<compile_context>
chip_gen: v5e
topology: v5e:2x2
jax: 0.10.0
libtpu: 0.0.40
codegen_flags: <defaults>
</compile_context>

<pallas_src>
import functools

import numpy as np

import jax
import jax.numpy as jnp
from jax.experimental import pallas as pl
from jax.experimental.pallas import tpu as pltpu


# ----------------------------- Pallas kernels ------------------------------

def _spatial_kernel(x_ref, wt1_ref, b1_ref, wt2_ref, b2_ref, mfc_ref, fcb_ref,
                    o_ref, *, nblk, height):
    """Fused DenseSpatialNet for one block of `nblk` images.

    x_ref:   [height*nblk, W*Cin]  bf16, rows ordered (h, image) h-major
    wt*_ref: [3, W*Cin_l, W*Cout_l] bf16 block-Toeplitz conv weights (per dy tap)
    b*_ref:  [1, W*Cout_l] f32 (bias tiled over the W lane blocks)
    mfc_ref: [W*64, 256] bf16   (global-avg-pool folded into the 64->256 FC)
    o_ref:   [nblk, 256] f32    (lane-dense output)
    """
    rows = height * nblk
    x = x_ref[...]                                     # bf16

    def conv3_rows(inp, wt_ref):
        # 3x3 'same' conv: W handled inside the block-Toeplitz weight,
        # H handled with 8-aligned row shifts + zero blocks (shift applied on
        # the narrower *input* slab, not the wider conv output).
        k = inp.shape[1]
        z = jnp.zeros((nblk, k), dtype=inp.dtype)
        up = jnp.concatenate([z, inp[:rows - nblk, :]], axis=0)   # uses row h-1
        dn = jnp.concatenate([inp[nblk:, :], z], axis=0)          # uses row h+1
        acc = jnp.dot(up, wt_ref[0], preferred_element_type=jnp.float32)
        acc = acc + jnp.dot(inp, wt_ref[1], preferred_element_type=jnp.float32)
        acc = acc + jnp.dot(dn, wt_ref[2], preferred_element_type=jnp.float32)
        return acc                                                # f32

    h1 = jnp.maximum(conv3_rows(x, wt1_ref) + b1_ref[...], 0.0)           # [rows, W*32]
    h2 = jnp.maximum(conv3_rows(h1.astype(jnp.bfloat16), wt2_ref)
                     + b2_ref[...], 0.0)                                  # [rows, W*64]

    # Global average pool over H (8-aligned row-block adds); mean over W and
    # the 64->256 FC are folded into mfc (already scaled by 1/(H*W)).
    pooled = h2[0:nblk, :]
    for i in range(1, height):
        pooled = pooled + h2[i * nblk:(i + 1) * nblk, :]
    feat = jnp.dot(pooled.astype(jnp.bfloat16), mfc_ref[...],
                   preferred_element_type=jnp.float32) + fcb_ref[...]
    o_ref[...] = jnp.maximum(feat, 0.0)


def _tcn_head_kernel(feat_ref, s_ref, *refs, channels, has_down):
    """Entire TCN (4 dilated-causal residual blocks) + dense head, fused.

    feat_ref: [B*T, 256] f32 spatial features (rows ordered (b, t) t-minor)
    s_ref:    [n_blocks, B*T, B*T] bf16 causal shift matrices (dilation 2**i)
    refs:     per-block (packed_weights, packed_biases) x n_blocks,
              then head (vflat, msk, rsum, cbat, fb1, w2, fb2), then out ref.
    All activations stay resident in VMEM ([48,256] ... [48,16]).
    """
    o_ref = refs[-1]
    wr = list(refs[:-1])

    x_f32 = feat_ref[...]                       # [B*T, 256] f32
    x = x_f32.astype(jnp.bfloat16)

    for i in range(len(has_down)):
        in_ch, out_ch = channels[i], channels[i + 1]
        s = s_ref[i]                            # [B*T, B*T] bf16 causal shift
        w_ref = wr.pop(0)                       # packed bf16 weights
        b_ref = wr.pop(0)                       # packed f32 biases [2|3, out_ch]

        off = 0
        c1w0 = w_ref[off:off + in_ch, :]; off += in_ch
        c1w1 = w_ref[off:off + in_ch, :]; off += in_ch
        c2w0 = w_ref[off:off + out_ch, :]; off += out_ch
        c2w1 = w_ref[off:off + out_ch, :]; off += out_ch

        # conv1 (k=2, dilated, causal) + ReLU: project channels first, then
        # apply the causal shift on the narrow out_ch activations.
        t0 = jnp.dot(x, c1w0, preferred_element_type=jnp.float32).astype(jnp.bfloat16)
        y = (jnp.dot(s, t0, preferred_element_type=jnp.float32)
             + jnp.dot(x, c1w1, preferred_element_type=jnp.float32)
             + b_ref[0])
        y = jnp.maximum(y, 0.0).astype(jnp.bfloat16)

        # conv2 (k=2, dilated, causal) + ReLU
        t1 = jnp.dot(y, c2w0, preferred_element_type=jnp.float32).astype(jnp.bfloat16)
        y2 = (jnp.dot(s, t1, preferred_element_type=jnp.float32)
              + jnp.dot(y, c2w1, preferred_element_type=jnp.float32)
              + b_ref[1])
        y2 = jnp.maximum(y2, 0.0)

        # residual (optional 1x1 downsample) + ReLU  (f32 epilogue)
        if has_down[i]:
            dw = w_ref[off:off + in_ch, :]
            res = jnp.dot(x, dw, preferred_element_type=jnp.float32) + b_ref[2]
        else:
            res = x_f32
        x_f32 = jnp.maximum(y2 + res, 0.0)
        x = x_f32.astype(jnp.bfloat16)

    # Dense head, fused.  fc1 acts on the channel-major flatten of [B, C, T];
    # realized via masked block-diagonal matmuls -> no in-kernel reshape.
    vflat, msk, rsum, cbat, fb1, w2, fb2 = wr

    gmat = jnp.dot(x, vflat[...], preferred_element_type=jnp.float32)   # [B*T, T*32]
    g = gmat.astype(jnp.bfloat16) * msk[...]                            # keep t-diag blocks
    z = jnp.dot(cbat[...], g, preferred_element_type=jnp.float32)       # [B, T*32]
    z = jnp.dot(z.astype(jnp.bfloat16), rsum[...],
                preferred_element_type=jnp.float32) + fb1[...]          # [B, 32]
    z = jnp.maximum(z, 0.0).astype(jnp.bfloat16)                        # Dropout -> identity
    o_ref[...] = jnp.dot(z, w2[...], preferred_element_type=jnp.float32) + fb2[...]


# --------------------------- pallas_call wrappers ---------------------------

def _spatial_call(pk, xs, *, n, nb, g):
    rows = xs.shape[1]
    wc_in = xs.shape[2]
    wco1 = pk["wt1"].shape[2]
    wco2 = pk["wt2"].shape[2]
    stc = pk["mfc"].shape[1]
    kernel = functools.partial(_spatial_kernel, nblk=nb, height=rows // nb)
    return pl.pallas_call(
        kernel,
        out_shape=jax.ShapeDtypeStruct((n, stc), jnp.float32),
        grid=(g,),
        in_specs=[
            pl.BlockSpec((None, rows, wc_in), lambda i: (i, 0, 0)),
            pl.BlockSpec((3, wc_in, wco1), lambda i: (0, 0, 0)),
            pl.BlockSpec((1, wco1), lambda i: (0, 0)),
            pl.BlockSpec((3, wco1, wco2), lambda i: (0, 0, 0)),
            pl.BlockSpec((1, wco2), lambda i: (0, 0)),
            pl.BlockSpec((wco2, stc), lambda i: (0, 0)),
            pl.BlockSpec((1, stc), lambda i: (0, 0)),
        ],
        out_specs=pl.BlockSpec((nb, stc), lambda i: (i, 0)),
        compiler_params=pltpu.CompilerParams(dimension_semantics=("parallel",)),
        cost_estimate=pk["spatial_cost"],
    )(xs, pk["wt1"], pk["b1"], pk["wt2"], pk["b2"], pk["mfc"], pk["fcb"])


def _tcn_head_call(pk, feat, *, n_batch):
    kernel = functools.partial(_tcn_head_kernel,
                               channels=pk["tcn_channels"],
                               has_down=pk["tcn_has_down"])
    return pl.pallas_call(
        kernel,
        out_shape=jax.ShapeDtypeStruct((n_batch, pk["n_outputs"]), jnp.float32),
        cost_estimate=pk["tcn_cost"],
    )(feat, pk["tcn_shift"], *pk["tcn_flat"])


# ------------------------------ parameters ----------------------------------

def _uniform(key, shape, fan_in):
    scale = 1.0 / jnp.sqrt(jnp.float32(fan_in))
    return jax.random.uniform(key, shape, minval=-scale, maxval=scale,
                              dtype=jnp.float32)


def init_params(key, n_inputs, n_outputs, n_timestep):
    st_channel = 256
    tcn_channels = [64, 32, 32, 16]
    keys = iter(jax.random.split(key, 64))
    p = {}

    # DenseSpatialNet (reconstructed): conv3x3(c->32), conv3x3(32->64), GAP, fc(64->256)
    p["dsn_conv1_w"] = _uniform(next(keys), (32, n_inputs, 3, 3), n_inputs * 9)
    p["dsn_conv1_b"] = _uniform(next(keys), (32,), n_inputs * 9)
    p["dsn_conv2_w"] = _uniform(next(keys), (64, 32, 3, 3), 32 * 9)
    p["dsn_conv2_b"] = _uniform(next(keys), (64,), 32 * 9)
    p["dsn_fc_w"] = _uniform(next(keys), (64, st_channel), 64)
    p["dsn_fc_b"] = _uniform(next(keys), (st_channel,), 64)

    # TemporalConvNet: 4 TemporalBlocks, kernel_size=2, dilation 2**i
    tcn = []
    in_ch = st_channel
    for out_ch in tcn_channels:
        blk = {
            "conv1_w": _uniform(next(keys), (out_ch, in_ch, 2), in_ch * 2),
            "conv1_b": _uniform(next(keys), (out_ch,), in_ch * 2),
            "conv2_w": _uniform(next(keys), (out_ch, out_ch, 2), out_ch * 2),
            "conv2_b": _uniform(next(keys), (out_ch,), out_ch * 2),
        }
        if in_ch != out_ch:
            blk["down_w"] = _uniform(next(keys), (out_ch, in_ch, 1), in_ch)
            blk["down_b"] = _uniform(next(keys), (out_ch,), in_ch)
        tcn.append(blk)
        in_ch = out_ch
    p["tcn"] = tcn

    # dense head: Linear(16*24, 32) -> ReLU -> Dropout(0.02)[identity] -> Linear(32, n_out)
    flat_dim = tcn_channels[-1] * 24
    assert n_timestep == 24, "dense head hard-codes tcn_channels[-1]*24"
    p["fc1_w"] = _uniform(next(keys), (flat_dim, 32), flat_dim)
    p["fc1_b"] = _uniform(next(keys), (32,), flat_dim)
    p["fc2_w"] = _uniform(next(keys), (32, n_outputs), 32)
    p["fc2_b"] = _uniform(next(keys), (n_outputs,), 32)
    return p


def _toeplitz_conv_weight(w_oihw, width):
    """[Cout,Cin,3,3] -> [3, width*Cin, width*Cout] block-Toeplitz weight.

    Tap dy contracts rows (jx, ci) of the input row-slab against lanes (j, co)
    of the output; 'same' padding along W is implicit (out-of-range jx absent).
    """
    co, ci, kh, kw = w_oihw.shape
    wt = np.zeros((kh, width * ci, width * co), np.float32)
    wn = np.asarray(w_oihw, np.float32)
    for dy in range(kh):
        for j in range(width):
            for dx in range(kw):
                jx = j + dx - 1
                if 0 <= jx < width:
                    wt[dy, jx * ci:(jx + 1) * ci, j * co:(j + 1) * co] = wn[:, :, dy, dx].T
    return wt


def pack_params(p, *, n_batch, n_timestep, h, w):
    """Pack PyTorch-layout params into kernel-ready layout (bf16 MXU operands,
    f32 biases, Toeplitz conv weights, folded GAP+FC, causal shift matrices,
    per-block packed TCN weight/bias slabs, masked head matrices).
    Batch/time sizes are baked into the shift/head matrices, so pack once per
    (B, T)."""
    n = n_batch * n_timestep
    c_in = p["dsn_conv1_w"].shape[1]
    c1 = p["dsn_conv1_w"].shape[0]
    c2 = p["dsn_conv2_w"].shape[0]
    stc = p["dsn_fc_w"].shape[1]
    n_outputs = int(p["fc2_w"].shape[1])
    hdim = int(p["fc1_b"].shape[0])

    pk = {"n_outputs": n_outputs}

    # ---- spatial stage ----
    pk["wt1"] = jnp.asarray(_toeplitz_conv_weight(np.asarray(p["dsn_conv1_w"]), w),
                            jnp.bfloat16)
    pk["b1"] = jnp.tile(jnp.asarray(p["dsn_conv1_b"], jnp.float32), w).reshape(1, -1)
    pk["wt2"] = jnp.asarray(_toeplitz_conv_weight(np.asarray(p["dsn_conv2_w"]), w),
                            jnp.bfloat16)
    pk["b2"] = jnp.tile(jnp.asarray(p["dsn_conv2_b"], jnp.float32), w).reshape(1, -1)
    pk["mfc"] = (jnp.tile(jnp.asarray(p["dsn_fc_w"], jnp.float32), (w, 1))
                 / float(h * w)).astype(jnp.bfloat16)
    pk["fcb"] = jnp.asarray(p["dsn_fc_b"], jnp.float32).reshape(1, -1)

    wc_in, wco1, wco2 = w * c_in, w * c1, w * c2
    rows = h * n
    sp_flops = 2 * rows * 3 * (wc_in * wco1 + wco1 * wco2) + 2 * n * wco2 * stc
    sp_bytes = (n * h * w * c_in * 2 + 3 * wc_in * wco1 * 2 + 3 * wco1 * wco2 * 2
                + wco2 * stc * 2 + (wco1 + wco2 + 2 * stc) * 4 + n * stc * 4)
    pk["spatial_cost"] = pl.CostEstimate(flops=int(sp_flops), transcendentals=0,
                                         bytes_accessed=int(sp_bytes))

    # ---- TCN + head ----
    bt = n
    shift, flat, has_down, channels = [], [], [], [stc]
    tcn_flops = 0
    in_ch = stc
    for i, blk in enumerate(p["tcn"]):
        d = 2 ** i
        out_ch = int(blk["conv1_w"].shape[0])
        hd = "down_w" in blk
        has_down.append(hd)
        channels.append(out_ch)

        shift.append(np.kron(np.eye(n_batch, dtype=np.float32),
                             np.eye(n_timestep, k=-d, dtype=np.float32)))

        # One bf16 weight slab + one f32 bias slab per block (static, 8-aligned
        # row offsets sliced inside the kernel).
        wparts = [np.asarray(blk["conv1_w"][:, :, 0], np.float32).T,   # [in, out]
                  np.asarray(blk["conv1_w"][:, :, 1], np.float32).T,
                  np.asarray(blk["conv2_w"][:, :, 0], np.float32).T,   # [out, out]
                  np.asarray(blk["conv2_w"][:, :, 1], np.float32).T]
        bparts = [np.asarray(blk["conv1_b"], np.float32),
                  np.asarray(blk["conv2_b"], np.float32)]
        if hd:
            wparts.append(np.asarray(blk["down_w"][:, :, 0], np.float32).T)
            bparts.append(np.asarray(blk["down_b"], np.float32))
        flat.append(jnp.asarray(np.concatenate(wparts, axis=0), jnp.bfloat16))
        flat.append(jnp.asarray(np.stack(bparts, axis=0), jnp.float32))

        tcn_flops += 2 * bt * (2 * in_ch * out_ch + bt * out_ch          # conv1
                               + 2 * out_ch * out_ch + bt * out_ch       # conv2
                               + (in_ch * out_ch if hd else 0))          # downsample
        in_ch = out_ch
    pk["tcn_shift"] = jnp.asarray(np.stack(shift), jnp.bfloat16)     # [blocks, BT, BT]
    pk["tcn_has_down"] = tuple(has_down)
    pk["tcn_channels"] = tuple(channels)

    c_end = in_ch
    # fc1 on channel-major flatten, via masked block-diagonal matmuls.
    vflat = np.asarray(p["fc1_w"], np.float32).reshape(c_end, n_timestep * hdim)
    msk = np.tile(np.kron(np.eye(n_timestep, dtype=np.float32),
                          np.ones((1, hdim), np.float32)), (n_batch, 1))
    rsum = np.tile(np.eye(hdim, dtype=np.float32), (n_timestep, 1))
    cbat = np.kron(np.eye(n_batch, dtype=np.float32),
                   np.ones((1, n_timestep), np.float32))
    flat += [jnp.asarray(vflat, jnp.bfloat16),
             jnp.asarray(msk, jnp.bfloat16),
             jnp.asarray(rsum, jnp.bfloat16),
             jnp.asarray(cbat, jnp.bfloat16),
             jnp.asarray(p["fc1_b"], jnp.float32).reshape(1, -1),
             jnp.asarray(p["fc2_w"], jnp.bfloat16),
             jnp.asarray(p["fc2_b"], jnp.float32).reshape(1, -1)]
    pk["tcn_flat"] = tuple(flat)

    tcn_flops += 2 * (bt * c_end * n_timestep * hdim
                      + n_batch * bt * n_timestep * hdim
                      + n_batch * n_timestep * hdim * hdim
                      + n_batch * hdim * n_outputs)
    tcn_bytes = (sum(int(a.size) * a.dtype.itemsize for a in flat)
                 + int(pk["tcn_shift"].size) * 2
                 + bt * stc * 4 + n_batch * n_outputs * 4)
    pk["tcn_cost"] = pl.CostEstimate(flops=int(tcn_flops), transcendentals=0,
                                     bytes_accessed=int(tcn_bytes))
    return pk


# ------------------------------- forward ------------------------------------

def spatial_temporal_convnet(pk, x):
    b, t, c, h, w = x.shape
    n = b * t
    assert n % 8 == 0, "b*t must be a multiple of 8 for the fused spatial kernel"
    assert pk["tcn_shift"].shape[1] == n, "packed params built for a different (B, T)"
    g = 2 if n % 16 == 0 else 1          # 2-way 'parallel' grid -> both v7x TCs
    nb = n // g

    # Layout plumbing (XLA glue on tiny tensors): NCHW -> rows=(H-major, image),
    # lanes=(W, C); images split into `g` contiguous blocks for the grid.
    xs = x.reshape(n, c, h, w).transpose(2, 0, 3, 1)          # [H, N, W, C]
    xs = xs.reshape(h, g, nb, w * c).transpose(1, 0, 2, 3)    # [g, H, nb, W*C]
    xs = xs.reshape(g, h * nb, w * c).astype(jnp.bfloat16)

    feat = _spatial_call(pk, xs, n=n, nb=nb, g=g)             # [N, 256] f32
    return _tcn_head_call(pk, feat, n_batch=b)                # [B, n_outputs]


# --------------------------------- main --------------------------------------

if __name__ == "__main__":
    B, T, C, H, W = 2, 24, 4, 8, 8      # T must be 24 (dense head uses 16*24)
    N_OUTPUTS = 3

    root = jax.random.PRNGKey(0)
    k_params, k_x = jax.random.split(root)
    params = init_params(k_params, n_inputs=C, n_outputs=N_OUTPUTS, n_timestep=T)
    packed = pack_params(params, n_batch=B, n_timestep=T, h=H, w=W)
    x = jax.random.normal(k_x, (B, T, C, H, W), dtype=jnp.float32)

    fwd = jax.jit(functools.partial(spatial_temporal_convnet, packed))
    out = fwd(x)
    jax.block_until_ready(out)
    assert out.shape == (B, N_OUTPUTS)
    assert jnp.all(jnp.isfinite(out))
    print("KERNEL_OK")
</pallas_src>

<mosaic_0001>
module attributes {stable_mosaic.version = 11 : i64} {
  func.func @_spatial_kernel(%arg0: i32, %arg1: memref<1x192x32xbf16, #tpu.memory_space<vmem>>, %arg2: memref<3x32x256xbf16, #tpu.memory_space<vmem>>, %arg3: memref<1x256xf32, #tpu.memory_space<vmem>>, %arg4: memref<3x256x512xbf16, #tpu.memory_space<vmem>>, %arg5: memref<1x512xf32, #tpu.memory_space<vmem>>, %arg6: memref<512x256xbf16, #tpu.memory_space<vmem>>, %arg7: memref<1x256xf32, #tpu.memory_space<vmem>>, %arg8: memref<24x256xf32, #tpu.memory_space<vmem>>) attributes {dimension_semantics = [#tpu.dimension_semantics<parallel>], iteration_bounds = array<i64: 2>, scalar_prefetch = 0 : i64, scratch_operands = 0 : i64, tpu.core_type = #tpu.core_type<tc>, window_params = [{transform_indices = @transform_0, window_bounds = array<i64: 1, 192, 32>}, {pipeline_mode = #tpu.pipeline_mode<synchronous>, transform_indices = @transform_1, window_bounds = array<i64: 3, 32, 256>}, {pipeline_mode = #tpu.pipeline_mode<synchronous>, transform_indices = @transform_2, window_bounds = array<i64: 1, 256>}, {pipeline_mode = #tpu.pipeline_mode<synchronous>, transform_indices = @transform_3, window_bounds = array<i64: 3, 256, 512>}, {pipeline_mode = #tpu.pipeline_mode<synchronous>, transform_indices = @transform_4, window_bounds = array<i64: 1, 512>}, {pipeline_mode = #tpu.pipeline_mode<synchronous>, transform_indices = @transform_5, window_bounds = array<i64: 512, 256>}, {pipeline_mode = #tpu.pipeline_mode<synchronous>, transform_indices = @transform_6, window_bounds = array<i64: 1, 256>}, {transform_indices = @transform_7, window_bounds = array<i64: 24, 256>}]} {
    %c0 = arith.constant 0 : index
    %c0_0 = arith.constant 0 : index
    %c0_1 = arith.constant 0 : index
    %0 = vector.load %arg1[%c0, %c0_0, %c0_1] : memref<1x192x32xbf16, #tpu.memory_space<vmem>>, vector<1x192x32xbf16>
    %1 = vector.shape_cast %0 : vector<1x192x32xbf16> to vector<192x32xbf16>
    %cst = arith.constant 0.000000e+00 : bf16
    %2 = vector.broadcast %cst : bf16 to vector<24x32xbf16>
    %3 = vector.extract_strided_slice %1 {offsets = [0, 0], sizes = [168, 32], strides = [1, 1]} : vector<192x32xbf16> to vector<168x32xbf16>
    %4 = tpu.concatenate %2, %3 in 0 : vector<24x32xbf16>, vector<168x32xbf16> -> vector<192x32xbf16>
    %5 = vector.extract_strided_slice %1 {offsets = [24, 0], sizes = [168, 32], strides = [1, 1]} : vector<192x32xbf16> to vector<168x32xbf16>
    %6 = tpu.concatenate %5, %2 in 0 : vector<168x32xbf16>, vector<24x32xbf16> -> vector<192x32xbf16>
    %c0_2 = arith.constant 0 : index
    %c0_3 = arith.constant 0 : index
    %c0_4 = arith.constant 0 : index
    %7 = vector.load %arg2[%c0_2, %c0_3, %c0_4] : memref<3x32x256xbf16, #tpu.memory_space<vmem>>, vector<1x32x256xbf16>
    %8 = vector.shape_cast %7 : vector<1x32x256xbf16> to vector<32x256xbf16>
    %cst_5 = arith.constant dense<0.000000e+00> : vector<192x256xf32>
    %9 = tpu.matmul %4, %8, %cst_5 {dimension_numbers = #tpu.dot_dimension_numbers<[1], [0], [0], [1], [0, 0, 1, 1], [], []>} : vector<192x32xbf16>, vector<32x256xbf16>, vector<192x256xf32> -> vector<192x256xf32>
    %c1 = arith.constant 1 : index
    %c0_6 = arith.constant 0 : index
    %c0_7 = arith.constant 0 : index
    %10 = vector.load %arg2[%c1, %c0_6, %c0_7] : memref<3x32x256xbf16, #tpu.memory_space<vmem>>, vector<1x32x256xbf16>
    %11 = vector.shape_cast %10 : vector<1x32x256xbf16> to vector<32x256xbf16>
    %cst_8 = arith.constant dense<0.000000e+00> : vector<192x256xf32>
    %12 = tpu.matmul %1, %11, %cst_8 {dimension_numbers = #tpu.dot_dimension_numbers<[1], [0], [0], [1], [0, 0, 1, 1], [], []>} : vector<192x32xbf16>, vector<32x256xbf16>, vector<192x256xf32> -> vector<192x256xf32>
    %13 = arith.addf %9, %12 : vector<192x256xf32>
    %c2 = arith.constant 2 : index
    %c0_9 = arith.constant 0 : index
    %c0_10 = arith.constant 0 : index
    %14 = vector.load %arg2[%c2, %c0_9, %c0_10] : memref<3x32x256xbf16, #tpu.memory_space<vmem>>, vector<1x32x256xbf16>
    %15 = vector.shape_cast %14 : vector<1x32x256xbf16> to vector<32x256xbf16>
    %cst_11 = arith.constant dense<0.000000e+00> : vector<192x256xf32>
    %16 = tpu.matmul %6, %15, %cst_11 {dimension_numbers = #tpu.dot_dimension_numbers<[1], [0], [0], [1], [0, 0, 1, 1], [], []>} : vector<192x32xbf16>, vector<32x256xbf16>, vector<192x256xf32> -> vector<192x256xf32>
    %17 = arith.addf %13, %16 : vector<192x256xf32>
    %c0_12 = arith.constant 0 : index
    %c0_13 = arith.constant 0 : index
    %18 = vector.load %arg3[%c0_12, %c0_13] : memref<1x256xf32, #tpu.memory_space<vmem>>, vector<1x256xf32>
    %19 = vector.broadcast %18 : vector<1x256xf32> to vector<192x256xf32>
    %20 = arith.addf %17, %19 : vector<192x256xf32>
    %cst_14 = arith.constant 0.000000e+00 : f32
    %21 = vector.broadcast %cst_14 : f32 to vector<192x256xf32>
    %22 = arith.maximumf %20, %21 : vector<192x256xf32>
    %23 = arith.truncf %22 : vector<192x256xf32> to vector<192x256xbf16>
    %cst_15 = arith.constant 0.000000e+00 : bf16
    %24 = vector.broadcast %cst_15 : bf16 to vector<24x256xbf16>
    %25 = vector.extract_strided_slice %23 {offsets = [0, 0], sizes = [168, 256], strides = [1, 1]} : vector<192x256xbf16> to vector<168x256xbf16>
    %26 = tpu.concatenate %24, %25 in 0 : vector<24x256xbf16>, vector<168x256xbf16> -> vector<192x256xbf16>
    %27 = vector.extract_strided_slice %23 {offsets = [24, 0], sizes = [168, 256], strides = [1, 1]} : vector<192x256xbf16> to vector<168x256xbf16>
    %28 = tpu.concatenate %27, %24 in 0 : vector<168x256xbf16>, vector<24x256xbf16> -> vector<192x256xbf16>
    %c0_16 = arith.constant 0 : index
    %c0_17 = arith.constant 0 : index
    %c0_18 = arith.constant 0 : index
    %29 = vector.load %arg4[%c0_16, %c0_17, %c0_18] : memref<3x256x512xbf16, #tpu.memory_space<vmem>>, vector<1x256x512xbf16>
    %30 = vector.shape_cast %29 : vector<1x256x512xbf16> to vector<256x512xbf16>
    %cst_19 = arith.constant dense<0.000000e+00> : vector<192x512xf32>
    %31 = tpu.matmul %26, %30, %cst_19 {dimension_numbers = #tpu.dot_dimension_numbers<[1], [0], [0], [1], [0, 0, 1, 1], [], []>} : vector<192x256xbf16>, vector<256x512xbf16>, vector<192x512xf32> -> vector<192x512xf32>
    %c1_20 = arith.constant 1 : index
    %c0_21 = arith.constant 0 : index
    %c0_22 = arith.constant 0 : index
    %32 = vector.load %arg4[%c1_20, %c0_21, %c0_22] : memref<3x256x512xbf16, #tpu.memory_space<vmem>>, vector<1x256x512xbf16>
    %33 = vector.shape_cast %32 : vector<1x256x512xbf16> to vector<256x512xbf16>
    %cst_23 = arith.constant dense<0.000000e+00> : vector<192x512xf32>
    %34 = tpu.matmul %23, %33, %cst_23 {dimension_numbers = #tpu.dot_dimension_numbers<[1], [0], [0], [1], [0, 0, 1, 1], [], []>} : vector<192x256xbf16>, vector<256x512xbf16>, vector<192x512xf32> -> vector<192x512xf32>
    %35 = arith.addf %31, %34 : vector<192x512xf32>
    %c2_24 = arith.constant 2 : index
    %c0_25 = arith.constant 0 : index
    %c0_26 = arith.constant 0 : index
    %36 = vector.load %arg4[%c2_24, %c0_25, %c0_26] : memref<3x256x512xbf16, #tpu.memory_space<vmem>>, vector<1x256x512xbf16>
    %37 = vector.shape_cast %36 : vector<1x256x512xbf16> to vector<256x512xbf16>
    %cst_27 = arith.constant dense<0.000000e+00> : vector<192x512xf32>
    %38 = tpu.matmul %28, %37, %cst_27 {dimension_numbers = #tpu.dot_dimension_numbers<[1], [0], [0], [1], [0, 0, 1, 1], [], []>} : vector<192x256xbf16>, vector<256x512xbf16>, vector<192x512xf32> -> vector<192x512xf32>
    %39 = arith.addf %35, %38 : vector<192x512xf32>
    %c0_28 = arith.constant 0 : index
    %c0_29 = arith.constant 0 : index
    %40 = vector.load %arg5[%c0_28, %c0_29] : memref<1x512xf32, #tpu.memory_space<vmem>>, vector<1x512xf32>
    %41 = vector.broadcast %40 : vector<1x512xf32> to vector<192x512xf32>
    %42 = arith.addf %39, %41 : vector<192x512xf32>
    %cst_30 = arith.constant 0.000000e+00 : f32
    %43 = vector.broadcast %cst_30 : f32 to vector<192x512xf32>
    %44 = arith.maximumf %42, %43 : vector<192x512xf32>
    %45 = vector.extract_strided_slice %44 {offsets = [0, 0], sizes = [24, 512], strides = [1, 1]} : vector<192x512xf32> to vector<24x512xf32>
    %46 = vector.extract_strided_slice %44 {offsets = [24, 0], sizes = [24, 512], strides = [1, 1]} : vector<192x512xf32> to vector<24x512xf32>
    %47 = arith.addf %45, %46 : vector<24x512xf32>
    %48 = vector.extract_strided_slice %44 {offsets = [48, 0], sizes = [24, 512], strides = [1, 1]} : vector<192x512xf32> to vector<24x512xf32>
    %49 = arith.addf %47, %48 : vector<24x512xf32>
    %50 = vector.extract_strided_slice %44 {offsets = [72, 0], sizes = [24, 512], strides = [1, 1]} : vector<192x512xf32> to vector<24x512xf32>
    %51 = arith.addf %49, %50 : vector<24x512xf32>
    %52 = vector.extract_strided_slice %44 {offsets = [96, 0], sizes = [24, 512], strides = [1, 1]} : vector<192x512xf32> to vector<24x512xf32>
    %53 = arith.addf %51, %52 : vector<24x512xf32>
    %54 = vector.extract_strided_slice %44 {offsets = [120, 0], sizes = [24, 512], strides = [1, 1]} : vector<192x512xf32> to vector<24x512xf32>
    %55 = arith.addf %53, %54 : vector<24x512xf32>
    %56 = vector.extract_strided_slice %44 {offsets = [144, 0], sizes = [24, 512], strides = [1, 1]} : vector<192x512xf32> to vector<24x512xf32>
    %57 = arith.addf %55, %56 : vector<24x512xf32>
    %58 = vector.extract_strided_slice %44 {offsets = [168, 0], sizes = [24, 512], strides = [1, 1]} : vector<192x512xf32> to vector<24x512xf32>
    %59 = arith.addf %57, %58 : vector<24x512xf32>
    %60 = arith.truncf %59 : vector<24x512xf32> to vector<24x512xbf16>
    %c0_31 = arith.constant 0 : index
    %c0_32 = arith.constant 0 : index
    %61 = vector.load %arg6[%c0_31, %c0_32] : memref<512x256xbf16, #tpu.memory_space<vmem>>, vector<512x256xbf16>
    %cst_33 = arith.constant dense<0.000000e+00> : vector<24x256xf32>
    %62 = tpu.matmul %60, %61, %cst_33 {dimension_numbers = #tpu.dot_dimension_numbers<[1], [0], [0], [1], [0, 0, 1, 1], [], []>} : vector<24x512xbf16>, vector<512x256xbf16>, vector<24x256xf32> -> vector<24x256xf32>
    %c0_34 = arith.constant 0 : index
    %c0_35 = arith.constant 0 : index
    %63 = vector.load %arg7[%c0_34, %c0_35] : memref<1x256xf32, #tpu.memory_space<vmem>>, vector<1x256xf32>
    %64 = vector.broadcast %63 : vector<1x256xf32> to vector<24x256xf32>
    %65 = arith.addf %62, %64 : vector<24x256xf32>
    %cst_36 = arith.constant 0.000000e+00 : f32
    %66 = vector.broadcast %cst_36 : f32 to vector<24x256xf32>
    %67 = arith.maximumf %65, %66 : vector<24x256xf32>
    %c0_37 = arith.constant 0 : index
    %c0_38 = arith.constant 0 : index
    %68 = vector.load %arg8[%c0_37, %c0_38] : memref<24x256xf32, #tpu.memory_space<vmem>>, vector<24x256xf32>
    tpu.vector_store %arg8[%c0_37, %c0_38], %67 {strides = array<i32>} : memref<24x256xf32, #tpu.memory_space<vmem>>, vector<24x256xf32>,
    return
  }
  func.func @transform_0(%arg0: i32) -> (i32, i32, i32) {
    %c0_i32 = arith.constant 0 : i32
    %c0_i32_0 = arith.constant 0 : i32
    %c0_i32_1 = arith.constant 0 : i32
    return %arg0, %c0_i32, %c0_i32_0 : i32, i32, i32
  }
  func.func @transform_1(%arg0: i32) -> (i32, i32, i32) {
    %c0_i32 = arith.constant 0 : i32
    %c0_i32_0 = arith.constant 0 : i32
    %c0_i32_1 = arith.constant 0 : i32
    %c0_i32_2 = arith.constant 0 : i32
    return %c0_i32, %c0_i32_0, %c0_i32_1 : i32, i32, i32
  }
  func.func @transform_2(%arg0: i32) -> (i32, i32) {
    %c0_i32 = arith.constant 0 : i32
    %c0_i32_0 = arith.constant 0 : i32
    %c0_i32_1 = arith.constant 0 : i32
    return %c0_i32, %c0_i32_0 : i32, i32
  }
  func.func @transform_3(%arg0: i32) -> (i32, i32, i32) {
    %c0_i32 = arith.constant 0 : i32
    %c0_i32_0 = arith.constant 0 : i32
    %c0_i32_1 = arith.constant 0 : i32
    %c0_i32_2 = arith.constant 0 : i32
    return %c0_i32, %c0_i32_0, %c0_i32_1 : i32, i32, i32
  }
  func.func @transform_4(%arg0: i32) -> (i32, i32) {
    %c0_i32 = arith.constant 0 : i32
    %c0_i32_0 = arith.constant 0 : i32
    %c0_i32_1 = arith.constant 0 : i32
    return %c0_i32, %c0_i32_0 : i32, i32
  }
  func.func @transform_5(%arg0: i32) -> (i32, i32) {
    %c0_i32 = arith.constant 0 : i32
    %c0_i32_0 = arith.constant 0 : i32
    %c0_i32_1 = arith.constant 0 : i32
    return %c0_i32, %c0_i32_0 : i32, i32
  }
  func.func @transform_6(%arg0: i32) -> (i32, i32) {
    %c0_i32 = arith.constant 0 : i32
    %c0_i32_0 = arith.constant 0 : i32
    %c0_i32_1 = arith.constant 0 : i32
    return %c0_i32, %c0_i32_0 : i32, i32
  }
  func.func @transform_7(%arg0: i32) -> (i32, i32) {
    %c0_i32 = arith.constant 0 : i32
    %c0_i32_0 = arith.constant 0 : i32
    return %arg0, %c0_i32 : i32, i32
  }
}

module attributes {stable_mosaic.version = 11 : i64} {
  func.func @_tcn_head_kernel(%arg0: memref<48x256xf32, #tpu.memory_space<vmem>>, %arg1: memref<4x48x48xbf16, #tpu.memory_space<vmem>>, %arg2: memref<896x64xbf16, #tpu.memory_space<vmem>>, %arg3: memref<3x64xf32, #tpu.memory_space<vmem>>, %arg4: memref<256x32xbf16, #tpu.memory_space<vmem>>, %arg5: memref<3x32xf32, #tpu.memory_space<vmem>>, %arg6: memref<128x32xbf16, #tpu.memory_space<vmem>>, %arg7: memref<2x32xf32, #tpu.memory_space<vmem>>, %arg8: memref<128x16xbf16, #tpu.memory_space<vmem>>, %arg9: memref<3x16xf32, #tpu.memory_space<vmem>>, %arg10: memref<16x768xbf16, #tpu.memory_space<vmem>>, %arg11: memref<48x768xbf16, #tpu.memory_space<vmem>>, %arg12: memref<768x32xbf16, #tpu.memory_space<vmem>>, %arg13: memref<2x48xbf16, #tpu.memory_space<vmem>>, %arg14: memref<1x32xf32, #tpu.memory_space<vmem>>, %arg15: memref<32x3xbf16, #tpu.memory_space<vmem>>, %arg16: memref<1x3xf32, #tpu.memory_space<vmem>>, %arg17: memref<2x3xf32, #tpu.memory_space<vmem>>) attributes {dimension_semantics = [], scalar_prefetch = 0 : i64, scratch_operands = 0 : i64, tpu.core_type = #tpu.core_type<tc>} {
    %c0 = arith.constant 0 : index
    %c0_0 = arith.constant 0 : index
    %0 = vector.load %arg0[%c0, %c0_0] : memref<48x256xf32, #tpu.memory_space<vmem>>, vector<48x256xf32>
    %1 = arith.truncf %0 : vector<48x256xf32> to vector<48x256xbf16>
    %c0_1 = arith.constant 0 : index
    %c0_2 = arith.constant 0 : index
    %c0_3 = arith.constant 0 : index
    %2 = vector.load %arg1[%c0_1, %c0_2, %c0_3] : memref<4x48x48xbf16, #tpu.memory_space<vmem>>, vector<1x48x48xbf16>
    %3 = vector.shape_cast %2 : vector<1x48x48xbf16> to vector<48x48xbf16>
    %c0_4 = arith.constant 0 : index
    %c0_5 = arith.constant 0 : index
    %4 = vector.load %arg2[%c0_4, %c0_5] : memref<896x64xbf16, #tpu.memory_space<vmem>>, vector<256x64xbf16>
    %c256 = arith.constant 256 : index
    %c0_6 = arith.constant 0 : index
    %5 = vector.load %arg2[%c256, %c0_6] : memref<896x64xbf16, #tpu.memory_space<vmem>>, vector<256x64xbf16>
    %c512 = arith.constant 512 : index
    %c0_7 = arith.constant 0 : index
    %6 = vector.load %arg2[%c512, %c0_7] : memref<896x64xbf16, #tpu.memory_space<vmem>>, vector<64x64xbf16>
    %c576 = arith.constant 576 : index
    %c0_8 = arith.constant 0 : index
    %7 = vector.load %arg2[%c576, %c0_8] : memref<896x64xbf16, #tpu.memory_space<vmem>>, vector<64x64xbf16>
    %cst = arith.constant dense<0.000000e+00> : vector<48x64xf32>
    %8 = tpu.matmul %1, %4, %cst {dimension_numbers = #tpu.dot_dimension_numbers<[1], [0], [0], [1], [0, 0, 1, 1], [], []>} : vector<48x256xbf16>, vector<256x64xbf16>, vector<48x64xf32> -> vector<48x64xf32>
    %9 = arith.truncf %8 : vector<48x64xf32> to vector<48x64xbf16>
    %cst_9 = arith.constant dense<0.000000e+00> : vector<48x64xf32>
    %10 = tpu.matmul %3, %9, %cst_9 {dimension_numbers = #tpu.dot_dimension_numbers<[1], [0], [0], [1], [0, 0, 1, 1], [], []>} : vector<48x48xbf16>, vector<48x64xbf16>, vector<48x64xf32> -> vector<48x64xf32>
    %cst_10 = arith.constant dense<0.000000e+00> : vector<48x64xf32>
    %11 = tpu.matmul %1, %5, %cst_10 {dimension_numbers = #tpu.dot_dimension_numbers<[1], [0], [0], [1], [0, 0, 1, 1], [], []>} : vector<48x256xbf16>, vector<256x64xbf16>, vector<48x64xf32> -> vector<48x64xf32>
    %12 = arith.addf %10, %11 : vector<48x64xf32>
    %c0_11 = arith.constant 0 : index
    %c0_12 = arith.constant 0 : index
    %13 = vector.load %arg3[%c0_11, %c0_12] : memref<3x64xf32, #tpu.memory_space<vmem>>, vector<1x64xf32>
    %14 = vector.shape_cast %13 : vector<1x64xf32> to vector<64xf32>
    %15 = vector.shape_cast %14 : vector<64xf32> to vector<1x64xf32>
    %16 = vector.broadcast %15 : vector<1x64xf32> to vector<48x64xf32>
    %17 = arith.addf %12, %16 : vector<48x64xf32>
    %cst_13 = arith.constant 0.000000e+00 : f32
    %18 = vector.broadcast %cst_13 : f32 to vector<48x64xf32>
    %19 = arith.maximumf %17, %18 : vector<48x64xf32>
    %20 = arith.truncf %19 : vector<48x64xf32> to vector<48x64xbf16>
    %cst_14 = arith.constant dense<0.000000e+00> : vector<48x64xf32>
    %21 = tpu.matmul %20, %6, %cst_14 {dimension_numbers = #tpu.dot_dimension_numbers<[1], [0], [0], [1], [0, 0, 1, 1], [], []>} : vector<48x64xbf16>, vector<64x64xbf16>, vector<48x64xf32> -> vector<48x64xf32>
    %22 = arith.truncf %21 : vector<48x64xf32> to vector<48x64xbf16>
    %cst_15 = arith.constant dense<0.000000e+00> : vector<48x64xf32>
    %23 = tpu.matmul %3, %22, %cst_15 {dimension_numbers = #tpu.dot_dimension_numbers<[1], [0], [0], [1], [0, 0, 1, 1], [], []>} : vector<48x48xbf16>, vector<48x64xbf16>, vector<48x64xf32> -> vector<48x64xf32>
    %cst_16 = arith.constant dense<0.000000e+00> : vector<48x64xf32>
    %24 = tpu.matmul %20, %7, %cst_16 {dimension_numbers = #tpu.dot_dimension_numbers<[1], [0], [0], [1], [0, 0, 1, 1], [], []>} : vector<48x64xbf16>, vector<64x64xbf16>, vector<48x64xf32> -> vector<48x64xf32>
    %25 = arith.addf %23, %24 : vector<48x64xf32>
    %c1 = arith.constant 1 : index
    %c0_17 = arith.constant 0 : index
    %26 = vector.load %arg3[%c1, %c0_17] : memref<3x64xf32, #tpu.memory_space<vmem>>, vector<1x64xf32>
    %27 = vector.shape_cast %26 : vector<1x64xf32> to vector<64xf32>
    %28 = vector.shape_cast %27 : vector<64xf32> to vector<1x64xf32>
    %29 = vector.broadcast %28 : vector<1x64xf32> to vector<48x64xf32>
    %30 = arith.addf %25, %29 : vector<48x64xf32>
    %cst_18 = arith.constant 0.000000e+00 : f32
    %31 = vector.broadcast %cst_18 : f32 to vector<48x64xf32>
    %32 = arith.maximumf %30, %31 : vector<48x64xf32>
    %c640 = arith.constant 640 : index
    %c0_19 = arith.constant 0 : index
    %33 = vector.load %arg2[%c640, %c0_19] : memref<896x64xbf16, #tpu.memory_space<vmem>>, vector<256x64xbf16>
    %cst_20 = arith.constant dense<0.000000e+00> : vector<48x64xf32>
    %34 = tpu.matmul %1, %33, %cst_20 {dimension_numbers = #tpu.dot_dimension_numbers<[1], [0], [0], [1], [0, 0, 1, 1], [], []>} : vector<48x256xbf16>, vector<256x64xbf16>, vector<48x64xf32> -> vector<48x64xf32>
    %c2 = arith.constant 2 : index
    %c0_21 = arith.constant 0 : index
    %35 = vector.load %arg3[%c2, %c0_21] : memref<3x64xf32, #tpu.memory_space<vmem>>, vector<1x64xf32>
    %36 = vector.shape_cast %35 : vector<1x64xf32> to vector<64xf32>
    %37 = vector.shape_cast %36 : vector<64xf32> to vector<1x64xf32>
    %38 = vector.broadcast %37 : vector<1x64xf32> to vector<48x64xf32>
    %39 = arith.addf %34, %38 : vector<48x64xf32>
    %40 = arith.addf %32, %39 : vector<48x64xf32>
    %cst_22 = arith.constant 0.000000e+00 : f32
    %41 = vector.broadcast %cst_22 : f32 to vector<48x64xf32>
    %42 = arith.maximumf %40, %41 : vector<48x64xf32>
    %43 = arith.truncf %42 : vector<48x64xf32> to vector<48x64xbf16>
    %c1_23 = arith.constant 1 : index
    %c0_24 = arith.constant 0 : index
    %c0_25 = arith.constant 0 : index
    %44 = vector.load %arg1[%c1_23, %c0_24, %c0_25] : memref<4x48x48xbf16, #tpu.memory_space<vmem>>, vector<1x48x48xbf16>
    %45 = vector.shape_cast %44 : vector<1x48x48xbf16> to vector<48x48xbf16>
    %c0_26 = arith.constant 0 : index
    %c0_27 = arith.constant 0 : index
    %46 = vector.load %arg4[%c0_26, %c0_27] : memref<256x32xbf16, #tpu.memory_space<vmem>>, vector<64x32xbf16>
    %c64 = arith.constant 64 : index
    %c0_28 = arith.constant 0 : index
    %47 = vector.load %arg4[%c64, %c0_28] : memref<256x32xbf16, #tpu.memory_space<vmem>>, vector<64x32xbf16>
    %c128 = arith.constant 128 : index
    %c0_29 = arith.constant 0 : index
    %48 = vector.load %arg4[%c128, %c0_29] : memref<256x32xbf16, #tpu.memory_space<vmem>>, vector<32x32xbf16>
    %c160 = arith.constant 160 : index
    %c0_30 = arith.constant 0 : index
    %49 = vector.load %arg4[%c160, %c0_30] : memref<256x32xbf16, #tpu.memory_space<vmem>>, vector<32x32xbf16>
    %cst_31 = arith.constant dense<0.000000e+00> : vector<48x32xf32>
    %50 = tpu.matmul %43, %46, %cst_31 {dimension_numbers = #tpu.dot_dimension_numbers<[1], [0], [0], [1], [0, 0, 1, 1], [], []>} : vector<48x64xbf16>, vector<64x32xbf16>, vector<48x32xf32> -> vector<48x32xf32>
    %51 = arith.truncf %50 : vector<48x32xf32> to vector<48x32xbf16>
    %cst_32 = arith.constant dense<0.000000e+00> : vector<48x32xf32>
    %52 = tpu.matmul %45, %51, %cst_32 {dimension_numbers = #tpu.dot_dimension_numbers<[1], [0], [0], [1], [0, 0, 1, 1], [], []>} : vector<48x48xbf16>, vector<48x32xbf16>, vector<48x32xf32> -> vector<48x32xf32>
    %cst_33 = arith.constant dense<0.000000e+00> : vector<48x32xf32>
    %53 = tpu.matmul %43, %47, %cst_33 {dimension_numbers = #tpu.dot_dimension_numbers<[1], [0], [0], [1], [0, 0, 1, 1], [], []>} : vector<48x64xbf16>, vector<64x32xbf16>, vector<48x32xf32> -> vector<48x32xf32>
    %54 = arith.addf %52, %53 : vector<48x32xf32>
    %c0_34 = arith.constant 0 : index
    %c0_35 = arith.constant 0 : index
    %55 = vector.load %arg5[%c0_34, %c0_35] : memref<3x32xf32, #tpu.memory_space<vmem>>, vector<1x32xf32>
    %56 = vector.shape_cast %55 : vector<1x32xf32> to vector<32xf32>
    %57 = vector.shape_cast %56 : vector<32xf32> to vector<1x32xf32>
    %58 = vector.broadcast %57 : vector<1x32xf32> to vector<48x32xf32>
    %59 = arith.addf %54, %58 : vector<48x32xf32>
    %cst_36 = arith.constant 0.000000e+00 : f32
    %60 = vector.broadcast %cst_36 : f32 to vector<48x32xf32>
    %61 = arith.maximumf %59, %60 : vector<48x32xf32>
    %62 = arith.truncf %61 : vector<48x32xf32> to vector<48x32xbf16>
    %cst_37 = arith.constant dense<0.000000e+00> : vector<48x32xf32>
    %63 = tpu.matmul %62, %48, %cst_37 {dimension_numbers = #tpu.dot_dimension_numbers<[1], [0], [0], [1], [0, 0, 1, 1], [], []>} : vector<48x32xbf16>, vector<32x32xbf16>, vector<48x32xf32> -> vector<48x32xf32>
    %64 = arith.truncf %63 : vector<48x32xf32> to vector<48x32xbf16>
    %cst_38 = arith.constant dense<0.000000e+00> : vector<48x32xf32>
    %65 = tpu.matmul %45, %64, %cst_38 {dimension_numbers = #tpu.dot_dimension_numbers<[1], [0], [0], [1], [0, 0, 1, 1], [], []>} : vector<48x48xbf16>, vector<48x32xbf16>, vector<48x32xf32> -> vector<48x32xf32>
    %cst_39 = arith.constant dense<0.000000e+00> : vector<48x32xf32>
    %66 = tpu.matmul %62, %49, %cst_39 {dimension_numbers = #tpu.dot_dimension_numbers<[1], [0], [0], [1], [0, 0, 1, 1], [], []>} : vector<48x32xbf16>, vector<32x32xbf16>, vector<48x32xf32> -> vector<48x32xf32>
    %67 = arith.addf %65, %66 : vector<48x32xf32>
    %c1_40 = arith.constant 1 : index
    %c0_41 = arith.constant 0 : index
    %68 = vector.load %arg5[%c1_40, %c0_41] : memref<3x32xf32, #tpu.memory_space<vmem>>, vector<1x32xf32>
    %69 = vector.shape_cast %68 : vector<1x32xf32> to vector<32xf32>
    %70 = vector.shape_cast %69 : vector<32xf32> to vector<1x32xf32>
    %71 = vector.broadcast %70 : vector<1x32xf32> to vector<48x32xf32>
    %72 = arith.addf %67, %71 : vector<48x32xf32>
    %cst_42 = arith.constant 0.000000e+00 : f32
    %73 = vector.broadcast %cst_42 : f32 to vector<48x32xf32>
    %74 = arith.maximumf %72, %73 : vector<48x32xf32>
    %c192 = arith.constant 192 : index
    %c0_43 = arith.constant 0 : index
    %75 = vector.load %arg4[%c192, %c0_43] : memref<256x32xbf16, #tpu.memory_space<vmem>>, vector<64x32xbf16>
    %cst_44 = arith.constant dense<0.000000e+00> : vector<48x32xf32>
    %76 = tpu.matmul %43, %75, %cst_44 {dimension_numbers = #tpu.dot_dimension_numbers<[1], [0], [0], [1], [0, 0, 1, 1], [], []>} : vector<48x64xbf16>, vector<64x32xbf16>, vector<48x32xf32> -> vector<48x32xf32>
    %c2_45 = arith.constant 2 : index
    %c0_46 = arith.constant 0 : index
    %77 = vector.load %arg5[%c2_45, %c0_46] : memref<3x32xf32, #tpu.memory_space<vmem>>, vector<1x32xf32>
    %78 = vector.shape_cast %77 : vector<1x32xf32> to vector<32xf32>
    %79 = vector.shape_cast %78 : vector<32xf32> to vector<1x32xf32>
    %80 = vector.broadcast %79 : vector<1x32xf32> to vector<48x32xf32>
    %81 = arith.addf %76, %80 : vector<48x32xf32>
    %82 = arith.addf %74, %81 : vector<48x32xf32>
    %cst_47 = arith.constant 0.000000e+00 : f32
    %83 = vector.broadcast %cst_47 : f32 to vector<48x32xf32>
    %84 = arith.maximumf %82, %83 : vector<48x32xf32>
    %85 = arith.truncf %84 : vector<48x32xf32> to vector<48x32xbf16>
    %c2_48 = arith.constant 2 : index
    %c0_49 = arith.constant 0 : index
    %c0_50 = arith.constant 0 : index
    %86 = vector.load %arg1[%c2_48, %c0_49, %c0_50] : memref<4x48x48xbf16, #tpu.memory_space<vmem>>, vector<1x48x48xbf16>
    %87 = vector.shape_cast %86 : vector<1x48x48xbf16> to vector<48x48xbf16>
    %c0_51 = arith.constant 0 : index
    %c0_52 = arith.constant 0 : index
    %88 = vector.load %arg6[%c0_51, %c0_52] : memref<128x32xbf16, #tpu.memory_space<vmem>>, vector<32x32xbf16>
    %c32 = arith.constant 32 : index
    %c0_53 = arith.constant 0 : index
    %89 = vector.load %arg6[%c32, %c0_53] : memref<128x32xbf16, #tpu.memory_space<vmem>>, vector<32x32xbf16>
    %c64_54 = arith.constant 64 : index
    %c0_55 = arith.constant 0 : index
    %90 = vector.load %arg6[%c64_54, %c0_55] : memref<128x32xbf16, #tpu.memory_space<vmem>>, vector<32x32xbf16>
    %c96 = arith.constant 96 : index
    %c0_56 = arith.constant 0 : index
    %91 = vector.load %arg6[%c96, %c0_56] : memref<128x32xbf16, #tpu.memory_space<vmem>>, vector<32x32xbf16>
    %cst_57 = arith.constant dense<0.000000e+00> : vector<48x32xf32>
    %92 = tpu.matmul %85, %88, %cst_57 {dimension_numbers = #tpu.dot_dimension_numbers<[1], [0], [0], [1], [0, 0, 1, 1], [], []>} : vector<48x32xbf16>, vector<32x32xbf16>, vector<48x32xf32> -> vector<48x32xf32>
    %93 = arith.truncf %92 : vector<48x32xf32> to vector<48x32xbf16>
    %cst_58 = arith.constant dense<0.000000e+00> : vector<48x32xf32>
    %94 = tpu.matmul %87, %93, %cst_58 {dimension_numbers = #tpu.dot_dimension_numbers<[1], [0], [0], [1], [0, 0, 1, 1], [], []>} : vector<48x48xbf16>, vector<48x32xbf16>, vector<48x32xf32> -> vector<48x32xf32>
    %cst_59 = arith.constant dense<0.000000e+00> : vector<48x32xf32>
    %95 = tpu.matmul %85, %89, %cst_59 {dimension_numbers = #tpu.dot_dimension_numbers<[1], [0], [0], [1], [0, 0, 1, 1], [], []>} : vector<48x32xbf16>, vector<32x32xbf16>, vector<48x32xf32> -> vector<48x32xf32>
    %96 = arith.addf %94, %95 : vector<48x32xf32>
    %c0_60 = arith.constant 0 : index
    %c0_61 = arith.constant 0 : index
    %97 = vector.load %arg7[%c0_60, %c0_61] : memref<2x32xf32, #tpu.memory_space<vmem>>, vector<1x32xf32>
    %98 = vector.shape_cast %97 : vector<1x32xf32> to vector<32xf32>
    %99 = vector.shape_cast %98 : vector<32xf32> to vector<1x32xf32>
    %100 = vector.broadcast %99 : vector<1x32xf32> to vector<48x32xf32>
    %101 = arith.addf %96, %100 : vector<48x32xf32>
    %cst_62 = arith.constant 0.000000e+00 : f32
    %102 = vector.broadcast %cst_62 : f32 to vector<48x32xf32>
    %103 = arith.maximumf %101, %102 : vector<48x32xf32>
    %104 = arith.truncf %103 : vector<48x32xf32> to vector<48x32xbf16>
    %cst_63 = arith.constant dense<0.000000e+00> : vector<48x32xf32>
    %105 = tpu.matmul %104, %90, %cst_63 {dimension_numbers = #tpu.dot_dimension_numbers<[1], [0], [0], [1], [0, 0, 1, 1], [], []>} : vector<48x32xbf16>, vector<32x32xbf16>, vector<48x32xf32> -> vector<48x32xf32>
    %106 = arith.truncf %105 : vector<48x32xf32> to vector<48x32xbf16>
    %cst_64 = arith.constant dense<0.000000e+00> : vector<48x32xf32>
    %107 = tpu.matmul %87, %106, %cst_64 {dimension_numbers = #tpu.dot_dimension_numbers<[1], [0], [0], [1], [0, 0, 1, 1], [], []>} : vector<48x48xbf16>, vector<48x32xbf16>, vector<48x32xf32> -> vector<48x32xf32>
    %cst_65 = arith.constant dense<0.000000e+00> : vector<48x32xf32>
    %108 = tpu.matmul %104, %91, %cst_65 {dimension_numbers = #tpu.dot_dimension_numbers<[1], [0], [0], [1], [0, 0, 1, 1], [], []>} : vector<48x32xbf16>, vector<32x32xbf16>, vector<48x32xf32> -> vector<48x32xf32>
    %109 = arith.addf %107, %108 : vector<48x32xf32>
    %c1_66 = arith.constant 1 : index
    %c0_67 = arith.constant 0 : index
    %110 = vector.load %arg7[%c1_66, %c0_67] : memref<2x32xf32, #tpu.memory_space<vmem>>, vector<1x32xf32>
    %111 = vector.shape_cast %110 : vector<1x32xf32> to vector<32xf32>
    %112 = vector.shape_cast %111 : vector<32xf32> to vector<1x32xf32>
    %113 = vector.broadcast %112 : vector<1x32xf32> to vector<48x32xf32>
    %114 = arith.addf %109, %113 : vector<48x32xf32>
    %cst_68 = arith.constant 0.000000e+00 : f32
    %115 = vector.broadcast %cst_68 : f32 to vector<48x32xf32>
    %116 = arith.maximumf %114, %115 : vector<48x32xf32>
    %117 = arith.addf %116, %84 : vector<48x32xf32>
    %cst_69 = arith.constant 0.000000e+00 : f32
    %118 = vector.broadcast %cst_69 : f32 to vector<48x32xf32>
    %119 = arith.maximumf %117, %118 : vector<48x32xf32>
    %120 = arith.truncf %119 : vector<48x32xf32> to vector<48x32xbf16>
    %c3 = arith.constant 3 : index
    %c0_70 = arith.constant 0 : index
    %c0_71 = arith.constant 0 : index
    %121 = vector.load %arg1[%c3, %c0_70, %c0_71] : memref<4x48x48xbf16, #tpu.memory_space<vmem>>, vector<1x48x48xbf16>
    %122 = vector.shape_cast %121 : vector<1x48x48xbf16> to vector<48x48xbf16>
    %c0_72 = arith.constant 0 : index
    %c0_73 = arith.constant 0 : index
    %123 = vector.load %arg8[%c0_72, %c0_73] : memref<128x16xbf16, #tpu.memory_space<vmem>>, vector<32x16xbf16>
    %c32_74 = arith.constant 32 : index
    %c0_75 = arith.constant 0 : index
    %124 = vector.load %arg8[%c32_74, %c0_75] : memref<128x16xbf16, #tpu.memory_space<vmem>>, vector<32x16xbf16>
    %c64_76 = arith.constant 64 : index
    %c0_77 = arith.constant 0 : index
    %125 = vector.load %arg8[%c64_76, %c0_77] : memref<128x16xbf16, #tpu.memory_space<vmem>>, vector<16x16xbf16>
    %c80 = arith.constant 80 : index
    %c0_78 = arith.constant 0 : index
    %126 = vector.load %arg8[%c80, %c0_78] : memref<128x16xbf16, #tpu.memory_space<vmem>>, vector<16x16xbf16>
    %cst_79 = arith.constant dense<0.000000e+00> : vector<48x16xf32>
    %127 = tpu.matmul %120, %123, %cst_79 {dimension_numbers = #tpu.dot_dimension_numbers<[1], [0], [0], [1], [0, 0, 1, 1], [], []>} : vector<48x32xbf16>, vector<32x16xbf16>, vector<48x16xf32> -> vector<48x16xf32>
    %128 = arith.truncf %127 : vector<48x16xf32> to vector<48x16xbf16>
    %cst_80 = arith.constant dense<0.000000e+00> : vector<48x16xf32>
    %129 = tpu.matmul %122, %128, %cst_80 {dimension_numbers = #tpu.dot_dimension_numbers<[1], [0], [0], [1], [0, 0, 1, 1], [], []>} : vector<48x48xbf16>, vector<48x16xbf16>, vector<48x16xf32> -> vector<48x16xf32>
    %cst_81 = arith.constant dense<0.000000e+00> : vector<48x16xf32>
    %130 = tpu.matmul %120, %124, %cst_81 {dimension_numbers = #tpu.dot_dimension_numbers<[1], [0], [0], [1], [0, 0, 1, 1], [], []>} : vector<48x32xbf16>, vector<32x16xbf16>, vector<48x16xf32> -> vector<48x16xf32>
    %131 = arith.addf %129, %130 : vector<48x16xf32>
    %c0_82 = arith.constant 0 : index
    %c0_83 = arith.constant 0 : index
    %132 = vector.load %arg9[%c0_82, %c0_83] : memref<3x16xf32, #tpu.memory_space<vmem>>, vector<1x16xf32>
    %133 = vector.shape_cast %132 : vector<1x16xf32> to vector<16xf32>
    %134 = vector.shape_cast %133 : vector<16xf32> to vector<1x16xf32>
    %135 = vector.broadcast %134 : vector<1x16xf32> to vector<48x16xf32>
    %136 = arith.addf %131, %135 : vector<48x16xf32>
    %cst_84 = arith.constant 0.000000e+00 : f32
    %137 = vector.broadcast %cst_84 : f32 to vector<48x16xf32>
    %138 = arith.maximumf %136, %137 : vector<48x16xf32>
    %139 = arith.truncf %138 : vector<48x16xf32> to vector<48x16xbf16>
    %cst_85 = arith.constant dense<0.000000e+00> : vector<48x16xf32>
    %140 = tpu.matmul %139, %125, %cst_85 {dimension_numbers = #tpu.dot_dimension_numbers<[1], [0], [0], [1], [0, 0, 1, 1], [], []>} : vector<48x16xbf16>, vector<16x16xbf16>, vector<48x16xf32> -> vector<48x16xf32>
    %141 = arith.truncf %140 : vector<48x16xf32> to vector<48x16xbf16>
    %cst_86 = arith.constant dense<0.000000e+00> : vector<48x16xf32>
    %142 = tpu.matmul %122, %141, %cst_86 {dimension_numbers = #tpu.dot_dimension_numbers<[1], [0], [0], [1], [0, 0, 1, 1], [], []>} : vector<48x48xbf16>, vector<48x16xbf16>, vector<48x16xf32> -> vector<48x16xf32>
    %cst_87 = arith.constant dense<0.000000e+00> : vector<48x16xf32>
    %143 = tpu.matmul %139, %126, %cst_87 {dimension_numbers = #tpu.dot_dimension_numbers<[1], [0], [0], [1], [0, 0, 1, 1], [], []>} : vector<48x16xbf16>, vector<16x16xbf16>, vector<48x16xf32> -> vector<48x16xf32>
    %144 = arith.addf %142, %143 : vector<48x16xf32>
    %c1_88 = arith.constant 1 : index
    %c0_89 = arith.constant 0 : index
    %145 = vector.load %arg9[%c1_88, %c0_89] : memref<3x16xf32, #tpu.memory_space<vmem>>, vector<1x16xf32>
    %146 = vector.shape_cast %145 : vector<1x16xf32> to vector<16xf32>
    %147 = vector.shape_cast %146 : vector<16xf32> to vector<1x16xf32>
    %148 = vector.broadcast %147 : vector<1x16xf32> to vector<48x16xf32>
    %149 = arith.addf %144, %148 : vector<48x16xf32>
    %cst_90 = arith.constant 0.000000e+00 : f32
    %150 = vector.broadcast %cst_90 : f32 to vector<48x16xf32>
    %151 = arith.maximumf %149, %150 : vector<48x16xf32>
    %c96_91 = arith.constant 96 : index
    %c0_92 = arith.constant 0 : index
    %152 = vector.load %arg8[%c96_91, %c0_92] : memref<128x16xbf16, #tpu.memory_space<vmem>>, vector<32x16xbf16>
    %cst_93 = arith.constant dense<0.000000e+00> : vector<48x16xf32>
    %153 = tpu.matmul %120, %152, %cst_93 {dimension_numbers = #tpu.dot_dimension_numbers<[1], [0], [0], [1], [0, 0, 1, 1], [], []>} : vector<48x32xbf16>, vector<32x16xbf16>, vector<48x16xf32> -> vector<48x16xf32>
    %c2_94 = arith.constant 2 : index
    %c0_95 = arith.constant 0 : index
    %154 = vector.load %arg9[%c2_94, %c0_95] : memref<3x16xf32, #tpu.memory_space<vmem>>, vector<1x16xf32>
    %155 = vector.shape_cast %154 : vector<1x16xf32> to vector<16xf32>
    %156 = vector.shape_cast %155 : vector<16xf32> to vector<1x16xf32>
    %157 = vector.broadcast %156 : vector<1x16xf32> to vector<48x16xf32>
    %158 = arith.addf %153, %157 : vector<48x16xf32>
    %159 = arith.addf %151, %158 : vector<48x16xf32>
    %cst_96 = arith.constant 0.000000e+00 : f32
    %160 = vector.broadcast %cst_96 : f32 to vector<48x16xf32>
    %161 = arith.maximumf %159, %160 : vector<48x16xf32>
    %162 = arith.truncf %161 : vector<48x16xf32> to vector<48x16xbf16>
    %c0_97 = arith.constant 0 : index
    %c0_98 = arith.constant 0 : index
    %163 = vector.load %arg10[%c0_97, %c0_98] : memref<16x768xbf16, #tpu.memory_space<vmem>>, vector<16x768xbf16>
    %cst_99 = arith.constant dense<0.000000e+00> : vector<48x768xf32>
    %164 = tpu.matmul %162, %163, %cst_99 {dimension_numbers = #tpu.dot_dimension_numbers<[1], [0], [0], [1], [0, 0, 1, 1], [], []>} : vector<48x16xbf16>, vector<16x768xbf16>, vector<48x768xf32> -> vector<48x768xf32>
    %165 = arith.truncf %164 : vector<48x768xf32> to vector<48x768xbf16>
    %c0_100 = arith.constant 0 : index
    %c0_101 = arith.constant 0 : index
    %166 = vector.load %arg11[%c0_100, %c0_101] : memref<48x768xbf16, #tpu.memory_space<vmem>>, vector<48x768xbf16>
    %167 = arith.mulf %165, %166 : vector<48x768xbf16>
    %c0_102 = arith.constant 0 : index
    %c0_103 = arith.constant 0 : index
    %168 = vector.load %arg13[%c0_102, %c0_103] : memref<2x48xbf16, #tpu.memory_space<vmem>>, vector<2x48xbf16>
    %cst_104 = arith.constant dense<0.000000e+00> : vector<2x768xf32>
    %169 = tpu.matmul %168, %167, %cst_104 {dimension_numbers = #tpu.dot_dimension_numbers<[1], [0], [0], [1], [0, 0, 1, 1], [], []>} : vector<2x48xbf16>, vector<48x768xbf16>, vector<2x768xf32> -> vector<2x768xf32>
    %170 = arith.truncf %169 : vector<2x768xf32> to vector<2x768xbf16>
    %c0_105 = arith.constant 0 : index
    %c0_106 = arith.constant 0 : index
    %171 = vector.load %arg12[%c0_105, %c0_106] : memref<768x32xbf16, #tpu.memory_space<vmem>>, vector<768x32xbf16>
    %cst_107 = arith.constant dense<0.000000e+00> : vector<2x32xf32>
    %172 = tpu.matmul %170, %171, %cst_107 {dimension_numbers = #tpu.dot_dimension_numbers<[1], [0], [0], [1], [0, 0, 1, 1], [], []>} : vector<2x768xbf16>, vector<768x32xbf16>, vector<2x32xf32> -> vector<2x32xf32>
    %c0_108 = arith.constant 0 : index
    %c0_109 = arith.constant 0 : index
    %173 = vector.load %arg14[%c0_108, %c0_109] : memref<1x32xf32, #tpu.memory_space<vmem>>, vector<1x32xf32>
    %174 = vector.broadcast %173 : vector<1x32xf32> to vector<2x32xf32>
    %175 = arith.addf %172, %174 : vector<2x32xf32>
    %cst_110 = arith.constant 0.000000e+00 : f32
    %176 = vector.broadcast %cst_110 : f32 to vector<2x32xf32>
    %177 = arith.maximumf %175, %176 : vector<2x32xf32>
    %178 = arith.truncf %177 : vector<2x32xf32> to vector<2x32xbf16>
    %c0_111 = arith.constant 0 : index
    %c0_112 = arith.constant 0 : index
    %179 = vector.load %arg15[%c0_111, %c0_112] : memref<32x3xbf16, #tpu.memory_space<vmem>>, vector<32x3xbf16>
    %cst_113 = arith.constant dense<0.000000e+00> : vector<2x3xf32>
    %180 = tpu.matmul %178, %179, %cst_113 {dimension_numbers = #tpu.dot_dimension_numbers<[1], [0], [0], [1], [0, 0, 1, 1], [], []>} : vector<2x32xbf16>, vector<32x3xbf16>, vector<2x3xf32> -> vector<2x3xf32>
    %c0_114 = arith.constant 0 : index
    %c0_115 = arith.constant 0 : index
    %181 = vector.load %arg16[%c0_114, %c0_115] : memref<1x3xf32, #tpu.memory_space<vmem>>, vector<1x3xf32>
    %182 = vector.broadcast %181 : vector<1x3xf32> to vector<2x3xf32>
    %183 = arith.addf %180, %182 : vector<2x3xf32>
    %c0_116 = arith.constant 0 : index
    %c0_117 = arith.constant 0 : index
    %184 = vector.load %arg17[%c0_116, %c0_117] : memref<2x3xf32, #tpu.memory_space<vmem>>, vector<2x3xf32>
    tpu.vector_store %arg17[%c0_116, %c0_117], %183 {strides = array<i32>} : memref<2x3xf32, #tpu.memory_space<vmem>>, vector<2x3xf32>,
    return
  }
}

</mosaic_0001>

<bundles_post_ra>
// kernel: spatial_temporal_convnet.2
= control target key start
LH: loop header
LB: loop body
LE: loop exit
PB: predicated region body
PF: predicated region fallthrough
CT: control target
= control target key end

     0   :  { %s6887_s24 = smov 0   ;;  %s10291_s0 = inlined_call_operand.vmem [shape: bf16[2,192,32], index: 0, kind: input, shape index: {}]   ;;  %s10292_s1 = inlined_call_operand.vmem [shape: bf16[3,32,256], index: 1, kind: input, shape index: {}]   ;;  %s10293_s2 = inlined_call_operand.vmem [shape: f32[1,256], index: 2, kind: input, shape index: {}]   ;;  %s10294_s3 = inlined_call_operand.vmem [shape: bf16[3,256,512], index: 3, kind: input, shape index: {}]   ;;  %s10295_s4 = inlined_call_operand.vmem [shape: f32[1,512], index: 4, kind: input, shape index: {}]   ;;  %s10296_s5 = inlined_call_operand.vmem [shape: bf16[512,256], index: 5, kind: input, shape index: {}]   ;;  %s10297_s6 = inlined_call_operand.vmem [shape: f32[1,256], index: 6, kind: input, shape index: {}]   ;;  %s10298_s7 = inlined_call_operand.vmem [shape: f32[48,256], index: 7, kind: output, shape index: {}]  }
   0x1 LB: > { %s6893_s25 = sadd.s32 4294967295, %s6844_s24   ;;  %p5112_p0 = scmp.ge.s32.totalorder %s6844_s24, 1  ;;  %s6844_s24 = sphi %s6887_s24, %s17_s24  }
   0x2   : > { %p237_p1 = scmp.lt.s32.totalorder %s6844_s24, 3 }
   0x4   : > { %p238_p2 = pnand %p5112_p0, %p237_p1 }
   0x6   : > { %241 = sbr.rel (%p238_p2) target bundleno = 1868 (0x74c), region = 48 }
   0xb   : > { %v5130_v0 = vld [vmem:[%s10292_s1 + $0x30] sm:$0xf]  ;;  %v6426_v1 = vld [vmem:[%s10292_s1 + $0x34] sm:$0xf0]  ;;  %v6425_v2 = vld [vmem:[%s10292_s1 + $0x34] sm:$0xf] }
   0xc   : > { %v5131_v3 = vor.u32 %v6426_v1, %v5130_v0  ;;  %v5132_v4 = vld [vmem:[%s10292_s1 + $0x38] sm:$0xf0]  ;;  %v5122_v5 = vld [vmem:[%s10292_s1 + $0x20] sm:$0xf]  ;;  %v6424_v6 = vld [vmem:[%s10292_s1 + $0x24] sm:$0xf0] }
   0xd   : > { %v5135_v7 = vor.u32 %v6425_v2, %v5132_v4  ;;  %v6423_v8 = vld [vmem:[%s10292_s1 + $0x24] sm:$0xf]  ;;  %v5124_v9 = vld [vmem:[%s10292_s1 + $0x28] sm:$0xf0]  ;;  %p270_p3 = scmp.lt.s32.totalorder %s6893_s25, 1  ;;  %v5123_v10 = vor.u32 %v6424_v6, %v5122_v5  ;;  %vm415_vm0 = vcmask 261120  }
   0xe   : > { %458 = vmatpush.bf16.msra.mxu0 %v5131_v3  ;;  %6801 = vmatpush.bf16.msra.mxu2 %v5131_v3  ;;  %v5212_v11 = vld [vmem:[%s10292_s1 + $0x50] sm:$0xf]  ;;  %v6430_v12 = vld [vmem:[%s10292_s1 + $0x54] sm:$0xf0]  ;;  %v6429_v13 = vld [vmem:[%s10292_s1 + $0x54] sm:$0xf]  ;;  %v5127_v14 = vor.u32 %v6423_v8, %v5124_v9 }
   0xf   : > { %527 = vmatpush.bf16.msra.mxu1 %v5135_v7  ;;  %6803 = vmatpush.bf16.msra.mxu3 %v5135_v7  ;;  %s271_s27 = scalar_select %p270_p3, %s6893_s25, 1  ;;  %v5214_v15 = vld [vmem:[%s10292_s1 + $0x58] sm:$0xf0]  ;;  %v5170_v16 = vld [vmem:[%s10292_s1 + $0x10] sm:$0xf]  ;;  %v5213_v17 = vor.u32 %v6430_v12, %v5212_v11  ;;  %v10299_v35 = vmov 0  }
  0x10   : > { %v5217_v18 = vor.u32 %v6429_v13, %v5214_v15  ;;  %v6422_v19 = vld [vmem:[%s10292_s1 + $0x14] sm:$0xf0]  ;;  %v6421_v20 = vld [vmem:[%s10292_s1 + $0x14] sm:$0xf]  ;;  %v5172_v21 = vld [vmem:[%s10292_s1 + $0x18] sm:$0xf0] }
  0x11   : > { %s6827_s15 = smul.u32 96, %s271_s27  ;;  %v5171_v22 = vor.u32 %v6422_v19, %v5170_v16  ;;  %v5175_v23 = vor.u32 %v6421_v20, %v5172_v21  ;;  %v5162_v24 = vld [vmem:[%s10292_s1] sm:$0xf]  ;;  %v6420_v25 = vld [vmem:[%s10292_s1 + $0x4] sm:$0xf0]  ;;  %vm360_vm1 = vcmask 1043456  }
  0x12   : > { %459 = vmatpush.bf16.msra.mxu0 %v5123_v10  ;;  %6802 = vmatpush.bf16.msra.mxu2 %v5123_v10  ;;  %v6419_v26 = vld [vmem:[%s10292_s1 + $0x4] sm:$0xf]  ;;  %v5164_v29 = vld [vmem:[%s10292_s1 + $0x8] sm:$0xf0]  ;;  %v5163_v30 = vor.u32 %v6420_v25, %v5162_v24  ;;  %v5204_v40 = vld [vmem:[%s10292_s1 + $0x40] sm:$0xf] }
  0x13   : > { %528 = vmatpush.bf16.msra.mxu1 %v5127_v14  ;;  %6804 = vmatpush.bf16.msra.mxu3 %v5127_v14  ;;  %s6950_s18 = scalar_lea.vmem %s10291_s0, %s6827_s15  ;;  %v5167_v31 = vor.u32 %v6419_v26, %v5164_v29  ;;  %v6428_v41 = vld [vmem:[%s10292_s1 + $0x44] sm:$0xf0]  ;;  %v6427_v42 = vld [vmem:[%s10292_s1 + $0x44] sm:$0xf]  ;;  %v5206_v44 = vld [vmem:[%s10292_s1 + $0x48] sm:$0xf0] }
  0x14   : > { %v6688_v27 = vld [vmem:[%s6950_s18] sm:$0xff]   ;;  %v6744_v28 = vld [vmem:[%s6950_s18 + $0x50] sm:$0xff]   ;;  %v6735_v32 = vld [vmem:[%s6950_s18 + $0x8] sm:$0xff]   ;;  %v5205_v43 = vor.u32 %v6428_v41, %v5204_v40  ;;  %v5209_v45 = vor.u32 %v6427_v42, %v5206_v44  ;;  %s275_s23 = smul.u32 3, %s6893_s25 }
  0x15   : > { %5136 = vmatmul.msk.bf16.vlgmr.msra.gmra.mxu0 %vm415_vm0, %v6688_v27  ;;  %5146 = vmatmul.msk.bf16.vlgmr.msra.gmra.mxu2 %vm415_vm0, %v6744_v28  ;;  %v6972_v33 = vld [vmem:[%s6950_s18 + $0x58] sm:$0xff]   ;;  %v6736_v34 = vld [vmem:[%s6950_s18 + $0x10] sm:$0xff]   ;;  %v6689_v36 = vunpack.c.l.b16 %v6688_v27  ;;  %v6807_v46 = vld [vmem:[%s6950_s18 + $0x4] sm:$0xff]  }
  0x16   : > { %818 = vmatpush.bf16.msrb.mxu0 %v5213_v17  ;;  %5148 = vmatmul.msk.bf16.vlgmr.msra.gmra.mxu1 %vm415_vm0, %v6688_v27  ;;  %v6737_v38 = vld [vmem:[%s6950_s18 + $0x18] sm:$0xff]   ;;  %v6738_v47 = vld [vmem:[%s6950_s18 + $0x20] sm:$0xff]   ;;  %v7010_v48 = vld [vmem:[%s6950_s18 + $0xc] sm:$0xff]   ;;  %p276_p4 = scmp.lt.s32.totalorder %s275_s23, 5 }
  0x17   : > { %887 = vmatpush.bf16.msrb.mxu1 %v5217_v18  ;;  %5158 = vmatmul.msk.bf16.vlgmr.msra.gmra.mxu3 %vm415_vm0, %v6744_v28  ;;  %v349_v37 = vpack.c.b16 %v6689_v36, %v6689_v36  ;;  %v6739_v49 = vld [vmem:[%s6950_s18 + $0x28] sm:$0xff]   ;;  %v7020_v50 = vld [vmem:[%s6950_s18 + $0x14] sm:$0xff]   ;;  %v7030_v52 = vld [vmem:[%s6950_s18 + $0x1c] sm:$0xff]  }
  0x18   : > { %650 = vmatpush.bf16.msrb.mxu2 %v5171_v22  ;;  %719 = vmatpush.bf16.msrb.mxu3 %v5175_v23  ;;  %v6740_v51 = vld [vmem:[%s6950_s18 + $0x30] sm:$0xff]   ;;  %v6741_v53 = vld [vmem:[%s6950_s18 + $0x38] sm:$0xff]   ;;  %v5418_v54 = vld [vmem:[%s10294_s3 + $0x2e0] sm:$0xf]  ;;  %s10678_s23 = smov (!%p276_p4, %s275_s23), 5 }
  0x19   : > { %v363_v39 = vsel %vm360_vm1, 0, %v349_v37  ;;  %v6525_v55 = vld [vmem:[%s10294_s3 + $0x2ec] sm:$0xf0]  ;;  %v5546_v56 = vld [vmem:[%s10294_s3 + $0x3e0] sm:$0xf]  ;;  %v7052_v60 = vld [vmem:[%s6950_s18 + $0x24] sm:$0xff]  }
  0x1a   : > { %819 = vmatpush.bf16.msrb.mxu0 %v5205_v43  ;;  %v5419_v57 = vor.u32 %v6525_v55, %v5418_v54  ;;  %v6557_v58 = vld [vmem:[%s10294_s3 + $0x3ec] sm:$0xf0]  ;;  %v6742_v62 = vld [vmem:[%s6950_s18 + $0x40] sm:$0xff]   ;;  %v5420_v1 = vld [vmem:[%s10294_s3 + $0x2f0] sm:$0xf0]  ;;  %s6418_s26 = sshll.u32 %s10678_s23, 4 }
  0x1b   : > { %888 = vmatpush.bf16.msrb.mxu1 %v5209_v45  ;;  %v5547_v59 = vor.u32 %v6557_v58, %v5546_v56  ;;  %v6523_v0 = vld [vmem:[%s10294_s3 + $0x2e4] sm:$0xf]  ;;  %v5548_v4 = vld [vmem:[%s10294_s3 + $0x3f0] sm:$0xf0]  ;;  %v7082_v8 = vld [vmem:[%s6950_s18 + $0x2c] sm:$0xff]   ;;  %s10278_s29 = scalar_lea.vmem %s10298_s7, %s6418_s26 }
  0x1c   : > { %651 = vmatpush.bf16.msrb.mxu2 %v5163_v30  ;;  %720 = vmatpush.bf16.msrb.mxu3 %v5167_v31  ;;  %v6555_v2 = vld [vmem:[%s10294_s3 + $0x3e4] sm:$0xf]  ;;  %v5423_v3 = vor.u32 %v6523_v0, %v5420_v1  ;;  %v6743_v10 = vld [vmem:[%s6950_s18 + $0x48] sm:$0xff]   ;;  %v5402_v12 = vld [vmem:[%s10294_s3 + $0x2c0] sm:$0xf] }
  0x1d   : > { %v5551_v5 = vor.u32 %v6555_v2, %v5548_v4  ;;  %v6521_v13 = vld [vmem:[%s10294_s3 + $0x2cc] sm:$0xf0]  ;;  %v5530_v14 = vld [vmem:[%s10294_s3 + $0x3c0] sm:$0xf]  ;;  %v6519_v20 = vld [vmem:[%s10294_s3 + $0x2c4] sm:$0xf] }
  0x1e   : > { %1891 = vmatpush.bf16.msra.mxu0 %v5423_v3  ;;  %v5403_v15 = vor.u32 %v6521_v13, %v5402_v12  ;;  %v6553_v16 = vld [vmem:[%s10294_s3 + $0x3cc] sm:$0xf0]  ;;  %v5404_v21 = vld [vmem:[%s10294_s3 + $0x2d0] sm:$0xf0]  ;;  %v6551_v22 = vld [vmem:[%s10294_s3 + $0x3c4] sm:$0xf] }
  0x1f   : > { %1960 = vmatpush.bf16.msra.mxu1 %v5551_v5  ;;  %v5531_v17 = vor.u32 %v6553_v16, %v5530_v14  ;;  %v5407_v23 = vor.u32 %v6519_v20, %v5404_v21  ;;  %v5532_v24 = vld [vmem:[%s10294_s3 + $0x3d0] sm:$0xf0]  ;;  %v6517_v36 = vld [vmem:[%s10294_s3 + $0x2ac] sm:$0xf0]  ;;  %v5514_v37 = vld [vmem:[%s10294_s3 + $0x3a0] sm:$0xf] }
  0x20   : > { %1753 = vmatpush.bf16.msra.mxu2 %v5419_v57  ;;  %1822 = vmatpush.bf16.msra.mxu3 %v5547_v59  ;;  %v5535_v25 = vor.u32 %v6551_v22, %v5532_v24  ;;  %v7124_v26 = vld [vmem:[%s6950_s18 + $0x34] sm:$0xff]   ;;  %v7163_v43 = vld [vmem:[%s6950_s18 + $0x3c] sm:$0xff]   ;;  %v7198_v57 = vld [vmem:[%s6950_s18 + $0x44] sm:$0xff]  }
  0x21   : > { %v5370_v1 = vld [vmem:[%s10294_s3 + $0x280] sm:$0xf]  ;;  %v6513_v2 = vld [vmem:[%s10294_s3 + $0x28c] sm:$0xf0]  ;;  %v6511_v13 = vld [vmem:[%s10294_s3 + $0x284] sm:$0xf] }
  0x22   : > { %1892 = vmatpush.bf16.msra.mxu0 %v5407_v23  ;;  %v5498_v3 = vld [vmem:[%s10294_s3 + $0x380] sm:$0xf]  ;;  %v5371_v4 = vor.u32 %v6513_v2, %v5370_v1  ;;  %v6545_v5 = vld [vmem:[%s10294_s3 + $0x38c] sm:$0xf0]  ;;  %v5372_v14 = vld [vmem:[%s10294_s3 + $0x290] sm:$0xf0] }
  0x23   : > { %1961 = vmatpush.bf16.msra.mxu1 %v5535_v25  ;;  %v5375_v16 = vor.u32 %v6511_v13, %v5372_v14  ;;  %v7249_v23 = vld [vmem:[%s6950_s18 + $0x4c] sm:$0xff]   ;;  %v6507_v2 = vld [vmem:[%s10294_s3 + $0x264] sm:$0xf]  ;;  %vm8389_vm2 = vmneg %vm360_vm1 }
  0x24   : > { %1754 = vmatpush.bf16.msra.mxu2 %v5403_v15  ;;  %1823 = vmatpush.bf16.msra.mxu3 %v5531_v17  ;;  %v6543_v15 = vld [vmem:[%s10294_s3 + $0x384] sm:$0xf]  ;;  %v5500_v17 = vld [vmem:[%s10294_s3 + $0x390] sm:$0xf0] }
  0x25   : > { %5137 = vmatmul.msk.bf16.gmra.mxu0 %vm415_vm0, %v6735_v32  ;;  %5147 = vmatmul.msk.bf16.gmra.mxu2 %vm415_vm0, %v6972_v33  ;;  %v5503_v21 = vor.u32 %v6543_v15, %v5500_v17 }
  0x26   : > { %5149 = vmatmul.msk.bf16.gmra.mxu1 %vm415_vm0, %v6735_v32 }
  0x27   : > { %5159 = vmatmul.msk.bf16.gmra.mxu3 %vm415_vm0, %v6972_v33 }
  0x35   : > { %5138 = vmatmul.msk.bf16.gmra.mxu0 %vm415_vm0, %v6736_v34  ;;  %652 = vmatmul.bf16.vlgmr.msrb.gmra.mxu2 %v10299_v35 }
  0x36   : > { %5150 = vmatmul.msk.bf16.gmra.mxu1 %vm415_vm0, %v6736_v34  ;;  %v5386_v34 = vld [vmem:[%s10294_s3 + $0x2a0] sm:$0xf] }
  0x37   : > { %721 = vmatmul.bf16.vlgmr.msrb.gmra.mxu3 %v10299_v35 }
  0x45   : > { %5139 = vmatmul.msk.bf16.gmra.mxu0 %vm415_vm0, %v6737_v38  ;;  %5176 = vmatmul.msk.bf16.gmra.mxu2 %vm415_vm0, %v363_v39 }
  0x46   : > { %5151 = vmatmul.msk.bf16.gmra.mxu1 %vm415_vm0, %v6737_v38  ;;  %v5387_v38 = vor.u32 %v6517_v36, %v5386_v34 }
  0x47   : > { %5187 = vmatmul.msk.bf16.gmra.mxu3 %vm415_vm0, %v363_v39  ;;  %v6549_v39 = vld [vmem:[%s10294_s3 + $0x3ac] sm:$0xf0] }
  0x48   : > { %v5515_v40 = vor.u32 %v6549_v39, %v5514_v37  ;;  %1755 = vmatpush.bf16.msra.mxu2 %v5387_v38  ;;  %v5354_v39 = vld [vmem:[%s10294_s3 + $0x260] sm:$0xf] }
  0x4a   : > { %1824 = vmatpush.bf16.msra.mxu3 %v5515_v40  ;;  %v6509_v40 = vld [vmem:[%s10294_s3 + $0x26c] sm:$0xf0] }
  0x4c   : > { %1756 = vmatpush.bf16.msra.mxu2 %v5371_v4  ;;  %v6539_v4 = vld [vmem:[%s10294_s3 + $0x364] sm:$0xf] }
  0x55   : > { %5140 = vmatmul.msk.bf16.gmra.mxu0 %vm415_vm0, %v6738_v47  ;;  %5177 = vmatmul.msk.bf16.gmra.mxu2 %vm415_vm0, %v6807_v46 }
  0x56   : > { %5152 = vmatmul.msk.bf16.gmra.mxu1 %vm415_vm0, %v6738_v47  ;;  %v5388_v47 = vld [vmem:[%s10294_s3 + $0x2b0] sm:$0xf0] }
  0x57   : > { %5188 = vmatmul.msk.bf16.gmra.mxu3 %vm415_vm0, %v6807_v46  ;;  %v6515_v46 = vld [vmem:[%s10294_s3 + $0x2a4] sm:$0xf] }
  0x65   : > { %5141 = vmatmul.msk.bf16.gmra.mxu0 %vm415_vm0, %v6739_v49  ;;  %5178 = vmatmul.msk.bf16.gmra.mxu2 %vm415_vm0, %v7010_v48 }
  0x66   : > { %5153 = vmatmul.msk.bf16.gmra.mxu1 %vm415_vm0, %v6739_v49  ;;  %v5391_v49 = vor.u32 %v6515_v46, %v5388_v47  ;;  %v5355_v46 = vor.u32 %v6509_v40, %v5354_v39  ;;  %v6541_v47 = vld [vmem:[%s10294_s3 + $0x36c] sm:$0xf0] }
  0x67   : > { %5189 = vmatmul.msk.bf16.gmra.mxu3 %vm415_vm0, %v7010_v48 }
  0x68   : > { %1893 = vmatpush.bf16.msra.mxu0 %v5391_v49  ;;  %1757 = vmatpush.bf16.msra.mxu2 %v5355_v46  ;;  %v6505_v46 = vld [vmem:[%s10294_s3 + $0x24c] sm:$0xf0] }
  0x6c   : > { %1894 = vmatpush.bf16.msra.mxu0 %v5375_v16 }
  0x75   : > { %5142 = vmatmul.msk.bf16.gmra.mxu0 %vm415_vm0, %v6740_v51  ;;  %5179 = vmatmul.msk.bf16.gmra.mxu2 %vm415_vm0, %v7020_v50 }
  0x76   : > { %5154 = vmatmul.msk.bf16.gmra.mxu1 %vm415_vm0, %v6740_v51  ;;  %v5516_v51 = vld [vmem:[%s10294_s3 + $0x3b0] sm:$0xf0] }
  0x77   : > { %5190 = vmatmul.msk.bf16.gmra.mxu3 %vm415_vm0, %v7020_v50 }
  0x85   : > { %5143 = vmatmul.msk.bf16.gmra.mxu0 %vm415_vm0, %v6741_v53  ;;  %5180 = vmatmul.msk.bf16.gmra.mxu2 %vm415_vm0, %v7030_v52 }
  0x86   : > { %5155 = vmatmul.msk.bf16.gmra.mxu1 %vm415_vm0, %v6741_v53 }
  0x87   : > { %5191 = vmatmul.msk.bf16.gmra.mxu3 %vm415_vm0, %v7030_v52 }
  0x92   : > { %v7054_v61 = vpop.f32.mrf.mxu0 }
  0x93   : > { %v7057_v63 = vpop.f32.mrf.mxu1 }
  0x95   : > { %5144 = vmatmul.msk.bf16.gmra.mxu0 %vm415_vm0, %v6742_v62  ;;  %5181 = vmatmul.msk.bf16.gmra.mxu2 %vm415_vm0, %v7052_v60 }
  0x96   : > { %5156 = vmatmul.msk.bf16.gmra.mxu1 %vm415_vm0, %v6742_v62 }
  0x97   : > { %5192 = vmatmul.msk.bf16.gmra.mxu3 %vm415_vm0, %v7052_v60 }
  0x98   : > { %v7130_v29 = vpop.f32.mrf.mxu2 }
  0x99   : > { %10320 = vst [vmem:[#allocation2_spill] sm:$0xff] %v7130_v29 }
  0x9a   : > { %v7077_v6 = vpop.f32.mrf.mxu0  ;;  %v7136_v30 = vpop.f32.mrf.mxu3 }
  0x9b   : > { %v7079_v7 = vpop.f32.mrf.mxu1  ;;  %10321 = vst [vmem:[#allocation3_spill] sm:$0xff] %v7136_v30 }
  0xa0   : > { %v7158_v41 = vpop.f32.mrf.mxu2 }
  0xa1   : > { %10322 = vst [vmem:[#allocation4_spill] sm:$0xff] %v7158_v41  ;;  %v6497_v41 = vld [vmem:[%s10294_s3 + $0x20c] sm:$0xf0] }
  0xa2   : > { %v7084_v9 = vpop.f32.mrf.mxu0  ;;  %v7160_v42 = vpop.f32.mrf.mxu3 }
  0xa3   : > { %v7087_v11 = vpop.f32.mrf.mxu1  ;;  %10323 = vst [vmem:[#allocation5_spill] sm:$0xff] %v7160_v42  ;;  %v5306_v42 = vld [vmem:[%s10294_s3 + $0x200] sm:$0xf] }
  0xa5   : > { %5145 = vmatmul.msk.bf16.gmra.mxu0 %vm415_vm0, %v6743_v10  ;;  %5182 = vmatmul.msk.bf16.gmra.mxu2 %vm415_vm0, %v7082_v8 }
  0xa6   : > { %5157 = vmatmul.msk.bf16.gmra.mxu1 %vm415_vm0, %v6743_v10  ;;  %v5499_v10 = vor.u32 %v6545_v5, %v5498_v3  ;;  %v5356_v3 = vld [vmem:[%s10294_s3 + $0x270] sm:$0xf0] }
  0xa7   : > { %5193 = vmatmul.msk.bf16.gmra.mxu3 %vm415_vm0, %v7082_v8  ;;  %v5359_v5 = vor.u32 %v6507_v2, %v5356_v3  ;;  %v6537_v2 = vld [vmem:[%s10294_s3 + $0x34c] sm:$0xf0] }
  0xa8   : > { %v7189_v54 = vpop.f32.mrf.mxu2  ;;  %1825 = vmatpush.bf16.msra.mxu3 %v5499_v10  ;;  %v5484_v10 = vld [vmem:[%s10294_s3 + $0x370] sm:$0xf0] }
  0xa9   : > { %10324 = vst [vmem:[#allocation6_spill] sm:$0xff] %v7189_v54  ;;  %v5487_v13 = vor.u32 %v6539_v4, %v5484_v10  ;;  %1895 = vmatpush.bf16.msra.mxu0 %v5359_v5  ;;  %v6503_v5 = vld [vmem:[%s10294_s3 + $0x244] sm:$0xf]  ;;  %v5340_v10 = vld [vmem:[%s10294_s3 + $0x250] sm:$0xf0] }
  0xaa   : > { %v7107_v18 = vpop.f32.mrf.mxu0 }
  0xab   : > { %v7109_v19 = vpop.f32.mrf.mxu1 }
  0xb0   : > { %v7202_v59 = vpop.f32.mrf.mxu2 }
  0xb1   : > { %10326 = vst [vmem:[#allocation8_spill] sm:$0xff] %v7202_v59  ;;  %v6533_v59 = vld [vmem:[%s10294_s3 + $0x32c] sm:$0xf0] }
  0xb2   : > { %v7126_v27 = vpop.f32.mrf.mxu0 }
  0xb3   : > { %v7128_v28 = vpop.f32.mrf.mxu1 }
  0xb5   : > { %5183 = vmatmul.msk.bf16.gmra.mxu2 %vm415_vm0, %v7124_v26  ;;  %5218 = vmatmul.msk.bf16.vlgmr.msrb.gmra.mxu0 %vm415_vm0, %v7010_v48 }
  0xb6   : > { %5229 = vmatmul.msk.bf16.vlgmr.msrb.gmra.mxu1 %vm415_vm0, %v7010_v48  ;;  %v6547_v48 = vld [vmem:[%s10294_s3 + $0x3a4] sm:$0xf] }
  0xb7   : > { %5194 = vmatmul.msk.bf16.gmra.mxu3 %vm415_vm0, %v7124_v26  ;;  %v5519_v53 = vor.u32 %v6547_v48, %v5516_v51 }
  0xb8   : > { %v7244_v20 = vpop.f32.mrf.mxu2 }
  0xb9   : > { %1962 = vmatpush.bf16.msra.mxu1 %v5519_v53 }
  0xba   : > { %v7142_v31 = vpop.f32.mrf.mxu0 }
  0xbb   : > { %v7144_v32 = vpop.f32.mrf.mxu1 }
  0xbd   : > { %1963 = vmatpush.bf16.msra.mxu1 %v5503_v21 }
  0xc0   : > { %v7263_v34 = vpop.f32.mrf.mxu2 }
  0xc1   : > { %1964 = vmatpush.bf16.msra.mxu1 %v5487_v13  ;;  %v6535_v13 = vld [vmem:[%s10294_s3 + $0x344] sm:$0xf] }
  0xc2   : > { %v7165_v44 = vpop.f32.mrf.mxu0 }
  0xc3   : > { %v7167_v45 = vpop.f32.mrf.mxu1 }
  0xc5   : > { %5184 = vmatmul.msk.bf16.gmra.mxu2 %vm415_vm0, %v7163_v43  ;;  %5219 = vmatmul.msk.bf16.gmra.mxu0 %vm415_vm0, %v7020_v50 }
  0xc6   : > { %5230 = vmatmul.msk.bf16.gmra.mxu1 %vm415_vm0, %v7020_v50  ;;  %v7191_v50 = vpop.f32.mrf.mxu3 }
  0xc7   : > { %5195 = vmatmul.msk.bf16.gmra.mxu3 %vm415_vm0, %v7163_v43  ;;  %10325 = vst [vmem:[#allocation7_spill] sm:$0xff] %v7191_v50 }
  0xc8   : > { %v7283_v49 = vpop.f32.mrf.mxu2 }
  0xca   : > { %v7193_v55 = vpop.f32.mrf.mxu0 }
  0xcb   : > { %v7195_v56 = vpop.f32.mrf.mxu1 }
  0xce   : > { %v7206_v0 = vpop.f32.mrf.mxu3 }
  0xcf   : > { %10327 = vst [vmem:[#allocation9_spill] sm:$0xff] %v7206_v0 }
  0xd0   : > { %v7309_v14 = vpop.f32.mrf.mxu2 }
  0xd2   : > { %v7200_v58 = vpop.f32.mrf.mxu0 }
  0xd3   : > { %v7204_v62 = vpop.f32.mrf.mxu1 }
  0xd5   : > { %5185 = vmatmul.msk.bf16.gmra.mxu2 %vm415_vm0, %v7198_v57  ;;  %5220 = vmatmul.msk.bf16.gmra.mxu0 %vm415_vm0, %v7030_v52 }
  0xd6   : > { %5231 = vmatmul.msk.bf16.gmra.mxu1 %vm415_vm0, %v7030_v52  ;;  %v7246_v22 = vpop.f32.mrf.mxu3 }
  0xd7   : > { %5196 = vmatmul.msk.bf16.gmra.mxu3 %vm415_vm0, %v7198_v57 }
  0xd8   : > { %v7319_v39 = vpop.f32.mrf.mxu2 }
  0xda   : > { %v7228_v52 = vpop.f32.mrf.mxu0 }
  0xdb   : > { %v7230_v12 = vpop.f32.mrf.mxu1 }
  0xde   : > { %v7265_v36 = vpop.f32.mrf.mxu3 }
  0xe2   : > { %v7251_v24 = vpop.f32.mrf.mxu0 }
  0xe3   : > { %v7253_v25 = vpop.f32.mrf.mxu1 }
  0xe5   : > { %5186 = vmatmul.msk.bf16.gmra.mxu2 %vm415_vm0, %v7249_v23  ;;  %5221 = vmatmul.msk.bf16.gmra.mxu0 %vm415_vm0, %v7052_v60 }
  0xe6   : > { %5232 = vmatmul.msk.bf16.gmra.mxu1 %vm415_vm0, %v7052_v60  ;;  %v5482_v60 = vld [vmem:[%s10294_s3 + $0x360] sm:$0xf]  ;;  %v7285_v51 = vpop.f32.mrf.mxu3 }
  0xe7   : > { %5197 = vmatmul.msk.bf16.gmra.mxu3 %vm415_vm0, %v7249_v23  ;;  %v5483_v48 = vor.u32 %v6541_v47, %v5482_v60  ;;  %v5338_v60 = vld [vmem:[%s10294_s3 + $0x240] sm:$0xf] }
  0xe8   : > { %v5466_v47 = vld [vmem:[%s10294_s3 + $0x340] sm:$0xf] }
  0xe9   : > { %1826 = vmatpush.bf16.msra.mxu3 %v5483_v48  ;;  %v5339_v48 = vor.u32 %v6505_v46, %v5338_v60  ;;  %v5467_v3 = vor.u32 %v6537_v2, %v5466_v47  ;;  %v5343_v60 = vor.u32 %v6503_v5, %v5340_v10  ;;  %v5468_v46 = vld [vmem:[%s10294_s3 + $0x350] sm:$0xf0] }
  0xea   : > { %v7267_v37 = vpop.f32.mrf.mxu0  ;;  %v5471_v47 = vor.u32 %v6535_v13, %v5468_v46  ;;  %v5322_v46 = vld [vmem:[%s10294_s3 + $0x220] sm:$0xf] }
  0xeb   : > { %v7269_v38 = vpop.f32.mrf.mxu1  ;;  %1758 = vmatpush.bf16.msra.mxu2 %v5339_v48  ;;  %1896 = vmatpush.bf16.msra.mxu0 %v5343_v60  ;;  %v7355_v48 = vpop.f32.mrf.mxu2 }
  0xec   : > { %1965 = vmatpush.bf16.msra.mxu1 %v5471_v47  ;;  %v6501_v47 = vld [vmem:[%s10294_s3 + $0x22c] sm:$0xf0] }
  0xed   : > { %1827 = vmatpush.bf16.msra.mxu3 %v5467_v3  ;;  %v5323_v0 = vor.u32 %v6501_v47, %v5322_v46  ;;  %v5434_v46 = vld [vmem:[%s10294_s3 + $0x300] sm:$0xf] }
  0xee   : > { %v7313_v16 = vpop.f32.mrf.mxu3 }
  0xef   : > { %1759 = vmatpush.bf16.msra.mxu2 %v5323_v0 }
  0xf2   : > { %v7287_v53 = vpop.f32.mrf.mxu0 }
  0xf3   : > { %v7289_v1 = vpop.f32.mrf.mxu1  ;;  %v7367_v5 = vpop.f32.mrf.mxu2 }
  0xf5   : > { %5222 = vmatmul.msk.bf16.gmra.mxu0 %vm415_vm0, %v7082_v8 }
  0xf6   : > { %5233 = vmatmul.msk.bf16.gmra.mxu1 %vm415_vm0, %v7082_v8  ;;  %v7323_v40 = vpop.f32.mrf.mxu3 }
  0xfa   : > { %v7307_v8 = vpop.f32.mrf.mxu0 }
  0xfb   : > { %v7311_v15 = vpop.f32.mrf.mxu1  ;;  %v7398_v47 = vpop.f32.mrf.mxu2 }
  0xfe   : > { %v7357_v2 = vpop.f32.mrf.mxu3 }
 0x102   : > { %v7315_v17 = vpop.f32.mrf.mxu0 }
 0x103   : > { %v7317_v21 = vpop.f32.mrf.mxu1 }
 0x105   : > { %5223 = vmatmul.msk.bf16.gmra.mxu0 %vm415_vm0, %v7124_v26 }
 0x106   : > { %5234 = vmatmul.msk.bf16.gmra.mxu1 %vm415_vm0, %v7124_v26  ;;  %v7369_v10 = vpop.f32.mrf.mxu3 }
 0x10a   : > { %v7339_v26 = vpop.f32.mrf.mxu0 }
 0x10b   : > { %10328 = vst [vmem:[#allocation10_spill] sm:$0xff] %v7339_v26  ;;  %v7341_v4 = vpop.f32.mrf.mxu1 }
 0x10c   : > { %10329 = vst [vmem:[#allocation11_spill] sm:$0xff] %v7341_v4 }
 0x10e   : > { %v7405_v0 = vpop.f32.mrf.mxu3 }
 0x112   : > { %v7359_v3 = vpop.f32.mrf.mxu0 }
 0x113   : > { %10330 = vst [vmem:[#allocation12_spill] sm:$0xff] %v7359_v3  ;;  %v7361_v35 = vpop.f32.mrf.mxu1 }
 0x114   : > { %10331 = vst [vmem:[#allocation13_spill] sm:$0xff] %v7361_v35 }
 0x115   : > { %5224 = vmatmul.msk.bf16.gmra.mxu0 %vm415_vm0, %v7163_v43 }
 0x116   : > { %5235 = vmatmul.msk.bf16.gmra.mxu1 %vm415_vm0, %v7163_v43  ;;  %v5450_v43 = vld [vmem:[%s10294_s3 + $0x320] sm:$0xf] }
 0x117   : > { %v5451_v50 = vor.u32 %v6533_v59, %v5450_v43  ;;  %v5307_v59 = vor.u32 %v6497_v41, %v5306_v42  ;;  %v6499_v41 = vld [vmem:[%s10294_s3 + $0x224] sm:$0xf]  ;;  %v5324_v42 = vld [vmem:[%s10294_s3 + $0x230] sm:$0xf0] }
 0x119   : > { %1828 = vmatpush.bf16.msra.mxu3 %v5451_v50  ;;  %v6529_v50 = vld [vmem:[%s10294_s3 + $0x30c] sm:$0xf0]  ;;  %1760 = vmatpush.bf16.msra.mxu2 %v5307_v59  ;;  %v7424_v59 = vpop.f32.mrf.mxu2 }
 0x11a   : > { %v7371_v13 = vpop.f32.mrf.mxu0  ;;  %v5435_v43 = vor.u32 %v6529_v50, %v5434_v46  ;;  %v6531_v46 = vld [vmem:[%s10294_s3 + $0x324] sm:$0xf]  ;;  %v5452_v50 = vld [vmem:[%s10294_s3 + $0x330] sm:$0xf0] }
 0x11b   : > { %10332 = vst [vmem:[#allocation14_spill] sm:$0xff] %v7371_v13  ;;  %v7373_v60 = vpop.f32.mrf.mxu1 }
 0x11c   : > { %10333 = vst [vmem:[#allocation15_spill] sm:$0xff] %v7373_v60 }
 0x11d   : > { %1829 = vmatpush.bf16.msra.mxu3 %v5435_v43  ;;  %v7429_v43 = vpop.f32.mrf.mxu3 }
 0x122   : > { %v7387_v54 = vpop.f32.mrf.mxu0 }
 0x123   : > { %10334 = vst [vmem:[#allocation16_spill] sm:$0xff] %v7387_v54  ;;  %v7400_v30 = vpop.f32.mrf.mxu1 }
 0x124   : > { %10335 = vst [vmem:[#allocation17_spill] sm:$0xff] %v7400_v30  ;;  %v654_v30 = vadd.f32 %v7244_v20, %v7054_v61  ;;  %v7448_v61 = vpop.f32.mrf.mxu2 }
 0x125   : > { %5225 = vmatmul.msk.bf16.gmra.mxu0 %vm415_vm0, %v7198_v57 }
 0x126   : > { %5236 = vmatmul.msk.bf16.gmra.mxu1 %vm415_vm0, %v7198_v57  ;;  %v5327_v57 = vor.u32 %v6499_v41, %v5324_v42  ;;  %v723_v41 = vadd.f32 %v7246_v22, %v7057_v63  ;;  %v7450_v63 = vpop.f32.mrf.mxu3 }
 0x128   : > { %1897 = vmatpush.bf16.msra.mxu0 %v5327_v57 }
 0x12a   : > { %v7411_v29 = vpop.f32.mrf.mxu0 }
 0x12b   : > { %10336 = vst [vmem:[#allocation18_spill] sm:$0xff] %v7411_v29  ;;  %v7413_v54 = vpop.f32.mrf.mxu1  ;;  %v5455_v29 = vor.u32 %v6531_v46, %v5452_v50 }
 0x12c   : > { %10337 = vst [vmem:[#allocation19_spill] sm:$0xff] %v7413_v54  ;;  %v998_v54 = vld [vmem:[%s10293_s2] sm:$0x3] }
 0x12d   : > { %1966 = vmatpush.bf16.msra.mxu1 %v5455_v29  ;;  %v7436_v60 = vperm.slane %v998_v54, 0  ;;  %v7440_v13 = vperm.slane %v998_v54, 1 }
 0x132   : > { %v821_v42 = vpop.f32.mrf.mxu0 }
 0x133   : > { %v950_v35 = vadd.f32 %v821_v42, %v654_v30  ;;  %v890_v3 = vpop.f32.mrf.mxu1  ;;  %v656_v30 = vadd.f32 %v7263_v34, %v7077_v6  ;;  %v659_v42 = vadd.f32 %v7283_v49, %v7084_v9  ;;  %v6826_v6 = vld [vmem:[%s6950_s18 + $0x54] sm:$0xff]   ;;  %v7465_v34 = vpop.f32.mrf.mxu3  ;;  %v6495_v9 = vld [vmem:[%s10294_s3 + $0x204] sm:$0xf] }
 0x134   : > { %v951_v4 = vadd.f32 %v890_v3, %v723_v41  ;;  %v6527_v49 = vld [vmem:[%s10294_s3 + $0x304] sm:$0xf] }
 0x135   : > { %v1004_v26 = vadd.f32 %v7436_v60, %v950_v35  ;;  %5226 = vmatmul.msk.bf16.gmra.mxu0 %vm415_vm0, %v7249_v23  ;;  %v725_v35 = vadd.f32 %v7265_v36, %v7079_v7  ;;  %v728_v7 = vadd.f32 %v7285_v51, %v7087_v11  ;;  %v5308_v11 = vld [vmem:[%s10294_s3 + $0x210] sm:$0xf0] }
 0x136   : > { %v1005_v29 = vadd.f32 %v7440_v13, %v951_v4  ;;  %5237 = vmatmul.msk.bf16.gmra.mxu1 %vm415_vm0, %v7249_v23 }
 0x137   : > { %v1052_v20 = vmax.f32 %v1004_v26, 0.0 }
 0x138   : > { %v1053_v54 = vmax.f32 %v1005_v29, 0.0  ;;  %v7460_v29 = vpop.f32.mrf.mxu2 }
 0x13a   : > { %v1100_v22 = vpack.c.bf16 %v1053_v54, %v1052_v20  ;;  %v823_v3 = vpop.f32.mrf.mxu0 }
 0x13b   : > { %v952_v46 = vadd.f32 %v823_v3, %v656_v30  ;;  %v892_v4 = vpop.f32.mrf.mxu1 }
 0x13c   : > { %v953_v57 = vadd.f32 %v892_v4, %v725_v35  ;;  %v7467_v54 = vunpack.c.l.b16 %v1100_v22  ;;  %v7469_v3 = vunpack.c.h.b16 %v1100_v22  ;;  %v5311_v22 = vor.u32 %v6495_v9, %v5308_v11 }
 0x13d   : > { %v1006_v23 = vadd.f32 %v7436_v60, %v952_v46 }
 0x13e   : > { %v1007_v50 = vadd.f32 %v7440_v13, %v953_v57  ;;  %10338 = vst [vmem:[#allocation20_spill] sm:$0xff] %v7469_v3  ;;  %1898 = vmatpush.bf16.msra.mxu0 %v5311_v22 }
 0x13f   : > { %v1054_v26 = vmax.f32 %v1006_v23, 0.0  ;;  %v5436_v23 = vld [vmem:[%s10294_s3 + $0x310] sm:$0xf0] }
 0x140   : > { %v1055_v41 = vmax.f32 %v1007_v50, 0.0 }
 0x142   : > { %v1101_v36 = vpack.c.bf16 %v1055_v41, %v1054_v26  ;;  %v826_v20 = vpop.f32.mrf.mxu0 }
 0x143   : > { %v954_v30 = vadd.f32 %v826_v20, %v659_v42  ;;  %v895_v35 = vpop.f32.mrf.mxu1  ;;  %v5439_v42 = vor.u32 %v6527_v49, %v5436_v23  ;;  %v661_v20 = vadd.f32 %v7309_v14, %v7107_v18 }
 0x144   : > { %v1147_v46 = vunpack.c.l.b16 %v1101_v36  ;;  %v1148_v4 = vunpack.c.h.b16 %v1101_v36  ;;  %v955_v57 = vadd.f32 %v895_v35, %v728_v7  ;;  %v730_v35 = vadd.f32 %v7313_v16, %v7109_v19 }
 0x145   : > { %v1008_v51 = vadd.f32 %v7436_v60, %v954_v30  ;;  %5227 = vmatmul.msk.bf16.gmra.mxu0 %vm415_vm0, %v6826_v6  ;;  %1967 = vmatpush.bf16.msra.mxu1 %v5439_v42  ;;  %v6734_v30 = vunpack.c.h.b16 %v6972_v33 }
 0x146   : > { %v7486_v50 = vpack.c.b16 %v1147_v46, %v7467_v54  ;;  %v7489_v26 = vpack.c.b16 %v1148_v4, %v7469_v3  ;;  %v1009_v41 = vadd.f32 %v7440_v13, %v955_v57  ;;  %5238 = vmatmul.msk.bf16.gmra.mxu1 %vm415_vm0, %v6826_v6  ;;  %v7500_v6 = vpop.f32.mrf.mxu2 }
 0x147   : > { %v1056_v7 = vmax.f32 %v1008_v51, 0.0  ;;  %v7502_v51 = vpop.f32.mrf.mxu3  ;;  %v371_v18 = vpack.c.b16 %v6734_v30, %v6734_v30 }
 0x148   : > { %v1057_v36 = vmax.f32 %v1009_v41, 0.0  ;;  %1761 = vmatmul.bf16.vlgmr.msra.gmra.mxu2 %v7486_v50  ;;  %1830 = vmatmul.bf16.vlgmr.msra.gmra.mxu3 %v7489_v26 }
 0x14a   : > { %v1102_v57 = vpack.c.bf16 %v1057_v36, %v1056_v7  ;;  %v828_v9 = vpop.f32.mrf.mxu0  ;;  %v664_v7 = vadd.f32 %v7319_v39, %v7126_v27  ;;  %v733_v36 = vadd.f32 %v7323_v40, %v7128_v28  ;;  %v6526_v27 = vld [vmem:[%s10294_s3 + $0x2f4] sm:$0xf0]  ;;  %v5554_v28 = vld [vmem:[%s10294_s3 + $0x3e8] sm:$0xf] }
 0x14b   : > { %v956_v11 = vadd.f32 %v828_v9, %v661_v20  ;;  %v897_v49 = vpop.f32.mrf.mxu1 }
 0x14c   : > { %v1149_v22 = vunpack.c.l.b16 %v1102_v57  ;;  %v1150_v23 = vunpack.c.h.b16 %v1102_v57  ;;  %v957_v41 = vadd.f32 %v897_v49, %v730_v35  ;;  %v373_v35 = vsel %vm360_vm1, %v371_v18, 0 }
 0x14d   : > { %v1010_v3 = vadd.f32 %v7436_v60, %v956_v11 }
 0x14e   : > { %v1011_v14 = vadd.f32 %v7440_v13, %v957_v41  ;;  %v7506_v33 = vpack.c.b16 %v1149_v22, %v1147_v46  ;;  %v7508_v42 = vpack.c.b16 %v1150_v23, %v1148_v4  ;;  %v7524_v39 = vpop.f32.mrf.mxu2  ;;  %v6558_v41 = vld [vmem:[%s10294_s3 + $0x3f4] sm:$0xf0] }
 0x14f   : > { %v1058_v19 = vmax.f32 %v1010_v3, 0.0  ;;  %v5426_v3 = vld [vmem:[%s10294_s3 + $0x2e8] sm:$0xf]  ;;  %v7531_v18 = vpop.f32.mrf.mxu3 }
 0x150   : > { %v1059_v16 = vmax.f32 %v1011_v14, 0.0  ;;  %v5427_v4 = vor.u32 %v6526_v27, %v5426_v3 }
 0x152   : > { %v1103_v20 = vpack.c.bf16 %v1059_v16, %v1058_v19  ;;  %v831_v57 = vpop.f32.mrf.mxu0  ;;  %2029 = vmatpush.bf16.msrb.mxu2 %v5427_v4 }
 0x153   : > { %v958_v9 = vadd.f32 %v831_v57, %v664_v7  ;;  %v900_v30 = vpop.f32.mrf.mxu1  ;;  %v5555_v7 = vor.u32 %v6558_v41, %v5554_v28  ;;  %v666_v57 = vadd.f32 %v7355_v48, %v7142_v31  ;;  %v6524_v31 = vld [vmem:[%s10294_s3 + $0x2ec] sm:$0xf] }
 0x154   : > { %v1151_v11 = vunpack.c.l.b16 %v1103_v20  ;;  %v1152_v49 = vunpack.c.h.b16 %v1103_v20  ;;  %v959_v46 = vadd.f32 %v900_v30, %v733_v36  ;;  %v6556_v48 = vld [vmem:[%s10294_s3 + $0x3ec] sm:$0xf] }
 0x155   : > { %v1012_v40 = vadd.f32 %v7436_v60, %v958_v9  ;;  %5228 = vmatmul.msk.bf16.gmra.mxu0 %vm415_vm0, %v373_v35  ;;  %2098 = vmatpush.bf16.msrb.mxu3 %v5555_v7  ;;  %v735_v9 = vadd.f32 %v7357_v2, %v7144_v32  ;;  %v5428_v32 = vld [vmem:[%s10294_s3 + $0x2f8] sm:$0xf0] }
 0x156   : > { %v1013_v14 = vadd.f32 %v7440_v13, %v959_v46  ;;  %5239 = vmatmul.msk.bf16.gmra.mxu1 %vm415_vm0, %v373_v35  ;;  %v7535_v19 = vpack.c.b16 %v1151_v11, %v1149_v22  ;;  %v7537_v16 = vpack.c.b16 %v1152_v49, %v1150_v23  ;;  %v7560_v2 = vpop.f32.mrf.mxu2 }
 0x157   : > { %v1060_v36 = vmax.f32 %v1012_v40, 0.0  ;;  %v7565_v7 = vpop.f32.mrf.mxu3 }
 0x158   : > { %v1061_v20 = vmax.f32 %v1013_v14, 0.0  ;;  %1766 = vmatmul.bf16.gmra.mxu2 %v7535_v19  ;;  %1835 = vmatmul.bf16.gmra.mxu3 %v7537_v16  ;;  %v5431_v14 = vor.u32 %v6524_v31, %v5428_v32 }
 0x15a   : > { %v1104_v35 = vpack.c.bf16 %v1061_v20, %v1060_v36  ;;  %v833_v22 = vpop.f32.mrf.mxu0  ;;  %2167 = vmatpush.bf16.msrb.mxu0 %v5431_v14  ;;  %v740_v14 = vadd.f32 %v7405_v0, %v7195_v56  ;;  %v5410_v56 = vld [vmem:[%s10294_s3 + $0x2c8] sm:$0xf] }
 0x15b   : > { %v960_v30 = vadd.f32 %v833_v22, %v666_v57  ;;  %v902_v23 = vpop.f32.mrf.mxu1  ;;  %v669_v57 = vadd.f32 %v7367_v5, %v7165_v44  ;;  %v5538_v0 = vld [vmem:[%s10294_s3 + $0x3c8] sm:$0xf] }
 0x15c   : > { %v1153_v46 = vunpack.c.l.b16 %v1104_v35  ;;  %v1154_v3 = vunpack.c.h.b16 %v1104_v35  ;;  %v961_v27 = vadd.f32 %v902_v23, %v735_v9  ;;  %v738_v9 = vadd.f32 %v7369_v10, %v7167_v45 }
 0x15d   : > { %v1014_v28 = vadd.f32 %v7436_v60, %v960_v30 }
 0x15e   : > { %v7546_v40 = vpack.c.b16 %v1153_v46, %v1151_v11  ;;  %v7548_v4 = vpack.c.b16 %v1154_v3, %v1152_v49  ;;  %v1015_v41 = vadd.f32 %v7440_v13, %v961_v27  ;;  %v5556_v49 = vld [vmem:[%s10294_s3 + $0x3f8] sm:$0xf0] }
 0x15f   : > { %v1062_v11 = vmax.f32 %v1014_v28, 0.0  ;;  %v5559_v20 = vor.u32 %v6556_v48, %v5556_v49  ;;  %v671_v48 = vadd.f32 %v7398_v47, %v7193_v55  ;;  %v7587_v49 = vpop.f32.mrf.mxu3  ;;  %v6522_v47 = vld [vmem:[%s10294_s3 + $0x2d4] sm:$0xf0] }
 0x160   : > { %10339 = vst [vmem:[#allocation21_spill] sm:$0xff] %v7548_v4  ;;  %v1063_v36 = vmax.f32 %v1015_v41, 0.0  ;;  %v10340_v4 = vmov 0  }
 0x161   : > { %2236 = vmatpush.bf16.msrb.mxu1 %v5559_v20 }
 0x162   : > { %v1105_v35 = vpack.c.bf16 %v1063_v36, %v1062_v11  ;;  %v836_v22 = vpop.f32.mrf.mxu0  ;;  %v7583_v11 = vpop.f32.mrf.mxu2 }
 0x163   : > { %v962_v30 = vadd.f32 %v836_v22, %v669_v57  ;;  %v905_v23 = vpop.f32.mrf.mxu1 }
 0x164   : > { %v1155_v27 = vunpack.c.l.b16 %v1105_v35  ;;  %v1156_v28 = vunpack.c.h.b16 %v1105_v35  ;;  %v963_v31 = vadd.f32 %v905_v23, %v738_v9 }
 0x165   : > { %v1016_v32 = vadd.f32 %v7436_v60, %v962_v30  ;;  %875 = vmatmul.bf16.gmra.mxu0 %v10340_v4 }
 0x166   : > { %v1017_v41 = vadd.f32 %v7440_v13, %v963_v31  ;;  %944 = vmatmul.bf16.gmra.mxu1 %v10340_v4  ;;  %v7575_v44 = vpack.c.b16 %v1155_v27, %v1153_v46  ;;  %v7577_v5 = vpack.c.b16 %v1156_v28, %v1154_v3 }
 0x167   : > { %v1064_v45 = vmax.f32 %v1016_v32, 0.0  ;;  %v5411_v32 = vor.u32 %v6522_v47, %v5410_v56  ;;  %v5540_v47 = vld [vmem:[%s10294_s3 + $0x3d8] sm:$0xf0] }
 0x168   : > { %v1065_v10 = vmax.f32 %v1017_v41, 0.0  ;;  %1771 = vmatmul.bf16.gmra.mxu2 %v7575_v44  ;;  %1840 = vmatmul.bf16.gmra.mxu3 %v7577_v5 }
 0x169   : > { %2030 = vmatpush.bf16.msrb.mxu2 %v5411_v32 }
 0x16a   : > { %v1106_v46 = vpack.c.bf16 %v1065_v10, %v1064_v45  ;;  %v838_v36 = vpop.f32.mrf.mxu0  ;;  %v674_v45 = vadd.f32 %v7424_v59, %v7200_v58  ;;  %v743_v10 = vadd.f32 %v7429_v43, %v7204_v62  ;;  %v6520_v58 = vld [vmem:[%s10294_s3 + $0x2cc] sm:$0xf]  ;;  %v5412_v62 = vld [vmem:[%s10294_s3 + $0x2d8] sm:$0xf0] }
 0x16b   : > { %v964_v3 = vadd.f32 %v838_v36, %v671_v48  ;;  %v907_v20 = vpop.f32.mrf.mxu1  ;;  %v6552_v59 = vld [vmem:[%s10294_s3 + $0x3cc] sm:$0xf]  ;;  %v5415_v56 = vor.u32 %v6520_v58, %v5412_v62 }
 0x16c   : > { %v1157_v57 = vunpack.c.l.b16 %v1106_v46  ;;  %v1158_v9 = vunpack.c.h.b16 %v1106_v46  ;;  %v965_v35 = vadd.f32 %v907_v20, %v740_v14  ;;  %v7611_v46 = vpop.f32.mrf.mxu2  ;;  %v7613_v20 = vpop.f32.mrf.mxu3 }
 0x16d   : > { %v1018_v22 = vadd.f32 %v7436_v60, %v964_v3  ;;  %2168 = vmatpush.bf16.msrb.mxu0 %v5415_v56  ;;  %v679_v56 = vadd.f32 %v7460_v29, %v7251_v24  ;;  %v5522_v24 = vld [vmem:[%s10294_s3 + $0x3a8] sm:$0xf] }
 0x16e   : > { %v7590_v30 = vpack.c.b16 %v1157_v57, %v1155_v27  ;;  %v7592_v23 = vpack.c.b16 %v1158_v9, %v1156_v28  ;;  %v1019_v55 = vadd.f32 %v7440_v13, %v965_v35  ;;  %v6554_v27 = vld [vmem:[%s10294_s3 + $0x3d4] sm:$0xf0] }
 0x16f   : > { %v1066_v31 = vmax.f32 %v1018_v22, 0.0  ;;  %v5539_v41 = vor.u32 %v6554_v27, %v5538_v0  ;;  %v5543_v27 = vor.u32 %v6552_v59, %v5540_v47  ;;  %v748_v47 = vadd.f32 %v7465_v34, %v7253_v25  ;;  %v6550_v34 = vld [vmem:[%s10294_s3 + $0x3b4] sm:$0xf0] }
 0x170   : > { %v1067_v28 = vmax.f32 %v1019_v55, 0.0 }
 0x171   : > { %2099 = vmatpush.bf16.msrb.mxu3 %v5539_v41  ;;  %2237 = vmatpush.bf16.msrb.mxu1 %v5543_v27 }
 0x172   : > { %v1107_v48 = vpack.c.bf16 %v1067_v28, %v1066_v31  ;;  %v841_v14 = vpop.f32.mrf.mxu0 }
 0x173   : > { %v966_v36 = vadd.f32 %v841_v14, %v674_v45  ;;  %v910_v3 = vpop.f32.mrf.mxu1  ;;  %v676_v45 = vadd.f32 %v7448_v61, %v7228_v52 }
 0x174   : > { %v1159_v35 = vunpack.c.l.b16 %v1107_v48  ;;  %v1160_v22 = vunpack.c.h.b16 %v1107_v48  ;;  %v967_v55 = vadd.f32 %v910_v3, %v743_v10  ;;  %v745_v10 = vadd.f32 %v7450_v63, %v7230_v12  ;;  %v7641_v58 = vpop.f32.mrf.mxu2  ;;  %v7644_v59 = vpop.f32.mrf.mxu3 }
 0x175   : > { %v1020_v43 = vadd.f32 %v7436_v60, %v966_v36  ;;  %1899 = vmatmul.bf16.vlgmr.msra.gmra.mxu0 %v7486_v50 }
 0x176   : > { %v1021_v0 = vadd.f32 %v7440_v13, %v967_v55  ;;  %1968 = vmatmul.bf16.vlgmr.msra.gmra.mxu1 %v7489_v26  ;;  %v7631_v31 = vpack.c.b16 %v1159_v35, %v1157_v57  ;;  %v7633_v32 = vpack.c.b16 %v1160_v22, %v1158_v9 }
 0x177   : > { %v1068_v28 = vmax.f32 %v1020_v43, 0.0 }
 0x178   : > { %v1069_v41 = vmax.f32 %v1021_v0, 0.0  ;;  %1776 = vmatmul.bf16.gmra.mxu2 %v7631_v31  ;;  %1845 = vmatmul.bf16.gmra.mxu3 %v7633_v32 }
 0x17a   : > { %v1108_v48 = vpack.c.bf16 %v1069_v41, %v1068_v28  ;;  %v843_v57 = vpop.f32.mrf.mxu0 }
 0x17b   : > { %v968_v14 = vadd.f32 %v843_v57, %v676_v45  ;;  %v912_v9 = vpop.f32.mrf.mxu1 }
 0x17c   : > { %v1161_v36 = vunpack.c.l.b16 %v1108_v48  ;;  %v1162_v3 = vunpack.c.h.b16 %v1108_v48  ;;  %v969_v55 = vadd.f32 %v912_v9, %v745_v10  ;;  %v6518_v48 = vld [vmem:[%s10294_s3 + $0x2b4] sm:$0xf0] }
 0x17d   : > { %v1022_v62 = vadd.f32 %v7436_v60, %v968_v14 }
 0x17e   : > { %v7646_v43 = vpack.c.b16 %v1161_v36, %v1159_v35  ;;  %v7648_v52 = vpack.c.b16 %v1162_v3, %v1160_v22  ;;  %v1023_v61 = vadd.f32 %v7440_v13, %v969_v55  ;;  %v5394_v22 = vld [vmem:[%s10294_s3 + $0x2a8] sm:$0xf]  ;;  %v5523_v55 = vor.u32 %v6550_v34, %v5522_v24 }
 0x17f   : > { %v1070_v12 = vmax.f32 %v1022_v62, 0.0  ;;  %v5395_v29 = vor.u32 %v6518_v48, %v5394_v22  ;;  %v7675_v62 = vpop.f32.mrf.mxu2 }
 0x180   : > { %v1071_v63 = vmax.f32 %v1023_v61, 0.0  ;;  %2100 = vmatpush.bf16.msrb.mxu3 %v5523_v55 }
 0x181   : > { %2031 = vmatpush.bf16.msrb.mxu2 %v5395_v29 }
 0x182   : > { %v1109_v0 = vpack.c.bf16 %v1071_v63, %v1070_v12  ;;  %v846_v27 = vpop.f32.mrf.mxu0  ;;  %v7677_v12 = vpop.f32.mrf.mxu3 }
 0x183   : > { %v970_v28 = vadd.f32 %v846_v27, %v679_v56  ;;  %v915_v41 = vpop.f32.mrf.mxu1  ;;  %v681_v56 = vadd.f32 %v7500_v6, %v7267_v37  ;;  %v6516_v37 = vld [vmem:[%s10294_s3 + $0x2ac] sm:$0xf] }
 0x184   : > { %v1163_v45 = vunpack.c.l.b16 %v1109_v0  ;;  %v1164_v10 = vunpack.c.h.b16 %v1109_v0  ;;  %v971_v35 = vadd.f32 %v915_v41, %v748_v47  ;;  %v6548_v6 = vld [vmem:[%s10294_s3 + $0x3ac] sm:$0xf] }
 0x185   : > { %v1024_v25 = vadd.f32 %v7436_v60, %v970_v28  ;;  %1904 = vmatmul.bf16.gmra.mxu0 %v7535_v19 }
 0x186   : > { %v1025_v57 = vadd.f32 %v7440_v13, %v971_v35  ;;  %1973 = vmatmul.bf16.gmra.mxu1 %v7537_v16  ;;  %v7671_v14 = vpack.c.b16 %v1163_v45, %v1161_v36  ;;  %v7673_v9 = vpack.c.b16 %v1164_v10, %v1162_v3  ;;  %v750_v36 = vadd.f32 %v7502_v51, %v7269_v38  ;;  %v5396_v38 = vld [vmem:[%s10294_s3 + $0x2b8] sm:$0xf0] }
 0x187   : > { %v1072_v61 = vmax.f32 %v1024_v25, 0.0  ;;  %v5399_v29 = vor.u32 %v6516_v37, %v5396_v38  ;;  %v7705_v55 = vpop.f32.mrf.mxu2  ;;  %v686_v37 = vadd.f32 %v7560_v2, %v7307_v8  ;;  %v755_v38 = vadd.f32 %v7565_v7, %v7311_v15  ;;  %v5378_v15 = vld [vmem:[%s10294_s3 + $0x288] sm:$0xf]  ;;  %v6514_v2 = vld [vmem:[%s10294_s3 + $0x294] sm:$0xf0] }
 0x188   : > { %v1073_v63 = vmax.f32 %v1025_v57, 0.0  ;;  %1781 = vmatmul.bf16.gmra.mxu2 %v7671_v14  ;;  %1850 = vmatmul.bf16.gmra.mxu3 %v7673_v9  ;;  %v684_v57 = vadd.f32 %v7524_v39, %v7287_v53  ;;  %v5506_v7 = vld [vmem:[%s10294_s3 + $0x388] sm:$0xf] }
 0x189   : > { %2169 = vmatpush.bf16.msrb.mxu0 %v5399_v29 }
 0x18a   : > { %v1110_v3 = vpack.c.bf16 %v1073_v63, %v1072_v61  ;;  %v848_v47 = vpop.f32.mrf.mxu0  ;;  %v753_v61 = vadd.f32 %v7531_v18, %v7289_v1  ;;  %v7709_v63 = vpop.f32.mrf.mxu3 }
 0x18b   : > { %v972_v0 = vadd.f32 %v848_v47, %v681_v56  ;;  %v917_v27 = vpop.f32.mrf.mxu1 }
 0x18c   : > { %v1165_v28 = vunpack.c.l.b16 %v1110_v3  ;;  %v1166_v41 = vunpack.c.h.b16 %v1110_v3  ;;  %v973_v35 = vadd.f32 %v917_v27, %v750_v36 }
 0x18d   : > { %v1026_v22 = vadd.f32 %v7436_v60, %v972_v0 }
 0x18e   : > { %v7686_v48 = vpack.c.b16 %v1165_v28, %v1163_v45  ;;  %v7688_v24 = vpack.c.b16 %v1166_v41, %v1164_v10  ;;  %v1027_v25 = vadd.f32 %v7440_v13, %v973_v35  ;;  %v5524_v45 = vld [vmem:[%s10294_s3 + $0x3b8] sm:$0xf0] }
 0x18f   : > { %v1074_v51 = vmax.f32 %v1026_v22, 0.0  ;;  %v5527_v34 = vor.u32 %v6548_v6, %v5524_v45  ;;  %v7725_v29 = vpop.f32.mrf.mxu2 }
 0x190   : > { %v1075_v10 = vmax.f32 %v1027_v25, 0.0 }
 0x191   : > { %2238 = vmatpush.bf16.msrb.mxu1 %v5527_v34 }
 0x192   : > { %v1111_v56 = vpack.c.bf16 %v1075_v10, %v1074_v51  ;;  %v851_v36 = vpop.f32.mrf.mxu0 }
 0x193   : > { %v974_v3 = vadd.f32 %v851_v36, %v684_v57  ;;  %v920_v47 = vpop.f32.mrf.mxu1 }
 0x194   : > { %v1167_v0 = vunpack.c.l.b16 %v1111_v56  ;;  %v1168_v27 = vunpack.c.h.b16 %v1111_v56  ;;  %v975_v35 = vadd.f32 %v920_v47, %v753_v61  ;;  %v5379_v47 = vor.u32 %v6514_v2, %v5378_v15 }
 0x195   : > { %v1028_v22 = vadd.f32 %v7436_v60, %v974_v3  ;;  %1909 = vmatmul.bf16.gmra.mxu0 %v7575_v44 }
 0x196   : > { %v1029_v53 = vadd.f32 %v7440_v13, %v975_v35  ;;  %1978 = vmatmul.bf16.gmra.mxu1 %v7577_v5  ;;  %v7715_v39 = vpack.c.b16 %v1167_v0, %v1165_v28  ;;  %v7717_v1 = vpack.c.b16 %v1168_v27, %v1166_v41  ;;  %v7727_v41 = vpop.f32.mrf.mxu3  ;;  %2032 = vmatpush.bf16.msrb.mxu2 %v5379_v47 }
 0x197   : > { %v1076_v18 = vmax.f32 %v1028_v22, 0.0  ;;  %v689_v22 = vadd.f32 %v7583_v11, %v7315_v17  ;;  %v5380_v17 = vld [vmem:[%s10294_s3 + $0x298] sm:$0xf0]  ;;  %v7760_v11 = vpop.f32.mrf.mxu2 }
 0x198   : > { %v1077_v25 = vmax.f32 %v1029_v53, 0.0  ;;  %1786 = vmatmul.bf16.gmra.mxu2 %v7715_v39  ;;  %1855 = vmatmul.bf16.gmra.mxu3 %v7717_v1  ;;  %v758_v53 = vadd.f32 %v7587_v49, %v7317_v21  ;;  %v6544_v21 = vld [vmem:[%s10294_s3 + $0x38c] sm:$0xf] }
 0x19a   : > { %v1112_v6 = vpack.c.bf16 %v1077_v25, %v1076_v18  ;;  %v853_v51 = vpop.f32.mrf.mxu0 }
 0x19b   : > { %v976_v28 = vadd.f32 %v853_v51, %v686_v37  ;;  %v922_v45 = vpop.f32.mrf.mxu1 }
 0x19c   : > { %v1169_v10 = vunpack.c.l.b16 %v1112_v6  ;;  %v1170_v34 = vunpack.c.h.b16 %v1112_v6  ;;  %v977_v57 = vadd.f32 %v922_v45, %v755_v38  ;;  %v6512_v45 = vld [vmem:[%s10294_s3 + $0x28c] sm:$0xf] }
 0x19d   : > { %v1030_v61 = vadd.f32 %v7436_v60, %v976_v28 }
 0x19e   : > { %v7730_v56 = vpack.c.b16 %v1169_v10, %v1167_v0  ;;  %v7732_v36 = vpack.c.b16 %v1170_v34, %v1168_v27  ;;  %v1031_v8 = vadd.f32 %v7440_v13, %v977_v57  ;;  %v6546_v0 = vld [vmem:[%s10294_s3 + $0x394] sm:$0xf0]  ;;  %v5383_v57 = vor.u32 %v6512_v45, %v5380_v17 }
 0x19f   : > { %v1078_v3 = vmax.f32 %v1030_v61, 0.0  ;;  %v5507_v35 = vor.u32 %v6546_v0, %v5506_v7  ;;  %v5508_v61 = vld [vmem:[%s10294_s3 + $0x398] sm:$0xf0] }
 0x1a0   : > { %v1079_v27 = vmax.f32 %v1031_v8, 0.0  ;;  %v7767_v8 = vpop.f32.mrf.mxu3  ;;  %2170 = vmatpush.bf16.msrb.mxu0 %v5383_v57 }
 0x1a1   : > { %2101 = vmatpush.bf16.msrb.mxu3 %v5507_v35 }
 0x1a2   : > { %v1113_v18 = vpack.c.bf16 %v1079_v27, %v1078_v3  ;;  %v856_v25 = vpop.f32.mrf.mxu0  ;;  %v5511_v3 = vor.u32 %v6544_v21, %v5508_v61  ;;  %v10341_v27 = vld [vmem:[#allocation10_spill] sm:$0xff] }
 0x1a3   : > { %v978_v37 = vadd.f32 %v856_v25, %v689_v22  ;;  %v925_v38 = vpop.f32.mrf.mxu1  ;;  %v691_v35 = vadd.f32 %v7611_v46, %v10341_v27  ;;  %v10342_v22 = vld [vmem:[#allocation11_spill] sm:$0xff]  ;;  %v7787_v46 = vpop.f32.mrf.mxu2 }
 0x1a4   : > { %v1171_v6 = vunpack.c.l.b16 %v1113_v18  ;;  %v1172_v51 = vunpack.c.h.b16 %v1113_v18  ;;  %v979_v28 = vadd.f32 %v925_v38, %v758_v53  ;;  %2239 = vmatpush.bf16.msrb.mxu1 %v5511_v3  ;;  %v760_v53 = vadd.f32 %v7613_v20, %v10342_v22 }
 0x1a5   : > { %v1032_v49 = vadd.f32 %v7436_v60, %v978_v37  ;;  %1914 = vmatmul.bf16.gmra.mxu0 %v7631_v31 }
 0x1a6   : > { %v1033_v15 = vadd.f32 %v7440_v13, %v979_v28  ;;  %1983 = vmatmul.bf16.gmra.mxu1 %v7633_v32  ;;  %v7771_v2 = vpack.c.b16 %v1171_v6, %v1169_v10  ;;  %v7773_v7 = vpack.c.b16 %v1172_v51, %v1170_v34 }
 0x1a7   : > { %v1080_v47 = vmax.f32 %v1032_v49, 0.0 }
 0x1a8   : > { %v1081_v0 = vmax.f32 %v1033_v15, 0.0  ;;  %1791 = vmatmul.bf16.gmra.mxu2 %v7771_v2  ;;  %1860 = vmatmul.bf16.gmra.mxu3 %v7773_v7  ;;  %v7789_v61 = vpop.f32.mrf.mxu3  ;;  %v10345_v15 = vld [vmem:[#allocation12_spill] sm:$0xff] }
 0x1a9   : > { %v694_v3 = vadd.f32 %v7641_v58, %v10345_v15  ;;  %v5490_v58 = vld [vmem:[%s10294_s3 + $0x368] sm:$0xf] }
 0x1aa   : > { %v1114_v18 = vpack.c.bf16 %v1081_v0, %v1080_v47  ;;  %v858_v10 = vpop.f32.mrf.mxu0  ;;  %v10346_v47 = vld [vmem:[#allocation13_spill] sm:$0xff] }
 0x1ab   : > { %v980_v25 = vadd.f32 %v858_v10, %v691_v35  ;;  %v927_v34 = vpop.f32.mrf.mxu1  ;;  %v763_v0 = vadd.f32 %v7644_v59, %v10346_v47  ;;  %v5362_v10 = vld [vmem:[%s10294_s3 + $0x268] sm:$0xf]  ;;  %v10347_v47 = vld [vmem:[#allocation14_spill] sm:$0xff] }
 0x1ac   : > { %v1173_v37 = vunpack.c.l.b16 %v1114_v18  ;;  %v1174_v38 = vunpack.c.h.b16 %v1114_v18  ;;  %v981_v28 = vadd.f32 %v927_v34, %v760_v53 }
 0x1ad   : > { %v1034_v45 = vadd.f32 %v7436_v60, %v980_v25  ;;  %v6510_v25 = vld [vmem:[%s10294_s3 + $0x274] sm:$0xf0] }
 0x1ae   : > { %v7782_v17 = vpack.c.b16 %v1173_v37, %v1171_v6  ;;  %v7784_v21 = vpack.c.b16 %v1174_v38, %v1172_v51  ;;  %v1035_v49 = vadd.f32 %v7440_v13, %v981_v28  ;;  %v5363_v34 = vor.u32 %v6510_v25, %v5362_v10  ;;  %v6542_v28 = vld [vmem:[%s10294_s3 + $0x374] sm:$0xf0] }
 0x1af   : > { %v1082_v57 = vmax.f32 %v1034_v45, 0.0 }
 0x1b0   : > { %10343 = vst [vmem:[#allocation10_spill] sm:$0xff] %v7782_v17  ;;  %v1083_v20 = vmax.f32 %v1035_v49, 0.0  ;;  %2033 = vmatpush.bf16.msrb.mxu2 %v5363_v34 }
 0x1b1   : > { %10344 = vst [vmem:[#allocation11_spill] sm:$0xff] %v7784_v21  ;;  %v10358_v21 = vld [vmem:[#allocation2_spill] sm:$0xff] }
 0x1b2   : > { %v1115_v27 = vpack.c.bf16 %v1083_v20, %v1082_v57  ;;  %v861_v35 = vpop.f32.mrf.mxu0  ;;  %v5491_v20 = vor.u32 %v6542_v28, %v5490_v58 }
 0x1b3   : > { %v982_v6 = vadd.f32 %v861_v35, %v694_v3  ;;  %v930_v22 = vpop.f32.mrf.mxu1  ;;  %v10348_v35 = vld [vmem:[#allocation15_spill] sm:$0xff] }
 0x1b4   : > { %v1175_v51 = vunpack.c.l.b16 %v1115_v27  ;;  %v1176_v53 = vunpack.c.h.b16 %v1115_v27  ;;  %v983_v18 = vadd.f32 %v930_v22, %v763_v0  ;;  %v696_v0 = vadd.f32 %v7675_v62, %v10347_v47  ;;  %v7819_v27 = vpop.f32.mrf.mxu2  ;;  %2102 = vmatpush.bf16.msrb.mxu3 %v5491_v20  ;;  %v5364_v20 = vld [vmem:[%s10294_s3 + $0x278] sm:$0xf0] }
 0x1b5   : > { %v1036_v59 = vadd.f32 %v7436_v60, %v982_v6  ;;  %1919 = vmatmul.bf16.gmra.mxu0 %v7671_v14  ;;  %v7823_v6 = vpop.f32.mrf.mxu3 }
 0x1b6   : > { %v1037_v45 = vadd.f32 %v7440_v13, %v983_v18  ;;  %1988 = vmatmul.bf16.gmra.mxu1 %v7673_v9  ;;  %v7811_v49 = vpack.c.b16 %v1175_v51, %v1173_v37  ;;  %v7813_v57 = vpack.c.b16 %v1176_v53, %v1174_v38  ;;  %v765_v37 = vadd.f32 %v7677_v12, %v10348_v35  ;;  %v6508_v12 = vld [vmem:[%s10294_s3 + $0x26c] sm:$0xf]  ;;  %v10351_v35 = vld [vmem:[#allocation16_spill] sm:$0xff] }
 0x1b7   : > { %v1084_v15 = vmax.f32 %v1036_v59, 0.0  ;;  %v5367_v47 = vor.u32 %v6508_v12, %v5364_v20 }
 0x1b8   : > { %v1085_v3 = vmax.f32 %v1037_v45, 0.0  ;;  %1796 = vmatmul.bf16.gmra.mxu2 %v7811_v49  ;;  %1865 = vmatmul.bf16.gmra.mxu3 %v7813_v57 }
 0x1b9   : > { %2171 = vmatpush.bf16.msrb.mxu0 %v5367_v47 }
 0x1ba   : > { %v1116_v38 = vpack.c.bf16 %v1085_v3, %v1084_v15  ;;  %v863_v22 = vpop.f32.mrf.mxu0  ;;  %v6540_v15 = vld [vmem:[%s10294_s3 + $0x36c] sm:$0xf] }
 0x1bb   : > { %v984_v18 = vadd.f32 %v863_v22, %v696_v0  ;;  %v932_v10 = vpop.f32.mrf.mxu1 }
 0x1bc   : > { %v1177_v25 = vunpack.c.l.b16 %v1116_v38  ;;  %v1178_v58 = vunpack.c.h.b16 %v1116_v38  ;;  %v985_v59 = vadd.f32 %v932_v10, %v765_v37  ;;  %v699_v37 = vadd.f32 %v7705_v55, %v10351_v35  ;;  %v10352_v38 = vld [vmem:[#allocation17_spill] sm:$0xff]  ;;  %v10354_v35 = vld [vmem:[#allocation19_spill] sm:$0xff] }
 0x1bd   : > { %v1038_v34 = vadd.f32 %v7436_v60, %v984_v18  ;;  %v768_v22 = vadd.f32 %v7709_v63, %v10352_v38  ;;  %v7849_v20 = vpop.f32.mrf.mxu3 }
 0x1be   : > { %v7826_v28 = vpack.c.b16 %v1177_v25, %v1175_v51  ;;  %v7828_v62 = vpack.c.b16 %v1178_v58, %v1176_v53  ;;  %v1039_v45 = vadd.f32 %v7440_v13, %v985_v59  ;;  %v5492_v51 = vld [vmem:[%s10294_s3 + $0x378] sm:$0xf0]  ;;  %v7847_v59 = vpop.f32.mrf.mxu2 }
 0x1bf   : > { %v1086_v3 = vmax.f32 %v1038_v34, 0.0  ;;  %v5495_v0 = vor.u32 %v6540_v15, %v5492_v51 }
 0x1c0   : > { %10349 = vst [vmem:[#allocation12_spill] sm:$0xff] %v7826_v28  ;;  %v1087_v53 = vmax.f32 %v1039_v45, 0.0 }
 0x1c1   : > { %10350 = vst [vmem:[#allocation13_spill] sm:$0xff] %v7828_v62  ;;  %2240 = vmatpush.bf16.msrb.mxu1 %v5495_v0 }
 0x1c2   : > { %v1117_v18 = vpack.c.bf16 %v1087_v53, %v1086_v3  ;;  %v866_v10 = vpop.f32.mrf.mxu0  ;;  %v10353_v53 = vld [vmem:[#allocation18_spill] sm:$0xff] }
 0x1c3   : > { %v986_v34 = vadd.f32 %v866_v10, %v699_v37  ;;  %v935_v12 = vpop.f32.mrf.mxu1  ;;  %v701_v0 = vadd.f32 %v7725_v29, %v10353_v53  ;;  %v770_v37 = vadd.f32 %v7727_v41, %v10354_v35  ;;  %v6506_v29 = vld [vmem:[%s10294_s3 + $0x254] sm:$0xf0]  ;;  %v5474_v41 = vld [vmem:[%s10294_s3 + $0x348] sm:$0xf] }
 0x1c4   : > { %v1179_v62 = vunpack.c.l.b16 %v1117_v18  ;;  %v1180_v28 = vunpack.c.h.b16 %v1117_v18  ;;  %v987_v45 = vadd.f32 %v935_v12, %v768_v22  ;;  %v6538_v53 = vld [vmem:[%s10294_s3 + $0x354] sm:$0xf0] }
 0x1c5   : > { %v1040_v15 = vadd.f32 %v7436_v60, %v986_v34  ;;  %1924 = vmatmul.bf16.gmra.mxu0 %v7715_v39 }
 0x1c6   : > { %v1041_v55 = vadd.f32 %v7440_v13, %v987_v45  ;;  %1993 = vmatmul.bf16.gmra.mxu1 %v7717_v1  ;;  %v7855_v63 = vpack.c.b16 %v1179_v62, %v1177_v25  ;;  %v7857_v3 = vpack.c.b16 %v1180_v28, %v1178_v58 }
 0x1c7   : > { %v1088_v47 = vmax.f32 %v1040_v15, 0.0  ;;  %v5346_v15 = vld [vmem:[%s10294_s3 + $0x248] sm:$0xf] }
 0x1c8   : > { %v1089_v51 = vmax.f32 %v1041_v55, 0.0  ;;  %1801 = vmatmul.bf16.gmra.mxu2 %v7855_v63  ;;  %1870 = vmatmul.bf16.gmra.mxu3 %v7857_v3 }
 0x1ca   : > { %v1118_v38 = vpack.c.bf16 %v1089_v51, %v1088_v47  ;;  %v868_v22 = vpop.f32.mrf.mxu0  ;;  %v5347_v51 = vor.u32 %v6506_v29, %v5346_v15 }
 0x1cb   : > { %v988_v18 = vadd.f32 %v868_v22, %v701_v0  ;;  %v937_v10 = vpop.f32.mrf.mxu1  ;;  %v1762_v25 = vpop.f32.mrf.mxu2 }
 0x1cc   : > { %v1181_v34 = vunpack.c.l.b16 %v1118_v38  ;;  %v1182_v58 = vunpack.c.h.b16 %v1118_v38  ;;  %v989_v12 = vadd.f32 %v937_v10, %v770_v37  ;;  %v1831_v45 = vpop.f32.mrf.mxu3  ;;  %v5475_v38 = vor.u32 %v6538_v53, %v5474_v41  ;;  %2034 = vmatpush.bf16.msrb.mxu2 %v5347_v51  ;;  %v6504_v41 = vld [vmem:[%s10294_s3 + $0x24c] sm:$0xf]  ;;  %v5476_v53 = vld [vmem:[%s10294_s3 + $0x358] sm:$0xf0] }
 0x1cd   : > { %v1042_v55 = vadd.f32 %v7436_v60, %v988_v18  ;;  %v7875_v47 = vadd.f32 %v1831_v45, %v1762_v25  ;;  %v704_v18 = vadd.f32 %v7760_v11, %v10358_v21  ;;  %v10359_v25 = vld [vmem:[#allocation3_spill] sm:$0xff]  ;;  %v5348_v11 = vld [vmem:[%s10294_s3 + $0x258] sm:$0xf0] }
 0x1ce   : > { %v7880_v0 = vpack.c.b16 %v1181_v34, %v1179_v62  ;;  %v7882_v35 = vpack.c.b16 %v1182_v58, %v1180_v28  ;;  %v1043_v37 = vadd.f32 %v7440_v13, %v989_v12  ;;  %2103 = vmatpush.bf16.msrb.mxu3 %v5475_v38  ;;  %v773_v45 = vadd.f32 %v7767_v8, %v10359_v25  ;;  %v6536_v8 = vld [vmem:[%s10294_s3 + $0x34c] sm:$0xf] }
 0x1cf   : > { %10355 = vst [vmem:[#allocation14_spill] sm:$0xff] %v7875_v47  ;;  %v1090_v22 = vmax.f32 %v1042_v55, 0.0  ;;  %v5351_v51 = vor.u32 %v6504_v41, %v5348_v11 }
 0x1d0   : > { %10356 = vst [vmem:[#allocation15_spill] sm:$0xff] %v7880_v0  ;;  %v1091_v10 = vmax.f32 %v1043_v37, 0.0 }
 0x1d1   : > { %10357 = vst [vmem:[#allocation16_spill] sm:$0xff] %v7882_v35  ;;  %2172 = vmatpush.bf16.msrb.mxu0 %v5351_v51 }
 0x1d2   : > { %v1119_v15 = vpack.c.bf16 %v1091_v10, %v1090_v22  ;;  %v871_v29 = vpop.f32.mrf.mxu0  ;;  %v5479_v10 = vor.u32 %v6536_v8, %v5476_v53  ;;  %v5458_v53 = vld [vmem:[%s10294_s3 + $0x328] sm:$0xf] }
 0x1d3   : > { %v990_v47 = vadd.f32 %v871_v29, %v704_v18  ;;  %v940_v62 = vpop.f32.mrf.mxu1  ;;  %v1764_v0 = vpop.f32.mrf.mxu2 }
 0x1d4   : > { %v1183_v28 = vunpack.c.l.b16 %v1119_v15  ;;  %v1184_v35 = vunpack.c.h.b16 %v1119_v15  ;;  %v991_v17 = vadd.f32 %v940_v62, %v773_v45  ;;  %v1833_v12 = vpop.f32.mrf.mxu3  ;;  %2241 = vmatpush.bf16.msrb.mxu1 %v5479_v10  ;;  %v10361_v45 = vld [vmem:[#allocation5_spill] sm:$0xff] }
 0x1d5   : > { %v1044_v21 = vadd.f32 %v7436_v60, %v990_v47  ;;  %v7899_v55 = vadd.f32 %v1833_v12, %v1764_v0  ;;  %1929 = vmatmul.bf16.gmra.mxu0 %v7771_v2  ;;  %v10360_v0 = vld [vmem:[#allocation4_spill] sm:$0xff] }
 0x1d6   : > { %v1045_v37 = vadd.f32 %v7440_v13, %v991_v17  ;;  %1998 = vmatmul.bf16.gmra.mxu1 %v7773_v7  ;;  %v7907_v38 = vpack.c.b16 %v1183_v28, %v1181_v34  ;;  %v7909_v22 = vpack.c.b16 %v1184_v35, %v1182_v58  ;;  %v706_v25 = vadd.f32 %v7787_v46, %v10360_v0  ;;  %v5330_v46 = vld [vmem:[%s10294_s3 + $0x228] sm:$0xf]  ;;  %v6534_v0 = vld [vmem:[%s10294_s3 + $0x334] sm:$0xf0] }
 0x1d7   : > { %v1092_v18 = vmax.f32 %v1044_v21, 0.0  ;;  %v775_v17 = vadd.f32 %v7789_v61, %v10361_v45  ;;  %v6502_v61 = vld [vmem:[%s10294_s3 + $0x234] sm:$0xf0]  ;;  %v5459_v45 = vor.u32 %v6534_v0, %v5458_v53 }
 0x1d8   : > { %v1093_v47 = vmax.f32 %v1045_v37, 0.0  ;;  %1806 = vmatmul.bf16.gmra.mxu2 %v7907_v38  ;;  %1875 = vmatmul.bf16.gmra.mxu3 %v7909_v22  ;;  %v6530_v0 = vld [vmem:[%s10294_s3 + $0x314] sm:$0xf0] }
 0x1d9   : > { %2104 = vmatpush.bf16.msrb.mxu3 %v5459_v45 }
 0x1da   : > { %v1120_v15 = vpack.c.bf16 %v1093_v47, %v1092_v18  ;;  %v873_v34 = vpop.f32.mrf.mxu0  ;;  %v5331_v47 = vor.u32 %v6502_v61, %v5330_v46  ;;  %v5314_v46 = vld [vmem:[%s10294_s3 + $0x208] sm:$0xf] }
 0x1db   : > { %v992_v29 = vadd.f32 %v873_v34, %v706_v25  ;;  %v942_v58 = vpop.f32.mrf.mxu1  ;;  %v1767_v62 = vpop.f32.mrf.mxu2 }
 0x1dc   : > { %v1185_v12 = vunpack.c.l.b16 %v1120_v15  ;;  %v1186_v41 = vunpack.c.h.b16 %v1120_v15  ;;  %v993_v11 = vadd.f32 %v942_v58, %v775_v17  ;;  %v1836_v8 = vpop.f32.mrf.mxu3  ;;  %2035 = vmatpush.bf16.msrb.mxu2 %v5331_v47  ;;  %v10364_v15 = vld [vmem:[#allocation6_spill] sm:$0xff] }
 0x1dd   : > { %v1046_v21 = vadd.f32 %v7436_v60, %v992_v29  ;;  %v7918_v51 = vadd.f32 %v1836_v8, %v1767_v62  ;;  %v709_v34 = vadd.f32 %v7819_v27, %v10364_v15  ;;  %v10365_v29 = vld [vmem:[#allocation7_spill] sm:$0xff] }
 0x1de   : > { %v7929_v37 = vpack.c.b16 %v1185_v12, %v1183_v28  ;;  %v7931_v10 = vpack.c.b16 %v1186_v41, %v1184_v35  ;;  %v1047_v18 = vadd.f32 %v7440_v13, %v993_v11  ;;  %v778_v28 = vadd.f32 %v7823_v6, %v10365_v29  ;;  %v5442_v27 = vld [vmem:[%s10294_s3 + $0x308] sm:$0xf] }
 0x1df   : > { %v1094_v25 = vmax.f32 %v1046_v21, 0.0  ;;  %v6498_v21 = vld [vmem:[%s10294_s3 + $0x214] sm:$0xf0] }
 0x1e0   : > { %10362 = vst [vmem:[#allocation17_spill] sm:$0xff] %v7929_v37  ;;  %v1095_v17 = vmax.f32 %v1047_v18, 0.0  ;;  %v5315_v47 = vor.u32 %v6498_v21, %v5314_v46  ;;  %v10366_v46 = vld [vmem:[#allocation8_spill] sm:$0xff] }
 0x1e1   : > { %10363 = vst [vmem:[#allocation18_spill] sm:$0xff] %v7931_v10  ;;  %v711_v21 = vadd.f32 %v7847_v59, %v10366_v46 }
 0x1e2   : > { %v1121_v35 = vpack.c.bf16 %v1095_v17, %v1094_v25  ;;  %v876_v58 = vpop.f32.mrf.mxu0  ;;  %v5443_v17 = vor.u32 %v6530_v0, %v5442_v27  ;;  %2036 = vmatpush.bf16.msrb.mxu2 %v5315_v47  ;;  %v10367_v27 = vld [vmem:[#allocation9_spill] sm:$0xff] }
 0x1e3   : > { %v994_v62 = vadd.f32 %v876_v58, %v709_v34  ;;  %v945_v11 = vpop.f32.mrf.mxu1  ;;  %v1769_v8 = vpop.f32.mrf.mxu2  ;;  %v6532_v58 = vld [vmem:[%s10294_s3 + $0x32c] sm:$0xf] }
 0x1e4   : > { %v1238_v61 = vunpack.c.l.b16 %v1121_v35  ;;  %v1239_v53 = vunpack.c.h.b16 %v1121_v35  ;;  %v995_v6 = vadd.f32 %v945_v11, %v778_v28  ;;  %v1838_v18 = vpop.f32.mrf.mxu3  ;;  %v6500_v28 = vld [vmem:[%s10294_s3 + $0x22c] sm:$0xf]  ;;  %v5332_v35 = vld [vmem:[%s10294_s3 + $0x238] sm:$0xf0]  ;;  %2105 = vmatpush.bf16.msrb.mxu3 %v5443_v17 }
 0x1e5   : > { %v1048_v25 = vadd.f32 %v7436_v60, %v994_v62  ;;  %v7954_v45 = vadd.f32 %v1838_v18, %v1769_v8  ;;  %1934 = vmatmul.bf16.gmra.mxu0 %v7811_v49  ;;  %v5335_v11 = vor.u32 %v6500_v28, %v5332_v35 }
 0x1e6   : > { %v1049_v15 = vadd.f32 %v7440_v13, %v995_v6  ;;  %2003 = vmatmul.bf16.gmra.mxu1 %v7813_v57  ;;  %v7959_v34 = vpack.c.b16 %v1238_v61, %v1185_v12  ;;  %v7961_v29 = vpack.c.b16 %v1239_v53, %v1186_v41  ;;  %v5460_v12 = vld [vmem:[%s10294_s3 + $0x338] sm:$0xf0]  ;;  %v780_v6 = vadd.f32 %v7849_v20, %v10367_v27 }
 0x1e7   : > { %v1096_v62 = vmax.f32 %v1048_v25, 0.0  ;;  %v5463_v8 = vor.u32 %v6532_v58, %v5460_v12  ;;  %2173 = vmatpush.bf16.msrb.mxu0 %v5335_v11 }
 0x1e8   : > { %v1097_v41 = vmax.f32 %v1049_v15, 0.0  ;;  %1811 = vmatmul.bf16.gmra.mxu2 %v7959_v34  ;;  %1880 = vmatmul.bf16.gmra.mxu3 %v7961_v29 }
 0x1e9   : > { %2242 = vmatpush.bf16.msrb.mxu1 %v5463_v8 }
 0x1ea   : > { %v1122_v18 = vpack.c.bf16 %v1097_v41, %v1096_v62  ;;  %v878_v47 = vpop.f32.mrf.mxu0 }
 0x1eb   : > { %v996_v0 = vadd.f32 %v878_v47, %v711_v21  ;;  %v947_v25 = vpop.f32.mrf.mxu1  ;;  %v1772_v17 = vpop.f32.mrf.mxu2 }
 0x1ec   : > { %v1240_v28 = vunpack.c.l.b16 %v1122_v18  ;;  %v1241_v15 = vunpack.c.h.b16 %v1122_v18  ;;  %v997_v35 = vadd.f32 %v947_v25, %v780_v6  ;;  %v1841_v10 = vpop.f32.mrf.mxu3 }
 0x1ed   : > { %v1050_v37 = vadd.f32 %v7436_v60, %v996_v0  ;;  %v7982_v58 = vadd.f32 %v1841_v10, %v1772_v17 }
 0x1ee   : > { %v1051_v59 = vadd.f32 %v7440_v13, %v997_v35  ;;  %v7985_v11 = vpack.c.b16 %v1240_v28, %v1238_v61  ;;  %v7987_v12 = vpack.c.b16 %v1241_v15, %v1239_v53  ;;  %v6528_v35 = vld [vmem:[%s10294_s3 + $0x30c] sm:$0xf] }
 0x1ef   : > { %v1098_v20 = vmax.f32 %v1050_v37, 0.0 }
 0x1f0   : > { %10368 = vst [vmem:[#allocation19_spill] sm:$0xff] %v7985_v11  ;;  %v1099_v62 = vmax.f32 %v1051_v59, 0.0 }
 0x1f1   : > { %10369 = vst [vmem:[#allocation2_spill] sm:$0xff] %v7987_v12 }
 0x1f2   : > { %v1123_v41 = vpack.c.bf16 %v1099_v62, %v1098_v20  ;;  %v1900_v8 = vpop.f32.mrf.mxu0  ;;  %v5444_v20 = vld [vmem:[%s10294_s3 + $0x318] sm:$0xf0] }
 0x1f3   : > { %v1774_v46 = vpop.f32.mrf.mxu2  ;;  %v1969_v21 = vpop.f32.mrf.mxu1  ;;  %v5447_v62 = vor.u32 %v6528_v35, %v5444_v20  ;;  %v6461_v20 = vld [vmem:[%s10294_s3 + $0xec] sm:$0xf0] }
 0x1f4   : > { %v7989_v27 = vunpack.c.l.b16 %v1123_v41  ;;  %v7991_v6 = vunpack.c.h.b16 %v1123_v41  ;;  %v1843_v18 = vpop.f32.mrf.mxu3  ;;  %v7993_v60 = vadd.f32 %v1969_v21, %v1900_v8 }
 0x1f5   : > { %v7995_v10 = vadd.f32 %v1843_v18, %v1774_v46  ;;  %1939 = vmatmul.bf16.gmra.mxu0 %v7855_v63  ;;  %2243 = vmatpush.bf16.msrb.mxu1 %v5447_v62  ;;  %v5802_v62 = vld [vmem:[%s10294_s3 + $0x1e0] sm:$0xf] }
 0x1f6   : > { %10370 = vst [vmem:[#allocation3_spill] sm:$0xff] %v7989_v27  ;;  %2008 = vmatmul.bf16.gmra.mxu1 %v7857_v3  ;;  %v8000_v13 = vpack.c.b16 %v7989_v27, %v1240_v28  ;;  %v8003_v37 = vpack.c.b16 %v7991_v6, %v1241_v15  ;;  %v6496_v28 = vld [vmem:[%s10294_s3 + $0x20c] sm:$0xf]  ;;  %v5316_v15 = vld [vmem:[%s10294_s3 + $0x218] sm:$0xf0] }
 0x1f7   : > { %10371 = vst [vmem:[#allocation4_spill] sm:$0xff] %v7991_v6  ;;  %v5319_v59 = vor.u32 %v6496_v28, %v5316_v15 }
 0x1f8   : > { %1816 = vmatmul.bf16.gmra.mxu2 %v8000_v13  ;;  %1885 = vmatmul.bf16.gmra.mxu3 %v8003_v37 }
 0x1f9   : > { %2174 = vmatpush.bf16.msrb.mxu0 %v5319_v59  ;;  %v5674_v59 = vld [vmem:[%s10294_s3 + $0xe0] sm:$0xf] }
 0x1fa   : > { %v1902_v61 = vpop.f32.mrf.mxu0 }
 0x1fb   : > { %v1777_v53 = vpop.f32.mrf.mxu2  ;;  %v1971_v47 = vpop.f32.mrf.mxu1 }
 0x1fc   : > { %v1846_v0 = vpop.f32.mrf.mxu3  ;;  %v8007_v25 = vadd.f32 %v1971_v47, %v1902_v61 }
 0x1fd   : > { %v8009_v17 = vadd.f32 %v1846_v0, %v1777_v53 }
 0x202   : > { %v1905_v41 = vpop.f32.mrf.mxu0 }
 0x203   : > { %v1779_v8 = vpop.f32.mrf.mxu2  ;;  %v1974_v46 = vpop.f32.mrf.mxu1 }
 0x204   : > { %v1848_v21 = vpop.f32.mrf.mxu3  ;;  %v8023_v18 = vadd.f32 %v1974_v46, %v1905_v41  ;;  %v5675_v41 = vor.u32 %v6461_v20, %v5674_v59  ;;  %v6459_v59 = vld [vmem:[%s10294_s3 + $0xe4] sm:$0xf]  ;;  %v5676_v20 = vld [vmem:[%s10294_s3 + $0xf0] sm:$0xf0] }
 0x205   : > { %v8025_v61 = vadd.f32 %v1848_v21, %v1779_v8  ;;  %1944 = vmatmul.bf16.gmra.mxu0 %v7907_v38  ;;  %v6493_v8 = vld [vmem:[%s10294_s3 + $0x1ec] sm:$0xf0] }
 0x206   : > { %2013 = vmatmul.bf16.gmra.mxu1 %v7909_v22  ;;  %v5803_v46 = vor.u32 %v6493_v8, %v5802_v62  ;;  %2625 = vmatpush.bf16.msra.mxu2 %v5675_v41  ;;  %v6491_v62 = vld [vmem:[%s10294_s3 + $0x1e4] sm:$0xf]  ;;  %v5679_v41 = vor.u32 %v6459_v59, %v5676_v20  ;;  %v5804_v8 = vld [vmem:[%s10294_s3 + $0x1f0] sm:$0xf0] }
 0x208   : > { %2037 = vmatmul.bf16.vlgmr.msrb.gmra.mxu2 %v7486_v50  ;;  %2106 = vmatmul.bf16.vlgmr.msrb.gmra.mxu3 %v7489_v26 }
 0x209   : > { %2694 = vmatpush.bf16.msra.mxu3 %v5803_v46  ;;  %v5807_v46 = vor.u32 %v6491_v62, %v5804_v8  ;;  %2763 = vmatpush.bf16.msra.mxu0 %v5679_v41  ;;  %v5658_v62 = vld [vmem:[%s10294_s3 + $0xc0] sm:$0xf]  ;;  %v6457_v41 = vld [vmem:[%s10294_s3 + $0xcc] sm:$0xf0] }
 0x20a   : > { %v1907_v53 = vpop.f32.mrf.mxu0  ;;  %v6489_v8 = vld [vmem:[%s10294_s3 + $0x1cc] sm:$0xf0] }
 0x20b   : > { %v1782_v47 = vpop.f32.mrf.mxu2  ;;  %v1976_v0 = vpop.f32.mrf.mxu1  ;;  %2832 = vmatpush.bf16.msra.mxu1 %v5807_v46 }
 0x20c   : > { %v1851_v28 = vpop.f32.mrf.mxu3  ;;  %v8031_v15 = vadd.f32 %v1976_v0, %v1907_v53 }
 0x20d   : > { %v8033_v35 = vadd.f32 %v1851_v28, %v1782_v47 }
 0x20f   : > { %10372 = vst [vmem:[#allocation5_spill] sm:$0xff] %v8033_v35 }
 0x212   : > { %v1910_v21 = vpop.f32.mrf.mxu0 }
 0x213   : > { %v1784_v53 = vpop.f32.mrf.mxu2  ;;  %v1979_v47 = vpop.f32.mrf.mxu1 }
 0x214   : > { %v1853_v0 = vpop.f32.mrf.mxu3  ;;  %v8047_v28 = vadd.f32 %v1979_v47, %v1910_v21 }
 0x215   : > { %v8049_v6 = vadd.f32 %v1853_v0, %v1784_v53  ;;  %1949 = vmatmul.bf16.gmra.mxu0 %v7959_v34 }
 0x216   : > { %10373 = vst [vmem:[#allocation6_spill] sm:$0xff] %v8047_v28  ;;  %2018 = vmatmul.bf16.gmra.mxu1 %v7961_v29 }
 0x217   : > { %10374 = vst [vmem:[#allocation7_spill] sm:$0xff] %v8049_v6 }
 0x218   : > { %2042 = vmatmul.bf16.gmra.mxu2 %v7535_v19  ;;  %2111 = vmatmul.bf16.gmra.mxu3 %v7537_v16 }
 0x21a   : > { %v1912_v21 = vpop.f32.mrf.mxu0 }
 0x21b   : > { %v1787_v53 = vpop.f32.mrf.mxu2  ;;  %v1981_v47 = vpop.f32.mrf.mxu1 }
 0x21c   : > { %v1856_v0 = vpop.f32.mrf.mxu3  ;;  %v8067_v27 = vadd.f32 %v1981_v47, %v1912_v21 }
 0x21d   : > { %v8069_v12 = vadd.f32 %v1856_v0, %v1787_v53 }
 0x222   : > { %v1915_v59 = vpop.f32.mrf.mxu0 }
 0x223   : > { %v1789_v20 = vpop.f32.mrf.mxu2  ;;  %v1984_v11 = vpop.f32.mrf.mxu1 }
 0x224   : > { %v1858_v6 = vpop.f32.mrf.mxu3  ;;  %v8071_v28 = vadd.f32 %v1984_v11, %v1915_v59  ;;  %v5786_v11 = vld [vmem:[%s10294_s3 + $0x1c0] sm:$0xf] }
 0x225   : > { %v8073_v35 = vadd.f32 %v1858_v6, %v1789_v20  ;;  %1954 = vmatmul.bf16.gmra.mxu0 %v8000_v13  ;;  %v5659_v6 = vor.u32 %v6457_v41, %v5658_v62  ;;  %v5787_v21 = vor.u32 %v6489_v8, %v5786_v11  ;;  %v5660_v62 = vld [vmem:[%s10294_s3 + $0xd0] sm:$0xf0]  ;;  %v6487_v41 = vld [vmem:[%s10294_s3 + $0x1c4] sm:$0xf] }
 0x226   : > { %2023 = vmatmul.bf16.gmra.mxu1 %v8003_v37 }
 0x227   : > { %10375 = vst [vmem:[#allocation8_spill] sm:$0xff] %v8073_v35  ;;  %2626 = vmatpush.bf16.msra.mxu2 %v5659_v6  ;;  %2695 = vmatpush.bf16.msra.mxu3 %v5787_v21  ;;  %v6455_v35 = vld [vmem:[%s10294_s3 + $0xc4] sm:$0xf]  ;;  %v5788_v6 = vld [vmem:[%s10294_s3 + $0x1d0] sm:$0xf0] }
 0x228   : > { %2047 = vmatmul.bf16.gmra.mxu2 %v7575_v44  ;;  %2116 = vmatmul.bf16.gmra.mxu3 %v7577_v5  ;;  %v5663_v11 = vor.u32 %v6455_v35, %v5660_v62  ;;  %v5791_v8 = vor.u32 %v6487_v41, %v5788_v6 }
 0x22a   : > { %v1917_v46 = vpop.f32.mrf.mxu0  ;;  %2764 = vmatpush.bf16.msra.mxu0 %v5663_v11  ;;  %2833 = vmatpush.bf16.msra.mxu1 %v5791_v8 }
 0x22b   : > { %v1792_v53 = vpop.f32.mrf.mxu2  ;;  %v1986_v47 = vpop.f32.mrf.mxu1 }
 0x22c   : > { %v1861_v0 = vpop.f32.mrf.mxu3  ;;  %v8091_v59 = vadd.f32 %v1986_v47, %v1917_v46 }
 0x22d   : > { %v8093_v20 = vadd.f32 %v1861_v0, %v1792_v53 }
 0x22f   : > { %10376 = vst [vmem:[#allocation9_spill] sm:$0xff] %v8093_v20 }
 0x232   : > { %v1920_v46 = vpop.f32.mrf.mxu0 }
 0x233   : > { %v1794_v21 = vpop.f32.mrf.mxu2  ;;  %v1989_v53 = vpop.f32.mrf.mxu1 }
 0x234   : > { %v1863_v47 = vpop.f32.mrf.mxu3  ;;  %v8107_v0 = vadd.f32 %v1989_v53, %v1920_v46  ;;  %v5642_v46 = vld [vmem:[%s10294_s3 + $0xa0] sm:$0xf]  ;;  %v6485_v53 = vld [vmem:[%s10294_s3 + $0x1ac] sm:$0xf0] }
 0x235   : > { %v8109_v20 = vadd.f32 %v1863_v47, %v1794_v21  ;;  %2175 = vmatmul.bf16.vlgmr.msrb.gmra.mxu0 %v7486_v50  ;;  %v6453_v50 = vld [vmem:[%s10294_s3 + $0xac] sm:$0xf0] }
 0x236   : > { %10377 = vst [vmem:[#allocation22_spill] sm:$0xff] %v8107_v0  ;;  %2244 = vmatmul.bf16.vlgmr.msrb.gmra.mxu1 %v7489_v26  ;;  %v5770_v26 = vld [vmem:[%s10294_s3 + $0x1a0] sm:$0xf]  ;;  %v5643_v21 = vor.u32 %v6453_v50, %v5642_v46  ;;  %v6451_v46 = vld [vmem:[%s10294_s3 + $0xa4] sm:$0xf] }
 0x237   : > { %10378 = vst [vmem:[#allocation23_spill] sm:$0xff] %v8109_v20  ;;  %v5771_v47 = vor.u32 %v6485_v53, %v5770_v26  ;;  %v5644_v50 = vld [vmem:[%s10294_s3 + $0xb0] sm:$0xf0]  ;;  %v6483_v26 = vld [vmem:[%s10294_s3 + $0x1a4] sm:$0xf] }
 0x238   : > { %2052 = vmatmul.bf16.gmra.mxu2 %v7631_v31  ;;  %2121 = vmatmul.bf16.gmra.mxu3 %v7633_v32  ;;  %v5772_v53 = vld [vmem:[%s10294_s3 + $0x1b0] sm:$0xf0] }
 0x239   : > { %2627 = vmatpush.bf16.msra.mxu2 %v5643_v21  ;;  %2696 = vmatpush.bf16.msra.mxu3 %v5771_v47  ;;  %v5647_v21 = vor.u32 %v6451_v46, %v5644_v50 }
 0x23a   : > { %v1922_v35 = vpop.f32.mrf.mxu0 }
 0x23b   : > { %v1797_v62 = vpop.f32.mrf.mxu2  ;;  %v1991_v41 = vpop.f32.mrf.mxu1  ;;  %2765 = vmatpush.bf16.msra.mxu0 %v5647_v21  ;;  %v6449_v21 = vld [vmem:[%s10294_s3 + $0x8c] sm:$0xf0] }
 0x23c   : > { %v1866_v11 = vpop.f32.mrf.mxu3  ;;  %v8115_v6 = vadd.f32 %v1991_v41, %v1922_v35 }
 0x23d   : > { %v8117_v8 = vadd.f32 %v1866_v11, %v1797_v62 }
 0x23e   : > { %10379 = vst [vmem:[#allocation24_spill] sm:$0xff] %v8115_v6 }
 0x23f   : > { %10380 = vst [vmem:[#allocation25_spill] sm:$0xff] %v8117_v8 }
 0x242   : > { %v1925_v35 = vpop.f32.mrf.mxu0 }
 0x243   : > { %v1799_v62 = vpop.f32.mrf.mxu2  ;;  %v1994_v41 = vpop.f32.mrf.mxu1 }
 0x244   : > { %v1868_v11 = vpop.f32.mrf.mxu3  ;;  %v8131_v8 = vadd.f32 %v1994_v41, %v1925_v35 }
 0x245   : > { %v8133_v6 = vadd.f32 %v1868_v11, %v1799_v62  ;;  %2180 = vmatmul.bf16.gmra.mxu0 %v7535_v19  ;;  %v5775_v19 = vor.u32 %v6483_v26, %v5772_v53  ;;  %v5626_v26 = vld [vmem:[%s10294_s3 + $0x80] sm:$0xf] }
 0x246   : > { %10381 = vst [vmem:[#allocation26_spill] sm:$0xff] %v8131_v8  ;;  %2249 = vmatmul.bf16.gmra.mxu1 %v7537_v16 }
 0x247   : > { %10382 = vst [vmem:[#allocation27_spill] sm:$0xff] %v8133_v6  ;;  %2834 = vmatpush.bf16.msra.mxu1 %v5775_v19 }
 0x248   : > { %2057 = vmatmul.bf16.gmra.mxu2 %v7671_v14  ;;  %2126 = vmatmul.bf16.gmra.mxu3 %v7673_v9 }
 0x24a   : > { %v1927_v16 = vpop.f32.mrf.mxu0 }
 0x24b   : > { %v1802_v47 = vpop.f32.mrf.mxu2  ;;  %v1996_v35 = vpop.f32.mrf.mxu1 }
 0x24c   : > { %v1871_v62 = vpop.f32.mrf.mxu3  ;;  %v8151_v41 = vadd.f32 %v1996_v35, %v1927_v16 }
 0x24d   : > { %v8153_v11 = vadd.f32 %v1871_v62, %v1802_v47 }
 0x252   : > { %v1930_v46 = vpop.f32.mrf.mxu0 }
 0x253   : > { %v1804_v50 = vpop.f32.mrf.mxu2  ;;  %v1999_v6 = vpop.f32.mrf.mxu1 }
 0x254   : > { %v1873_v8 = vpop.f32.mrf.mxu3  ;;  %v8155_v20 = vadd.f32 %v1999_v6, %v1930_v46  ;;  %v5754_v6 = vld [vmem:[%s10294_s3 + $0x180] sm:$0xf]  ;;  %v6447_v46 = vld [vmem:[%s10294_s3 + $0x84] sm:$0xf] }
 0x255   : > { %v8157_v0 = vadd.f32 %v1873_v8, %v1804_v50  ;;  %2185 = vmatmul.bf16.gmra.mxu0 %v7575_v44  ;;  %v5627_v8 = vor.u32 %v6449_v21, %v5626_v26  ;;  %v6481_v44 = vld [vmem:[%s10294_s3 + $0x18c] sm:$0xf0]  ;;  %v5628_v50 = vld [vmem:[%s10294_s3 + $0x90] sm:$0xf0]  ;;  %v6479_v26 = vld [vmem:[%s10294_s3 + $0x184] sm:$0xf] }
 0x256   : > { %2254 = vmatmul.bf16.gmra.mxu1 %v7577_v5  ;;  %v5755_v53 = vor.u32 %v6481_v44, %v5754_v6  ;;  %v5631_v21 = vor.u32 %v6447_v46, %v5628_v50  ;;  %v5756_v6 = vld [vmem:[%s10294_s3 + $0x190] sm:$0xf0] }
 0x257   : > { %2628 = vmatpush.bf16.msra.mxu2 %v5627_v8  ;;  %v5759_v8 = vor.u32 %v6479_v26, %v5756_v6 }
 0x258   : > { %2062 = vmatmul.bf16.gmra.mxu2 %v7715_v39  ;;  %2131 = vmatmul.bf16.gmra.mxu3 %v7717_v1 }
 0x259   : > { %2697 = vmatpush.bf16.msra.mxu3 %v5755_v53  ;;  %2766 = vmatpush.bf16.msra.mxu0 %v5631_v21 }
 0x25a   : > { %v1932_v5 = vpop.f32.mrf.mxu0  ;;  %2835 = vmatpush.bf16.msra.mxu1 %v5759_v8 }
 0x25b   : > { %v1807_v19 = vpop.f32.mrf.mxu2  ;;  %v2001_v16 = vpop.f32.mrf.mxu1 }
 0x25c   : > { %v1876_v47 = vpop.f32.mrf.mxu3  ;;  %v8175_v35 = vadd.f32 %v2001_v16, %v1932_v5 }
 0x25d   : > { %v8177_v62 = vadd.f32 %v1876_v47, %v1807_v19 }
 0x262   : > { %v1935_v44 = vpop.f32.mrf.mxu0 }
 0x263   : > { %v1809_v5 = vpop.f32.mrf.mxu2  ;;  %v2004_v53 = vpop.f32.mrf.mxu1 }
 0x264   : > { %v1878_v19 = vpop.f32.mrf.mxu3  ;;  %v8191_v16 = vadd.f32 %v2004_v53, %v1935_v44  ;;  %v5610_v44 = vld [vmem:[%s10294_s3 + $0x60] sm:$0xf]  ;;  %v6477_v53 = vld [vmem:[%s10294_s3 + $0x16c] sm:$0xf0] }
 0x265   : > { %v8193_v47 = vadd.f32 %v1878_v19, %v1809_v5  ;;  %2190 = vmatmul.bf16.gmra.mxu0 %v7631_v31  ;;  %v6445_v31 = vld [vmem:[%s10294_s3 + $0x6c] sm:$0xf0] }
 0x266   : > { %10383 = vst [vmem:[#allocation28_spill] sm:$0xff] %v8191_v16  ;;  %2259 = vmatmul.bf16.gmra.mxu1 %v7633_v32  ;;  %v5738_v32 = vld [vmem:[%s10294_s3 + $0x160] sm:$0xf]  ;;  %v5611_v5 = vor.u32 %v6445_v31, %v5610_v44  ;;  %v6443_v44 = vld [vmem:[%s10294_s3 + $0x64] sm:$0xf] }
 0x267   : > { %10384 = vst [vmem:[#allocation29_spill] sm:$0xff] %v8193_v47  ;;  %v5739_v19 = vor.u32 %v6477_v53, %v5738_v32  ;;  %v5612_v31 = vld [vmem:[%s10294_s3 + $0x70] sm:$0xf0]  ;;  %v6475_v32 = vld [vmem:[%s10294_s3 + $0x164] sm:$0xf] }
 0x268   : > { %2067 = vmatmul.bf16.gmra.mxu2 %v7771_v2  ;;  %2136 = vmatmul.bf16.gmra.mxu3 %v7773_v7  ;;  %v5740_v53 = vld [vmem:[%s10294_s3 + $0x170] sm:$0xf0] }
 0x269   : > { %2629 = vmatpush.bf16.msra.mxu2 %v5611_v5  ;;  %2698 = vmatpush.bf16.msra.mxu3 %v5739_v19  ;;  %v5615_v5 = vor.u32 %v6443_v44, %v5612_v31 }
 0x26a   : > { %v1937_v46 = vpop.f32.mrf.mxu0 }
 0x26b   : > { %v1812_v50 = vpop.f32.mrf.mxu2  ;;  %v2006_v26 = vpop.f32.mrf.mxu1  ;;  %2767 = vmatpush.bf16.msra.mxu0 %v5615_v5  ;;  %v6441_v5 = vld [vmem:[%s10294_s3 + $0x4c] sm:$0xf0] }
 0x26c   : > { %v1881_v21 = vpop.f32.mrf.mxu3  ;;  %v8199_v6 = vadd.f32 %v2006_v26, %v1937_v46 }
 0x26d   : > { %v8201_v8 = vadd.f32 %v1881_v21, %v1812_v50 }
 0x26e   : > { %10385 = vst [vmem:[#allocation30_spill] sm:$0xff] %v8199_v6 }
 0x26f   : > { %10386 = vst [vmem:[#allocation31_spill] sm:$0xff] %v8201_v8 }
 0x272   : > { %v1940_v46 = vpop.f32.mrf.mxu0 }
 0x273   : > { %v1814_v50 = vpop.f32.mrf.mxu2  ;;  %v2009_v26 = vpop.f32.mrf.mxu1 }
 0x274   : > { %v1883_v21 = vpop.f32.mrf.mxu3  ;;  %v8215_v8 = vadd.f32 %v2009_v26, %v1940_v46 }
 0x275   : > { %v8217_v6 = vadd.f32 %v1883_v21, %v1814_v50  ;;  %2195 = vmatmul.bf16.gmra.mxu0 %v7671_v14  ;;  %v5743_v14 = vor.u32 %v6475_v32, %v5740_v53  ;;  %v5594_v32 = vld [vmem:[%s10294_s3 + $0x40] sm:$0xf] }
 0x276   : > { %10387 = vst [vmem:[#allocation32_spill] sm:$0xff] %v8215_v8  ;;  %2264 = vmatmul.bf16.gmra.mxu1 %v7673_v9 }
 0x277   : > { %10388 = vst [vmem:[#allocation33_spill] sm:$0xff] %v8217_v6  ;;  %2836 = vmatpush.bf16.msra.mxu1 %v5743_v14 }
 0x278   : > { %2072 = vmatmul.bf16.gmra.mxu2 %v7811_v49  ;;  %2141 = vmatmul.bf16.gmra.mxu3 %v7813_v57 }
 0x27a   : > { %v1942_v9 = vpop.f32.mrf.mxu0 }
 0x27b   : > { %v1817_v19 = vpop.f32.mrf.mxu2  ;;  %v2011_v46 = vpop.f32.mrf.mxu1 }
 0x27c   : > { %v1886_v50 = vpop.f32.mrf.mxu3  ;;  %v8235_v26 = vadd.f32 %v2011_v46, %v1942_v9 }
 0x27d   : > { %v8237_v21 = vadd.f32 %v1886_v50, %v1817_v19 }
 0x282   : > { %v1945_v44 = vpop.f32.mrf.mxu0 }
 0x283   : > { %v1819_v31 = vpop.f32.mrf.mxu2  ;;  %v2014_v6 = vpop.f32.mrf.mxu1 }
 0x284   : > { %v1888_v8 = vpop.f32.mrf.mxu3  ;;  %v8239_v47 = vadd.f32 %v2014_v6, %v1945_v44  ;;  %v5722_v6 = vld [vmem:[%s10294_s3 + $0x140] sm:$0xf]  ;;  %v6439_v44 = vld [vmem:[%s10294_s3 + $0x44] sm:$0xf] }
 0x285   : > { %v8241_v16 = vadd.f32 %v1888_v8, %v1819_v31  ;;  %2200 = vmatmul.bf16.gmra.mxu0 %v7715_v39  ;;  %v5595_v8 = vor.u32 %v6441_v5, %v5594_v32  ;;  %v6473_v39 = vld [vmem:[%s10294_s3 + $0x14c] sm:$0xf0]  ;;  %v5596_v31 = vld [vmem:[%s10294_s3 + $0x50] sm:$0xf0]  ;;  %v6471_v32 = vld [vmem:[%s10294_s3 + $0x144] sm:$0xf] }
 0x286   : > { %2269 = vmatmul.bf16.gmra.mxu1 %v7717_v1  ;;  %v5723_v53 = vor.u32 %v6473_v39, %v5722_v6  ;;  %v5599_v5 = vor.u32 %v6439_v44, %v5596_v31  ;;  %v5724_v6 = vld [vmem:[%s10294_s3 + $0x150] sm:$0xf0] }
 0x287   : > { %2630 = vmatpush.bf16.msra.mxu2 %v5595_v8  ;;  %v5727_v8 = vor.u32 %v6471_v32, %v5724_v6 }
 0x288   : > { %2077 = vmatmul.bf16.gmra.mxu2 %v7855_v63  ;;  %2146 = vmatmul.bf16.gmra.mxu3 %v7857_v3 }
 0x289   : > { %2699 = vmatpush.bf16.msra.mxu3 %v5723_v53  ;;  %2768 = vmatpush.bf16.msra.mxu0 %v5599_v5 }
 0x28a   : > { %v1947_v1 = vpop.f32.mrf.mxu0  ;;  %2837 = vmatpush.bf16.msra.mxu1 %v5727_v8 }
 0x28b   : > { %v2016_v14 = vpop.f32.mrf.mxu1  ;;  %v2038_v9 = vpop.f32.mrf.mxu2 }
 0x28c   : > { %v8259_v19 = vadd.f32 %v2016_v14, %v1947_v1  ;;  %v2107_v46 = vpop.f32.mrf.mxu3 }
 0x28d   : > { %v8261_v50 = vadd.f32 %v2107_v46, %v2038_v9 }
 0x292   : > { %v1950_v39 = vpop.f32.mrf.mxu0 }
 0x293   : > { %v2019_v1 = vpop.f32.mrf.mxu1  ;;  %v2040_v53 = vpop.f32.mrf.mxu2 }
 0x294   : > { %v8275_v14 = vadd.f32 %v2019_v1, %v1950_v39  ;;  %v2109_v9 = vpop.f32.mrf.mxu3  ;;  %v5578_v39 = vld [vmem:[%s10294_s3 + $0x20] sm:$0xf] }
 0x295   : > { %v8277_v46 = vadd.f32 %v2109_v9, %v2040_v53  ;;  %2205 = vmatmul.bf16.gmra.mxu0 %v7771_v2  ;;  %v6437_v2 = vld [vmem:[%s10294_s3 + $0x2c] sm:$0xf0] }
 0x296   : > { %10389 = vst [vmem:[#allocation34_spill] sm:$0xff] %v8275_v14  ;;  %2274 = vmatmul.bf16.gmra.mxu1 %v7773_v7  ;;  %v5706_v7 = vld [vmem:[%s10294_s3 + $0x120] sm:$0xf]  ;;  %v5579_v1 = vor.u32 %v6437_v2, %v5578_v39  ;;  %v6469_v53 = vld [vmem:[%s10294_s3 + $0x12c] sm:$0xf0] }
 0x297   : > { %10390 = vst [vmem:[#allocation35_spill] sm:$0xff] %v8277_v46  ;;  %v5707_v9 = vor.u32 %v6469_v53, %v5706_v7  ;;  %v5690_v39 = vld [vmem:[%s10294_s3 + $0x100] sm:$0xf]  ;;  %v6465_v53 = vld [vmem:[%s10294_s3 + $0x10c] sm:$0xf0] }
 0x298   : > { %2082 = vmatmul.bf16.gmra.mxu2 %v7907_v38  ;;  %2151 = vmatmul.bf16.gmra.mxu3 %v7909_v22  ;;  %v6435_v46 = vld [vmem:[%s10294_s3 + $0x24] sm:$0xf] }
 0x299   : > { %2631 = vmatpush.bf16.msra.mxu2 %v5579_v1  ;;  %2700 = vmatpush.bf16.msra.mxu3 %v5707_v9 }
 0x29a   : > { %v1952_v44 = vpop.f32.mrf.mxu0 }
 0x29b   : > { %v2021_v31 = vpop.f32.mrf.mxu1  ;;  %v2043_v32 = vpop.f32.mrf.mxu2 }
 0x29c   : > { %v8283_v5 = vadd.f32 %v2021_v31, %v1952_v44  ;;  %v2112_v6 = vpop.f32.mrf.mxu3 }
 0x29d   : > { %v8285_v8 = vadd.f32 %v2112_v6, %v2043_v32  ;;  %v5562_v6 = vld [vmem:[%s10294_s3] sm:$0xf] }
 0x29e   : > { %10391 = vst [vmem:[#allocation36_spill] sm:$0xff] %v8283_v5  ;;  %v5691_v5 = vor.u32 %v6465_v53, %v5690_v39 }
 0x29f   : > { %10392 = vst [vmem:[#allocation37_spill] sm:$0xff] %v8285_v8  ;;  %v6433_v8 = vld [vmem:[%s10294_s3 + $0xc] sm:$0xf0] }
 0x2a0   : > { %v5563_v1 = vor.u32 %v6433_v8, %v5562_v6  ;;  %v5580_v8 = vld [vmem:[%s10294_s3 + $0x30] sm:$0xf0]  ;;  %2701 = vmatpush.bf16.msra.mxu3 %v5691_v5 }
 0x2a2   : > { %v1955_v44 = vpop.f32.mrf.mxu0  ;;  %2632 = vmatpush.bf16.msra.mxu2 %v5563_v1 }
 0x2a3   : > { %v2024_v31 = vpop.f32.mrf.mxu1  ;;  %v2045_v32 = vpop.f32.mrf.mxu2 }
 0x2a4   : > { %v8308_v2 = vadd.f32 %v2024_v31, %v1955_v44  ;;  %v2114_v7 = vpop.f32.mrf.mxu3  ;;  %v6467_v44 = vld [vmem:[%s10294_s3 + $0x124] sm:$0xf]  ;;  %v5583_v31 = vor.u32 %v6435_v46, %v5580_v8 }
 0x2a5   : > { %v8313_v9 = vadd.f32 %v2114_v7, %v2045_v32  ;;  %2210 = vmatmul.bf16.gmra.mxu0 %v7811_v49  ;;  %v5708_v49 = vld [vmem:[%s10294_s3 + $0x130] sm:$0xf0] }
 0x2a6   : > { %10393 = vst [vmem:[#allocation38_spill] sm:$0xff] %v8308_v2  ;;  %2279 = vmatmul.bf16.gmra.mxu1 %v7813_v57  ;;  %v5711_v57 = vor.u32 %v6467_v44, %v5708_v49  ;;  %2769 = vmatpush.bf16.msra.mxu0 %v5583_v31 }
 0x2a7   : > { %10394 = vst [vmem:[#allocation39_spill] sm:$0xff] %v8313_v9 }
 0x2a8   : > { %2087 = vmatmul.bf16.gmra.mxu2 %v7959_v34  ;;  %2156 = vmatmul.bf16.gmra.mxu3 %v7961_v29 }
 0x2a9   : > { %2838 = vmatpush.bf16.msra.mxu1 %v5711_v57 }
 0x2aa   : > { %v1957_v32 = vpop.f32.mrf.mxu0 }
 0x2ab   : > { %v2026_v6 = vpop.f32.mrf.mxu1  ;;  %v2048_v39 = vpop.f32.mrf.mxu2 }
 0x2ac   : > { %v8331_v7 = vadd.f32 %v2026_v6, %v1957_v32  ;;  %v2117_v1 = vpop.f32.mrf.mxu3 }
 0x2ad   : > { %v8333_v53 = vadd.f32 %v2117_v1, %v2048_v39  ;;  %v5692_v1 = vld [vmem:[%s10294_s3 + $0x110] sm:$0xf0] }
 0x2b2   : > { %v2176_v46 = vpop.f32.mrf.mxu0 }
 0x2b3   : > { %v2050_v5 = vpop.f32.mrf.mxu2  ;;  %v2245_v8 = vpop.f32.mrf.mxu1 }
 0x2b4   : > { %v2119_v9 = vpop.f32.mrf.mxu3  ;;  %v8335_v2 = vadd.f32 %v2245_v8, %v2176_v46 }
 0x2b5   : > { %v8337_v14 = vadd.f32 %v2119_v9, %v2050_v5  ;;  %2215 = vmatmul.bf16.gmra.mxu0 %v7855_v63  ;;  %v6431_v9 = vld [vmem:[%s10294_s3 + $0x4] sm:$0xf]  ;;  %v5564_v63 = vld [vmem:[%s10294_s3 + $0x10] sm:$0xf0] }
 0x2b6   : > { %10395 = vst [vmem:[#allocation40_spill] sm:$0xff] %v8335_v2  ;;  %2284 = vmatmul.bf16.gmra.mxu1 %v7857_v3  ;;  %v6463_v3 = vld [vmem:[%s10294_s3 + $0x104] sm:$0xf]  ;;  %v5567_v39 = vor.u32 %v6431_v9, %v5564_v63 }
 0x2b7   : > { %10396 = vst [vmem:[#allocation41_spill] sm:$0xff] %v8337_v14  ;;  %v5695_v46 = vor.u32 %v6463_v3, %v5692_v1 }
 0x2b8   : > { %2092 = vmatmul.bf16.gmra.mxu2 %v8000_v13  ;;  %2161 = vmatmul.bf16.gmra.mxu3 %v8003_v37 }
 0x2b9   : > { %2770 = vmatpush.bf16.msra.mxu0 %v5567_v39  ;;  %2839 = vmatpush.bf16.msra.mxu1 %v5695_v46 }
 0x2ba   : > { %v2178_v44 = vpop.f32.mrf.mxu0 }
 0x2bb   : > { %v2053_v31 = vpop.f32.mrf.mxu2  ;;  %v2247_v49 = vpop.f32.mrf.mxu1 }
 0x2bc   : > { %v2122_v57 = vpop.f32.mrf.mxu3  ;;  %v8343_v32 = vadd.f32 %v2247_v49, %v2178_v44 }
 0x2bd   : > { %v8345_v6 = vadd.f32 %v2122_v57, %v2053_v31 }
 0x2be   : > { %10397 = vst [vmem:[#allocation42_spill] sm:$0xff] %v8343_v32 }
 0x2bf   : > { %10398 = vst [vmem:[#allocation43_spill] sm:$0xff] %v8345_v6 }
 0x2c2   : > { %v2181_v5 = vpop.f32.mrf.mxu0 }
 0x2c3   : > { %v2055_v8 = vpop.f32.mrf.mxu2  ;;  %v2250_v44 = vpop.f32.mrf.mxu1 }
 0x2c4   : > { %v2124_v31 = vpop.f32.mrf.mxu3  ;;  %v8359_v49 = vadd.f32 %v2250_v44, %v2181_v5  ;;  %v5682_v5 = vld [vmem:[%s10294_s3 + $0xe8] sm:$0xf]  ;;  %v6494_v44 = vld [vmem:[%s10294_s3 + $0x1f4] sm:$0xf0] }
 0x2c5   : > { %v8361_v57 = vadd.f32 %v2124_v31, %v2055_v8  ;;  %2220 = vmatmul.bf16.gmra.mxu0 %v7907_v38  ;;  %v6462_v38 = vld [vmem:[%s10294_s3 + $0xf4] sm:$0xf0] }
 0x2c6   : > { %10399 = vst [vmem:[#allocation44_spill] sm:$0xff] %v8359_v49  ;;  %2289 = vmatmul.bf16.gmra.mxu1 %v7909_v22  ;;  %v5810_v22 = vld [vmem:[%s10294_s3 + $0x1e8] sm:$0xf]  ;;  %v5683_v8 = vor.u32 %v6462_v38, %v5682_v5  ;;  %v8396_v38 = vpack.c.b16 %v7467_v54, %v7467_v54  ;;  %v5812_v54 = vld [vmem:[%s10294_s3 + $0x1f8] sm:$0xf0] }
 0x2c7   : > { %10400 = vst [vmem:[#allocation45_spill] sm:$0xff] %v8361_v57  ;;  %v5811_v31 = vor.u32 %v6494_v44, %v5810_v22  ;;  %v10407_v22 = vld [vmem:[#allocation20_spill] sm:$0xff]  ;;  %v6460_v44 = vld [vmem:[%s10294_s3 + $0xec] sm:$0xf] }
 0x2c8   : > { %2633 = vmatmul.bf16.vlgmr.msra.gmra.mxu2 %v10340_v4  ;;  %2702 = vmatmul.bf16.vlgmr.msra.gmra.mxu3 %v10340_v4 }
 0x2c9   : > { %2901 = vmatpush.bf16.msrb.mxu2 %v5683_v8  ;;  %2970 = vmatpush.bf16.msrb.mxu3 %v5811_v31  ;;  %v8400_v8 = vpack.c.b16 %v10407_v22, %v10407_v22 }
 0x2ca   : > { %v2183_v9 = vpop.f32.mrf.mxu0 }
 0x2cb   : > { %v2058_v63 = vpop.f32.mrf.mxu2  ;;  %v2252_v3 = vpop.f32.mrf.mxu1 }
 0x2cc   : > { %v2127_v39 = vpop.f32.mrf.mxu3  ;;  %v8367_v1 = vadd.f32 %v2252_v3, %v2183_v9 }
 0x2cd   : > { %v8369_v46 = vadd.f32 %v2127_v39, %v2058_v63 }
 0x2ce   : > { %10401 = vst [vmem:[#allocation46_spill] sm:$0xff] %v8367_v1 }
 0x2cf   : > { %10402 = vst [vmem:[#allocation47_spill] sm:$0xff] %v8369_v46 }
 0x2d2   : > { %v2186_v9 = vpop.f32.mrf.mxu0 }
 0x2d3   : > { %v2060_v63 = vpop.f32.mrf.mxu2  ;;  %v2255_v3 = vpop.f32.mrf.mxu1 }
 0x2d4   : > { %v2129_v39 = vpop.f32.mrf.mxu3  ;;  %v8383_v46 = vadd.f32 %v2255_v3, %v2186_v9 }
 0x2d5   : > { %v8385_v1 = vadd.f32 %v2129_v39, %v2060_v63  ;;  %2225 = vmatmul.bf16.gmra.mxu0 %v7959_v34  ;;  %v5684_v34 = vld [vmem:[%s10294_s3 + $0xf8] sm:$0xf0] }
 0x2d6   : > { %10403 = vst [vmem:[#allocation48_spill] sm:$0xff] %v8383_v46  ;;  %2294 = vmatmul.bf16.gmra.mxu1 %v7961_v29  ;;  %v6492_v29 = vld [vmem:[%s10294_s3 + $0x1ec] sm:$0xf]  ;;  %v5687_v31 = vor.u32 %v6460_v44, %v5684_v34 }
 0x2d7   : > { %10404 = vst [vmem:[#allocation49_spill] sm:$0xff] %v8385_v1  ;;  %v5815_v9 = vor.u32 %v6492_v29, %v5812_v54  ;;  %v5666_v29 = vld [vmem:[%s10294_s3 + $0xc8] sm:$0xf] }
 0x2d8   : > { %5817 = vmatmul.msk.bf16.gmra.mxu2 %vm8389_vm2, %v8396_v38  ;;  %5819 = vmatmul.msk.bf16.gmra.mxu3 %vm8389_vm2, %v8400_v8 }
 0x2d9   : > { %3039 = vmatpush.bf16.msrb.mxu0 %v5687_v31  ;;  %3108 = vmatpush.bf16.msrb.mxu1 %v5815_v9  ;;  %v6458_v31 = vld [vmem:[%s10294_s3 + $0xd4] sm:$0xf0] }
 0x2da   : > { %v2188_v63 = vpop.f32.mrf.mxu0 }
 0x2db   : > { %v2063_v3 = vpop.f32.mrf.mxu2  ;;  %v2257_v39 = vpop.f32.mrf.mxu1 }
 0x2dc   : > { %v2132_v22 = vpop.f32.mrf.mxu3  ;;  %v8420_v44 = vadd.f32 %v2257_v39, %v2188_v63  ;;  %v6456_v39 = vld [vmem:[%s10294_s3 + $0xcc] sm:$0xf] }
 0x2dd   : > { %v8422_v34 = vadd.f32 %v2132_v22, %v2063_v3  ;;  %v5668_v22 = vld [vmem:[%s10294_s3 + $0xd8] sm:$0xf0] }
 0x2de   : > { %10408 = vst [vmem:[#allocation20_spill] sm:$0xff] %v8420_v44 }
 0x2df   : > { %10409 = vst [vmem:[#allocation50_spill] sm:$0xff] %v8422_v34 }
 0x2e2   : > { %v2191_v1 = vpop.f32.mrf.mxu0 }
 0x2e3   : > { %v2065_v46 = vpop.f32.mrf.mxu2  ;;  %v2260_v57 = vpop.f32.mrf.mxu1 }
 0x2e4   : > { %v2134_v49 = vpop.f32.mrf.mxu3  ;;  %v8424_v6 = vadd.f32 %v2260_v57, %v2191_v1  ;;  %v5667_v57 = vor.u32 %v6458_v31, %v5666_v29  ;;  %v6488_v29 = vld [vmem:[%s10294_s3 + $0x1cc] sm:$0xf]  ;;  %v5671_v31 = vor.u32 %v6456_v39, %v5668_v22  ;;  %v10416_v39 = vld [vmem:[#allocation21_spill] sm:$0xff] }
 0x2e5   : > { %v8426_v32 = vadd.f32 %v2134_v49, %v2065_v46  ;;  %2230 = vmatmul.bf16.gmra.mxu0 %v8000_v13  ;;  %v5794_v49 = vld [vmem:[%s10294_s3 + $0x1c8] sm:$0xf]  ;;  %v6490_v13 = vld [vmem:[%s10294_s3 + $0x1d4] sm:$0xf0] }
 0x2e6   : > { %10410 = vst [vmem:[#allocation51_spill] sm:$0xff] %v8424_v6  ;;  %2299 = vmatmul.bf16.gmra.mxu1 %v8003_v37  ;;  %v5795_v1 = vor.u32 %v6490_v13, %v5794_v49  ;;  %2902 = vmatpush.bf16.msrb.mxu2 %v5667_v57  ;;  %v5796_v49 = vld [vmem:[%s10294_s3 + $0x1d8] sm:$0xf0] }
 0x2e7   : > { %10411 = vst [vmem:[#allocation52_spill] sm:$0xff] %v8426_v32  ;;  %v5799_v57 = vor.u32 %v6488_v29, %v5796_v49  ;;  %3040 = vmatpush.bf16.msrb.mxu0 %v5671_v31 }
 0x2e8   : > { %2643 = vmatmul.bf16.gmra.mxu2 %v7506_v33  ;;  %2712 = vmatmul.bf16.gmra.mxu3 %v7508_v42 }
 0x2e9   : > { %2971 = vmatpush.bf16.msrb.mxu3 %v5795_v1  ;;  %3109 = vmatpush.bf16.msrb.mxu1 %v5799_v57 }
 0x2ea   : > { %v2193_v37 = vpop.f32.mrf.mxu0 }
 0x2eb   : > { %v2068_v46 = vpop.f32.mrf.mxu2  ;;  %v2262_v54 = vpop.f32.mrf.mxu1 }
 0x2ec   : > { %v2137_v9 = vpop.f32.mrf.mxu3  ;;  %v8444_v63 = vadd.f32 %v2262_v54, %v2193_v37 }
 0x2ed   : > { %v8446_v3 = vadd.f32 %v2137_v9, %v2068_v46 }
 0x2ee   : > { %10412 = vst [vmem:[#allocation53_spill] sm:$0xff] %v8444_v63 }
 0x2ef   : > { %10413 = vst [vmem:[#allocation54_spill] sm:$0xff] %v8446_v3 }
 0x2f2   : > { %v2196_v13 = vpop.f32.mrf.mxu0 }
 0x2f3   : > { %v2070_v37 = vpop.f32.mrf.mxu2  ;;  %v2265_v1 = vpop.f32.mrf.mxu1 }
 0x2f4   : > { %v2139_v46 = vpop.f32.mrf.mxu3  ;;  %v8460_v54 = vadd.f32 %v2265_v1, %v2196_v13  ;;  %v5650_v13 = vld [vmem:[%s10294_s3 + $0xa8] sm:$0xf] }
 0x2f5   : > { %v8462_v9 = vadd.f32 %v2139_v46, %v2070_v37  ;;  %2771 = vmatmul.bf16.vlgmr.msra.gmra.mxu0 %v10340_v4  ;;  %v6454_v37 = vld [vmem:[%s10294_s3 + $0xb4] sm:$0xf0]  ;;  %v5778_v1 = vld [vmem:[%s10294_s3 + $0x1a8] sm:$0xf] }
 0x2f6   : > { %10414 = vst [vmem:[#allocation55_spill] sm:$0xff] %v8460_v54  ;;  %2840 = vmatmul.bf16.vlgmr.msra.gmra.mxu1 %v10340_v4  ;;  %v5651_v46 = vor.u32 %v6454_v37, %v5650_v13  ;;  %v6452_v13 = vld [vmem:[%s10294_s3 + $0xac] sm:$0xf]  ;;  %v5652_v37 = vld [vmem:[%s10294_s3 + $0xb8] sm:$0xf0] }
 0x2f7   : > { %10415 = vst [vmem:[#allocation56_spill] sm:$0xff] %v8462_v9 }
 0x2f8   : > { %2648 = vmatmul.bf16.gmra.mxu2 %v7546_v40  ;;  %2717 = vmatmul.bf16.gmra.mxu3 %v10416_v39 }
 0x2f9   : > { %2903 = vmatpush.bf16.msrb.mxu2 %v5651_v46 }
 0x2fa   : > { %v2198_v22 = vpop.f32.mrf.mxu0 }
 0x2fb   : > { %v2073_v29 = vpop.f32.mrf.mxu2  ;;  %v2267_v31 = vpop.f32.mrf.mxu1 }
 0x2fc   : > { %v2142_v49 = vpop.f32.mrf.mxu3  ;;  %v8468_v57 = vadd.f32 %v2267_v31, %v2198_v22  ;;  %v6486_v22 = vld [vmem:[%s10294_s3 + $0x1b4] sm:$0xf0] }
 0x2fd   : > { %v8470_v3 = vadd.f32 %v2142_v49, %v2073_v29  ;;  %v5779_v31 = vor.u32 %v6486_v22, %v5778_v1  ;;  %v5780_v1 = vld [vmem:[%s10294_s3 + $0x1b8] sm:$0xf0] }
 0x2fe   : > { %10417 = vst [vmem:[#allocation21_spill] sm:$0xff] %v8468_v57 }
 0x2ff   : > { %10418 = vst [vmem:[#allocation57_spill] sm:$0xff] %v8470_v3  ;;  %2972 = vmatpush.bf16.msrb.mxu3 %v5779_v31 }
 0x302   : > { %v2201_v29 = vpop.f32.mrf.mxu0 }
 0x303   : > { %v2075_v49 = vpop.f32.mrf.mxu2  ;;  %v2270_v3 = vpop.f32.mrf.mxu1 }
 0x304   : > { %v2144_v57 = vpop.f32.mrf.mxu3  ;;  %v8484_v9 = vadd.f32 %v2270_v3, %v2201_v29  ;;  %v6484_v3 = vld [vmem:[%s10294_s3 + $0x1ac] sm:$0xf] }
 0x305   : > { %v8486_v54 = vadd.f32 %v2144_v57, %v2075_v49  ;;  %5821 = vmatmul.msk.bf16.gmra.mxu0 %vm8389_vm2, %v8396_v38  ;;  %v5655_v57 = vor.u32 %v6452_v13, %v5652_v37  ;;  %v5783_v46 = vor.u32 %v6484_v3, %v5780_v1  ;;  %v5634_v3 = vld [vmem:[%s10294_s3 + $0x88] sm:$0xf]  ;;  %v6482_v1 = vld [vmem:[%s10294_s3 + $0x194] sm:$0xf0] }
 0x306   : > { %10419 = vst [vmem:[#allocation58_spill] sm:$0xff] %v8484_v9  ;;  %5823 = vmatmul.msk.bf16.gmra.mxu1 %vm8389_vm2, %v8400_v8 }
 0x307   : > { %10420 = vst [vmem:[#allocation59_spill] sm:$0xff] %v8486_v54  ;;  %3041 = vmatpush.bf16.msrb.mxu0 %v5655_v57  ;;  %3110 = vmatpush.bf16.msrb.mxu1 %v5783_v46  ;;  %v6450_v57 = vld [vmem:[%s10294_s3 + $0x94] sm:$0xf0] }
 0x308   : > { %2653 = vmatmul.bf16.gmra.mxu2 %v7590_v30  ;;  %2722 = vmatmul.bf16.gmra.mxu3 %v7592_v23 }
 0x30a   : > { %v2203_v22 = vpop.f32.mrf.mxu0 }
 0x30b   : > { %v2078_v31 = vpop.f32.mrf.mxu2  ;;  %v2272_v29 = vpop.f32.mrf.mxu1 }
 0x30c   : > { %v2147_v49 = vpop.f32.mrf.mxu3  ;;  %v8508_v54 = vadd.f32 %v2272_v29, %v2203_v22 }
 0x30d   : > { %v8510_v9 = vadd.f32 %v2147_v49, %v2078_v31 }
 0x30e   : > { %10421 = vst [vmem:[#allocation60_spill] sm:$0xff] %v8508_v54 }
 0x30f   : > { %10422 = vst [vmem:[#allocation61_spill] sm:$0xff] %v8510_v9 }
 0x312   : > { %v2206_v13 = vpop.f32.mrf.mxu0 }
 0x313   : > { %v2080_v37 = vpop.f32.mrf.mxu2  ;;  %v2275_v63 = vpop.f32.mrf.mxu1 }
 0x314   : > { %v2149_v32 = vpop.f32.mrf.mxu3  ;;  %v8512_v6 = vadd.f32 %v2275_v63, %v2206_v13  ;;  %v5635_v63 = vor.u32 %v6450_v57, %v5634_v3  ;;  %v5636_v3 = vld [vmem:[%s10294_s3 + $0x98] sm:$0xf0]  ;;  %v6480_v57 = vld [vmem:[%s10294_s3 + $0x18c] sm:$0xf] }
 0x315   : > { %v8514_v34 = vadd.f32 %v2149_v32, %v2080_v37  ;;  %2781 = vmatmul.bf16.gmra.mxu0 %v7506_v33  ;;  %v5762_v32 = vld [vmem:[%s10294_s3 + $0x188] sm:$0xf] }
 0x316   : > { %10423 = vst [vmem:[#allocation62_spill] sm:$0xff] %v8512_v6  ;;  %2850 = vmatmul.bf16.gmra.mxu1 %v7508_v42  ;;  %v5763_v22 = vor.u32 %v6482_v1, %v5762_v32  ;;  %2904 = vmatpush.bf16.msrb.mxu2 %v5635_v63  ;;  %v5764_v63 = vld [vmem:[%s10294_s3 + $0x198] sm:$0xf0] }
 0x317   : > { %10424 = vst [vmem:[#allocation63_spill] sm:$0xff] %v8514_v34  ;;  %v6448_v34 = vld [vmem:[%s10294_s3 + $0x8c] sm:$0xf]  ;;  %v5767_v1 = vor.u32 %v6480_v57, %v5764_v63 }
 0x318   : > { %2658 = vmatmul.bf16.gmra.mxu2 %v7646_v43  ;;  %2727 = vmatmul.bf16.gmra.mxu3 %v7648_v52  ;;  %v5639_v32 = vor.u32 %v6448_v34, %v5636_v3 }
 0x319   : > { %2973 = vmatpush.bf16.msrb.mxu3 %v5763_v22  ;;  %3111 = vmatpush.bf16.msrb.mxu1 %v5767_v1 }
 0x31a   : > { %v2208_v46 = vpop.f32.mrf.mxu0  ;;  %3042 = vmatpush.bf16.msrb.mxu0 %v5639_v32 }
 0x31b   : > { %v2083_v31 = vpop.f32.mrf.mxu2  ;;  %v2277_v29 = vpop.f32.mrf.mxu1 }
 0x31c   : > { %v2152_v49 = vpop.f32.mrf.mxu3  ;;  %v8532_v13 = vadd.f32 %v2277_v29, %v2208_v46 }
 0x31d   : > { %v8534_v37 = vadd.f32 %v2152_v49, %v2083_v31 }
 0x31e   : > { %10425 = vst [vmem:[#allocation64_spill] sm:$0xff] %v8532_v13 }
 0x31f   : > { %10426 = vst [vmem:[#allocation65_spill] sm:$0xff] %v8534_v37 }
 0x322   : > { %v2211_v46 = vpop.f32.mrf.mxu0 }
 0x323   : > { %v2085_v22 = vpop.f32.mrf.mxu2  ;;  %v2280_v31 = vpop.f32.mrf.mxu1 }
 0x324   : > { %v2154_v29 = vpop.f32.mrf.mxu3  ;;  %v8548_v49 = vadd.f32 %v2280_v31, %v2211_v46  ;;  %v5618_v46 = vld [vmem:[%s10294_s3 + $0x68] sm:$0xf] }
 0x325   : > { %v8550_v37 = vadd.f32 %v2154_v29, %v2085_v22  ;;  %2786 = vmatmul.bf16.gmra.mxu0 %v7546_v40  ;;  %v6446_v22 = vld [vmem:[%s10294_s3 + $0x74] sm:$0xf0]  ;;  %v5746_v31 = vld [vmem:[%s10294_s3 + $0x168] sm:$0xf] }
 0x326   : > { %10427 = vst [vmem:[#allocation66_spill] sm:$0xff] %v8548_v49  ;;  %2855 = vmatmul.bf16.gmra.mxu1 %v10416_v39  ;;  %v5619_v29 = vor.u32 %v6446_v22, %v5618_v46  ;;  %v6444_v46 = vld [vmem:[%s10294_s3 + $0x6c] sm:$0xf]  ;;  %v5620_v22 = vld [vmem:[%s10294_s3 + $0x78] sm:$0xf0] }
 0x327   : > { %10428 = vst [vmem:[#allocation67_spill] sm:$0xff] %v8550_v37 }
 0x328   : > { %2663 = vmatmul.bf16.gmra.mxu2 %v7686_v48  ;;  %2732 = vmatmul.bf16.gmra.mxu3 %v7688_v24 }
 0x329   : > { %2905 = vmatpush.bf16.msrb.mxu2 %v5619_v29 }
 0x32a   : > { %v2213_v34 = vpop.f32.mrf.mxu0 }
 0x32b   : > { %v2088_v3 = vpop.f32.mrf.mxu2  ;;  %v2282_v57 = vpop.f32.mrf.mxu1 }
 0x32c   : > { %v2157_v32 = vpop.f32.mrf.mxu3  ;;  %v8556_v63 = vadd.f32 %v2282_v57, %v2213_v34  ;;  %v6478_v34 = vld [vmem:[%s10294_s3 + $0x174] sm:$0xf0] }
 0x32d   : > { %v8558_v1 = vadd.f32 %v2157_v32, %v2088_v3  ;;  %v5747_v57 = vor.u32 %v6478_v34, %v5746_v31  ;;  %v6476_v31 = vld [vmem:[%s10294_s3 + $0x16c] sm:$0xf] }
 0x32e   : > { %10429 = vst [vmem:[#allocation68_spill] sm:$0xff] %v8556_v63 }
 0x32f   : > { %10430 = vst [vmem:[#allocation69_spill] sm:$0xff] %v8558_v1  ;;  %2974 = vmatpush.bf16.msrb.mxu3 %v5747_v57 }
 0x332   : > { %v2216_v3 = vpop.f32.mrf.mxu0 }
 0x333   : > { %v2090_v32 = vpop.f32.mrf.mxu2  ;;  %v2285_v1 = vpop.f32.mrf.mxu1 }
 0x334   : > { %v2159_v63 = vpop.f32.mrf.mxu3  ;;  %v8572_v37 = vadd.f32 %v2285_v1, %v2216_v3  ;;  %v5623_v1 = vor.u32 %v6444_v46, %v5620_v22 }
 0x335   : > { %v8574_v49 = vadd.f32 %v2159_v63, %v2090_v32  ;;  %2791 = vmatmul.bf16.gmra.mxu0 %v7590_v30  ;;  %v5748_v63 = vld [vmem:[%s10294_s3 + $0x178] sm:$0xf0] }
 0x336   : > { %10431 = vst [vmem:[#allocation70_spill] sm:$0xff] %v8572_v37  ;;  %2860 = vmatmul.bf16.gmra.mxu1 %v7592_v23  ;;  %v5751_v29 = vor.u32 %v6476_v31, %v5748_v63  ;;  %3043 = vmatpush.bf16.msrb.mxu0 %v5623_v1  ;;  %v10437_v31 = vld [vmem:[#allocation10_spill] sm:$0xff]  ;;  %v10438_v1 = vld [vmem:[#allocation11_spill] sm:$0xff] }
 0x337   : > { %10432 = vst [vmem:[#allocation71_spill] sm:$0xff] %v8574_v49  ;;  %v5602_v63 = vld [vmem:[%s10294_s3 + $0x48] sm:$0xf] }
 0x338   : > { %2668 = vmatmul.bf16.gmra.mxu2 %v7730_v56  ;;  %2737 = vmatmul.bf16.gmra.mxu3 %v7732_v36 }
 0x339   : > { %3112 = vmatpush.bf16.msrb.mxu1 %v5751_v29  ;;  %v6442_v29 = vld [vmem:[%s10294_s3 + $0x54] sm:$0xf0] }
 0x33a   : > { %v2218_v34 = vpop.f32.mrf.mxu0 }
 0x33b   : > { %v2093_v57 = vpop.f32.mrf.mxu2  ;;  %v2287_v3 = vpop.f32.mrf.mxu1 }
 0x33c   : > { %v2162_v32 = vpop.f32.mrf.mxu3  ;;  %v8592_v49 = vadd.f32 %v2287_v3, %v2218_v34  ;;  %v6474_v34 = vld [vmem:[%s10294_s3 + $0x154] sm:$0xf0] }
 0x33d   : > { %v8594_v37 = vadd.f32 %v2162_v32, %v2093_v57 }
 0x33e   : > { %10433 = vst [vmem:[#allocation72_spill] sm:$0xff] %v8592_v49 }
 0x33f   : > { %10434 = vst [vmem:[#allocation73_spill] sm:$0xff] %v8594_v37 }
 0x342   : > { %v2221_v46 = vpop.f32.mrf.mxu0 }
 0x343   : > { %v2095_v22 = vpop.f32.mrf.mxu2  ;;  %v2290_v13 = vpop.f32.mrf.mxu1 }
 0x344   : > { %v2164_v6 = vpop.f32.mrf.mxu3  ;;  %v8596_v9 = vadd.f32 %v2290_v13, %v2221_v46  ;;  %v5603_v13 = vor.u32 %v6442_v29, %v5602_v63  ;;  %v6440_v63 = vld [vmem:[%s10294_s3 + $0x4c] sm:$0xf]  ;;  %v5604_v29 = vld [vmem:[%s10294_s3 + $0x58] sm:$0xf0] }
 0x345   : > { %v8598_v54 = vadd.f32 %v2164_v6, %v2095_v22  ;;  %2796 = vmatmul.bf16.gmra.mxu0 %v7646_v43  ;;  %v5730_v6 = vld [vmem:[%s10294_s3 + $0x148] sm:$0xf] }
 0x346   : > { %10435 = vst [vmem:[#allocation74_spill] sm:$0xff] %v8596_v9  ;;  %2865 = vmatmul.bf16.gmra.mxu1 %v7648_v52  ;;  %v5731_v3 = vor.u32 %v6474_v34, %v5730_v6  ;;  %2906 = vmatpush.bf16.msrb.mxu2 %v5603_v13  ;;  %v6472_v6 = vld [vmem:[%s10294_s3 + $0x14c] sm:$0xf]  ;;  %v5607_v13 = vor.u32 %v6440_v63, %v5604_v29  ;;  %v10444_v63 = vld [vmem:[#allocation12_spill] sm:$0xff]  ;;  %v10445_v29 = vld [vmem:[#allocation13_spill] sm:$0xff] }
 0x347   : > { %10436 = vst [vmem:[#allocation75_spill] sm:$0xff] %v8598_v54  ;;  %v10440_v54 = vld [vmem:[#allocation14_spill] sm:$0xff] }
 0x348   : > { %2673 = vmatmul.bf16.gmra.mxu2 %v10437_v31  ;;  %2742 = vmatmul.bf16.gmra.mxu3 %v10438_v1 }
 0x349   : > { %2975 = vmatpush.bf16.msrb.mxu3 %v5731_v3  ;;  %3044 = vmatpush.bf16.msrb.mxu0 %v5607_v13 }
 0x34a   : > { %v2223_v57 = vpop.f32.mrf.mxu0 }
 0x34b   : > { %v2292_v32 = vpop.f32.mrf.mxu1  ;;  %v2634_v46 = vpop.f32.mrf.mxu2 }
 0x34c   : > { %v8616_v22 = vadd.f32 %v2292_v32, %v2223_v57  ;;  %v2635_v9 = vadd.f32 %v2634_v46, %v10440_v54  ;;  %v2703_v37 = vpop.f32.mrf.mxu3  ;;  %v5732_v54 = vld [vmem:[%s10294_s3 + $0x158] sm:$0xf0] }
 0x34d   : > { %v5735_v34 = vor.u32 %v6472_v6, %v5732_v54 }
 0x34e   : > { %10439 = vst [vmem:[#allocation10_spill] sm:$0xff] %v8616_v22  ;;  %v8619_v49 = vadd.f32 %v2703_v37, %v2635_v9 }
 0x34f   : > { %3113 = vmatpush.bf16.msrb.mxu1 %v5735_v34 }
 0x350   : > { %10441 = vst [vmem:[#allocation11_spill] sm:$0xff] %v8619_v49 }
 0x352   : > { %v2226_v9 = vpop.f32.mrf.mxu0 }
 0x353   : > { %v2295_v37 = vpop.f32.mrf.mxu1  ;;  %v2636_v57 = vpop.f32.mrf.mxu2 }
 0x354   : > { %v8633_v3 = vadd.f32 %v2295_v37, %v2226_v9  ;;  %v2637_v32 = vadd.f32 %v2636_v57, %v7899_v55  ;;  %v2705_v46 = vpop.f32.mrf.mxu3  ;;  %v5586_v57 = vld [vmem:[%s10294_s3 + $0x28] sm:$0xf] }
 0x355   : > { %2801 = vmatmul.bf16.gmra.mxu0 %v7686_v48 }
 0x356   : > { %10442 = vst [vmem:[#allocation14_spill] sm:$0xff] %v8633_v3  ;;  %v8637_v49 = vadd.f32 %v2705_v46, %v2637_v32  ;;  %2870 = vmatmul.bf16.gmra.mxu1 %v7688_v24  ;;  %v6438_v32 = vld [vmem:[%s10294_s3 + $0x34] sm:$0xf0]  ;;  %v5714_v46 = vld [vmem:[%s10294_s3 + $0x128] sm:$0xf] }
 0x358   : > { %10443 = vst [vmem:[#allocation76_spill] sm:$0xff] %v8637_v49  ;;  %2678 = vmatmul.bf16.gmra.mxu2 %v10444_v63  ;;  %2747 = vmatmul.bf16.gmra.mxu3 %v10445_v29  ;;  %v5587_v49 = vor.u32 %v6438_v32, %v5586_v57  ;;  %v5698_v57 = vld [vmem:[%s10294_s3 + $0x108] sm:$0xf] }
 0x35a   : > { %v2228_v6 = vpop.f32.mrf.mxu0  ;;  %2907 = vmatpush.bf16.msrb.mxu2 %v5587_v49 }
 0x35b   : > { %v2297_v13 = vpop.f32.mrf.mxu1  ;;  %v2639_v54 = vpop.f32.mrf.mxu2 }
 0x35c   : > { %v8642_v34 = vadd.f32 %v2297_v13, %v2228_v6  ;;  %v2640_v9 = vadd.f32 %v2639_v54, %v7918_v51  ;;  %v2708_v37 = vpop.f32.mrf.mxu3  ;;  %v6470_v51 = vld [vmem:[%s10294_s3 + $0x134] sm:$0xf0] }
 0x35d   : > { %v5715_v6 = vor.u32 %v6470_v51, %v5714_v46 }
 0x35e   : > { %10446 = vst [vmem:[#allocation12_spill] sm:$0xff] %v8642_v34  ;;  %v8645_v55 = vadd.f32 %v2708_v37, %v2640_v9  ;;  %v5570_v37 = vld [vmem:[%s10294_s3 + $0x8] sm:$0xf] }
 0x35f   : > { %2976 = vmatpush.bf16.msrb.mxu3 %v5715_v6  ;;  %v6466_v6 = vld [vmem:[%s10294_s3 + $0x114] sm:$0xf0] }
 0x360   : > { %10447 = vst [vmem:[#allocation13_spill] sm:$0xff] %v8645_v55  ;;  %v6434_v55 = vld [vmem:[%s10294_s3 + $0x14] sm:$0xf0]  ;;  %v5699_v34 = vor.u32 %v6466_v6, %v5698_v57  ;;  %v10451_v57 = vld [vmem:[#allocation16_spill] sm:$0xff] }
 0x361   : > { %v5571_v51 = vor.u32 %v6434_v55, %v5570_v37  ;;  %v6468_v55 = vld [vmem:[%s10294_s3 + $0x12c] sm:$0xf] }
 0x362   : > { %v2231_v13 = vpop.f32.mrf.mxu0  ;;  %v10450_v37 = vld [vmem:[#allocation15_spill] sm:$0xff] }
 0x363   : > { %v2300_v54 = vpop.f32.mrf.mxu1  ;;  %v2641_v9 = vpop.f32.mrf.mxu2  ;;  %2908 = vmatpush.bf16.msrb.mxu2 %v5571_v51  ;;  %2977 = vmatpush.bf16.msrb.mxu3 %v5699_v34 }
 0x364   : > { %v8668_v32 = vadd.f32 %v2300_v54, %v2231_v13  ;;  %v2642_v49 = vadd.f32 %v2641_v9, %v7954_v45  ;;  %v2710_v46 = vpop.f32.mrf.mxu3  ;;  %v6436_v13 = vld [vmem:[%s10294_s3 + $0x2c] sm:$0xf]  ;;  %v5588_v45 = vld [vmem:[%s10294_s3 + $0x38] sm:$0xf0] }
 0x365   : > { %2806 = vmatmul.bf16.gmra.mxu0 %v7730_v56  ;;  %v5591_v54 = vor.u32 %v6436_v13, %v5588_v45  ;;  %v5716_v9 = vld [vmem:[%s10294_s3 + $0x138] sm:$0xf0] }
 0x366   : > { %10448 = vst [vmem:[#allocation77_spill] sm:$0xff] %v8668_v32  ;;  %v8675_v3 = vadd.f32 %v2710_v46, %v2642_v49  ;;  %2875 = vmatmul.bf16.gmra.mxu1 %v7732_v36  ;;  %v5719_v49 = vor.u32 %v6468_v55, %v5716_v9 }
 0x367   : > { %3045 = vmatpush.bf16.msrb.mxu0 %v5591_v54 }
 0x368   : > { %10449 = vst [vmem:[#allocation78_spill] sm:$0xff] %v8675_v3  ;;  %2683 = vmatmul.bf16.gmra.mxu2 %v10450_v37  ;;  %2752 = vmatmul.bf16.gmra.mxu3 %v10451_v57 }
 0x369   : > { %3114 = vmatpush.bf16.msrb.mxu1 %v5719_v49 }
 0x36a   : > { %v2233_v46 = vpop.f32.mrf.mxu0 }
 0x36b   : > { %v2302_v51 = vpop.f32.mrf.mxu1  ;;  %v2644_v6 = vpop.f32.mrf.mxu2 }
 0x36c   : > { %v8692_v3 = vadd.f32 %v2302_v51, %v2233_v46  ;;  %v2645_v32 = vadd.f32 %v2644_v6, %v7982_v58  ;;  %v2713_v34 = vpop.f32.mrf.mxu3  ;;  %v10452_v58 = vld [vmem:[#allocation17_spill] sm:$0xff] }
 0x36d   : > { %v5572_v6 = vld [vmem:[%s10294_s3 + $0x18] sm:$0xf0] }
 0x36e   : > { %v8695_v13 = vadd.f32 %v2713_v34, %v2645_v32  ;;  %v10453_v32 = vld [vmem:[#allocation18_spill] sm:$0xff] }
 0x372   : > { %v2772_v45 = vpop.f32.mrf.mxu0 }
 0x373   : > { %v2646_v22 = vpop.f32.mrf.mxu2  ;;  %v2773_v44 = vadd.f32 %v2772_v45, %v7993_v60  ;;  %v2841_v14 = vpop.f32.mrf.mxu1 }
 0x374   : > { %v2647_v2 = vadd.f32 %v2646_v22, %v7995_v10  ;;  %v2715_v55 = vpop.f32.mrf.mxu3 }
 0x375   : > { %v8699_v54 = vadd.f32 %v2841_v14, %v2773_v44  ;;  %2811 = vmatmul.bf16.gmra.mxu0 %v10437_v31 }
 0x376   : > { %v8702_v9 = vadd.f32 %v2715_v55, %v2647_v2  ;;  %2880 = vmatmul.bf16.gmra.mxu1 %v10438_v1  ;;  %v6432_v2 = vld [vmem:[%s10294_s3 + $0xc] sm:$0xf] }
 0x377   : > { %v5575_v34 = vor.u32 %v6432_v2, %v5572_v6 }
 0x378   : > { %2688 = vmatmul.bf16.gmra.mxu2 %v10452_v58  ;;  %2757 = vmatmul.bf16.gmra.mxu3 %v10453_v32 }
 0x379   : > { %3046 = vmatpush.bf16.msrb.mxu0 %v5575_v34 }
 0x37a   : > { %v2774_v49 = vpop.f32.mrf.mxu0 }
 0x37b   : > { %v2649_v46 = vpop.f32.mrf.mxu2  ;;  %v2775_v60 = vadd.f32 %v2774_v49, %v8007_v25  ;;  %v2843_v51 = vpop.f32.mrf.mxu1  ;;  %v6464_v25 = vld [vmem:[%s10294_s3 + $0x10c] sm:$0xf] }
 0x37c   : > { %v2650_v10 = vadd.f32 %v2649_v46, %v8009_v17  ;;  %v2718_v22 = vpop.f32.mrf.mxu3  ;;  %v5700_v17 = vld [vmem:[%s10294_s3 + $0x118] sm:$0xf0] }
 0x37d   : > { %v8709_v14 = vadd.f32 %v2843_v51, %v2775_v60  ;;  %v5703_v45 = vor.u32 %v6464_v25, %v5700_v17  ;;  %v10456_v17 = vld [vmem:[#allocation5_spill] sm:$0xff] }
 0x37e   : > { %v8711_v44 = vadd.f32 %v2718_v22, %v2650_v10 }
 0x37f   : > { %3115 = vmatpush.bf16.msrb.mxu1 %v5703_v45 }
 0x382   : > { %v2777_v55 = vpop.f32.mrf.mxu0 }
 0x383   : > { %v2651_v49 = vpop.f32.mrf.mxu2  ;;  %v2778_v46 = vadd.f32 %v2777_v55, %v8023_v18  ;;  %v2846_v60 = vpop.f32.mrf.mxu1 }
 0x384   : > { %v2652_v51 = vadd.f32 %v2651_v49, %v8025_v61  ;;  %v2720_v10 = vpop.f32.mrf.mxu3 }
 0x385   : > { %v8727_v22 = vadd.f32 %v2846_v60, %v2778_v46  ;;  %2816 = vmatmul.bf16.gmra.mxu0 %v10444_v63  ;;  %v6010_v46 = vld [vmem:[%s10294_s3 + $0x4e0] sm:$0xf]  ;;  %v6589_v60 = vld [vmem:[%s10294_s3 + $0x4ec] sm:$0xf0] }
 0x386   : > { %v8730_v2 = vadd.f32 %v2720_v10, %v2652_v51  ;;  %2885 = vmatmul.bf16.gmra.mxu1 %v10445_v29  ;;  %v6011_v51 = vor.u32 %v6589_v60, %v6010_v46  ;;  %v6621_v10 = vld [vmem:[%s10294_s3 + $0x5ec] sm:$0xf0]  ;;  %v6587_v60 = vld [vmem:[%s10294_s3 + $0x4e4] sm:$0xf] }
 0x387   : > { %10454 = vst [vmem:[#allocation15_spill] sm:$0xff] %v8727_v22 }
 0x388   : > { %10455 = vst [vmem:[#allocation17_spill] sm:$0xff] %v8730_v2  ;;  %2909 = vmatmul.bf16.vlgmr.msrb.gmra.mxu2 %v10340_v4  ;;  %2978 = vmatmul.bf16.vlgmr.msrb.gmra.mxu3 %v10340_v4 }
 0x389   : > { %3562 = vmatpush.bf16.msra.mxu2 %v6011_v51  ;;  %v6619_v51 = vld [vmem:[%s10294_s3 + $0x5e4] sm:$0xf] }
 0x38a   : > { %v2779_v6 = vpop.f32.mrf.mxu0 }
 0x38b   : > { %v2654_v25 = vpop.f32.mrf.mxu2  ;;  %v2780_v18 = vadd.f32 %v2779_v6, %v8031_v15  ;;  %v2848_v34 = vpop.f32.mrf.mxu1  ;;  %v6138_v15 = vld [vmem:[%s10294_s3 + $0x5e0] sm:$0xf] }
 0x38c   : > { %v2655_v61 = vadd.f32 %v2654_v25, %v10456_v17  ;;  %v2723_v45 = vpop.f32.mrf.mxu3  ;;  %v6139_v6 = vor.u32 %v6621_v10, %v6138_v15  ;;  %v6012_v15 = vld [vmem:[%s10294_s3 + $0x4f0] sm:$0xf0] }
 0x38d   : > { %v8737_v55 = vadd.f32 %v2848_v34, %v2780_v18  ;;  %v10459_v34 = vld [vmem:[#allocation6_spill] sm:$0xff]  ;;  %v6015_v10 = vor.u32 %v6587_v60, %v6012_v15 }
 0x38e   : > { %v8739_v49 = vadd.f32 %v2723_v45, %v2655_v61  ;;  %3631 = vmatpush.bf16.msra.mxu3 %v6139_v6  ;;  %v10460_v45 = vld [vmem:[#allocation7_spill] sm:$0xff] }
 0x38f   : > { %10457 = vst [vmem:[#allocation5_spill] sm:$0xff] %v8737_v55  ;;  %3700 = vmatpush.bf16.msra.mxu0 %v6015_v10 }
 0x390   : > { %10458 = vst [vmem:[#allocation79_spill] sm:$0xff] %v8739_v49 }
 0x392   : > { %v2782_v25 = vpop.f32.mrf.mxu0 }
 0x393   : > { %v2656_v18 = vpop.f32.mrf.mxu2  ;;  %v2783_v17 = vadd.f32 %v2782_v25, %v10459_v34  ;;  %v2851_v61 = vpop.f32.mrf.mxu1 }
 0x394   : > { %v2657_v49 = vadd.f32 %v2656_v18, %v10460_v45  ;;  %v2725_v55 = vpop.f32.mrf.mxu3 }
 0x395   : > { %v8755_v2 = vadd.f32 %v2851_v61, %v2783_v17  ;;  %2821 = vmatmul.bf16.gmra.mxu0 %v10450_v37 }
 0x396   : > { %v8758_v46 = vadd.f32 %v2725_v55, %v2657_v49  ;;  %2890 = vmatmul.bf16.gmra.mxu1 %v10451_v57  ;;  %v6140_v55 = vld [vmem:[%s10294_s3 + $0x5f0] sm:$0xf0] }
 0x397   : > { %10461 = vst [vmem:[#allocation6_spill] sm:$0xff] %v8755_v2  ;;  %v6143_v49 = vor.u32 %v6619_v51, %v6140_v55  ;;  %v10463_v51 = vld [vmem:[#allocation8_spill] sm:$0xff] }
 0x398   : > { %10462 = vst [vmem:[#allocation7_spill] sm:$0xff] %v8758_v46  ;;  %5825 = vmatmul.msk.bf16.gmra.mxu2 %vm8389_vm2, %v8396_v38  ;;  %5827 = vmatmul.msk.bf16.gmra.mxu3 %vm8389_vm2, %v8400_v8 }
 0x399   : > { %3769 = vmatpush.bf16.msra.mxu1 %v6143_v49 }
 0x39a   : > { %v2784_v6 = vpop.f32.mrf.mxu0 }
 0x39b   : > { %v2659_v25 = vpop.f32.mrf.mxu2  ;;  %v2785_v18 = vadd.f32 %v2784_v6, %v8067_v27  ;;  %v2853_v34 = vpop.f32.mrf.mxu1 }
 0x39c   : > { %v2660_v17 = vadd.f32 %v2659_v25, %v8069_v12  ;;  %v2728_v61 = vpop.f32.mrf.mxu3  ;;  %v5994_v12 = vld [vmem:[%s10294_s3 + $0x4c0] sm:$0xf] }
 0x39d   : > { %v8781_v45 = vadd.f32 %v2853_v34, %v2785_v18 }
 0x39e   : > { %v8783_v60 = vadd.f32 %v2728_v61, %v2660_v17  ;;  %v10464_v61 = vld [vmem:[#allocation9_spill] sm:$0xff] }
 0x3a2   : > { %v2787_v15 = vpop.f32.mrf.mxu0 }
 0x3a3   : > { %v2661_v46 = vpop.f32.mrf.mxu2  ;;  %v2788_v2 = vadd.f32 %v2787_v15, %v8071_v28  ;;  %v2856_v22 = vpop.f32.mrf.mxu1  ;;  %v6585_v28 = vld [vmem:[%s10294_s3 + $0x4cc] sm:$0xf0] }
 0x3a4   : > { %v2662_v10 = vadd.f32 %v2661_v46, %v10463_v51  ;;  %v2730_v55 = vpop.f32.mrf.mxu3  ;;  %v6617_v46 = vld [vmem:[%s10294_s3 + $0x5cc] sm:$0xf0] }
 0x3a5   : > { %v8787_v49 = vadd.f32 %v2856_v22, %v2788_v2  ;;  %2826 = vmatmul.bf16.gmra.mxu0 %v10452_v58  ;;  %v6122_v22 = vld [vmem:[%s10294_s3 + $0x5c0] sm:$0xf]  ;;  %v5995_v2 = vor.u32 %v6585_v28, %v5994_v12  ;;  %v6583_v12 = vld [vmem:[%s10294_s3 + $0x4c4] sm:$0xf]  ;;  %v5996_v28 = vld [vmem:[%s10294_s3 + $0x4d0] sm:$0xf0] }
 0x3a6   : > { %v8790_v27 = vadd.f32 %v2730_v55, %v2662_v10  ;;  %2895 = vmatmul.bf16.gmra.mxu1 %v10453_v32  ;;  %v6123_v25 = vor.u32 %v6617_v46, %v6122_v22  ;;  %v5999_v22 = vor.u32 %v6583_v12, %v5996_v28 }
 0x3a7   : > { %3563 = vmatpush.bf16.msra.mxu2 %v5995_v2  ;;  %v6124_v2 = vld [vmem:[%s10294_s3 + $0x5d0] sm:$0xf0] }
 0x3a8   : > { %2919 = vmatmul.bf16.gmra.mxu2 %v7506_v33  ;;  %2988 = vmatmul.bf16.gmra.mxu3 %v7508_v42 }
 0x3a9   : > { %3632 = vmatpush.bf16.msra.mxu3 %v6123_v25  ;;  %3701 = vmatpush.bf16.msra.mxu0 %v5999_v22  ;;  %v10470_v22 = vld [vmem:[#allocation24_spill] sm:$0xff] }
 0x3aa   : > { %v2789_v6 = vpop.f32.mrf.mxu0 }
 0x3ab   : > { %v2664_v18 = vpop.f32.mrf.mxu2  ;;  %v2790_v34 = vadd.f32 %v2789_v6, %v8091_v59  ;;  %v2858_v17 = vpop.f32.mrf.mxu1  ;;  %v6615_v59 = vld [vmem:[%s10294_s3 + $0x5c4] sm:$0xf] }
 0x3ac   : > { %v2665_v15 = vadd.f32 %v2664_v18, %v10464_v61  ;;  %v2733_v51 = vpop.f32.mrf.mxu3  ;;  %v6127_v46 = vor.u32 %v6615_v59, %v6124_v2  ;;  %v10466_v18 = vld [vmem:[#allocation22_spill] sm:$0xff]  ;;  %v10467_v61 = vld [vmem:[#allocation23_spill] sm:$0xff] }
 0x3ad   : > { %v8809_v10 = vadd.f32 %v2858_v17, %v2790_v34 }
 0x3ae   : > { %v8811_v55 = vadd.f32 %v2733_v51, %v2665_v15  ;;  %3770 = vmatpush.bf16.msra.mxu1 %v6127_v46 }
 0x3b0   : > { %10465 = vst [vmem:[#allocation8_spill] sm:$0xff] %v8811_v55 }
 0x3b2   : > { %v2792_v6 = vpop.f32.mrf.mxu0 }
 0x3b3   : > { %v2666_v25 = vpop.f32.mrf.mxu2  ;;  %v2793_v34 = vadd.f32 %v2792_v6, %v10466_v18  ;;  %v2861_v17 = vpop.f32.mrf.mxu1  ;;  %v10471_v6 = vld [vmem:[#allocation25_spill] sm:$0xff] }
 0x3b4   : > { %v2667_v15 = vadd.f32 %v2666_v25, %v10467_v61  ;;  %v2735_v51 = vpop.f32.mrf.mxu3  ;;  %v5978_v61 = vld [vmem:[%s10294_s3 + $0x4a0] sm:$0xf] }
 0x3b5   : > { %v8827_v55 = vadd.f32 %v2861_v17, %v2793_v34  ;;  %3047 = vmatmul.bf16.vlgmr.msrb.gmra.mxu0 %v10340_v4 }
 0x3b6   : > { %v8830_v12 = vadd.f32 %v2735_v51, %v2667_v15  ;;  %3116 = vmatmul.bf16.vlgmr.msrb.gmra.mxu1 %v10340_v4  ;;  %v6581_v15 = vld [vmem:[%s10294_s3 + $0x4ac] sm:$0xf0]  ;;  %v6106_v51 = vld [vmem:[%s10294_s3 + $0x5a0] sm:$0xf] }
 0x3b7   : > { %10468 = vst [vmem:[#allocation9_spill] sm:$0xff] %v8827_v55 }
 0x3b8   : > { %10469 = vst [vmem:[#allocation22_spill] sm:$0xff] %v8830_v12  ;;  %2924 = vmatmul.bf16.gmra.mxu2 %v7546_v40  ;;  %2993 = vmatmul.bf16.gmra.mxu3 %v10416_v39 }
 0x3ba   : > { %v2794_v28 = vpop.f32.mrf.mxu0 }
 0x3bb   : > { %v2669_v59 = vpop.f32.mrf.mxu2  ;;  %v2795_v2 = vadd.f32 %v2794_v28, %v10470_v22  ;;  %v2863_v46 = vpop.f32.mrf.mxu1  ;;  %v5979_v28 = vor.u32 %v6581_v15, %v5978_v61  ;;  %v6579_v15 = vld [vmem:[%s10294_s3 + $0x4a4] sm:$0xf] }
 0x3bc   : > { %v2670_v25 = vadd.f32 %v2669_v59, %v10471_v6  ;;  %v2738_v18 = vpop.f32.mrf.mxu3  ;;  %v6613_v59 = vld [vmem:[%s10294_s3 + $0x5ac] sm:$0xf0]  ;;  %v10474_v6 = vld [vmem:[#allocation26_spill] sm:$0xff] }
 0x3bd   : > { %v8837_v34 = vadd.f32 %v2863_v46, %v2795_v2  ;;  %v6107_v22 = vor.u32 %v6613_v59, %v6106_v51  ;;  %3564 = vmatpush.bf16.msra.mxu2 %v5979_v28  ;;  %v6611_v51 = vld [vmem:[%s10294_s3 + $0x5a4] sm:$0xf] }
 0x3be   : > { %v8839_v17 = vadd.f32 %v2738_v18, %v2670_v25 }
 0x3bf   : > { %10472 = vst [vmem:[#allocation23_spill] sm:$0xff] %v8837_v34  ;;  %3633 = vmatpush.bf16.msra.mxu3 %v6107_v22 }
 0x3c0   : > { %10473 = vst [vmem:[#allocation24_spill] sm:$0xff] %v8839_v17  ;;  %v10475_v17 = vld [vmem:[#allocation27_spill] sm:$0xff] }
 0x3c2   : > { %v2797_v2 = vpop.f32.mrf.mxu0 }
 0x3c3   : > { %v2671_v46 = vpop.f32.mrf.mxu2  ;;  %v2798_v25 = vadd.f32 %v2797_v2, %v10474_v6  ;;  %v2866_v18 = vpop.f32.mrf.mxu1 }
 0x3c4   : > { %v2672_v34 = vadd.f32 %v2671_v46, %v10475_v17  ;;  %v2740_v12 = vpop.f32.mrf.mxu3  ;;  %v5980_v17 = vld [vmem:[%s10294_s3 + $0x4b0] sm:$0xf0] }
 0x3c5   : > { %v8855_v55 = vadd.f32 %v2866_v18, %v2798_v25  ;;  %5829 = vmatmul.msk.bf16.gmra.mxu0 %vm8389_vm2, %v8396_v38  ;;  %v5983_v28 = vor.u32 %v6579_v15, %v5980_v17  ;;  %v6108_v38 = vld [vmem:[%s10294_s3 + $0x5b0] sm:$0xf0] }
 0x3c6   : > { %v8860_v61 = vadd.f32 %v2740_v12, %v2672_v34  ;;  %5831 = vmatmul.msk.bf16.gmra.mxu1 %vm8389_vm2, %v8400_v8  ;;  %v6111_v5 = vor.u32 %v6611_v51, %v6108_v38 }
 0x3c7   : > { %3702 = vmatpush.bf16.msra.mxu0 %v5983_v28 }
 0x3c8   : > { %2929 = vmatmul.bf16.gmra.mxu2 %v7590_v30  ;;  %2998 = vmatmul.bf16.gmra.mxu3 %v7592_v23 }
 0x3c9   : > { %3771 = vmatpush.bf16.msra.mxu1 %v6111_v5 }
 0x3ca   : > { %v2799_v8 = vpop.f32.mrf.mxu0 }
 0x3cb   : > { %v2674_v12 = vpop.f32.mrf.mxu2  ;;  %v2800_v34 = vadd.f32 %v2799_v8, %v8151_v41  ;;  %v2868_v59 = vpop.f32.mrf.mxu1 }
 0x3cc   : > { %v2675_v22 = vadd.f32 %v2674_v12, %v8153_v11  ;;  %v2743_v2 = vpop.f32.mrf.mxu3 }
 0x3cd   : > { %v8881_v46 = vadd.f32 %v2868_v59, %v2800_v34 }
 0x3ce   : > { %v8883_v6 = vadd.f32 %v2743_v2, %v2675_v22 }
 0x3d2   : > { %v2802_v25 = vpop.f32.mrf.mxu0 }
 0x3d3   : > { %v2676_v18 = vpop.f32.mrf.mxu2  ;;  %v2803_v15 = vadd.f32 %v2802_v25, %v8155_v20  ;;  %v2871_v17 = vpop.f32.mrf.mxu1  ;;  %v5962_v20 = vld [vmem:[%s10294_s3 + $0x480] sm:$0xf] }
 0x3d4   : > { %v2677_v51 = vadd.f32 %v2676_v18, %v8157_v0  ;;  %v2745_v28 = vpop.f32.mrf.mxu3  ;;  %v6577_v0 = vld [vmem:[%s10294_s3 + $0x48c] sm:$0xf0] }
 0x3d5   : > { %v8887_v38 = vadd.f32 %v2871_v17, %v2803_v15  ;;  %3057 = vmatmul.bf16.gmra.mxu0 %v7506_v33  ;;  %v6090_v33 = vld [vmem:[%s10294_s3 + $0x580] sm:$0xf]  ;;  %v5963_v11 = vor.u32 %v6577_v0, %v5962_v20  ;;  %v6575_v15 = vld [vmem:[%s10294_s3 + $0x484] sm:$0xf]  ;;  %v5964_v17 = vld [vmem:[%s10294_s3 + $0x490] sm:$0xf0] }
 0x3d6   : > { %v8890_v41 = vadd.f32 %v2745_v28, %v2677_v51  ;;  %3126 = vmatmul.bf16.gmra.mxu1 %v7508_v42  ;;  %v6609_v42 = vld [vmem:[%s10294_s3 + $0x58c] sm:$0xf0]  ;;  %v5967_v51 = vor.u32 %v6575_v15, %v5964_v17  ;;  %v10478_v15 = vld [vmem:[#allocation30_spill] sm:$0xff] }
 0x3d7   : > { %v6091_v8 = vor.u32 %v6609_v42, %v6090_v33  ;;  %3565 = vmatpush.bf16.msra.mxu2 %v5963_v11  ;;  %v10476_v33 = vld [vmem:[#allocation28_spill] sm:$0xff] }
 0x3d8   : > { %2934 = vmatmul.bf16.gmra.mxu2 %v7646_v43  ;;  %3003 = vmatmul.bf16.gmra.mxu3 %v7648_v52 }
 0x3d9   : > { %3634 = vmatpush.bf16.msra.mxu3 %v6091_v8  ;;  %3703 = vmatpush.bf16.msra.mxu0 %v5967_v51  ;;  %v10479_v51 = vld [vmem:[#allocation31_spill] sm:$0xff] }
 0x3da   : > { %v2804_v5 = vpop.f32.mrf.mxu0 }
 0x3db   : > { %v2679_v12 = vpop.f32.mrf.mxu2  ;;  %v2805_v34 = vadd.f32 %v2804_v5, %v8175_v35  ;;  %v2873_v59 = vpop.f32.mrf.mxu1  ;;  %v6607_v35 = vld [vmem:[%s10294_s3 + $0x584] sm:$0xf]  ;;  %v10477_v5 = vld [vmem:[#allocation29_spill] sm:$0xff] }
 0x3dc   : > { %v2680_v22 = vadd.f32 %v2679_v12, %v8177_v62  ;;  %v2748_v2 = vpop.f32.mrf.mxu3  ;;  %v6092_v62 = vld [vmem:[%s10294_s3 + $0x590] sm:$0xf0] }
 0x3dd   : > { %v8909_v25 = vadd.f32 %v2873_v59, %v2805_v34  ;;  %v6095_v28 = vor.u32 %v6607_v35, %v6092_v62 }
 0x3de   : > { %v8911_v18 = vadd.f32 %v2748_v2, %v2680_v22 }
 0x3df   : > { %3772 = vmatpush.bf16.msra.mxu1 %v6095_v28 }
 0x3e2   : > { %v2807_v20 = vpop.f32.mrf.mxu0 }
 0x3e3   : > { %v2681_v0 = vpop.f32.mrf.mxu2  ;;  %v2808_v11 = vadd.f32 %v2807_v20, %v10476_v33  ;;  %v2876_v42 = vpop.f32.mrf.mxu1  ;;  %v5946_v33 = vld [vmem:[%s10294_s3 + $0x460] sm:$0xf] }
 0x3e4   : > { %v2682_v8 = vadd.f32 %v2681_v0, %v10477_v5  ;;  %v2750_v12 = vpop.f32.mrf.mxu3 }
 0x3e5   : > { %v8927_v34 = vadd.f32 %v2876_v42, %v2808_v11  ;;  %3062 = vmatmul.bf16.gmra.mxu0 %v7546_v40  ;;  %v6573_v11 = vld [vmem:[%s10294_s3 + $0x46c] sm:$0xf0]  ;;  %v6074_v42 = vld [vmem:[%s10294_s3 + $0x560] sm:$0xf] }
 0x3e6   : > { %v8930_v59 = vadd.f32 %v2750_v12, %v2682_v8  ;;  %3131 = vmatmul.bf16.gmra.mxu1 %v10416_v39  ;;  %v5947_v5 = vor.u32 %v6573_v11, %v5946_v33  ;;  %v6605_v8 = vld [vmem:[%s10294_s3 + $0x56c] sm:$0xf0]  ;;  %v6571_v11 = vld [vmem:[%s10294_s3 + $0x464] sm:$0xf] }
 0x3e7   : > { %v6075_v12 = vor.u32 %v6605_v8, %v6074_v42  ;;  %v5948_v42 = vld [vmem:[%s10294_s3 + $0x470] sm:$0xf0] }
 0x3e8   : > { %2939 = vmatmul.bf16.gmra.mxu2 %v7686_v48  ;;  %3008 = vmatmul.bf16.gmra.mxu3 %v7688_v24  ;;  %v5951_v8 = vor.u32 %v6571_v11, %v5948_v42 }
 0x3e9   : > { %3566 = vmatpush.bf16.msra.mxu2 %v5947_v5  ;;  %3635 = vmatpush.bf16.msra.mxu3 %v6075_v12  ;;  %v6603_v5 = vld [vmem:[%s10294_s3 + $0x564] sm:$0xf]  ;;  %v6076_v12 = vld [vmem:[%s10294_s3 + $0x570] sm:$0xf0] }
 0x3ea   : > { %v2809_v22 = vpop.f32.mrf.mxu0  ;;  %3704 = vmatpush.bf16.msra.mxu0 %v5951_v8 }
 0x3eb   : > { %v2684_v2 = vpop.f32.mrf.mxu2  ;;  %v2810_v17 = vadd.f32 %v2809_v22, %v10478_v15  ;;  %v2878_v35 = vpop.f32.mrf.mxu1  ;;  %v10482_v15 = vld [vmem:[#allocation32_spill] sm:$0xff] }
 0x3ec   : > { %v2685_v62 = vadd.f32 %v2684_v2, %v10479_v51  ;;  %v2753_v28 = vpop.f32.mrf.mxu3  ;;  %v10483_v51 = vld [vmem:[#allocation33_spill] sm:$0xff] }
 0x3ed   : > { %v8937_v20 = vadd.f32 %v2878_v35, %v2810_v17 }
 0x3ee   : > { %v8939_v0 = vadd.f32 %v2753_v28, %v2685_v62 }
 0x3ef   : > { %10480 = vst [vmem:[#allocation25_spill] sm:$0xff] %v8937_v20 }
 0x3f0   : > { %10481 = vst [vmem:[#allocation26_spill] sm:$0xff] %v8939_v0 }
 0x3f2   : > { %v2812_v22 = vpop.f32.mrf.mxu0 }
 0x3f3   : > { %v2686_v2 = vpop.f32.mrf.mxu2  ;;  %v2813_v17 = vadd.f32 %v2812_v22, %v10482_v15  ;;  %v2881_v35 = vpop.f32.mrf.mxu1  ;;  %v6079_v22 = vor.u32 %v6603_v5, %v6076_v12 }
 0x3f4   : > { %v2687_v62 = vadd.f32 %v2686_v2, %v10483_v51  ;;  %v2755_v28 = vpop.f32.mrf.mxu3 }
 0x3f5   : > { %v8955_v0 = vadd.f32 %v2881_v35, %v2813_v17  ;;  %3067 = vmatmul.bf16.gmra.mxu0 %v7590_v30  ;;  %3773 = vmatpush.bf16.msra.mxu1 %v6079_v22 }
 0x3f6   : > { %v8958_v33 = vadd.f32 %v2755_v28, %v2687_v62  ;;  %3136 = vmatmul.bf16.gmra.mxu1 %v7592_v23 }
 0x3f7   : > { %10484 = vst [vmem:[#allocation27_spill] sm:$0xff] %v8955_v0 }
 0x3f8   : > { %10485 = vst [vmem:[#allocation28_spill] sm:$0xff] %v8958_v33  ;;  %2944 = vmatmul.bf16.gmra.mxu2 %v7730_v56  ;;  %3013 = vmatmul.bf16.gmra.mxu3 %v7732_v36 }
 0x3fa   : > { %v2814_v2 = vpop.f32.mrf.mxu0 }
 0x3fb   : > { %v2689_v15 = vpop.f32.mrf.mxu2  ;;  %v2815_v17 = vadd.f32 %v2814_v2, %v8235_v26  ;;  %v2883_v35 = vpop.f32.mrf.mxu1 }
 0x3fc   : > { %v2690_v51 = vadd.f32 %v2689_v15, %v8237_v21  ;;  %v2758_v62 = vpop.f32.mrf.mxu3  ;;  %v6058_v21 = vld [vmem:[%s10294_s3 + $0x540] sm:$0xf] }
 0x3fd   : > { %v8977_v28 = vadd.f32 %v2883_v35, %v2815_v17 }
 0x3fe   : > { %v8979_v11 = vadd.f32 %v2758_v62, %v2690_v51 }
 0x3ff   : > { %10486 = vst [vmem:[#allocation29_spill] sm:$0xff] %v8977_v28 }
 0x400   : > { %10487 = vst [vmem:[#allocation30_spill] sm:$0xff] %v8979_v11  ;;  %v10598_v11 = vld [vmem:[#allocation78_spill] sm:$0xff] }
 0x402   : > { %v2817_v42 = vpop.f32.mrf.mxu0 }
 0x403   : > { %v2691_v33 = vpop.f32.mrf.mxu2  ;;  %v2818_v0 = vadd.f32 %v2817_v42, %v8239_v47  ;;  %v2886_v20 = vpop.f32.mrf.mxu1  ;;  %v5930_v47 = vld [vmem:[%s10294_s3 + $0x440] sm:$0xf] }
 0x404   : > { %v2692_v5 = vadd.f32 %v2691_v33, %v8241_v16  ;;  %v2760_v8 = vpop.f32.mrf.mxu3  ;;  %v6569_v16 = vld [vmem:[%s10294_s3 + $0x44c] sm:$0xf0] }
 0x405   : > { %v8983_v12 = vadd.f32 %v2886_v20, %v2818_v0  ;;  %3072 = vmatmul.bf16.gmra.mxu0 %v7646_v43  ;;  %v5931_v20 = vor.u32 %v6569_v16, %v5930_v47  ;;  %v6601_v0 = vld [vmem:[%s10294_s3 + $0x54c] sm:$0xf0] }
 0x406   : > { %v8986_v26 = vadd.f32 %v2760_v8, %v2692_v5  ;;  %3141 = vmatmul.bf16.gmra.mxu1 %v7648_v52  ;;  %v6059_v22 = vor.u32 %v6601_v0, %v6058_v21  ;;  %v6567_v5 = vld [vmem:[%s10294_s3 + $0x444] sm:$0xf]  ;;  %v5932_v8 = vld [vmem:[%s10294_s3 + $0x450] sm:$0xf0] }
 0x407   : > { %10488 = vst [vmem:[#allocation31_spill] sm:$0xff] %v8983_v12  ;;  %3567 = vmatpush.bf16.msra.mxu2 %v5931_v20  ;;  %v5935_v47 = vor.u32 %v6567_v5, %v5932_v8  ;;  %v10492_v20 = vld [vmem:[#allocation34_spill] sm:$0xff]  ;;  %v10496_v8 = vld [vmem:[#allocation36_spill] sm:$0xff] }
 0x408   : > { %10489 = vst [vmem:[#allocation32_spill] sm:$0xff] %v8986_v26  ;;  %2949 = vmatmul.bf16.gmra.mxu2 %v10437_v31  ;;  %3018 = vmatmul.bf16.gmra.mxu3 %v10438_v1 }
 0x409   : > { %3636 = vmatpush.bf16.msra.mxu3 %v6059_v22  ;;  %3705 = vmatpush.bf16.msra.mxu0 %v5935_v47 }
 0x40a   : > { %v2819_v33 = vpop.f32.mrf.mxu0 }
 0x40b   : > { %v2820_v2 = vadd.f32 %v2819_v33, %v8259_v19  ;;  %v2888_v15 = vpop.f32.mrf.mxu1  ;;  %v2910_v17 = vpop.f32.mrf.mxu2  ;;  %v6599_v19 = vld [vmem:[%s10294_s3 + $0x544] sm:$0xf] }
 0x40c   : > { %v2911_v35 = vadd.f32 %v2910_v17, %v8261_v50  ;;  %v2979_v51 = vpop.f32.mrf.mxu3  ;;  %v6060_v50 = vld [vmem:[%s10294_s3 + $0x550] sm:$0xf0] }
 0x40d   : > { %v9005_v62 = vadd.f32 %v2888_v15, %v2820_v2  ;;  %v6063_v16 = vor.u32 %v6599_v19, %v6060_v50  ;;  %v10493_v2 = vld [vmem:[#allocation35_spill] sm:$0xff] }
 0x40e   : > { %v9007_v42 = vadd.f32 %v2979_v51, %v2911_v35 }
 0x40f   : > { %10490 = vst [vmem:[#allocation33_spill] sm:$0xff] %v9005_v62  ;;  %3774 = vmatpush.bf16.msra.mxu1 %v6063_v16  ;;  %v10497_v16 = vld [vmem:[#allocation37_spill] sm:$0xff]  ;;  %v10579_v62 = vld [vmem:[#allocation75_spill] sm:$0xff] }
 0x410   : > { %10491 = vst [vmem:[#allocation80_spill] sm:$0xff] %v9007_v42 }
 0x412   : > { %v2822_v21 = vpop.f32.mrf.mxu0 }
 0x413   : > { %v2823_v0 = vadd.f32 %v2822_v21, %v10492_v20  ;;  %v2891_v33 = vpop.f32.mrf.mxu1  ;;  %v2912_v22 = vpop.f32.mrf.mxu2 }
 0x414   : > { %v2913_v15 = vadd.f32 %v2912_v22, %v10493_v2  ;;  %v2981_v17 = vpop.f32.mrf.mxu3  ;;  %v5914_v22 = vld [vmem:[%s10294_s3 + $0x420] sm:$0xf]  ;;  %v6565_v2 = vld [vmem:[%s10294_s3 + $0x42c] sm:$0xf0] }
 0x415   : > { %v9023_v35 = vadd.f32 %v2891_v33, %v2823_v0  ;;  %3077 = vmatmul.bf16.gmra.mxu0 %v7686_v48 }
 0x416   : > { %v9026_v51 = vadd.f32 %v2981_v17, %v2913_v15  ;;  %3146 = vmatmul.bf16.gmra.mxu1 %v7688_v24  ;;  %v6042_v15 = vld [vmem:[%s10294_s3 + $0x520] sm:$0xf]  ;;  %v5915_v17 = vor.u32 %v6565_v2, %v5914_v22  ;;  %v6561_v22 = vld [vmem:[%s10294_s3 + $0x40c] sm:$0xf0] }
 0x417   : > { %10494 = vst [vmem:[#allocation34_spill] sm:$0xff] %v9023_v35  ;;  %v6026_v2 = vld [vmem:[%s10294_s3 + $0x500] sm:$0xf] }
 0x418   : > { %10495 = vst [vmem:[#allocation35_spill] sm:$0xff] %v9026_v51  ;;  %2954 = vmatmul.bf16.gmra.mxu2 %v10444_v63  ;;  %3023 = vmatmul.bf16.gmra.mxu3 %v10445_v29  ;;  %v10506_v51 = vld [vmem:[#allocation40_spill] sm:$0xff] }
 0x419   : > { %3568 = vmatpush.bf16.msra.mxu2 %v5915_v17 }
 0x41a   : > { %v2824_v5 = vpop.f32.mrf.mxu0 }
 0x41b   : > { %v2825_v19 = vadd.f32 %v2824_v5, %v10496_v8  ;;  %v2893_v47 = vpop.f32.mrf.mxu1  ;;  %v2915_v50 = vpop.f32.mrf.mxu2  ;;  %v6597_v5 = vld [vmem:[%s10294_s3 + $0x52c] sm:$0xf0] }
 0x41c   : > { %v2916_v21 = vadd.f32 %v2915_v50, %v10497_v16  ;;  %v2984_v20 = vpop.f32.mrf.mxu3  ;;  %v6043_v8 = vor.u32 %v6597_v5, %v6042_v15  ;;  %v10501_v15 = vld [vmem:[#allocation39_spill] sm:$0xff] }
 0x41d   : > { %v9033_v0 = vadd.f32 %v2893_v47, %v2825_v19  ;;  %v10500_v47 = vld [vmem:[#allocation38_spill] sm:$0xff] }
 0x41e   : > { %v9035_v33 = vadd.f32 %v2984_v20, %v2916_v21  ;;  %3637 = vmatpush.bf16.msra.mxu3 %v6043_v8  ;;  %v5898_v20 = vld [vmem:[%s10294_s3 + $0x400] sm:$0xf] }
 0x41f   : > { %10498 = vst [vmem:[#allocation36_spill] sm:$0xff] %v9033_v0  ;;  %v5899_v8 = vor.u32 %v6561_v22, %v5898_v20  ;;  %v5916_v20 = vld [vmem:[%s10294_s3 + $0x430] sm:$0xf0] }
 0x420   : > { %10499 = vst [vmem:[#allocation37_spill] sm:$0xff] %v9035_v33  ;;  %v6044_v22 = vld [vmem:[%s10294_s3 + $0x530] sm:$0xf0] }
 0x421   : > { %3569 = vmatpush.bf16.msra.mxu2 %v5899_v8 }
 0x422   : > { %v2827_v19 = vpop.f32.mrf.mxu0 }
 0x423   : > { %v2828_v50 = vadd.f32 %v2827_v19, %v10500_v47  ;;  %v2896_v16 = vpop.f32.mrf.mxu1  ;;  %v2917_v21 = vpop.f32.mrf.mxu2  ;;  %v6593_v19 = vld [vmem:[%s10294_s3 + $0x50c] sm:$0xf0] }
 0x424   : > { %v2918_v17 = vadd.f32 %v2917_v21, %v10501_v15  ;;  %v2986_v5 = vpop.f32.mrf.mxu3  ;;  %v6027_v33 = vor.u32 %v6593_v19, %v6026_v2  ;;  %v6563_v21 = vld [vmem:[%s10294_s3 + $0x424] sm:$0xf] }
 0x425   : > { %v9063_v47 = vadd.f32 %v2896_v16, %v2828_v50  ;;  %3082 = vmatmul.bf16.gmra.mxu0 %v7730_v56  ;;  %v6595_v50 = vld [vmem:[%s10294_s3 + $0x524] sm:$0xf]  ;;  %v5919_v16 = vor.u32 %v6563_v21, %v5916_v20 }
 0x426   : > { %v9066_v0 = vadd.f32 %v2986_v5, %v2918_v17  ;;  %3151 = vmatmul.bf16.gmra.mxu1 %v7732_v36  ;;  %3638 = vmatpush.bf16.msra.mxu3 %v6027_v33  ;;  %v6047_v2 = vor.u32 %v6595_v50, %v6044_v22  ;;  %v10507_v50 = vld [vmem:[#allocation41_spill] sm:$0xff] }
 0x427   : > { %10502 = vst [vmem:[#allocation38_spill] sm:$0xff] %v9063_v47  ;;  %3706 = vmatpush.bf16.msra.mxu0 %v5919_v16 }
 0x428   : > { %10503 = vst [vmem:[#allocation39_spill] sm:$0xff] %v9066_v0  ;;  %2959 = vmatmul.bf16.gmra.mxu2 %v10450_v37  ;;  %3028 = vmatmul.bf16.gmra.mxu3 %v10451_v57 }
 0x429   : > { %3775 = vmatpush.bf16.msra.mxu1 %v6047_v2 }
 0x42a   : > { %v2829_v15 = vpop.f32.mrf.mxu0 }
 0x42b   : > { %v2830_v17 = vadd.f32 %v2829_v15, %v8331_v7  ;;  %v2898_v5 = vpop.f32.mrf.mxu1  ;;  %v2920_v8 = vpop.f32.mrf.mxu2 }
 0x42c   : > { %v2921_v19 = vadd.f32 %v2920_v8, %v8333_v53  ;;  %v2989_v33 = vpop.f32.mrf.mxu3 }
 0x42d   : > { %v9085_v21 = vadd.f32 %v2898_v5, %v2830_v17  ;;  %v10510_v17 = vld [vmem:[#allocation42_spill] sm:$0xff]  ;;  %v10511_v5 = vld [vmem:[#allocation43_spill] sm:$0xff] }
 0x42e   : > { %v9087_v20 = vadd.f32 %v2989_v33, %v2921_v19  ;;  %v6559_v19 = vld [vmem:[%s10294_s3 + $0x404] sm:$0xf]  ;;  %v5900_v33 = vld [vmem:[%s10294_s3 + $0x410] sm:$0xf0] }
 0x42f   : > { %10504 = vst [vmem:[#allocation81_spill] sm:$0xff] %v9085_v21 }
 0x430   : > { %10505 = vst [vmem:[#allocation82_spill] sm:$0xff] %v9087_v20 }
 0x432   : > { %v3048_v0 = vpop.f32.mrf.mxu0 }
 0x433   : > { %v2922_v47 = vpop.f32.mrf.mxu2  ;;  %v3049_v35 = vadd.f32 %v3048_v0, %v10506_v51  ;;  %v3117_v42 = vpop.f32.mrf.mxu1 }
 0x434   : > { %v2923_v16 = vadd.f32 %v2922_v47, %v10507_v50  ;;  %v2991_v22 = vpop.f32.mrf.mxu3  ;;  %v6591_v50 = vld [vmem:[%s10294_s3 + $0x504] sm:$0xf] }
 0x435   : > { %v9091_v2 = vadd.f32 %v3117_v42, %v3049_v35  ;;  %3087 = vmatmul.bf16.gmra.mxu0 %v10437_v31 }
 0x436   : > { %v9094_v7 = vadd.f32 %v2991_v22, %v2923_v16  ;;  %3156 = vmatmul.bf16.gmra.mxu1 %v10438_v1  ;;  %v5903_v16 = vor.u32 %v6559_v19, %v5900_v33  ;;  %v6028_v22 = vld [vmem:[%s10294_s3 + $0x510] sm:$0xf0] }
 0x437   : > { %10508 = vst [vmem:[#allocation40_spill] sm:$0xff] %v9091_v2  ;;  %v10530_v2 = vld [vmem:[#allocation51_spill] sm:$0xff] }
 0x438   : > { %10509 = vst [vmem:[#allocation41_spill] sm:$0xff] %v9094_v7  ;;  %2964 = vmatmul.bf16.gmra.mxu2 %v10452_v58  ;;  %3033 = vmatmul.bf16.gmra.mxu3 %v10453_v32 }
 0x439   : > { %3707 = vmatpush.bf16.msra.mxu0 %v5903_v16  ;;  %v10518_v16 = vld [vmem:[#allocation46_spill] sm:$0xff] }
 0x43a   : > { %v3050_v53 = vpop.f32.mrf.mxu0 }
 0x43b   : > { %v2925_v15 = vpop.f32.mrf.mxu2  ;;  %v3051_v51 = vadd.f32 %v3050_v53, %v10510_v17  ;;  %v3119_v0 = vpop.f32.mrf.mxu1  ;;  %v6031_v53 = vor.u32 %v6591_v50, %v6028_v22 }
 0x43c   : > { %v2926_v47 = vadd.f32 %v2925_v15, %v10511_v5  ;;  %v2994_v8 = vpop.f32.mrf.mxu3 }
 0x43d   : > { %v9101_v42 = vadd.f32 %v3119_v0, %v3051_v51  ;;  %3776 = vmatpush.bf16.msra.mxu1 %v6031_v53  ;;  %v10514_v51 = vld [vmem:[#allocation44_spill] sm:$0xff] }
 0x43e   : > { %v9103_v35 = vadd.f32 %v2994_v8, %v2926_v47  ;;  %v10515_v47 = vld [vmem:[#allocation45_spill] sm:$0xff] }
 0x43f   : > { %10512 = vst [vmem:[#allocation42_spill] sm:$0xff] %v9101_v42 }
 0x440   : > { %10513 = vst [vmem:[#allocation43_spill] sm:$0xff] %v9103_v35 }
 0x442   : > { %v3053_v15 = vpop.f32.mrf.mxu0 }
 0x443   : > { %v2927_v17 = vpop.f32.mrf.mxu2  ;;  %v3054_v0 = vadd.f32 %v3053_v15, %v10514_v51  ;;  %v3122_v5 = vpop.f32.mrf.mxu1  ;;  %v10519_v15 = vld [vmem:[#allocation47_spill] sm:$0xff] }
 0x444   : > { %v2928_v8 = vadd.f32 %v2927_v17, %v10515_v47  ;;  %v2996_v35 = vpop.f32.mrf.mxu3  ;;  %v6590_v47 = vld [vmem:[%s10294_s3 + $0x4f4] sm:$0xf0] }
 0x445   : > { %v9119_v42 = vadd.f32 %v3122_v5, %v3054_v0  ;;  %3092 = vmatmul.bf16.gmra.mxu0 %v10444_v63 }
 0x446   : > { %v9122_v19 = vadd.f32 %v2996_v35, %v2928_v8  ;;  %3161 = vmatmul.bf16.gmra.mxu1 %v10445_v29  ;;  %v6018_v35 = vld [vmem:[%s10294_s3 + $0x4e8] sm:$0xf] }
 0x447   : > { %10516 = vst [vmem:[#allocation44_spill] sm:$0xff] %v9119_v42  ;;  %v6146_v8 = vld [vmem:[%s10294_s3 + $0x5e8] sm:$0xf] }
 0x448   : > { %10517 = vst [vmem:[#allocation45_spill] sm:$0xff] %v9122_v19  ;;  %3570 = vmatmul.bf16.vlgmr.msra.gmra.mxu2 %v7546_v40  ;;  %3639 = vmatmul.bf16.vlgmr.msra.gmra.mxu3 %v10416_v39 }
 0x44a   : > { %v3055_v33 = vpop.f32.mrf.mxu0 }
 0x44b   : > { %v2930_v50 = vpop.f32.mrf.mxu2  ;;  %v3056_v22 = vadd.f32 %v3055_v33, %v10518_v16  ;;  %v3124_v53 = vpop.f32.mrf.mxu1  ;;  %v6019_v33 = vor.u32 %v6590_v47, %v6018_v35  ;;  %v6588_v47 = vld [vmem:[%s10294_s3 + $0x4ec] sm:$0xf] }
 0x44c   : > { %v2931_v17 = vadd.f32 %v2930_v50, %v10519_v15  ;;  %v2999_v51 = vpop.f32.mrf.mxu3  ;;  %v6622_v50 = vld [vmem:[%s10294_s3 + $0x5f4] sm:$0xf0]  ;;  %v10522_v15 = vld [vmem:[#allocation48_spill] sm:$0xff] }
 0x44d   : > { %v9129_v0 = vadd.f32 %v3124_v53, %v3056_v22  ;;  %v6147_v16 = vor.u32 %v6622_v50, %v6146_v8  ;;  %3838 = vmatpush.bf16.msrb.mxu2 %v6019_v33  ;;  %v6020_v8 = vld [vmem:[%s10294_s3 + $0x4f8] sm:$0xf0] }
 0x44e   : > { %v9131_v5 = vadd.f32 %v2999_v51, %v2931_v17  ;;  %v6023_v33 = vor.u32 %v6588_v47, %v6020_v8 }
 0x44f   : > { %10520 = vst [vmem:[#allocation46_spill] sm:$0xff] %v9129_v0  ;;  %3907 = vmatpush.bf16.msrb.mxu3 %v6147_v16 }
 0x450   : > { %10521 = vst [vmem:[#allocation47_spill] sm:$0xff] %v9131_v5  ;;  %v10523_v5 = vld [vmem:[#allocation49_spill] sm:$0xff]  ;;  %3976 = vmatpush.bf16.msrb.mxu0 %v6023_v33 }
 0x452   : > { %v3058_v22 = vpop.f32.mrf.mxu0 }
 0x453   : > { %v2932_v53 = vpop.f32.mrf.mxu2  ;;  %v3059_v17 = vadd.f32 %v3058_v22, %v10522_v15  ;;  %v3127_v51 = vpop.f32.mrf.mxu1  ;;  %v10526_v22 = vld [vmem:[#allocation20_spill] sm:$0xff] }
 0x454   : > { %v2933_v0 = vadd.f32 %v2932_v53, %v10523_v5  ;;  %v3001_v19 = vpop.f32.mrf.mxu3  ;;  %v6620_v5 = vld [vmem:[%s10294_s3 + $0x5ec] sm:$0xf] }
 0x455   : > { %v9147_v42 = vadd.f32 %v3127_v51, %v3059_v17  ;;  %3097 = vmatmul.bf16.gmra.mxu0 %v10450_v37  ;;  %v10527_v17 = vld [vmem:[#allocation50_spill] sm:$0xff] }
 0x456   : > { %v9150_v35 = vadd.f32 %v3001_v19, %v2933_v0  ;;  %3166 = vmatmul.bf16.gmra.mxu1 %v10451_v57  ;;  %v6148_v19 = vld [vmem:[%s10294_s3 + $0x5f8] sm:$0xf0] }
 0x457   : > { %10524 = vst [vmem:[#allocation48_spill] sm:$0xff] %v9147_v42  ;;  %v6151_v0 = vor.u32 %v6620_v5, %v6148_v19  ;;  %v10531_v5 = vld [vmem:[#allocation52_spill] sm:$0xff] }
 0x458   : > { %10525 = vst [vmem:[#allocation49_spill] sm:$0xff] %v9150_v35  ;;  %3575 = vmatmul.bf16.gmra.mxu2 %v7590_v30  ;;  %3644 = vmatmul.bf16.gmra.mxu3 %v7592_v23 }
 0x459   : > { %4045 = vmatpush.bf16.msrb.mxu1 %v6151_v0 }
 0x45a   : > { %v3060_v50 = vpop.f32.mrf.mxu0 }
 0x45b   : > { %v2935_v16 = vpop.f32.mrf.mxu2  ;;  %v3061_v53 = vadd.f32 %v3060_v50, %v10526_v22  ;;  %v3129_v15 = vpop.f32.mrf.mxu1 }
 0x45c   : > { %v2936_v51 = vadd.f32 %v2935_v16, %v10527_v17  ;;  %v3004_v35 = vpop.f32.mrf.mxu3 }
 0x45d   : > { %v9169_v47 = vadd.f32 %v3129_v15, %v3061_v53  ;;  %v10534_v53 = vld [vmem:[#allocation53_spill] sm:$0xff] }
 0x45e   : > { %v9171_v8 = vadd.f32 %v3004_v35, %v2936_v51  ;;  %v10535_v51 = vld [vmem:[#allocation54_spill] sm:$0xff] }
 0x45f   : > { %10528 = vst [vmem:[#allocation20_spill] sm:$0xff] %v9169_v47 }
 0x460   : > { %10529 = vst [vmem:[#allocation50_spill] sm:$0xff] %v9171_v8 }
 0x462   : > { %v3063_v42 = vpop.f32.mrf.mxu0 }
 0x463   : > { %v2937_v7 = vpop.f32.mrf.mxu2  ;;  %v3064_v20 = vadd.f32 %v3063_v42, %v10530_v2  ;;  %v3132_v21 = vpop.f32.mrf.mxu1  ;;  %v6002_v2 = vld [vmem:[%s10294_s3 + $0x4c8] sm:$0xf]  ;;  %v6618_v42 = vld [vmem:[%s10294_s3 + $0x5d4] sm:$0xf0] }
 0x464   : > { %v2938_v33 = vadd.f32 %v2937_v7, %v10531_v5  ;;  %v3006_v19 = vpop.f32.mrf.mxu3  ;;  %v6586_v7 = vld [vmem:[%s10294_s3 + $0x4d4] sm:$0xf0] }
 0x465   : > { %v9175_v0 = vadd.f32 %v3132_v21, %v3064_v20  ;;  %3102 = vmatmul.bf16.gmra.mxu0 %v10452_v58  ;;  %v6130_v21 = vld [vmem:[%s10294_s3 + $0x5c8] sm:$0xf]  ;;  %v6003_v20 = vor.u32 %v6586_v7, %v6002_v2  ;;  %v6584_v2 = vld [vmem:[%s10294_s3 + $0x4cc] sm:$0xf]  ;;  %v6004_v7 = vld [vmem:[%s10294_s3 + $0x4d8] sm:$0xf0] }
 0x466   : > { %v9178_v50 = vadd.f32 %v3006_v19, %v2938_v33  ;;  %3171 = vmatmul.bf16.gmra.mxu1 %v10453_v32  ;;  %v6131_v16 = vor.u32 %v6618_v42, %v6130_v21  ;;  %v6616_v21 = vld [vmem:[%s10294_s3 + $0x5cc] sm:$0xf]  ;;  %v6132_v42 = vld [vmem:[%s10294_s3 + $0x5d8] sm:$0xf0] }
 0x467   : > { %10532 = vst [vmem:[#allocation51_spill] sm:$0xff] %v9175_v0  ;;  %3839 = vmatpush.bf16.msrb.mxu2 %v6003_v20  ;;  %v6007_v20 = vor.u32 %v6584_v2, %v6004_v7  ;;  %v10554_v0 = vld [vmem:[#allocation62_spill] sm:$0xff] }
 0x468   : > { %10533 = vst [vmem:[#allocation52_spill] sm:$0xff] %v9178_v50  ;;  %3580 = vmatmul.bf16.gmra.mxu2 %v7646_v43  ;;  %3649 = vmatmul.bf16.gmra.mxu3 %v7648_v52 }
 0x469   : > { %3908 = vmatpush.bf16.msrb.mxu3 %v6131_v16  ;;  %3977 = vmatpush.bf16.msrb.mxu0 %v6007_v20  ;;  %v10542_v20 = vld [vmem:[#allocation21_spill] sm:$0xff] }
 0x46a   : > { %v3065_v35 = vpop.f32.mrf.mxu0 }
 0x46b   : > { %v2940_v22 = vpop.f32.mrf.mxu2  ;;  %v3066_v15 = vadd.f32 %v3065_v35, %v10534_v53  ;;  %v3134_v17 = vpop.f32.mrf.mxu1  ;;  %v6135_v35 = vor.u32 %v6616_v21, %v6132_v42  ;;  %v10538_v53 = vld [vmem:[#allocation55_spill] sm:$0xff] }
 0x46c   : > { %v2941_v5 = vadd.f32 %v2940_v22, %v10535_v51  ;;  %v3009_v33 = vpop.f32.mrf.mxu3  ;;  %v10539_v51 = vld [vmem:[#allocation56_spill] sm:$0xff] }
 0x46d   : > { %v9197_v19 = vadd.f32 %v3134_v17, %v3066_v15  ;;  %4046 = vmatpush.bf16.msrb.mxu1 %v6135_v35 }
 0x46e   : > { %v9199_v50 = vadd.f32 %v3009_v33, %v2941_v5 }
 0x46f   : > { %10536 = vst [vmem:[#allocation53_spill] sm:$0xff] %v9197_v19 }
 0x470   : > { %10537 = vst [vmem:[#allocation54_spill] sm:$0xff] %v9199_v50 }
 0x472   : > { %v3068_v16 = vpop.f32.mrf.mxu0 }
 0x473   : > { %v2942_v22 = vpop.f32.mrf.mxu2  ;;  %v3069_v15 = vadd.f32 %v3068_v16, %v10538_v53  ;;  %v3137_v17 = vpop.f32.mrf.mxu1  ;;  %v10543_v16 = vld [vmem:[#allocation57_spill] sm:$0xff] }
 0x474   : > { %v2943_v5 = vadd.f32 %v2942_v22, %v10539_v51  ;;  %v3011_v33 = vpop.f32.mrf.mxu3  ;;  %v5986_v51 = vld [vmem:[%s10294_s3 + $0x4a8] sm:$0xf] }
 0x475   : > { %v9215_v50 = vadd.f32 %v3137_v17, %v3069_v15  ;;  %3708 = vmatmul.bf16.vlgmr.msra.gmra.mxu0 %v7546_v40 }
 0x476   : > { %v9218_v2 = vadd.f32 %v3011_v33, %v2943_v5  ;;  %3777 = vmatmul.bf16.vlgmr.msra.gmra.mxu1 %v10416_v39  ;;  %v6582_v5 = vld [vmem:[%s10294_s3 + $0x4b4] sm:$0xf0]  ;;  %v6114_v33 = vld [vmem:[%s10294_s3 + $0x5a8] sm:$0xf] }
 0x477   : > { %10540 = vst [vmem:[#allocation55_spill] sm:$0xff] %v9215_v50 }
 0x478   : > { %10541 = vst [vmem:[#allocation56_spill] sm:$0xff] %v9218_v2  ;;  %3585 = vmatmul.bf16.gmra.mxu2 %v7686_v48  ;;  %3654 = vmatmul.bf16.gmra.mxu3 %v7688_v24 }
 0x47a   : > { %v3070_v7 = vpop.f32.mrf.mxu0 }
 0x47b   : > { %v2945_v21 = vpop.f32.mrf.mxu2  ;;  %v3071_v42 = vadd.f32 %v3070_v7, %v10542_v20  ;;  %v3139_v35 = vpop.f32.mrf.mxu1  ;;  %v5987_v7 = vor.u32 %v6582_v5, %v5986_v51  ;;  %v6580_v5 = vld [vmem:[%s10294_s3 + $0x4ac] sm:$0xf] }
 0x47c   : > { %v2946_v22 = vadd.f32 %v2945_v21, %v10543_v16  ;;  %v3014_v53 = vpop.f32.mrf.mxu3  ;;  %v6614_v21 = vld [vmem:[%s10294_s3 + $0x5b4] sm:$0xf0]  ;;  %v10546_v16 = vld [vmem:[#allocation58_spill] sm:$0xff] }
 0x47d   : > { %v9225_v15 = vadd.f32 %v3139_v35, %v3071_v42  ;;  %v6115_v20 = vor.u32 %v6614_v21, %v6114_v33  ;;  %3840 = vmatpush.bf16.msrb.mxu2 %v5987_v7  ;;  %v5988_v33 = vld [vmem:[%s10294_s3 + $0x4b8] sm:$0xf0] }
 0x47e   : > { %v9227_v17 = vadd.f32 %v3014_v53, %v2946_v22  ;;  %v5991_v7 = vor.u32 %v6580_v5, %v5988_v33 }
 0x47f   : > { %10544 = vst [vmem:[#allocation21_spill] sm:$0xff] %v9225_v15  ;;  %3909 = vmatpush.bf16.msrb.mxu3 %v6115_v20 }
 0x480   : > { %10545 = vst [vmem:[#allocation57_spill] sm:$0xff] %v9227_v17  ;;  %v10547_v17 = vld [vmem:[#allocation59_spill] sm:$0xff]  ;;  %3978 = vmatpush.bf16.msrb.mxu0 %v5991_v7 }
 0x482   : > { %v3073_v42 = vpop.f32.mrf.mxu0 }
 0x483   : > { %v2947_v35 = vpop.f32.mrf.mxu2  ;;  %v3074_v22 = vadd.f32 %v3073_v42, %v10546_v16  ;;  %v3142_v53 = vpop.f32.mrf.mxu1  ;;  %v10550_v42 = vld [vmem:[#allocation60_spill] sm:$0xff] }
 0x484   : > { %v2948_v15 = vadd.f32 %v2947_v35, %v10547_v17  ;;  %v3016_v2 = vpop.f32.mrf.mxu3  ;;  %v6612_v17 = vld [vmem:[%s10294_s3 + $0x5ac] sm:$0xf] }
 0x485   : > { %v9243_v50 = vadd.f32 %v3142_v53, %v3074_v22  ;;  %3713 = vmatmul.bf16.gmra.mxu0 %v7590_v30  ;;  %v10551_v22 = vld [vmem:[#allocation61_spill] sm:$0xff] }
 0x486   : > { %v9246_v51 = vadd.f32 %v3016_v2, %v2948_v15  ;;  %3782 = vmatmul.bf16.gmra.mxu1 %v7592_v23  ;;  %v6116_v2 = vld [vmem:[%s10294_s3 + $0x5b8] sm:$0xf0] }
 0x487   : > { %10548 = vst [vmem:[#allocation58_spill] sm:$0xff] %v9243_v50  ;;  %v6119_v15 = vor.u32 %v6612_v17, %v6116_v2  ;;  %v10555_v17 = vld [vmem:[#allocation63_spill] sm:$0xff] }
 0x488   : > { %10549 = vst [vmem:[#allocation59_spill] sm:$0xff] %v9246_v51  ;;  %3590 = vmatmul.bf16.gmra.mxu2 %v7730_v56  ;;  %3659 = vmatmul.bf16.gmra.mxu3 %v7732_v36 }
 0x489   : > { %4047 = vmatpush.bf16.msrb.mxu1 %v6119_v15 }
 0x48a   : > { %v3075_v21 = vpop.f32.mrf.mxu0 }
 0x48b   : > { %v2950_v20 = vpop.f32.mrf.mxu2  ;;  %v3076_v35 = vadd.f32 %v3075_v21, %v10550_v42  ;;  %v3144_v16 = vpop.f32.mrf.mxu1 }
 0x48c   : > { %v2951_v53 = vadd.f32 %v2950_v20, %v10551_v22  ;;  %v3019_v51 = vpop.f32.mrf.mxu3 }
 0x48d   : > { %v9265_v5 = vadd.f32 %v3144_v16, %v3076_v35  ;;  %v10558_v35 = vld [vmem:[#allocation64_spill] sm:$0xff] }
 0x48e   : > { %v9267_v33 = vadd.f32 %v3019_v51, %v2951_v53  ;;  %v10559_v53 = vld [vmem:[#allocation65_spill] sm:$0xff] }
 0x48f   : > { %10552 = vst [vmem:[#allocation60_spill] sm:$0xff] %v9265_v5 }
 0x490   : > { %10553 = vst [vmem:[#allocation61_spill] sm:$0xff] %v9267_v33 }
 0x492   : > { %v3078_v50 = vpop.f32.mrf.mxu0 }
 0x493   : > { %v2952_v19 = vpop.f32.mrf.mxu2  ;;  %v3079_v8 = vadd.f32 %v3078_v50, %v10554_v0  ;;  %v3147_v47 = vpop.f32.mrf.mxu1  ;;  %v5970_v0 = vld [vmem:[%s10294_s3 + $0x488] sm:$0xf]  ;;  %v6578_v50 = vld [vmem:[%s10294_s3 + $0x494] sm:$0xf0] }
 0x494   : > { %v2953_v7 = vadd.f32 %v2952_v19, %v10555_v17  ;;  %v3021_v2 = vpop.f32.mrf.mxu3  ;;  %v6610_v19 = vld [vmem:[%s10294_s3 + $0x594] sm:$0xf0] }
 0x495   : > { %v9271_v15 = vadd.f32 %v3147_v47, %v3079_v8  ;;  %3718 = vmatmul.bf16.gmra.mxu0 %v7646_v43  ;;  %v6098_v47 = vld [vmem:[%s10294_s3 + $0x588] sm:$0xf]  ;;  %v5971_v8 = vor.u32 %v6578_v50, %v5970_v0  ;;  %v6576_v0 = vld [vmem:[%s10294_s3 + $0x48c] sm:$0xf]  ;;  %v5972_v50 = vld [vmem:[%s10294_s3 + $0x498] sm:$0xf0] }
 0x496   : > { %v9274_v21 = vadd.f32 %v3021_v2, %v2953_v7  ;;  %3787 = vmatmul.bf16.gmra.mxu1 %v7648_v52  ;;  %v6099_v20 = vor.u32 %v6610_v19, %v6098_v47  ;;  %v6608_v47 = vld [vmem:[%s10294_s3 + $0x58c] sm:$0xf]  ;;  %v6100_v19 = vld [vmem:[%s10294_s3 + $0x598] sm:$0xf0] }
 0x497   : > { %10556 = vst [vmem:[#allocation62_spill] sm:$0xff] %v9271_v15  ;;  %3841 = vmatpush.bf16.msrb.mxu2 %v5971_v8  ;;  %v5975_v8 = vor.u32 %v6576_v0, %v5972_v50  ;;  %v10578_v15 = vld [vmem:[#allocation74_spill] sm:$0xff] }
 0x498   : > { %10557 = vst [vmem:[#allocation63_spill] sm:$0xff] %v9274_v21  ;;  %3595 = vmatmul.bf16.gmra.mxu2 %v10437_v31  ;;  %3664 = vmatmul.bf16.gmra.mxu3 %v10438_v1 }
 0x499   : > { %3910 = vmatpush.bf16.msrb.mxu3 %v6099_v20  ;;  %3979 = vmatpush.bf16.msrb.mxu0 %v5975_v8  ;;  %v10566_v8 = vld [vmem:[#allocation68_spill] sm:$0xff] }
 0x49a   : > { %v3080_v51 = vpop.f32.mrf.mxu0 }
 0x49b   : > { %v2955_v42 = vpop.f32.mrf.mxu2  ;;  %v3081_v16 = vadd.f32 %v3080_v51, %v10558_v35  ;;  %v3149_v22 = vpop.f32.mrf.mxu1  ;;  %v6103_v51 = vor.u32 %v6608_v47, %v6100_v19  ;;  %v10562_v35 = vld [vmem:[#allocation66_spill] sm:$0xff] }
 0x49c   : > { %v2956_v17 = vadd.f32 %v2955_v42, %v10559_v53  ;;  %v3024_v7 = vpop.f32.mrf.mxu3  ;;  %v10563_v53 = vld [vmem:[#allocation67_spill] sm:$0xff] }
 0x49d   : > { %v9293_v2 = vadd.f32 %v3149_v22, %v3081_v16  ;;  %4048 = vmatpush.bf16.msrb.mxu1 %v6103_v51 }
 0x49e   : > { %v9295_v21 = vadd.f32 %v3024_v7, %v2956_v17 }
 0x49f   : > { %10560 = vst [vmem:[#allocation64_spill] sm:$0xff] %v9293_v2  ;;  %v5954_v2 = vld [vmem:[%s10294_s3 + $0x468] sm:$0xf] }
 0x4a0   : > { %10561 = vst [vmem:[#allocation65_spill] sm:$0xff] %v9295_v21 }
 0x4a2   : > { %v3083_v20 = vpop.f32.mrf.mxu0 }
 0x4a3   : > { %v2957_v42 = vpop.f32.mrf.mxu2  ;;  %v3084_v16 = vadd.f32 %v3083_v20, %v10562_v35  ;;  %v3152_v22 = vpop.f32.mrf.mxu1  ;;  %v10567_v20 = vld [vmem:[#allocation69_spill] sm:$0xff] }
 0x4a4   : > { %v2958_v17 = vadd.f32 %v2957_v42, %v10563_v53  ;;  %v3026_v7 = vpop.f32.mrf.mxu3 }
 0x4a5   : > { %v9311_v21 = vadd.f32 %v3152_v22, %v3084_v16  ;;  %3723 = vmatmul.bf16.gmra.mxu0 %v7686_v48 }
 0x4a6   : > { %v9314_v0 = vadd.f32 %v3026_v7, %v2958_v17  ;;  %3792 = vmatmul.bf16.gmra.mxu1 %v7688_v24  ;;  %v10570_v7 = vld [vmem:[#allocation70_spill] sm:$0xff] }
 0x4a7   : > { %10564 = vst [vmem:[#allocation66_spill] sm:$0xff] %v9311_v21 }
 0x4a8   : > { %10565 = vst [vmem:[#allocation67_spill] sm:$0xff] %v9314_v0  ;;  %3600 = vmatmul.bf16.gmra.mxu2 %v10444_v63  ;;  %3669 = vmatmul.bf16.gmra.mxu3 %v10445_v29 }
 0x4aa   : > { %v3085_v50 = vpop.f32.mrf.mxu0 }
 0x4ab   : > { %v2960_v47 = vpop.f32.mrf.mxu2  ;;  %v3086_v19 = vadd.f32 %v3085_v50, %v10566_v8  ;;  %v3154_v51 = vpop.f32.mrf.mxu1  ;;  %v6574_v50 = vld [vmem:[%s10294_s3 + $0x474] sm:$0xf0]  ;;  %v10571_v8 = vld [vmem:[#allocation71_spill] sm:$0xff] }
 0x4ac   : > { %v2961_v42 = vadd.f32 %v2960_v47, %v10567_v20  ;;  %v3029_v35 = vpop.f32.mrf.mxu3  ;;  %v6082_v47 = vld [vmem:[%s10294_s3 + $0x568] sm:$0xf]  ;;  %v5955_v20 = vor.u32 %v6574_v50, %v5954_v2  ;;  %v10574_v50 = vld [vmem:[#allocation72_spill] sm:$0xff] }
 0x4ad   : > { %v9321_v16 = vadd.f32 %v3154_v51, %v3086_v19 }
 0x4ae   : > { %v9323_v22 = vadd.f32 %v3029_v35, %v2961_v42  ;;  %v6606_v42 = vld [vmem:[%s10294_s3 + $0x574] sm:$0xf0]  ;;  %3842 = vmatpush.bf16.msrb.mxu2 %v5955_v20 }
 0x4af   : > { %10568 = vst [vmem:[#allocation68_spill] sm:$0xff] %v9321_v16 }
 0x4b0   : > { %10569 = vst [vmem:[#allocation69_spill] sm:$0xff] %v9323_v22 }
 0x4b2   : > { %v3088_v53 = vpop.f32.mrf.mxu0 }
 0x4b3   : > { %v2962_v17 = vpop.f32.mrf.mxu2  ;;  %v3089_v0 = vadd.f32 %v3088_v53, %v10570_v7  ;;  %v3157_v21 = vpop.f32.mrf.mxu1  ;;  %v6083_v53 = vor.u32 %v6606_v42, %v6082_v47  ;;  %v6604_v47 = vld [vmem:[%s10294_s3 + $0x56c] sm:$0xf] }
 0x4b4   : > { %v2963_v19 = vadd.f32 %v2962_v17, %v10571_v8  ;;  %v3031_v51 = vpop.f32.mrf.mxu3 }
 0x4b5   : > { %v9339_v35 = vadd.f32 %v3157_v21, %v3089_v0  ;;  %3728 = vmatmul.bf16.gmra.mxu0 %v7730_v56  ;;  %3911 = vmatpush.bf16.msrb.mxu3 %v6083_v53  ;;  %v6572_v21 = vld [vmem:[%s10294_s3 + $0x46c] sm:$0xf]  ;;  %v5956_v0 = vld [vmem:[%s10294_s3 + $0x478] sm:$0xf0] }
 0x4b6   : > { %v9342_v7 = vadd.f32 %v3031_v51, %v2963_v19  ;;  %3797 = vmatmul.bf16.gmra.mxu1 %v7732_v36  ;;  %v10575_v19 = vld [vmem:[#allocation73_spill] sm:$0xff]  ;;  %v5959_v42 = vor.u32 %v6572_v21, %v5956_v0 }
 0x4b7   : > { %10572 = vst [vmem:[#allocation70_spill] sm:$0xff] %v9339_v35  ;;  %v6084_v53 = vld [vmem:[%s10294_s3 + $0x578] sm:$0xf0] }
 0x4b8   : > { %10573 = vst [vmem:[#allocation71_spill] sm:$0xff] %v9342_v7  ;;  %3605 = vmatmul.bf16.gmra.mxu2 %v10450_v37  ;;  %3674 = vmatmul.bf16.gmra.mxu3 %v10451_v57 }
 0x4b9   : > { %3980 = vmatpush.bf16.msrb.mxu0 %v5959_v42 }
 0x4ba   : > { %v3090_v2 = vpop.f32.mrf.mxu0 }
 0x4bb   : > { %v2965_v17 = vpop.f32.mrf.mxu2  ;;  %v3091_v8 = vadd.f32 %v3090_v2, %v10574_v50  ;;  %v3159_v22 = vpop.f32.mrf.mxu1  ;;  %v6087_v50 = vor.u32 %v6604_v47, %v6084_v53  ;;  %v6602_v53 = vld [vmem:[%s10294_s3 + $0x554] sm:$0xf0] }
 0x4bc   : > { %v2966_v51 = vadd.f32 %v2965_v17, %v10575_v19  ;;  %v3034_v20 = vpop.f32.mrf.mxu3 }
 0x4bd   : > { %v9361_v2 = vadd.f32 %v3159_v22, %v3091_v8  ;;  %4049 = vmatpush.bf16.msrb.mxu1 %v6087_v50  ;;  %v10582_v8 = vld [vmem:[#allocation10_spill] sm:$0xff]  ;;  %v10584_v50 = vld [vmem:[#allocation11_spill] sm:$0xff] }
 0x4be   : > { %v9363_v7 = vadd.f32 %v3034_v20, %v2966_v51  ;;  %v6066_v20 = vld [vmem:[%s10294_s3 + $0x548] sm:$0xf] }
 0x4bf   : > { %10576 = vst [vmem:[#allocation72_spill] sm:$0xff] %v9361_v2 }
 0x4c0   : > { %10577 = vst [vmem:[#allocation73_spill] sm:$0xff] %v9363_v7  ;;  %v10592_v7 = vld [vmem:[#allocation13_spill] sm:$0xff] }
 0x4c2   : > { %v3093_v35 = vpop.f32.mrf.mxu0 }
 0x4c3   : > { %v2967_v16 = vpop.f32.mrf.mxu2  ;;  %v3094_v33 = vadd.f32 %v3093_v35, %v10578_v15  ;;  %v3162_v5 = vpop.f32.mrf.mxu1 }
 0x4c4   : > { %v2968_v17 = vadd.f32 %v2967_v16, %v10579_v62  ;;  %v3036_v19 = vpop.f32.mrf.mxu3  ;;  %v6570_v16 = vld [vmem:[%s10294_s3 + $0x454] sm:$0xf0] }
 0x4c5   : > { %v9367_v21 = vadd.f32 %v3162_v5, %v3094_v33  ;;  %3733 = vmatmul.bf16.gmra.mxu0 %v10437_v31  ;;  %v5938_v33 = vld [vmem:[%s10294_s3 + $0x448] sm:$0xf] }
 0x4c6   : > { %v9370_v0 = vadd.f32 %v3036_v19, %v2968_v17  ;;  %3802 = vmatmul.bf16.gmra.mxu1 %v10438_v1  ;;  %v5939_v42 = vor.u32 %v6570_v16, %v5938_v33  ;;  %v6067_v19 = vor.u32 %v6602_v53, %v6066_v20  ;;  %v6568_v33 = vld [vmem:[%s10294_s3 + $0x44c] sm:$0xf]  ;;  %v10587_v53 = vld [vmem:[#allocation76_spill] sm:$0xff] }
 0x4c7   : > { %10580 = vst [vmem:[#allocation74_spill] sm:$0xff] %v9367_v21  ;;  %v6600_v16 = vld [vmem:[%s10294_s3 + $0x54c] sm:$0xf] }
 0x4c8   : > { %10581 = vst [vmem:[#allocation75_spill] sm:$0xff] %v9370_v0  ;;  %3610 = vmatmul.bf16.gmra.mxu2 %v10452_v58  ;;  %3679 = vmatmul.bf16.gmra.mxu3 %v10453_v32 }
 0x4c9   : > { %3843 = vmatpush.bf16.msrb.mxu2 %v5939_v42  ;;  %3912 = vmatpush.bf16.msrb.mxu3 %v6067_v19  ;;  %v6068_v42 = vld [vmem:[%s10294_s3 + $0x558] sm:$0xf0] }
 0x4ca   : > { %v3095_v22 = vpop.f32.mrf.mxu0  ;;  %v6071_v19 = vor.u32 %v6600_v16, %v6068_v42  ;;  %v6566_v16 = vld [vmem:[%s10294_s3 + $0x434] sm:$0xf0]  ;;  %v9431_v42 = vld [vmem:[%s10295_s4] sm:$0xf] }
 0x4cb   : > { %v3096_v47 = vadd.f32 %v3095_v22, %v10582_v8  ;;  %v3164_v15 = vpop.f32.mrf.mxu1  ;;  %v3571_v35 = vpop.f32.mrf.mxu2  ;;  %v10585_v8 = vld [vmem:[#allocation14_spill] sm:$0xff]  ;;  %10593 = vst [vmem:[#allocation76_spill] sm:$0xff] %v9431_v42 }
 0x4cc   : > { %v3640_v51 = vpop.f32.mrf.mxu3  ;;  %4050 = vmatpush.bf16.msrb.mxu1 %v6071_v19  ;;  %v9437_v19 = vperm.slane %v9431_v42, 0 }
 0x4cd   : > { %v9376_v62 = vadd.f32 %v3164_v15, %v3096_v47  ;;  %v3641_v5 = vadd.f32 %v3640_v51, %v3571_v35 }
 0x4cf   : > { %10583 = vst [vmem:[#allocation10_spill] sm:$0xff] %v9376_v62  ;;  %v4114_v17 = vadd.f32 %v3641_v5, %v10584_v50  ;;  %v5940_v5 = vld [vmem:[%s10294_s3 + $0x458] sm:$0xf0] }
 0x4d0   : > { %v5943_v20 = vor.u32 %v6568_v33, %v5940_v5 }
 0x4d1   : > { %v4220_v12 = vadd.f32 %v9437_v19, %v4114_v17 }
 0x4d2   : > { %v3098_v22 = vpop.f32.mrf.mxu0  ;;  %3981 = vmatpush.bf16.msrb.mxu0 %v5943_v20  ;;  %v6050_v20 = vld [vmem:[%s10294_s3 + $0x528] sm:$0xf] }
 0x4d3   : > { %v3099_v47 = vadd.f32 %v3098_v22, %v10585_v8  ;;  %v3167_v15 = vpop.f32.mrf.mxu1  ;;  %v3573_v35 = vpop.f32.mrf.mxu2  ;;  %v10588_v22 = vld [vmem:[#allocation19_spill] sm:$0xff]  ;;  %v10589_v8 = vld [vmem:[#allocation2_spill] sm:$0xff] }
 0x4d4   : > { %v3642_v51 = vpop.f32.mrf.mxu3 }
 0x4d5   : > { %v9392_v62 = vadd.f32 %v3167_v15, %v3099_v47  ;;  %v3643_v0 = vadd.f32 %v3642_v51, %v3573_v35  ;;  %3738 = vmatmul.bf16.gmra.mxu0 %v10444_v63  ;;  %v10590_v15 = vld [vmem:[#allocation12_spill] sm:$0xff] }
 0x4d6   : > { %3807 = vmatmul.bf16.gmra.mxu1 %v10445_v29 }
 0x4d7   : > { %10586 = vst [vmem:[#allocation11_spill] sm:$0xff] %v9392_v62  ;;  %v9409_v50 = vadd.f32 %v3643_v0, %v10587_v53  ;;  %v5922_v0 = vld [vmem:[%s10294_s3 + $0x428] sm:$0xf] }
 0x4d8   : > { %3615 = vmatmul.bf16.gmra.mxu2 %v10588_v22  ;;  %3684 = vmatmul.bf16.gmra.mxu3 %v10589_v8 }
 0x4da   : > { %v3100_v47 = vpop.f32.mrf.mxu0 }
 0x4db   : > { %v3101_v35 = vadd.f32 %v3100_v47, %v10590_v15  ;;  %v3169_v51 = vpop.f32.mrf.mxu1  ;;  %v3576_v62 = vpop.f32.mrf.mxu2  ;;  %v10594_v47 = vld [vmem:[#allocation77_spill] sm:$0xff] }
 0x4dc   : > { %v3645_v33 = vpop.f32.mrf.mxu3 }
 0x4dd   : > { %v9414_v5 = vadd.f32 %v3169_v51, %v3101_v35  ;;  %v3646_v21 = vadd.f32 %v3645_v33, %v3576_v62  ;;  %v5923_v62 = vor.u32 %v6566_v16, %v5922_v0  ;;  %v5906_v33 = vld [vmem:[%s10294_s3 + $0x408] sm:$0xf]  ;;  %v6562_v0 = vld [vmem:[%s10294_s3 + $0x414] sm:$0xf0] }
 0x4df   : > { %10591 = vst [vmem:[#allocation14_spill] sm:$0xff] %v9414_v5  ;;  %v9417_v2 = vadd.f32 %v3646_v21, %v10592_v7  ;;  %v6598_v7 = vld [vmem:[%s10294_s3 + $0x534] sm:$0xf0]  ;;  %3844 = vmatpush.bf16.msrb.mxu2 %v5923_v62  ;;  %v6034_v62 = vld [vmem:[%s10294_s3 + $0x508] sm:$0xf] }
 0x4e0   : > { %v6051_v21 = vor.u32 %v6598_v7, %v6050_v20  ;;  %v5907_v20 = vor.u32 %v6562_v0, %v5906_v33  ;;  %v6594_v7 = vld [vmem:[%s10294_s3 + $0x514] sm:$0xf0]  ;;  %v10596_v5 = vld [vmem:[#allocation3_spill] sm:$0xff]  ;;  %v10597_v33 = vld [vmem:[#allocation4_spill] sm:$0xff] }
 0x4e1   : > { %v9458_v26 = vpack.c.b16 %v10596_v5, %v10596_v5  ;;  %v9462_v0 = vpack.c.b16 %v10597_v33, %v10597_v33 }
 0x4e2   : > { %v3103_v53 = vpop.f32.mrf.mxu0  ;;  %3913 = vmatpush.bf16.msrb.mxu3 %v6051_v21 }
 0x4e3   : > { %v3104_v15 = vadd.f32 %v3103_v53, %v10594_v47  ;;  %v3172_v35 = vpop.f32.mrf.mxu1  ;;  %v3578_v51 = vpop.f32.mrf.mxu2  ;;  %v6035_v47 = vor.u32 %v6594_v7, %v6034_v62  ;;  %3845 = vmatpush.bf16.msrb.mxu2 %v5907_v20 }
 0x4e4   : > { %v3647_v16 = vpop.f32.mrf.mxu3 }
 0x4e5   : > { %v9452_v53 = vadd.f32 %v3172_v35, %v3104_v15  ;;  %v3648_v21 = vadd.f32 %v3647_v16, %v3578_v51  ;;  %3743 = vmatmul.bf16.gmra.mxu0 %v10450_v37  ;;  %v4316_v51 = vmax.f32 %v4220_v12, 0.0  ;;  %v6596_v12 = vld [vmem:[%s10294_s3 + $0x52c] sm:$0xf] }
 0x4e6   : > { %3812 = vmatmul.bf16.gmra.mxu1 %v10451_v57  ;;  %3914 = vmatpush.bf16.msrb.mxu3 %v6035_v47  ;;  %v5924_v47 = vld [vmem:[%s10294_s3 + $0x438] sm:$0xf0] }
 0x4e7   : > { %10595 = vst [vmem:[#allocation12_spill] sm:$0xff] %v9452_v53  ;;  %v4126_v15 = vadd.f32 %v3648_v21, %v10598_v11  ;;  %v6564_v21 = vld [vmem:[%s10294_s3 + $0x42c] sm:$0xf] }
 0x4e8   : > { %6152 = vmatmul.msk.bf16.gmra.mxu2 %vm360_vm1, %v9458_v26  ;;  %6153 = vmatmul.msk.bf16.gmra.mxu3 %vm360_vm1, %v9462_v0 }
 0x4e9   : > { %v4232_v35 = vadd.f32 %v9437_v19, %v4126_v15  ;;  %v6052_v15 = vld [vmem:[%s10294_s3 + $0x538] sm:$0xf0] }
 0x4ea   : > { %v3105_v5 = vpop.f32.mrf.mxu0 }
 0x4eb   : > { %v4328_v16 = vmax.f32 %v4232_v35, 0.0  ;;  %v3106_v62 = vadd.f32 %v3105_v5, %v8692_v3  ;;  %v3174_v7 = vpop.f32.mrf.mxu1  ;;  %v3581_v20 = vpop.f32.mrf.mxu2  ;;  %v5927_v3 = vor.u32 %v6564_v21, %v5924_v47  ;;  %v4224_v35 = vadd.f32 %v9437_v19, %v9409_v50 }
 0x4ec   : > { %v3650_v33 = vpop.f32.mrf.mxu3 }
 0x4ed   : > { %v4412_v17 = vadd.f32 %v4328_v16, %v4316_v51  ;;  %v9472_v53 = vadd.f32 %v3174_v7, %v3106_v62  ;;  %v3651_v11 = vadd.f32 %v3650_v33, %v3581_v20  ;;  %v6055_v51 = vor.u32 %v6596_v12, %v6052_v15  ;;  %3982 = vmatpush.bf16.msrb.mxu0 %v5927_v3 }
 0x4ee   : > { %v4320_v7 = vmax.f32 %v4224_v35, 0.0 }
 0x4ef   : > { %10599 = vst [vmem:[#allocation13_spill] sm:$0xff] %v9472_v53  ;;  %v4130_v5 = vadd.f32 %v3651_v11, %v8695_v13  ;;  %4051 = vmatpush.bf16.msrb.mxu1 %v6055_v51  ;;  %v4228_v13 = vadd.f32 %v9437_v19, %v9417_v2 }
 0x4f1   : > { %v4236_v16 = vadd.f32 %v9437_v19, %v4130_v5  ;;  %v4324_v3 = vmax.f32 %v4228_v13, 0.0 }
 0x4f2   : > { %v3709_v62 = vpop.f32.mrf.mxu0 }
 0x4f3   : > { %v4332_v20 = vmax.f32 %v4236_v16, 0.0  ;;  %v3583_v33 = vpop.f32.mrf.mxu2  ;;  %v3778_v53 = vpop.f32.mrf.mxu1 }
 0x4f4   : > { %v3652_v21 = vpop.f32.mrf.mxu3  ;;  %v3779_v47 = vadd.f32 %v3778_v53, %v3709_v62 }
 0x4f5   : > { %v4416_v28 = vadd.f32 %v4332_v20, %v4320_v7  ;;  %v3653_v57 = vadd.f32 %v3652_v21, %v3583_v33  ;;  %3748 = vmatmul.bf16.gmra.mxu0 %v10452_v58 }
 0x4f6   : > { %v4115_v50 = vadd.f32 %v3779_v47, %v8699_v54  ;;  %3817 = vmatmul.bf16.gmra.mxu1 %v10453_v32 }
 0x4f7   : > { %v4134_v11 = vadd.f32 %v3653_v57, %v8702_v9 }
 0x4f8   : > { %3625 = vmatmul.bf16.gmra.mxu2 %v10340_v4  ;;  %3694 = vmatmul.bf16.gmra.mxu3 %v10340_v4 }
 0x4f9   : > { %v4240_v12 = vadd.f32 %v9437_v19, %v4134_v11 }
 0x4fa   : > { %v3711_v53 = vpop.f32.mrf.mxu0 }
 0x4fb   : > { %v4336_v15 = vmax.f32 %v4240_v12, 0.0  ;;  %v3586_v35 = vpop.f32.mrf.mxu2  ;;  %v3780_v5 = vpop.f32.mrf.mxu1 }
 0x4fc   : > { %v3655_v51 = vpop.f32.mrf.mxu3  ;;  %v3781_v54 = vadd.f32 %v3780_v5, %v3711_v53  ;;  %v6560_v53 = vld [vmem:[%s10294_s3 + $0x40c] sm:$0xf]  ;;  %v10601_v5 = vld [vmem:[#allocation17_spill] sm:$0xff] }
 0x4fd   : > { %v4420_v16 = vadd.f32 %v4336_v15, %v4324_v3  ;;  %v3656_v62 = vadd.f32 %v3655_v51, %v3586_v35  ;;  %v10600_v3 = vld [vmem:[#allocation15_spill] sm:$0xff]  ;;  %v6036_v35 = vld [vmem:[%s10294_s3 + $0x518] sm:$0xf0] }
 0x4fe   : > { %v4119_v7 = vadd.f32 %v3781_v54, %v8709_v14  ;;  %v5908_v14 = vld [vmem:[%s10294_s3 + $0x418] sm:$0xf0] }
 0x4ff   : > { %v4138_v2 = vadd.f32 %v3656_v62, %v8711_v44  ;;  %v6592_v44 = vld [vmem:[%s10294_s3 + $0x50c] sm:$0xf] }
 0x500   : > { %v6039_v54 = vor.u32 %v6592_v44, %v6036_v35 }
 0x501   : > { %v4244_v57 = vadd.f32 %v9437_v19, %v4138_v2  ;;  %v9522_v2 = vperm.slane %v9431_v42, 1 }
 0x502   : > { %v3714_v9 = vpop.f32.mrf.mxu0  ;;  %4052 = vmatpush.bf16.msrb.mxu1 %v6039_v54 }
 0x503   : > { %v4340_v20 = vmax.f32 %v4244_v57, 0.0  ;;  %v3588_v33 = vpop.f32.mrf.mxu2  ;;  %v3783_v21 = vpop.f32.mrf.mxu1 }
 0x504   : > { %v3657_v47 = vpop.f32.mrf.mxu3  ;;  %v3784_v11 = vadd.f32 %v3783_v21, %v3714_v9 }
 0x505   : > { %v4424_v13 = vadd.f32 %v4412_v17, %v4340_v20  ;;  %v3658_v12 = vadd.f32 %v3657_v47, %v3588_v33  ;;  %3753 = vmatmul.bf16.gmra.mxu0 %v10588_v22  ;;  %v5911_v17 = vor.u32 %v6560_v53, %v5908_v14  ;;  %v4221_v53 = vadd.f32 %v9522_v2, %v4115_v50  ;;  %v10602_v14 = vld [vmem:[#allocation5_spill] sm:$0xff] }
 0x506   : > { %v4123_v15 = vadd.f32 %v3784_v11, %v10600_v3  ;;  %3822 = vmatmul.bf16.gmra.mxu1 %v10589_v8  ;;  %v10603_v3 = vld [vmem:[#allocation79_spill] sm:$0xff]  ;;  %v4225_v50 = vadd.f32 %v9522_v2, %v4119_v7 }
 0x507   : > { %v4142_v51 = vadd.f32 %v3658_v12, %v10601_v5  ;;  %3983 = vmatpush.bf16.msrb.mxu0 %v5911_v17 }
 0x508   : > { %3846 = vmatmul.bf16.vlgmr.msrb.gmra.mxu2 %v7546_v40  ;;  %3915 = vmatmul.bf16.vlgmr.msrb.gmra.mxu3 %v10416_v39 }
 0x509   : > { %v4248_v62 = vadd.f32 %v9437_v19, %v4142_v51  ;;  %v4317_v51 = vmax.f32 %v4221_v53, 0.0 }
 0x50a   : > { %v3716_v57 = vpop.f32.mrf.mxu0 }
 0x50b   : > { %v4344_v9 = vmax.f32 %v4248_v62, 0.0  ;;  %v3591_v20 = vpop.f32.mrf.mxu2  ;;  %v3785_v33 = vpop.f32.mrf.mxu1 }
 0x50c   : > { %v3660_v21 = vpop.f32.mrf.mxu3  ;;  %v3786_v47 = vadd.f32 %v3785_v33, %v3716_v57  ;;  %v10604_v33 = vld [vmem:[#allocation6_spill] sm:$0xff] }
 0x50d   : > { %v4428_v11 = vadd.f32 %v4416_v28, %v4344_v9  ;;  %v3661_v12 = vadd.f32 %v3660_v21, %v3591_v20 }
 0x50e   : > { %v4127_v44 = vadd.f32 %v3786_v47, %v10602_v14  ;;  %v10605_v47 = vld [vmem:[#allocation7_spill] sm:$0xff] }
 0x50f   : > { %v4146_v35 = vadd.f32 %v3661_v12, %v10603_v3 }
 0x510   : > { %v4233_v17 = vadd.f32 %v9522_v2, %v4127_v44 }
 0x511   : > { %v4252_v5 = vadd.f32 %v9437_v19, %v4146_v35 }
 0x512   : > { %v4329_v54 = vmax.f32 %v4233_v17, 0.0  ;;  %v3719_v42 = vpop.f32.mrf.mxu0 }
 0x513   : > { %v4348_v62 = vmax.f32 %v4252_v5, 0.0  ;;  %v3593_v8 = vpop.f32.mrf.mxu2  ;;  %v3788_v22 = vpop.f32.mrf.mxu1 }
 0x514   : > { %v4413_v32 = vadd.f32 %v4329_v54, %v4317_v51  ;;  %v3662_v57 = vpop.f32.mrf.mxu3  ;;  %v3789_v28 = vadd.f32 %v3788_v22, %v3719_v42  ;;  %v4229_v54 = vadd.f32 %v9522_v2, %v4123_v15 }
 0x515   : > { %v4432_v9 = vadd.f32 %v4420_v16, %v4348_v62  ;;  %v3663_v20 = vadd.f32 %v3662_v57, %v3593_v8  ;;  %6154 = vmatmul.msk.bf16.gmra.mxu0 %vm360_vm1, %v9458_v26  ;;  %v4321_v8 = vmax.f32 %v4225_v50, 0.0 }
 0x516   : > { %v4131_v21 = vadd.f32 %v3789_v28, %v10604_v33  ;;  %6155 = vmatmul.msk.bf16.gmra.mxu1 %vm360_vm1, %v9462_v0  ;;  %v4325_v50 = vmax.f32 %v4229_v54, 0.0 }
 0x517   : > { %v4150_v12 = vadd.f32 %v3663_v20, %v10605_v47 }
 0x518   : > { %v4237_v53 = vadd.f32 %v9522_v2, %v4131_v21  ;;  %3851 = vmatmul.bf16.gmra.mxu2 %v7590_v30  ;;  %3920 = vmatmul.bf16.gmra.mxu3 %v7592_v23 }
 0x519   : > { %v4256_v22 = vadd.f32 %v9437_v19, %v4150_v12 }
 0x51a   : > { %v4333_v42 = vmax.f32 %v4237_v53, 0.0  ;;  %v3721_v16 = vpop.f32.mrf.mxu0 }
 0x51b   : > { %v4352_v14 = vmax.f32 %v4256_v22, 0.0  ;;  %v3596_v7 = vpop.f32.mrf.mxu2  ;;  %v3790_v44 = vpop.f32.mrf.mxu1 }
 0x51c   : > { %v4417_v3 = vadd.f32 %v4333_v42, %v4321_v8  ;;  %v3665_v35 = vpop.f32.mrf.mxu3  ;;  %v3791_v17 = vadd.f32 %v3790_v44, %v3721_v16 }
 0x51d   : > { %v4436_v5 = vadd.f32 %v4424_v13, %v4352_v14  ;;  %v3666_v51 = vadd.f32 %v3665_v35, %v3596_v7 }
 0x51e   : > { %v4135_v62 = vadd.f32 %v3791_v17, %v8781_v45 }
 0x51f   : > { %v4154_v57 = vadd.f32 %v3666_v51, %v8783_v60 }
 0x520   : > { %v4241_v28 = vadd.f32 %v9522_v2, %v4135_v62 }
 0x521   : > { %v4260_v20 = vadd.f32 %v9437_v19, %v4154_v57 }
 0x522   : > { %v4337_v33 = vmax.f32 %v4241_v28, 0.0  ;;  %v3724_v21 = vpop.f32.mrf.mxu0  ;;  %v10606_v28 = vld [vmem:[#allocation8_spill] sm:$0xff] }
 0x523   : > { %v4356_v47 = vmax.f32 %v4260_v20, 0.0  ;;  %v3598_v12 = vpop.f32.mrf.mxu2  ;;  %v3793_v53 = vpop.f32.mrf.mxu1 }
 0x524   : > { %v4421_v22 = vadd.f32 %v4337_v33, %v4325_v50  ;;  %v3667_v8 = vpop.f32.mrf.mxu3  ;;  %v3794_v13 = vadd.f32 %v3793_v53, %v3724_v21 }
 0x525   : > { %v4440_v42 = vadd.f32 %v4428_v11, %v4356_v47  ;;  %v3668_v16 = vadd.f32 %v3667_v8, %v3598_v12  ;;  %3763 = vmatmul.bf16.gmra.mxu0 %v10340_v4 }
 0x526   : > { %v4139_v45 = vadd.f32 %v3794_v13, %v8787_v49  ;;  %3832 = vmatmul.bf16.gmra.mxu1 %v10340_v4 }
 0x527   : > { %v4158_v60 = vadd.f32 %v3668_v16, %v8790_v27 }
 0x528   : > { %v4245_v15 = vadd.f32 %v9522_v2, %v4139_v45  ;;  %3856 = vmatmul.bf16.gmra.mxu2 %v7646_v43  ;;  %3925 = vmatmul.bf16.gmra.mxu3 %v7648_v52 }
 0x529   : > { %v4264_v14 = vadd.f32 %v9437_v19, %v4158_v60 }
 0x52a   : > { %v4341_v7 = vmax.f32 %v4245_v15, 0.0  ;;  %v3726_v44 = vpop.f32.mrf.mxu0  ;;  %v10608_v15 = vld [vmem:[#allocation22_spill] sm:$0xff] }
 0x52b   : > { %v4360_v11 = vmax.f32 %v4264_v14, 0.0  ;;  %v3601_v35 = vpop.f32.mrf.mxu2  ;;  %v3795_v17 = vpop.f32.mrf.mxu1 }
 0x52c   : > { %v4425_v51 = vadd.f32 %v4413_v32, %v4341_v7  ;;  %v3670_v54 = vpop.f32.mrf.mxu3  ;;  %v3796_v49 = vadd.f32 %v3795_v17, %v3726_v44 }
 0x52d   : > { %v4444_v62 = vadd.f32 %v4432_v9, %v4360_v11  ;;  %v3671_v57 = vadd.f32 %v3670_v54, %v3601_v35  ;;  %v10607_v9 = vld [vmem:[#allocation9_spill] sm:$0xff] }
 0x52e   : > { %v4143_v27 = vadd.f32 %v3796_v49, %v8809_v10 }
 0x52f   : > { %v4162_v20 = vadd.f32 %v3671_v57, %v10606_v28 }
 0x530   : > { %v4249_v50 = vadd.f32 %v9522_v2, %v4143_v27  ;;  %v10609_v27 = vld [vmem:[#allocation23_spill] sm:$0xff] }
 0x531   : > { %v4268_v33 = vadd.f32 %v9437_v19, %v4162_v20  ;;  %v10610_v20 = vld [vmem:[#allocation24_spill] sm:$0xff] }
 0x532   : > { %v4345_v21 = vmax.f32 %v4249_v50, 0.0  ;;  %v3729_v47 = vpop.f32.mrf.mxu0 }
 0x533   : > { %v4364_v12 = vmax.f32 %v4268_v33, 0.0  ;;  %v3603_v53 = vpop.f32.mrf.mxu2  ;;  %v3798_v8 = vpop.f32.mrf.mxu1 }
 0x534   : > { %v4429_v13 = vadd.f32 %v4417_v3, %v4345_v21  ;;  %v3672_v16 = vpop.f32.mrf.mxu3  ;;  %v3799_v32 = vadd.f32 %v3798_v8, %v3729_v47 }
 0x535   : > { %v4448_v45 = vadd.f32 %v4436_v5, %v4364_v12  ;;  %v3673_v60 = vadd.f32 %v3672_v16, %v3603_v53  ;;  %3984 = vmatmul.bf16.vlgmr.msrb.gmra.mxu0 %v7546_v40 }
 0x536   : > { %v4147_v10 = vadd.f32 %v3799_v32, %v10607_v9  ;;  %4053 = vmatmul.bf16.vlgmr.msrb.gmra.mxu1 %v10416_v39 }
 0x537   : > { %v4166_v14 = vadd.f32 %v3673_v60, %v10608_v15 }
 0x538   : > { %v4253_v7 = vadd.f32 %v9522_v2, %v4147_v10  ;;  %3861 = vmatmul.bf16.gmra.mxu2 %v7686_v48  ;;  %3930 = vmatmul.bf16.gmra.mxu3 %v7688_v24 }
 0x539   : > { %v4272_v3 = vadd.f32 %v9437_v19, %v4166_v14 }
 0x53a   : > { %v4349_v44 = vmax.f32 %v4253_v7, 0.0  ;;  %v3731_v11 = vpop.f32.mrf.mxu0 }
 0x53b   : > { %v4368_v5 = vmax.f32 %v4272_v3, 0.0  ;;  %v3606_v35 = vpop.f32.mrf.mxu2  ;;  %v3800_v17 = vpop.f32.mrf.mxu1 }
 0x53c   : > { %v4433_v40 = vadd.f32 %v4421_v22, %v4349_v44  ;;  %v3675_v54 = vpop.f32.mrf.mxu3  ;;  %v3801_v49 = vadd.f32 %v3800_v17, %v3731_v11 }
 0x53d   : > { %v4452_v57 = vadd.f32 %v4440_v42, %v4368_v5  ;;  %v3676_v39 = vadd.f32 %v3675_v54, %v3606_v35 }
 0x53e   : > { %v4151_v28 = vadd.f32 %v3801_v49, %v10609_v27 }
 0x53f   : > { %v4170_v50 = vadd.f32 %v3676_v39, %v10610_v20 }
 0x540   : > { %v4257_v33 = vadd.f32 %v9522_v2, %v4151_v28 }
 0x541   : > { %v4276_v21 = vadd.f32 %v9437_v19, %v4170_v50 }
 0x542   : > { %v4353_v47 = vmax.f32 %v4257_v33, 0.0  ;;  %v3734_v12 = vpop.f32.mrf.mxu0 }
 0x543   : > { %v4372_v53 = vmax.f32 %v4276_v21, 0.0  ;;  %v3608_v8 = vpop.f32.mrf.mxu2  ;;  %v3803_v16 = vpop.f32.mrf.mxu1 }
 0x544   : > { %v4437_v32 = vadd.f32 %v4425_v51, %v4353_v47  ;;  %v3677_v60 = vpop.f32.mrf.mxu3  ;;  %v3804_v22 = vadd.f32 %v3803_v16, %v3734_v12 }
 0x545   : > { %v4456_v9 = vadd.f32 %v4444_v62, %v4372_v53  ;;  %v3678_v10 = vadd.f32 %v3677_v60, %v3608_v8  ;;  %3989 = vmatmul.bf16.gmra.mxu0 %v7590_v30 }
 0x546   : > { %v4155_v42 = vadd.f32 %v3804_v22, %v8855_v55  ;;  %4058 = vmatmul.bf16.gmra.mxu1 %v7592_v23 }
 0x547   : > { %v4174_v15 = vadd.f32 %v3678_v10, %v8860_v61 }
 0x548   : > { %v4261_v14 = vadd.f32 %v9522_v2, %v4155_v42  ;;  %3866 = vmatmul.bf16.gmra.mxu2 %v7730_v56  ;;  %3935 = vmatmul.bf16.gmra.mxu3 %v7732_v36 }
 0x549   : > { %v4280_v51 = vadd.f32 %v9437_v19, %v4174_v15 }
 0x54a   : > { %v4357_v7 = vmax.f32 %v4261_v14, 0.0  ;;  %v3736_v3 = vpop.f32.mrf.mxu0 }
 0x54b   : > { %v4376_v62 = vmax.f32 %v4280_v51, 0.0  ;;  %v3611_v44 = vpop.f32.mrf.mxu2  ;;  %v3805_v11 = vpop.f32.mrf.mxu1 }
 0x54c   : > { %v4441_v30 = vadd.f32 %v4429_v13, %v4357_v7  ;;  %v3680_v5 = vpop.f32.mrf.mxu3  ;;  %v3806_v55 = vadd.f32 %v3805_v11, %v3736_v3 }
 0x54d   : > { %v4460_v35 = vadd.f32 %v4448_v45, %v4376_v62  ;;  %v3681_v23 = vadd.f32 %v3680_v5, %v3611_v44 }
 0x54e   : > { %v4159_v61 = vadd.f32 %v3806_v55, %v8881_v46 }
 0x54f   : > { %v4178_v17 = vadd.f32 %v3681_v23, %v8883_v6 }
 0x550   : > { %v4265_v54 = vadd.f32 %v9522_v2, %v4159_v61 }
 0x551   : > { %v4284_v49 = vadd.f32 %v9437_v19, %v4178_v17 }
 0x552   : > { %v4361_v39 = vmax.f32 %v4265_v54, 0.0  ;;  %v3739_v27 = vpop.f32.mrf.mxu0 }
 0x553   : > { %v4380_v28 = vmax.f32 %v4284_v49, 0.0  ;;  %v3613_v20 = vpop.f32.mrf.mxu2  ;;  %v3808_v50 = vpop.f32.mrf.mxu1 }
 0x554   : > { %v4445_v33 = vadd.f32 %v4433_v40, %v4361_v39  ;;  %v3682_v21 = vpop.f32.mrf.mxu3  ;;  %v3809_v13 = vadd.f32 %v3808_v50, %v3739_v27 }
 0x555   : > { %v4464_v47 = vadd.f32 %v4452_v57, %v4380_v28  ;;  %v3683_v12 = vadd.f32 %v3682_v21, %v3613_v20  ;;  %3994 = vmatmul.bf16.gmra.mxu0 %v7646_v43  ;;  %v10611_v28 = vld [vmem:[#allocation25_spill] sm:$0xff]  ;;  %v10612_v20 = vld [vmem:[#allocation26_spill] sm:$0xff] }
 0x556   : > { %v4163_v46 = vadd.f32 %v3809_v13, %v8887_v38  ;;  %4063 = vmatmul.bf16.gmra.mxu1 %v7648_v52 }
 0x557   : > { %v4182_v6 = vadd.f32 %v3683_v12, %v8890_v41 }
 0x558   : > { %v4269_v45 = vadd.f32 %v9522_v2, %v4163_v46  ;;  %3871 = vmatmul.bf16.gmra.mxu2 %v10437_v31  ;;  %3940 = vmatmul.bf16.gmra.mxu3 %v10438_v1 }
 0x559   : > { %v4288_v40 = vadd.f32 %v9437_v19, %v4182_v6 }
 0x55a   : > { %v4365_v53 = vmax.f32 %v4269_v45, 0.0  ;;  %v3741_v8 = vpop.f32.mrf.mxu0 }
 0x55b   : > { %v4384_v57 = vmax.f32 %v4288_v40, 0.0  ;;  %v3616_v16 = vpop.f32.mrf.mxu2  ;;  %v3810_v60 = vpop.f32.mrf.mxu1 }
 0x55c   : > { %v4449_v43 = vadd.f32 %v4437_v32, %v4365_v53  ;;  %v3685_v22 = vpop.f32.mrf.mxu3  ;;  %v3811_v38 = vadd.f32 %v3810_v60, %v3741_v8 }
 0x55d   : > { %v4468_v10 = vadd.f32 %v4456_v9, %v4384_v57  ;;  %v3686_v52 = vadd.f32 %v3685_v22, %v3616_v16  ;;  %v6638_v57 = vld [vmem:[%s10296_s5 + $0x74] sm:$0xf0]  ;;  %v6282_v16 = vld [vmem:[%s10296_s5 + $0xf0] sm:$0xf] }
 0x55e   : > { %v4167_v41 = vadd.f32 %v3811_v38, %v8909_v25 }
 0x55f   : > { %v4186_v42 = vadd.f32 %v3686_v52, %v8911_v18  ;;  %v10613_v52 = vld [vmem:[#allocation27_spill] sm:$0xff] }
 0x560   : > { %v4273_v15 = vadd.f32 %v9522_v2, %v4167_v41 }
 0x561   : > { %v4292_v14 = vadd.f32 %v9437_v19, %v4186_v42 }
 0x562   : > { %v4369_v51 = vmax.f32 %v4273_v15, 0.0  ;;  %v3744_v7 = vpop.f32.mrf.mxu0  ;;  %v10614_v15 = vld [vmem:[#allocation28_spill] sm:$0xff] }
 0x563   : > { %v4388_v3 = vmax.f32 %v4292_v14, 0.0  ;;  %v3618_v62 = vpop.f32.mrf.mxu2  ;;  %v3813_v44 = vpop.f32.mrf.mxu1 }
 0x564   : > { %v4453_v11 = vadd.f32 %v4441_v30, %v4369_v51  ;;  %v3687_v5 = vpop.f32.mrf.mxu3  ;;  %v3814_v32 = vadd.f32 %v3813_v44, %v3744_v7  ;;  %v10615_v7 = vld [vmem:[#allocation16_spill] sm:$0xff] }
 0x565   : > { %v4472_v55 = vadd.f32 %v4460_v35, %v4388_v3  ;;  %v3688_v23 = vadd.f32 %v3687_v5, %v3618_v62  ;;  %3999 = vmatmul.bf16.gmra.mxu0 %v7686_v48 }
 0x566   : > { %v4171_v25 = vadd.f32 %v3814_v32, %v8927_v34  ;;  %4068 = vmatmul.bf16.gmra.mxu1 %v7688_v24 }
 0x567   : > { %v4190_v18 = vadd.f32 %v3688_v23, %v8930_v59 }
 0x568   : > { %v4277_v9 = vadd.f32 %v9522_v2, %v4171_v25  ;;  %3876 = vmatmul.bf16.gmra.mxu2 %v10444_v63  ;;  %3945 = vmatmul.bf16.gmra.mxu3 %v10445_v29 }
 0x569   : > { %v4296_v30 = vadd.f32 %v9437_v19, %v4190_v18 }
 0x56a   : > { %v4373_v61 = vmax.f32 %v4277_v9, 0.0  ;;  %v3746_v17 = vpop.f32.mrf.mxu0  ;;  %v10616_v9 = vld [vmem:[#allocation29_spill] sm:$0xff] }
 0x56b   : > { %v4392_v35 = vmax.f32 %v4296_v30, 0.0  ;;  %v3621_v54 = vpop.f32.mrf.mxu2  ;;  %v3815_v49 = vpop.f32.mrf.mxu1 }
 0x56c   : > { %v4457_v48 = vadd.f32 %v4445_v33, %v4373_v61  ;;  %v3690_v39 = vpop.f32.mrf.mxu3  ;;  %v3816_v34 = vadd.f32 %v3815_v49, %v3746_v17  ;;  %v10617_v61 = vld [vmem:[#allocation30_spill] sm:$0xff] }
 0x56d   : > { %v4476_v27 = vadd.f32 %v4464_v47, %v4392_v35  ;;  %v3691_v24 = vadd.f32 %v3690_v39, %v3621_v54  ;;  %v6218_v47 = vld [vmem:[%s10296_s5 + $0x70] sm:$0xf] }
 0x56e   : > { %v4175_v59 = vadd.f32 %v3816_v34, %v10611_v28  ;;  %v6219_v22 = vor.u32 %v6638_v57, %v6218_v47  ;;  %v6636_v57 = vld [vmem:[%s10296_s5 + $0x64] sm:$0xf0] }
 0x56f   : > { %v4194_v50 = vadd.f32 %v3691_v24, %v10612_v20 }
 0x570   : > { %v4281_v21 = vadd.f32 %v9522_v2, %v4175_v59  ;;  %4894 = vmatpush.bf16.msra.mxu2 %v6219_v22 }
 0x571   : > { %v4300_v13 = vadd.f32 %v9437_v19, %v4194_v50 }
 0x572   : > { %v4377_v12 = vmax.f32 %v4281_v21, 0.0  ;;  %v3749_v46 = vpop.f32.mrf.mxu0  ;;  %v10618_v21 = vld [vmem:[#allocation31_spill] sm:$0xff] }
 0x573   : > { %v4396_v6 = vmax.f32 %v4300_v13, 0.0  ;;  %v3623_v45 = vpop.f32.mrf.mxu2  ;;  %v3818_v40 = vpop.f32.mrf.mxu1 }
 0x574   : > { %v4461_v53 = vadd.f32 %v4449_v43, %v4377_v12  ;;  %v3692_v8 = vpop.f32.mrf.mxu3  ;;  %v3819_v33 = vadd.f32 %v3818_v40, %v3749_v46  ;;  %v6654_v43 = vld [vmem:[%s10296_s5 + $0xf4] sm:$0xf0]  ;;  %v10619_v46 = vld [vmem:[#allocation32_spill] sm:$0xff] }
 0x575   : > { %v3693_v60 = vadd.f32 %v3692_v8, %v3623_v45  ;;  %4004 = vmatmul.bf16.gmra.mxu0 %v7730_v56  ;;  %v4480_v38 = vadd.f32 %v4468_v10, %v4396_v6  ;;  %v6283_v42 = vor.u32 %v6654_v43, %v6282_v16 }
 0x576   : > { %v4179_v41 = vadd.f32 %v3819_v33, %v10613_v52  ;;  %4073 = vmatmul.bf16.gmra.mxu1 %v7732_v36  ;;  %v6652_v52 = vld [vmem:[%s10296_s5 + $0xe4] sm:$0xf0] }
 0x577   : > { %v4198_v14 = vadd.f32 %v3693_v60, %v10614_v15  ;;  %4912 = vmatpush.bf16.msra.mxu3 %v6283_v42 }
 0x578   : > { %v4285_v51 = vadd.f32 %v9522_v2, %v4179_v41  ;;  %3881 = vmatmul.bf16.gmra.mxu2 %v10450_v37  ;;  %3950 = vmatmul.bf16.gmra.mxu3 %v10615_v7 }
 0x579   : > { %v4304_v56 = vadd.f32 %v9437_v19, %v4198_v14  ;;  %v10621_v14 = vld [vmem:[#allocation33_spill] sm:$0xff] }
 0x57a   : > { %v4381_v3 = vmax.f32 %v4285_v51, 0.0  ;;  %v3751_v62 = vpop.f32.mrf.mxu0 }
 0x57b   : > { %v4400_v10 = vmax.f32 %v4304_v56, 0.0  ;;  %v3626_v44 = vpop.f32.mrf.mxu2  ;;  %v3820_v5 = vpop.f32.mrf.mxu1 }
 0x57c   : > { %v9625_v32 = vadd.f32 %v4453_v11, %v4381_v3  ;;  %v3695_v36 = vpop.f32.mrf.mxu3  ;;  %v3821_v23 = vadd.f32 %v3820_v5, %v3751_v62  ;;  %v6202_v3 = vld [vmem:[%s10296_s5 + $0x50] sm:$0xf]  ;;  %v6634_v62 = vld [vmem:[%s10296_s5 + $0x54] sm:$0xf0] }
 0x57d   : > { %v4484_v25 = vadd.f32 %v4472_v55, %v4400_v10  ;;  %v3696_v18 = vadd.f32 %v3695_v36, %v3626_v44  ;;  %v6203_v44 = vor.u32 %v6634_v62, %v6202_v3  ;;  %v6650_v5 = vld [vmem:[%s10296_s5 + $0xd4] sm:$0xf0]  ;;  %v6170_v62 = vld [vmem:[%s10296_s5 + $0x10] sm:$0xf] }
 0x57e   : > { %v4183_v30 = vadd.f32 %v3821_v23, %v10616_v9 }
 0x57f   : > { %v4202_v17 = vadd.f32 %v3696_v18, %v10617_v61  ;;  %v6632_v61 = vld [vmem:[%s10296_s5 + $0x44] sm:$0xf0] }
 0x580   : > { %v4289_v35 = vadd.f32 %v9522_v2, %v4183_v30  ;;  %v6194_v30 = vld [vmem:[%s10296_s5 + $0x40] sm:$0xf] }
 0x581   : > { %v4308_v54 = vadd.f32 %v9437_v19, %v4202_v17 }
 0x582   : > { %v4385_v49 = vmax.f32 %v4289_v35, 0.0  ;;  %v3754_v39 = vpop.f32.mrf.mxu0 }
 0x583   : > { %v4404_v34 = vmax.f32 %v4308_v54, 0.0  ;;  %v3628_v24 = vpop.f32.mrf.mxu2  ;;  %v3823_v28 = vpop.f32.mrf.mxu1 }
 0x584   : > { %v9631_v59 = vadd.f32 %v4457_v48, %v4385_v49  ;;  %v3697_v11 = vpop.f32.mrf.mxu3  ;;  %v3824_v20 = vadd.f32 %v3823_v28, %v3754_v39  ;;  %v10620_v48 = vld [vmem:[#allocation18_spill] sm:$0xff]  ;;  %v6195_v49 = vor.u32 %v6632_v61, %v6194_v30 }
 0x585   : > { %v4488_v50 = vadd.f32 %v4476_v27, %v4404_v34  ;;  %v3698_v55 = vadd.f32 %v3697_v11, %v3628_v24  ;;  %4009 = vmatmul.bf16.gmra.mxu0 %v10437_v31  ;;  %v6258_v39 = vld [vmem:[%s10296_s5 + $0xc0] sm:$0xf]  ;;  %v6648_v34 = vld [vmem:[%s10296_s5 + $0xc4] sm:$0xf0] }
 0x586   : > { %v4187_v13 = vadd.f32 %v3824_v20, %v10618_v21  ;;  %4078 = vmatmul.bf16.gmra.mxu1 %v10438_v1  ;;  %v6210_v1 = vld [vmem:[%s10296_s5 + $0x60] sm:$0xf]  ;;  %v6259_v28 = vor.u32 %v6648_v34, %v6258_v39  ;;  %v6630_v21 = vld [vmem:[%s10296_s5 + $0x34] sm:$0xf0] }
 0x587   : > { %v9636_v12 = vpack.c.bf16 %v4488_v50, %v4484_v25  ;;  %v4206_v6 = vadd.f32 %v3698_v55, %v10619_v46  ;;  %v6211_v43 = vor.u32 %v6636_v57, %v6210_v1  ;;  %v10623_v11 = vld [vmem:[#allocation34_spill] sm:$0xff]  ;;  %v6186_v55 = vld [vmem:[%s10296_s5 + $0x30] sm:$0xf]  ;;  %v6628_v1 = vld [vmem:[%s10296_s5 + $0x24] sm:$0xf0] }
 0x588   : > { %v4293_v45 = vadd.f32 %v9522_v2, %v4187_v13  ;;  %3886 = vmatmul.bf16.gmra.mxu2 %v10452_v58  ;;  %3955 = vmatmul.bf16.gmra.mxu3 %v10620_v48  ;;  %v10625_v13 = vld [vmem:[#allocation19_spill] sm:$0xff]  ;;  %v10626_v46 = vld [vmem:[#allocation2_spill] sm:$0xff] }
 0x589   : > { %v4312_v40 = vadd.f32 %v9437_v19, %v4206_v6  ;;  %v6274_v19 = vld [vmem:[%s10296_s5 + $0xe0] sm:$0xf]  ;;  %4895 = vmatpush.bf16.msra.mxu2 %v6211_v43  ;;  %v6250_v6 = vld [vmem:[%s10296_s5 + $0xb0] sm:$0xf] }
 0x58a   : > { %v4389_v27 = vmax.f32 %v4293_v45, 0.0  ;;  %v3756_v8 = vpop.f32.mrf.mxu0  ;;  %v6275_v42 = vor.u32 %v6652_v52, %v6274_v19  ;;  %v6646_v45 = vld [vmem:[%s10296_s5 + $0xb4] sm:$0xf0]  ;;  %v6242_v43 = vld [vmem:[%s10296_s5 + $0xa0] sm:$0xf] }
 0x58b   : > { %v4408_v33 = vmax.f32 %v4312_v40, 0.0  ;;  %v3825_v31 = vpop.f32.mrf.mxu1  ;;  %v3847_v47 = vpop.f32.mrf.mxu2  ;;  %v6251_v40 = vor.u32 %v6646_v45, %v6250_v6  ;;  %v6644_v19 = vld [vmem:[%s10296_s5 + $0xa4] sm:$0xf0] }
 0x58c   : > { %v9649_v16 = vadd.f32 %v4461_v53, %v4389_v27  ;;  %v3826_v60 = vadd.f32 %v3825_v31, %v3756_v8  ;;  %v3916_v22 = vpop.f32.mrf.mxu3  ;;  %v10622_v53 = vld [vmem:[#allocation80_spill] sm:$0xff]  ;;  %4913 = vmatpush.bf16.msra.mxu3 %v6275_v42  ;;  %v6243_v42 = vor.u32 %v6644_v19, %v6242_v43 }
 0x58d   : > { %v3917_v41 = vadd.f32 %v3916_v22, %v3847_v47  ;;  %v9657_v15 = vadd.f32 %v4480_v38, %v4408_v33  ;;  %v6266_v38 = vld [vmem:[%s10296_s5 + $0xd0] sm:$0xf]  ;;  %4896 = vmatpush.bf16.msra.mxu2 %v6203_v44  ;;  %v6178_v47 = vld [vmem:[%s10296_s5 + $0x20] sm:$0xf] }
 0x58e   : > { %v4191_v51 = vadd.f32 %v3826_v60, %v10621_v14  ;;  %v6267_v36 = vor.u32 %v6650_v5, %v6266_v38  ;;  %v6179_v22 = vor.u32 %v6628_v1, %v6178_v47  ;;  %v10627_v14 = vld [vmem:[#allocation36_spill] sm:$0xff]  ;;  %v6626_v38 = vld [vmem:[%s10296_s5 + $0x14] sm:$0xf0] }
 0x58f   : > { %v9661_v56 = vadd.f32 %v3917_v41, %v10622_v53  ;;  %v10628_v53 = vld [vmem:[#allocation37_spill] sm:$0xff]  ;;  %v6171_v44 = vor.u32 %v6626_v38, %v6170_v62 }
 0x590   : > { %v4297_v10 = vadd.f32 %v9522_v2, %v4191_v51  ;;  %4914 = vmatpush.bf16.msra.mxu3 %v6267_v36  ;;  %v6642_v5 = vld [vmem:[%s10296_s5 + $0x94] sm:$0xf0] }
 0x591   : > { %4897 = vmatpush.bf16.msra.mxu2 %v6195_v49 }
 0x592   : > { %v4393_v23 = vmax.f32 %v4297_v10, 0.0  ;;  %v3759_v25 = vpop.f32.mrf.mxu0 }
 0x593   : > { %v3828_v18 = vpop.f32.mrf.mxu1  ;;  %v3849_v9 = vpop.f32.mrf.mxu2 }
 0x594   : > { %v9683_v17 = vadd.f32 %v9625_v32, %v4393_v23  ;;  %v3829_v35 = vadd.f32 %v3828_v18, %v3759_v25  ;;  %v3918_v54 = vpop.f32.mrf.mxu3  ;;  %v10624_v32 = vld [vmem:[#allocation35_spill] sm:$0xff]  ;;  %4915 = vmatpush.bf16.msra.mxu3 %v6259_v28  ;;  %v10629_v18 = vld [vmem:[#allocation76_spill] sm:$0xff]  ;;  %v6226_v28 = vld [vmem:[%s10296_s5 + $0x80] sm:$0xf] }
 0x595   : > { %v3919_v24 = vadd.f32 %v3918_v54, %v3849_v9  ;;  %4014 = vmatmul.bf16.gmra.mxu0 %v10444_v63  ;;  %v9745_v9 = vperm.slane %v10629_v18, 2  ;;  %v6624_v54 = vld [vmem:[%s10296_s5 + $0x4] sm:$0xf0] }
 0x596   : > { %v4195_v20 = vadd.f32 %v3829_v35, %v10623_v11  ;;  %4083 = vmatmul.bf16.gmra.mxu1 %v10445_v29  ;;  %v6187_v29 = vor.u32 %v6630_v21, %v6186_v55  ;;  %v6162_v35 = vld [vmem:[%s10296_s5] sm:$0xf]  ;;  %v6640_v11 = vld [vmem:[%s10296_s5 + $0x84] sm:$0xf0] }
 0x597   : > { %v9695_v50 = vadd.f32 %v3919_v24, %v10624_v32  ;;  %v6163_v24 = vor.u32 %v6624_v54, %v6162_v35  ;;  %v6227_v32 = vor.u32 %v6640_v11, %v6226_v28  ;;  %v10630_v55 = vld [vmem:[#allocation38_spill] sm:$0xff] }
 0x598   : > { %v4301_v63 = vadd.f32 %v9522_v2, %v4195_v20  ;;  %3891 = vmatmul.bf16.gmra.mxu2 %v10625_v13  ;;  %3960 = vmatmul.bf16.gmra.mxu3 %v10626_v46  ;;  %v10636_v11 = vld [vmem:[#allocation42_spill] sm:$0xff] }
 0x599   : > { %4898 = vmatpush.bf16.msra.mxu2 %v6187_v29  ;;  %4916 = vmatpush.bf16.msra.mxu3 %v6251_v40  ;;  %v4226_v19 = vadd.f32 %v9745_v9, %v9695_v50  ;;  %v10634_v50 = vld [vmem:[#allocation40_spill] sm:$0xff] }
 0x59a   : > { %v4397_v27 = vmax.f32 %v4301_v63, 0.0  ;;  %v3761_v8 = vpop.f32.mrf.mxu0  ;;  %v10631_v63 = vld [vmem:[#allocation39_spill] sm:$0xff] }
 0x59b   : > { %v3830_v33 = vpop.f32.mrf.mxu1  ;;  %v3852_v31 = vpop.f32.mrf.mxu2 }
 0x59c   : > { %v3831_v57 = vadd.f32 %v3830_v33, %v3761_v8  ;;  %v3921_v60 = vpop.f32.mrf.mxu3  ;;  %v9725_v52 = vadd.f32 %v9631_v59, %v4397_v27  ;;  %v6234_v59 = vld [vmem:[%s10296_s5 + $0x90] sm:$0xf] }
 0x59d   : > { %v3922_v41 = vadd.f32 %v3921_v60, %v3852_v31  ;;  %4899 = vmatpush.bf16.msra.mxu2 %v6179_v22  ;;  %4917 = vmatpush.bf16.msra.mxu3 %v6243_v42  ;;  %v6235_v36 = vor.u32 %v6642_v5, %v6234_v59  ;;  %v10632_v22 = vld [vmem:[#allocation81_spill] sm:$0xff] }
 0x59e   : > { %v4199_v51 = vadd.f32 %v3831_v57, %v10627_v14 }
 0x59f   : > { %v9729_v3 = vadd.f32 %v3922_v41, %v10628_v53  ;;  %v10633_v41 = vld [vmem:[#allocation82_spill] sm:$0xff] }
 0x5a0   : > { %v4305_v10 = vadd.f32 %v9522_v2, %v4199_v51 }
 0x5a1   : > { %4900 = vmatpush.bf16.msra.mxu2 %v6171_v44  ;;  %4918 = vmatpush.bf16.msra.mxu3 %v6235_v36 }
 0x5a2   : > { %v4401_v23 = vmax.f32 %v4305_v10, 0.0  ;;  %v3764_v25 = vpop.f32.mrf.mxu0 }
 0x5a3   : > { %v3833_v30 = vpop.f32.mrf.mxu1  ;;  %v3854_v61 = vpop.f32.mrf.mxu2 }
 0x5a4   : > { %v4485_v49 = vadd.f32 %v9649_v16, %v4401_v23  ;;  %v3834_v39 = vadd.f32 %v3833_v30, %v3764_v25  ;;  %v3923_v34 = vpop.f32.mrf.mxu3  ;;  %v4222_v16 = vadd.f32 %v9745_v9, %v9661_v56  ;;  %v10635_v30 = vld [vmem:[#allocation41_spill] sm:$0xff] }
 0x5a5   : > { %v3924_v20 = vadd.f32 %v3923_v34, %v3854_v61  ;;  %4019 = vmatmul.bf16.gmra.mxu0 %v10450_v37  ;;  %4901 = vmatpush.bf16.msra.mxu2 %v6163_v24 }
 0x5a6   : > { %v4203_v21 = vadd.f32 %v3834_v39, %v10630_v55  ;;  %4088 = vmatmul.bf16.gmra.mxu1 %v10615_v7  ;;  %4919 = vmatpush.bf16.msra.mxu3 %v6227_v32  ;;  %v4318_v7 = vmax.f32 %v4222_v16, 0.0 }
 0x5a7   : > { %v4128_v29 = vadd.f32 %v3924_v20, %v10631_v63 }
 0x5a8   : > { %v4309_v6 = vadd.f32 %v9522_v2, %v4203_v21  ;;  %6156 = vmatmul.msk.bf16.gmra.mxu2 %vm360_vm1, %v9458_v26  ;;  %6157 = vmatmul.msk.bf16.gmra.mxu3 %vm360_vm1, %v9462_v0 }
 0x5a9   : > { %v4234_v37 = vadd.f32 %v9745_v9, %v4128_v29 }
 0x5aa   : > { %v4405_v45 = vmax.f32 %v4309_v6, 0.0  ;;  %v3766_v40 = vpop.f32.mrf.mxu0 }
 0x5ab   : > { %v4330_v27 = vmax.f32 %v4234_v37, 0.0  ;;  %v3835_v8 = vpop.f32.mrf.mxu1  ;;  %v3857_v33 = vpop.f32.mrf.mxu2 }
 0x5ac   : > { %v4489_v56 = vadd.f32 %v9683_v17, %v4405_v45  ;;  %v3836_v31 = vadd.f32 %v3835_v8, %v3766_v40  ;;  %v3926_v47 = vpop.f32.mrf.mxu3  ;;  %v4322_v17 = vmax.f32 %v4226_v19, 0.0  ;;  %v10639_v8 = vld [vmem:[#allocation45_spill] sm:$0xff] }
 0x5ad   : > { %v4414_v1 = vadd.f32 %v4330_v27, %v4318_v7  ;;  %v3927_v57 = vadd.f32 %v3926_v47, %v3857_v33  ;;  %v10638_v7 = vld [vmem:[#allocation44_spill] sm:$0xff] }
 0x5ae   : > { %v9773_v60 = vpack.c.bf16 %v4489_v56, %v4485_v49  ;;  %v4207_v43 = vadd.f32 %v3836_v31, %v10632_v22  ;;  %v6837_v31 = vld [vmem:[%s10295_s4] sm:$0xf] }
 0x5af   : > { %v4132_v42 = vadd.f32 %v3927_v57, %v10633_v41  ;;  %v9806_v47 = vperm.slane %v6837_v31, 3 }
 0x5b0   : > { %v4313_v14 = vadd.f32 %v9522_v2, %v4207_v43  ;;  %v4230_v2 = vadd.f32 %v9745_v9, %v9729_v3  ;;  %v10637_v3 = vld [vmem:[#allocation43_spill] sm:$0xff] }
 0x5b1   : > { %v4238_v51 = vadd.f32 %v9745_v9, %v4132_v42 }
 0x5b2   : > { %v4409_v53 = vmax.f32 %v4313_v14, 0.0  ;;  %v3985_v62 = vpop.f32.mrf.mxu0  ;;  %v4326_v54 = vmax.f32 %v4230_v2, 0.0  ;;  %v10640_v14 = vld [vmem:[#allocation46_spill] sm:$0xff] }
 0x5b3   : > { %v4334_v38 = vmax.f32 %v4238_v51, 0.0  ;;  %v3859_v59 = vpop.f32.mrf.mxu2  ;;  %v4054_v10 = vpop.f32.mrf.mxu1 }
 0x5b4   : > { %v3928_v44 = vpop.f32.mrf.mxu3  ;;  %v4055_v5 = vadd.f32 %v4054_v10, %v3985_v62  ;;  %v9782_v36 = vadd.f32 %v9725_v52, %v4409_v53  ;;  %v10641_v53 = vld [vmem:[#allocation47_spill] sm:$0xff] }
 0x5b5   : > { %v4418_v23 = vadd.f32 %v4334_v38, %v4322_v17  ;;  %v3929_v25 = vadd.f32 %v3928_v44, %v3859_v59  ;;  %4024 = vmatmul.bf16.gmra.mxu0 %v10452_v58 }
 0x5b6   : > { %v4117_v18 = vadd.f32 %v4055_v5, %v10634_v50  ;;  %4093 = vmatmul.bf16.gmra.mxu1 %v10620_v48 }
 0x5b7   : > { %v4136_v61 = vadd.f32 %v3929_v25, %v10635_v30 }
 0x5b8   : > { %3901 = vmatmul.bf16.gmra.mxu2 %v10340_v4  ;;  %3970 = vmatmul.bf16.gmra.mxu3 %v10340_v4  ;;  %v4223_v42 = vadd.f32 %v9806_v47, %v4117_v18 }
 0x5b9   : > { %v4242_v52 = vadd.f32 %v9745_v9, %v4136_v61 }
 0x5ba   : > { %v3987_v35 = vpop.f32.mrf.mxu0  ;;  %v4319_v59 = vmax.f32 %v4223_v42, 0.0  ;;  %v10647_v42 = vld [vmem:[#allocation52_spill] sm:$0xff] }
 0x5bb   : > { %v4338_v49 = vmax.f32 %v4242_v52, 0.0  ;;  %v3862_v39 = vpop.f32.mrf.mxu2  ;;  %v4056_v58 = vpop.f32.mrf.mxu1 }
 0x5bc   : > { %v3931_v34 = vpop.f32.mrf.mxu3  ;;  %v4057_v24 = vadd.f32 %v4056_v58, %v3987_v35  ;;  %v10642_v35 = vld [vmem:[#allocation48_spill] sm:$0xff]  ;;  %v10643_v58 = vld [vmem:[#allocation49_spill] sm:$0xff] }
 0x5bd   : > { %v4422_v28 = vadd.f32 %v4338_v49, %v4326_v54  ;;  %v3932_v48 = vadd.f32 %v3931_v34, %v3862_v39  ;;  %v9821_v49 = vpack.c.bf16 %v9657_v15, %v9657_v15  ;;  %v9825_v39 = vpack.c.bf16 %v9782_v36, %v9782_v36 }
 0x5be   : > { %v4121_v20 = vadd.f32 %v4057_v24, %v10636_v11 }
 0x5bf   : > { %v4140_v32 = vadd.f32 %v3932_v48, %v10637_v3 }
 0x5c0   : > { %v4227_v18 = vadd.f32 %v9806_v47, %v4121_v20 }
 0x5c1   : > { %v4246_v55 = vadd.f32 %v9745_v9, %v4140_v32 }
 0x5c2   : > { %v3990_v21 = vpop.f32.mrf.mxu0 }
 0x5c3   : > { %v4342_v16 = vmax.f32 %v4246_v55, 0.0  ;;  %v3864_v63 = vpop.f32.mrf.mxu2  ;;  %v4059_v29 = vpop.f32.mrf.mxu1 }
 0x5c4   : > { %v3933_v6 = vpop.f32.mrf.mxu3  ;;  %v4060_v37 = vadd.f32 %v4059_v29, %v3990_v21 }
 0x5c5   : > { %v4426_v45 = vadd.f32 %v4414_v1, %v4342_v16  ;;  %v3934_v40 = vadd.f32 %v3933_v6, %v3864_v63  ;;  %4029 = vmatmul.bf16.gmra.mxu0 %v10625_v13  ;;  %v10644_v63 = vld [vmem:[#allocation20_spill] sm:$0xff]  ;;  %v10645_v6 = vld [vmem:[#allocation50_spill] sm:$0xff] }
 0x5c6   : > { %v4125_v27 = vadd.f32 %v4060_v37, %v10638_v7  ;;  %4098 = vmatmul.bf16.gmra.mxu1 %v10626_v46 }
 0x5c7   : > { %v4144_v33 = vadd.f32 %v3934_v40, %v10639_v8 }
 0x5c8   : > { %4902 = vmatmul.bf16.vlgmr.msra.gmra.mxu2 %v9636_v12  ;;  %4920 = vmatmul.bf16.vlgmr.msra.gmra.mxu3 %v9773_v60  ;;  %v4231_v16 = vadd.f32 %v9806_v47, %v4125_v27  ;;  %v10646_v27 = vld [vmem:[#allocation51_spill] sm:$0xff] }
 0x5c9   : > { %v4250_v56 = vadd.f32 %v9745_v9, %v4144_v33 }
 0x5ca   : > { %v3992_v1 = vpop.f32.mrf.mxu0  ;;  %v4327_v8 = vmax.f32 %v4231_v16, 0.0 }
 0x5cb   : > { %v4346_v13 = vmax.f32 %v4250_v56, 0.0  ;;  %v3867_v57 = vpop.f32.mrf.mxu2  ;;  %v4061_v22 = vpop.f32.mrf.mxu1 }
 0x5cc   : > { %v3936_v43 = vpop.f32.mrf.mxu3  ;;  %v4062_v46 = vadd.f32 %v4061_v22, %v3992_v1 }
 0x5cd   : > { %v4430_v19 = vadd.f32 %v4418_v23, %v4346_v13  ;;  %v3937_v41 = vadd.f32 %v3936_v43, %v3867_v57 }
 0x5ce   : > { %v4129_v51 = vadd.f32 %v4062_v46, %v10640_v14 }
 0x5cf   : > { %v4148_v62 = vadd.f32 %v3937_v41, %v10641_v53 }
 0x5d0   : > { %v4235_v17 = vadd.f32 %v9806_v47, %v4129_v51 }
 0x5d1   : > { %v4254_v38 = vadd.f32 %v9745_v9, %v4148_v62 }
 0x5d2   : > { %v4331_v10 = vmax.f32 %v4235_v17, 0.0  ;;  %v3995_v44 = vpop.f32.mrf.mxu0 }
 0x5d3   : > { %v4350_v5 = vmax.f32 %v4254_v38, 0.0  ;;  %v3869_v25 = vpop.f32.mrf.mxu2  ;;  %v4064_v50 = vpop.f32.mrf.mxu1 }
 0x5d4   : > { %v4415_v2 = vadd.f32 %v4331_v10, %v4319_v59  ;;  %v3938_v30 = vpop.f32.mrf.mxu3  ;;  %v4065_v23 = vadd.f32 %v4064_v50, %v3995_v44 }
 0x5d5   : > { %v4434_v61 = vadd.f32 %v4422_v28, %v4350_v5  ;;  %v3939_v52 = vadd.f32 %v3938_v30, %v3869_v25  ;;  %6158 = vmatmul.msk.bf16.gmra.mxu0 %vm360_vm1, %v9458_v26  ;;  %v4323_v28 = vmax.f32 %v4227_v18, 0.0  ;;  %v10648_v30 = vld [vmem:[#allocation53_spill] sm:$0xff] }
 0x5d6   : > { %v4133_v54 = vadd.f32 %v4065_v23, %v10642_v35  ;;  %6159 = vmatmul.msk.bf16.gmra.mxu1 %vm360_vm1, %v9462_v0 }
 0x5d7   : > { %v4152_v34 = vadd.f32 %v3939_v52, %v10643_v58  ;;  %v10649_v52 = vld [vmem:[#allocation54_spill] sm:$0xff] }
 0x5d8   : > { %v4239_v24 = vadd.f32 %v9806_v47, %v4133_v54  ;;  %4907 = vmatmul.bf16.gmra.mxu2 %v9821_v49  ;;  %4925 = vmatmul.bf16.gmra.mxu3 %v9825_v39 }
 0x5d9   : > { %v4258_v26 = vadd.f32 %v9745_v9, %v4152_v34 }
 0x5da   : > { %v4335_v0 = vmax.f32 %v4239_v24, 0.0  ;;  %v3997_v48 = vpop.f32.mrf.mxu0 }
 0x5db   : > { %v4354_v11 = vmax.f32 %v4258_v26, 0.0  ;;  %v3872_v15 = vpop.f32.mrf.mxu2  ;;  %v4066_v20 = vpop.f32.mrf.mxu1 }
 0x5dc   : > { %v4419_v3 = vadd.f32 %v4335_v0, %v4323_v28  ;;  %v3941_v32 = vpop.f32.mrf.mxu3  ;;  %v4067_v36 = vadd.f32 %v4066_v20, %v3997_v48  ;;  %v10651_v20 = vld [vmem:[#allocation56_spill] sm:$0xff] }
 0x5dd   : > { %v4438_v55 = vadd.f32 %v4426_v45, %v4354_v11  ;;  %v3942_v21 = vadd.f32 %v3941_v32, %v3872_v15 }
 0x5de   : > { %v4137_v29 = vadd.f32 %v4067_v36, %v10644_v63 }
 0x5df   : > { %v4156_v37 = vadd.f32 %v3942_v21, %v10645_v6 }
 0x5e0   : > { %v4243_v40 = vadd.f32 %v9806_v47, %v4137_v29 }
 0x5e1   : > { %v4262_v7 = vadd.f32 %v9745_v9, %v4156_v37 }
 0x5e2   : > { %v4339_v33 = vmax.f32 %v4243_v40, 0.0  ;;  %v4000_v56 = vpop.f32.mrf.mxu0 }
 0x5e3   : > { %v4358_v31 = vmax.f32 %v4262_v7, 0.0  ;;  %v3874_v1 = vpop.f32.mrf.mxu2  ;;  %v4069_v13 = vpop.f32.mrf.mxu1 }
 0x5e4   : > { %v4423_v57 = vadd.f32 %v4339_v33, %v4327_v8  ;;  %v3943_v22 = vpop.f32.mrf.mxu3  ;;  %v4070_v45 = vadd.f32 %v4069_v13, %v4000_v56 }
 0x5e5   : > { %v4442_v43 = vadd.f32 %v4430_v19, %v4358_v31  ;;  %v3944_v46 = vadd.f32 %v3943_v22, %v3874_v1  ;;  %4039 = vmatmul.bf16.gmra.mxu0 %v10340_v4  ;;  %v10653_v31 = vld [vmem:[#allocation57_spill] sm:$0xff] }
 0x5e6   : > { %v4141_v41 = vadd.f32 %v4070_v45, %v10646_v27  ;;  %4108 = vmatmul.bf16.gmra.mxu1 %v10340_v4 }
 0x5e7   : > { %v4160_v14 = vadd.f32 %v3944_v46, %v10647_v42 }
 0x5e8   : > { %v4247_v51 = vadd.f32 %v9806_v47, %v4141_v41 }
 0x5e9   : > { %v4266_v53 = vadd.f32 %v9745_v9, %v4160_v14 }
 0x5ea   : > { %v4343_v62 = vmax.f32 %v4247_v51, 0.0  ;;  %v4002_v17 = vpop.f32.mrf.mxu0 }
 0x5eb   : > { %v4362_v38 = vmax.f32 %v4266_v53, 0.0  ;;  %v3877_v59 = vpop.f32.mrf.mxu2  ;;  %v4071_v10 = vpop.f32.mrf.mxu1 }
 0x5ec   : > { %v4427_v44 = vadd.f32 %v4415_v2, %v4343_v62  ;;  %v3946_v19 = vpop.f32.mrf.mxu3  ;;  %v4072_v5 = vadd.f32 %v4071_v10, %v4002_v17  ;;  %v10654_v62 = vld [vmem:[#allocation58_spill] sm:$0xff]  ;;  %v6346_v10 = vld [vmem:[%s10296_s5 + $0x170] sm:$0xf] }
 0x5ed   : > { %v4446_v25 = vadd.f32 %v4434_v61, %v4362_v38  ;;  %v3947_v50 = vadd.f32 %v3946_v19, %v3877_v59  ;;  %v10650_v61 = vld [vmem:[#allocation55_spill] sm:$0xff]  ;;  %v6670_v19 = vld [vmem:[%s10296_s5 + $0x174] sm:$0xf0] }
 0x5ee   : > { %v4145_v23 = vadd.f32 %v4072_v5, %v10648_v30  ;;  %v10655_v38 = vld [vmem:[#allocation59_spill] sm:$0xff]  ;;  %v6347_v5 = vor.u32 %v6670_v19, %v6346_v10 }
 0x5ef   : > { %v4164_v4 = vadd.f32 %v3947_v50, %v10649_v52 }
 0x5f0   : > { %v4251_v18 = vadd.f32 %v9806_v47, %v4145_v23  ;;  %4930 = vmatpush.bf16.msrb.mxu2 %v6347_v5 }
 0x5f1   : > { %v4270_v35 = vadd.f32 %v9745_v9, %v4164_v4 }
 0x5f2   : > { %v4347_v54 = vmax.f32 %v4251_v18, 0.0  ;;  %v4005_v58 = vpop.f32.mrf.mxu0  ;;  %v6338_v18 = vld [vmem:[%s10296_s5 + $0x160] sm:$0xf] }
 0x5f3   : > { %v4366_v34 = vmax.f32 %v4270_v35, 0.0  ;;  %v3879_v24 = vpop.f32.mrf.mxu2  ;;  %v4074_v26 = vpop.f32.mrf.mxu1  ;;  %v6668_v35 = vld [vmem:[%s10296_s5 + $0x164] sm:$0xf0] }
 0x5f4   : > { %v4431_v28 = vadd.f32 %v4419_v3, %v4347_v54  ;;  %v3948_v0 = vpop.f32.mrf.mxu3  ;;  %v4075_v2 = vadd.f32 %v4074_v26, %v4005_v58 }
 0x5f5   : > { %v4450_v48 = vadd.f32 %v4438_v55, %v4366_v34  ;;  %v3949_v11 = vadd.f32 %v3948_v0, %v3879_v24  ;;  %v10652_v55 = vld [vmem:[#allocation21_spill] sm:$0xff]  ;;  %v6339_v24 = vor.u32 %v6668_v35, %v6338_v18  ;;  %v6298_v18 = vld [vmem:[%s10296_s5 + $0x110] sm:$0xf] }
 0x5f6   : > { %v4149_v15 = vadd.f32 %v4075_v2, %v10650_v61  ;;  %v10656_v2 = vld [vmem:[#allocation60_spill] sm:$0xff]  ;;  %v10657_v61 = vld [vmem:[#allocation61_spill] sm:$0xff] }
 0x5f7   : > { %v4168_v32 = vadd.f32 %v3949_v11, %v10651_v20  ;;  %4931 = vmatpush.bf16.msrb.mxu2 %v6339_v24  ;;  %v6330_v20 = vld [vmem:[%s10296_s5 + $0x150] sm:$0xf] }
 0x5f8   : > { %v4255_v36 = vadd.f32 %v9806_v47, %v4149_v15 }
 0x5f9   : > { %v4274_v21 = vadd.f32 %v9745_v9, %v4168_v32 }
 0x5fa   : > { %v4351_v16 = vmax.f32 %v4255_v36, 0.0  ;;  %v4007_v63 = vpop.f32.mrf.mxu0 }
 0x5fb   : > { %v4370_v29 = vmax.f32 %v4274_v21, 0.0  ;;  %v3882_v6 = vpop.f32.mrf.mxu2  ;;  %v4076_v37 = vpop.f32.mrf.mxu1 }
 0x5fc   : > { %v4435_v40 = vadd.f32 %v4423_v57, %v4351_v16  ;;  %v3951_v7 = vpop.f32.mrf.mxu3  ;;  %v4077_v3 = vadd.f32 %v4076_v37, %v4007_v63  ;;  %v6322_v37 = vld [vmem:[%s10296_s5 + $0x140] sm:$0xf] }
 0x5fd   : > { %v4454_v8 = vadd.f32 %v4442_v43, %v4370_v29  ;;  %v3952_v33 = vadd.f32 %v3951_v7, %v3882_v6  ;;  %v6664_v7 = vld [vmem:[%s10296_s5 + $0x144] sm:$0xf0] }
 0x5fe   : > { %v4153_v56 = vadd.f32 %v4077_v3, %v10652_v55 }
 0x5ff   : > { %v4172_v1 = vadd.f32 %v3952_v33, %v10653_v31 }
 0x600   : > { %v4259_v13 = vadd.f32 %v9806_v47, %v4153_v56  ;;  %v6323_v56 = vor.u32 %v6664_v7, %v6322_v37  ;;  %v6637_v37 = vld [vmem:[%s10296_s5 + $0x74] sm:$0xf] }
 0x601   : > { %v4278_v22 = vadd.f32 %v9745_v9, %v4172_v1 }
 0x602   : > { %v4355_v45 = vmax.f32 %v4259_v13, 0.0  ;;  %v4010_v46 = vpop.f32.mrf.mxu0  ;;  %v10658_v13 = vld [vmem:[#allocation62_spill] sm:$0xff] }
 0x603   : > { %v4374_v27 = vmax.f32 %v4278_v22, 0.0  ;;  %v3884_v41 = vpop.f32.mrf.mxu2  ;;  %v4079_v42 = vpop.f32.mrf.mxu1 }
 0x604   : > { %v9855_v14 = vadd.f32 %v4427_v44, %v4355_v45  ;;  %v3953_v57 = vpop.f32.mrf.mxu3  ;;  %v4080_v51 = vadd.f32 %v4079_v42, %v4010_v46  ;;  %v10659_v45 = vld [vmem:[#allocation63_spill] sm:$0xff] }
 0x605   : > { %v9857_v53 = vadd.f32 %v4446_v25, %v4374_v27  ;;  %v3954_v43 = vadd.f32 %v3953_v57, %v3884_v41  ;;  %v6314_v27 = vld [vmem:[%s10296_s5 + $0x130] sm:$0xf] }
 0x606   : > { %v4157_v17 = vadd.f32 %v4080_v51, %v10654_v62 }
 0x607   : > { %v4176_v59 = vadd.f32 %v3954_v43, %v10655_v38  ;;  %v6306_v38 = vld [vmem:[%s10296_s5 + $0x120] sm:$0xf] }
 0x608   : > { %v4263_v44 = vadd.f32 %v9806_v47, %v4157_v17 }
 0x609   : > { %v4282_v50 = vadd.f32 %v9745_v9, %v4176_v59  ;;  %v6660_v59 = vld [vmem:[%s10296_s5 + $0x124] sm:$0xf0] }
 0x60a   : > { %v4359_v25 = vmax.f32 %v4263_v44, 0.0  ;;  %v4012_v30 = vpop.f32.mrf.mxu0  ;;  %v6307_v5 = vor.u32 %v6660_v59, %v6306_v38  ;;  %v6410_v38 = vld [vmem:[%s10296_s5 + $0x1f0] sm:$0xf]  ;;  %v6633_v59 = vld [vmem:[%s10296_s5 + $0x54] sm:$0xf] }
 0x60b   : > { %v4378_v23 = vmax.f32 %v4282_v50, 0.0  ;;  %v3887_v52 = vpop.f32.mrf.mxu2  ;;  %v4081_v4 = vpop.f32.mrf.mxu1 }
 0x60c   : > { %v9875_v54 = vadd.f32 %v4431_v28, %v4359_v25  ;;  %v3956_v58 = vpop.f32.mrf.mxu3  ;;  %v4082_v34 = vadd.f32 %v4081_v4, %v4012_v30  ;;  %v6666_v28 = vld [vmem:[%s10296_s5 + $0x154] sm:$0xf0]  ;;  %v10660_v30 = vld [vmem:[#allocation64_spill] sm:$0xff] }
 0x60d   : > { %v9877_v26 = vadd.f32 %v4450_v48, %v4378_v23  ;;  %v3957_v0 = vadd.f32 %v3956_v58, %v3887_v52  ;;  %v6331_v36 = vor.u32 %v6666_v28, %v6330_v20  ;;  %v10661_v52 = vld [vmem:[#allocation65_spill] sm:$0xff] }
 0x60e   : > { %v4161_v11 = vadd.f32 %v4082_v34, %v10656_v2 }
 0x60f   : > { %v4180_v15 = vadd.f32 %v3957_v0, %v10657_v61  ;;  %4932 = vmatpush.bf16.msrb.mxu2 %v6331_v36  ;;  %v6290_v61 = vld [vmem:[%s10296_s5 + $0x100] sm:$0xf] }
 0x610   : > { %v4267_v32 = vadd.f32 %v9806_v47, %v4161_v11 }
 0x611   : > { %v4286_v48 = vadd.f32 %v9745_v9, %v4180_v15  ;;  %v6656_v15 = vld [vmem:[%s10296_s5 + $0x104] sm:$0xf0] }
 0x612   : > { %v4363_v21 = vmax.f32 %v4267_v32, 0.0  ;;  %v4015_v16 = vpop.f32.mrf.mxu0  ;;  %v6291_v36 = vor.u32 %v6656_v15, %v6290_v61 }
 0x613   : > { %v4382_v63 = vmax.f32 %v4286_v48, 0.0  ;;  %v3889_v29 = vpop.f32.mrf.mxu2  ;;  %v4084_v6 = vpop.f32.mrf.mxu1  ;;  %4933 = vmatpush.bf16.msrb.mxu2 %v6323_v56 }
 0x614   : > { %v9895_v3 = vadd.f32 %v4435_v40, %v4363_v21  ;;  %v3958_v33 = vpop.f32.mrf.mxu3  ;;  %v4085_v55 = vadd.f32 %v4084_v6, %v4015_v16  ;;  %v6662_v40 = vld [vmem:[%s10296_s5 + $0x134] sm:$0xf0]  ;;  %v10662_v16 = vld [vmem:[#allocation66_spill] sm:$0xff] }
 0x615   : > { %v9897_v31 = vadd.f32 %v4454_v8, %v4382_v63  ;;  %v3959_v1 = vadd.f32 %v3958_v33, %v3889_v29  ;;  %v6315_v42 = vor.u32 %v6662_v40, %v6314_v27  ;;  %v10663_v29 = vld [vmem:[#allocation67_spill] sm:$0xff] }
 0x616   : > { %v4165_v22 = vadd.f32 %v4085_v55, %v10658_v13 }
 0x617   : > { %v4184_v46 = vadd.f32 %v3959_v1, %v10659_v45  ;;  %4934 = vmatpush.bf16.msrb.mxu2 %v6315_v42  ;;  %v6635_v45 = vld [vmem:[%s10296_s5 + $0x64] sm:$0xf] }
 0x618   : > { %v4271_v41 = vadd.f32 %v9806_v47, %v4165_v22 }
 0x619   : > { %v4290_v8 = vadd.f32 %v9745_v9, %v4184_v46  ;;  %v6212_v46 = vld [vmem:[%s10296_s5 + $0x68] sm:$0xf0] }
 0x61a   : > { %v4367_v57 = vmax.f32 %v4271_v41, 0.0  ;;  %v4017_v51 = vpop.f32.mrf.mxu0  ;;  %v6215_v42 = vor.u32 %v6635_v45, %v6212_v46 }
 0x61b   : > { %v4386_v43 = vmax.f32 %v4290_v8, 0.0  ;;  %v3892_v62 = vpop.f32.mrf.mxu2  ;;  %v4086_v17 = vpop.f32.mrf.mxu1  ;;  %4935 = vmatpush.bf16.msrb.mxu2 %v6307_v5 }
 0x61c   : > { %v9916_v10 = vadd.f32 %v9855_v14, %v4367_v57  ;;  %v3961_v19 = vpop.f32.mrf.mxu3  ;;  %v4087_v44 = vadd.f32 %v4086_v17, %v4017_v51  ;;  %v6658_v14 = vld [vmem:[%s10296_s5 + $0x114] sm:$0xf0]  ;;  %v10664_v51 = vld [vmem:[#allocation68_spill] sm:$0xff] }
 0x61d   : > { %v9919_v50 = vadd.f32 %v9857_v53, %v4386_v43  ;;  %v3962_v25 = vadd.f32 %v3961_v19, %v3892_v62  ;;  %v6299_v58 = vor.u32 %v6658_v14, %v6298_v18  ;;  %v10665_v62 = vld [vmem:[#allocation69_spill] sm:$0xff]  ;;  %v6402_v14 = vld [vmem:[%s10296_s5 + $0x1e0] sm:$0xf] }
 0x61e   : > { %v4169_v23 = vadd.f32 %v4087_v44, %v10660_v30  ;;  %v6204_v44 = vld [vmem:[%s10296_s5 + $0x58] sm:$0xf0] }
 0x61f   : > { %v4188_v4 = vadd.f32 %v3962_v25, %v10661_v52  ;;  %4936 = vmatpush.bf16.msrb.mxu2 %v6299_v58  ;;  %v6207_v25 = vor.u32 %v6633_v59, %v6204_v44  ;;  %v6678_v59 = vld [vmem:[%s10296_s5 + $0x1b4] sm:$0xf0]  ;;  %v6172_v44 = vld [vmem:[%s10296_s5 + $0x18] sm:$0xf0] }
 0x620   : > { %v4275_v35 = vadd.f32 %v9806_v47, %v4169_v23 }
 0x621   : > { %v4294_v53 = vadd.f32 %v9745_v9, %v4188_v4 }
 0x622   : > { %v4371_v34 = vmax.f32 %v4275_v35, 0.0  ;;  %v4020_v24 = vpop.f32.mrf.mxu0  ;;  %v6684_v35 = vld [vmem:[%s10296_s5 + $0x1e4] sm:$0xf0] }
 0x623   : > { %v4390_v0 = vmax.f32 %v4294_v53, 0.0  ;;  %v3894_v2 = vpop.f32.mrf.mxu2  ;;  %v4089_v11 = vpop.f32.mrf.mxu1  ;;  %4937 = vmatpush.bf16.msrb.mxu2 %v6291_v36 }
 0x624   : > { %v9938_v20 = vadd.f32 %v9875_v54, %v4371_v34  ;;  %v3963_v28 = vpop.f32.mrf.mxu3  ;;  %v4090_v32 = vadd.f32 %v4089_v11, %v4020_v24  ;;  %v6220_v54 = vld [vmem:[%s10296_s5 + $0x78] sm:$0xf0]  ;;  %v6403_v24 = vor.u32 %v6684_v35, %v6402_v14  ;;  %v6370_v14 = vld [vmem:[%s10296_s5 + $0x1a0] sm:$0xf]  ;;  %v6676_v35 = vld [vmem:[%s10296_s5 + $0x1a4] sm:$0xf0] }
 0x625   : > { %v9941_v48 = vadd.f32 %v9877_v26, %v4390_v0  ;;  %v3964_v21 = vadd.f32 %v3963_v28, %v3894_v2  ;;  %v6223_v33 = vor.u32 %v6637_v37, %v6220_v54  ;;  %v6631_v0 = vld [vmem:[%s10296_s5 + $0x44] sm:$0xf]  ;;  %v6196_v2 = vld [vmem:[%s10296_s5 + $0x48] sm:$0xf0] }
 0x626   : > { %v4173_v63 = vadd.f32 %v4090_v32, %v10662_v16  ;;  %v6199_v61 = vor.u32 %v6631_v0, %v6196_v2  ;;  %v10666_v28 = vld [vmem:[#allocation70_spill] sm:$0xff]  ;;  %v6682_v16 = vld [vmem:[%s10296_s5 + $0x1d4] sm:$0xf0]  ;;  %v6371_v0 = vor.u32 %v6676_v35, %v6370_v14 }
 0x627   : > { %v4192_v6 = vadd.f32 %v3964_v21, %v10663_v29  ;;  %4966 = vmatpush.bf16.msra.mxu2 %v6223_v33  ;;  %v6394_v21 = vld [vmem:[%s10296_s5 + $0x1d0] sm:$0xf]  ;;  %v6623_v2 = vld [vmem:[%s10296_s5 + $0x4] sm:$0xf] }
 0x628   : > { %v4279_v7 = vadd.f32 %v9806_v47, %v4173_v63  ;;  %v6629_v63 = vld [vmem:[%s10296_s5 + $0x34] sm:$0xf]  ;;  %v6395_v29 = vor.u32 %v6682_v16, %v6394_v21  ;;  %v10671_v16 = vld [vmem:[#allocation75_spill] sm:$0xff]  ;;  %v6663_v35 = vld [vmem:[%s10296_s5 + $0x144] sm:$0xf] }
 0x629   : > { %v4298_v26 = vadd.f32 %v9745_v9, %v4192_v6  ;;  %v6188_v6 = vld [vmem:[%s10296_s5 + $0x38] sm:$0xf0] }
 0x62a   : > { %v4375_v55 = vmax.f32 %v4279_v7, 0.0  ;;  %v4022_v56 = vpop.f32.mrf.mxu0  ;;  %v6191_v54 = vor.u32 %v6629_v63, %v6188_v6 }
 0x62b   : > { %v4394_v1 = vmax.f32 %v4298_v26, 0.0  ;;  %v3897_v13 = vpop.f32.mrf.mxu2  ;;  %v4091_v22 = vpop.f32.mrf.mxu1  ;;  %4967 = vmatpush.bf16.msra.mxu2 %v6215_v42  ;;  %v6180_v42 = vld [vmem:[%s10296_s5 + $0x28] sm:$0xf0] }
 0x62c   : > { %v9960_v27 = vadd.f32 %v9895_v3, %v4375_v55  ;;  %v3966_v40 = vpop.f32.mrf.mxu3  ;;  %v4092_v41 = vadd.f32 %v4091_v22, %v4022_v56  ;;  %v6686_v3 = vld [vmem:[%s10296_s5 + $0x1f4] sm:$0xf0] }
 0x62d   : > { %v9963_v8 = vadd.f32 %v9897_v31, %v4394_v1  ;;  %v3967_v57 = vadd.f32 %v3966_v40, %v3897_v13  ;;  %v6411_v19 = vor.u32 %v6686_v3, %v6410_v38  ;;  %v6386_v1 = vld [vmem:[%s10296_s5 + $0x1c0] sm:$0xf]  ;;  %v6680_v13 = vld [vmem:[%s10296_s5 + $0x1c4] sm:$0xf0]  ;;  %v6378_v3 = vld [vmem:[%s10296_s5 + $0x1b0] sm:$0xf] }
 0x62e   : > { %v4177_v43 = vadd.f32 %v4092_v41, %v10664_v51  ;;  %v6387_v40 = vor.u32 %v6680_v13, %v6386_v1  ;;  %v6627_v41 = vld [vmem:[%s10296_s5 + $0x24] sm:$0xf] }
 0x62f   : > { %v4196_v17 = vadd.f32 %v3967_v57, %v10665_v62  ;;  %4948 = vmatpush.bf16.msrb.mxu3 %v6411_v19  ;;  %4968 = vmatpush.bf16.msra.mxu2 %v6207_v25  ;;  %v10668_v62 = vld [vmem:[#allocation72_spill] sm:$0xff]  ;;  %v6379_v19 = vor.u32 %v6678_v59, %v6378_v3 }
 0x630   : > { %v4283_v31 = vadd.f32 %v9806_v47, %v4177_v43  ;;  %v6183_v43 = vor.u32 %v6627_v41, %v6180_v42  ;;  %v6653_v59 = vld [vmem:[%s10296_s5 + $0xf4] sm:$0xf] }
 0x631   : > { %v4302_v5 = vadd.f32 %v9745_v9, %v4196_v17 }
 0x632   : > { %v4379_v30 = vmax.f32 %v4283_v31, 0.0  ;;  %v4025_v23 = vpop.f32.mrf.mxu0 }
 0x633   : > { %v4398_v52 = vmax.f32 %v4302_v5, 0.0  ;;  %v3899_v4 = vpop.f32.mrf.mxu2  ;;  %v4094_v18 = vpop.f32.mrf.mxu1  ;;  %4949 = vmatpush.bf16.msrb.mxu3 %v6403_v24  ;;  %4969 = vmatpush.bf16.msra.mxu2 %v6199_v61 }
 0x634   : > { %v9988_v58 = vadd.f32 %v9916_v10, %v4379_v30  ;;  %v3968_v53 = vpop.f32.mrf.mxu3  ;;  %v4095_v34 = vadd.f32 %v4094_v18, %v4025_v23  ;;  %v10667_v10 = vld [vmem:[#allocation71_spill] sm:$0xff] }
 0x635   : > { %v3969_v11 = vadd.f32 %v3968_v53, %v3899_v4  ;;  %v9997_v15 = vadd.f32 %v9919_v50, %v4398_v52 }
 0x636   : > { %v4181_v32 = vadd.f32 %v4095_v34, %v10666_v28 }
 0x637   : > { %v4200_v36 = vadd.f32 %v3969_v11, %v10667_v10  ;;  %4950 = vmatpush.bf16.msrb.mxu3 %v6395_v29  ;;  %4970 = vmatpush.bf16.msra.mxu2 %v6191_v54  ;;  %v6164_v11 = vld [vmem:[%s10296_s5 + $0x8] sm:$0xf0]  ;;  %v10670_v10 = vld [vmem:[#allocation74_spill] sm:$0xff]  ;;  %v6669_v29 = vld [vmem:[%s10296_s5 + $0x174] sm:$0xf] }
 0x638   : > { %v4287_v50 = vadd.f32 %v9806_v47, %v4181_v32  ;;  %v10066_v32 = vld [vmem:[%s10297_s6] sm:$0x3] }
 0x639   : > { %v4306_v37 = vadd.f32 %v9745_v9, %v4200_v36 }
 0x63a   : > { %v4383_v7 = vmax.f32 %v4287_v50, 0.0  ;;  %v4027_v33 = vpop.f32.mrf.mxu0  ;;  %v6362_v50 = vld [vmem:[%s10296_s5 + $0x190] sm:$0xf] }
 0x63b   : > { %v4402_v26 = vmax.f32 %v4306_v37, 0.0  ;;  %v3902_v55 = vpop.f32.mrf.mxu2  ;;  %v4096_v56 = vpop.f32.mrf.mxu1  ;;  %4951 = vmatpush.bf16.msrb.mxu3 %v6387_v40  ;;  %4971 = vmatpush.bf16.msra.mxu2 %v6183_v43  ;;  %v10083_v37 = vperm.slane %v10066_v32, 0  ;;  %v6672_v40 = vld [vmem:[%s10296_s5 + $0x184] sm:$0xf0]  ;;  %v6667_v43 = vld [vmem:[%s10296_s5 + $0x164] sm:$0xf] }
 0x63c   : > { %v10022_v22 = vadd.f32 %v9938_v20, %v4383_v7  ;;  %v3971_v45 = vpop.f32.mrf.mxu3  ;;  %v4097_v46 = vadd.f32 %v4096_v56, %v4027_v33  ;;  %v10669_v20 = vld [vmem:[#allocation73_spill] sm:$0xff] }
 0x63d   : > { %v4486_v57 = vadd.f32 %v9941_v48, %v4402_v26  ;;  %v3972_v51 = vadd.f32 %v3971_v45, %v3902_v55  ;;  %v6625_v48 = vld [vmem:[%s10296_s5 + $0x14] sm:$0xf]  ;;  %v6348_v7 = vld [vmem:[%s10296_s5 + $0x178] sm:$0xf0] }
 0x63e   : > { %v4185_v17 = vadd.f32 %v4097_v46, %v10668_v62  ;;  %v6175_v25 = vor.u32 %v6625_v48, %v6172_v44  ;;  %v6351_v26 = vor.u32 %v6669_v29, %v6348_v7  ;;  %v6354_v46 = vld [vmem:[%s10296_s5 + $0x180] sm:$0xf]  ;;  %v6340_v62 = vld [vmem:[%s10296_s5 + $0x168] sm:$0xf0]  ;;  %v6284_v48 = vld [vmem:[%s10296_s5 + $0xf8] sm:$0xf0] }
 0x63f   : > { %v4204_v38 = vadd.f32 %v3972_v51, %v10669_v20  ;;  %4952 = vmatpush.bf16.msrb.mxu3 %v6379_v19  ;;  %v6355_v51 = vor.u32 %v6672_v40, %v6354_v46  ;;  %v6343_v20 = vor.u32 %v6667_v43, %v6340_v62  ;;  %v6287_v19 = vor.u32 %v6653_v59, %v6284_v48  ;;  %v6332_v44 = vld [vmem:[%s10296_s5 + $0x158] sm:$0xf0]  ;;  %v6260_v7 = vld [vmem:[%s10296_s5 + $0xc8] sm:$0xf0]  ;;  %v6643_v59 = vld [vmem:[%s10296_s5 + $0xa4] sm:$0xf] }
 0x640   : > { %v4291_v31 = vadd.f32 %v9806_v47, %v4185_v17  ;;  %4972 = vmatpush.bf16.msra.mxu2 %v6175_v25  ;;  %v6316_v29 = vld [vmem:[%s10296_s5 + $0x138] sm:$0xf0]  ;;  %v6244_v48 = vld [vmem:[%s10296_s5 + $0xa8] sm:$0xf0] }
 0x641   : > { %v4310_v5 = vadd.f32 %v9745_v9, %v4204_v38  ;;  %v10672_v38 = vld [vmem:[#allocation10_spill] sm:$0xff] }
 0x642   : > { %v4387_v30 = vmax.f32 %v4291_v31, 0.0  ;;  %v4030_v23 = vpop.f32.mrf.mxu0  ;;  %v6665_v31 = vld [vmem:[%s10296_s5 + $0x154] sm:$0xf] }
 0x643   : > { %v4406_v52 = vmax.f32 %v4310_v5, 0.0  ;;  %v3904_v4 = vpop.f32.mrf.mxu2  ;;  %v4099_v18 = vpop.f32.mrf.mxu1  ;;  %4953 = vmatpush.bf16.msrb.mxu3 %v6371_v0  ;;  %v6335_v5 = vor.u32 %v6665_v31, %v6332_v44 }
 0x644   : > { %v10054_v53 = vadd.f32 %v9960_v27, %v4387_v30  ;;  %v3973_v34 = vpop.f32.mrf.mxu3  ;;  %v4100_v24 = vadd.f32 %v4099_v18, %v4030_v23  ;;  %v6167_v27 = vor.u32 %v6623_v2, %v6164_v11  ;;  %v6651_v23 = vld [vmem:[%s10296_s5 + $0xe4] sm:$0xf] }
 0x645   : > { %v4490_v61 = vadd.f32 %v9963_v8, %v4406_v52  ;;  %v3974_v28 = vadd.f32 %v3973_v34, %v3904_v4  ;;  %v6674_v8 = vld [vmem:[%s10296_s5 + $0x194] sm:$0xf0]  ;;  %v6276_v52 = vld [vmem:[%s10296_s5 + $0xe8] sm:$0xf0] }
 0x646   : > { %v4189_v36 = vadd.f32 %v4100_v24, %v10670_v10  ;;  %4973 = vmatpush.bf16.msra.mxu2 %v6167_v27  ;;  %v6363_v54 = vor.u32 %v6674_v8, %v6362_v50  ;;  %v6279_v14 = vor.u32 %v6651_v23, %v6276_v52  ;;  %v6324_v34 = vld [vmem:[%s10296_s5 + $0x148] sm:$0xf0] }
 0x647   : > { %v10069_v21 = vpack.c.bf16 %v4490_v61, %v4486_v57  ;;  %v4208_v63 = vadd.f32 %v3974_v28, %v10671_v16  ;;  %v6327_v61 = vor.u32 %v6663_v35, %v6324_v34  ;;  %v10673_v28 = vld [vmem:[#allocation11_spill] sm:$0xff]  ;;  %v6649_v16 = vld [vmem:[%s10296_s5 + $0xd4] sm:$0xf] }
 0x648   : > { %v4295_v6 = vadd.f32 %v9806_v47, %v4189_v36  ;;  %4954 = vmatpush.bf16.msrb.mxu3 %v6363_v54  ;;  %v6647_v54 = vld [vmem:[%s10296_s5 + $0xc4] sm:$0xf] }
 0x649   : > { %v4314_v33 = vadd.f32 %v9745_v9, %v4208_v63  ;;  %4938 = vmatmul.bf16.vlgmr.msrb.gmra.mxu2 %v10069_v21  ;;  %v6661_v63 = vld [vmem:[%s10296_s5 + $0x134] sm:$0xf] }
 0x64a   : > { %v4391_v55 = vmax.f32 %v4295_v6, 0.0  ;;  %v4032_v56 = vpop.f32.mrf.mxu0  ;;  %5002 = vmatpush.bf16.msrb.mxu2 %v6351_v26  ;;  %v6319_v6 = vor.u32 %v6661_v63, %v6316_v29 }
 0x64b   : > { %v4410_v1 = vmax.f32 %v4314_v33, 0.0  ;;  %v4101_v13 = vpop.f32.mrf.mxu1  ;;  %v4903_v45 = vpop.f32.mrf.mxu2  ;;  %v6659_v33 = vld [vmem:[%s10296_s5 + $0x124] sm:$0xf] }
 0x64c   : > { %v10097_v9 = vadd.f32 %v9988_v58, %v4391_v55  ;;  %v4102_v41 = vadd.f32 %v4101_v13, %v4032_v56  ;;  %v4904_v42 = vadd.f32 %v4903_v45, %v10083_v37  ;;  %v4921_v57 = vpop.f32.mrf.mxu3  ;;  %4955 = vmatpush.bf16.msrb.mxu3 %v6355_v51  ;;  %v6263_v56 = vor.u32 %v6647_v54, %v6260_v7  ;;  %v10674_v51 = vld [vmem:[#allocation14_spill] sm:$0xff]  ;;  %v6412_v7 = vld [vmem:[%s10296_s5 + $0x1f8] sm:$0xf0] }
 0x64d   : > { %v4494_v17 = vadd.f32 %v9997_v15, %v4410_v1  ;;  %v6308_v1 = vld [vmem:[%s10296_s5 + $0x128] sm:$0xf0] }
 0x64e   : > { %v4193_v3 = vadd.f32 %v4102_v41, %v10672_v38  ;;  %v10108_v58 = vadd.f32 %v4921_v57, %v4904_v42  ;;  %5003 = vmatpush.bf16.msrb.mxu2 %v6343_v20  ;;  %v6311_v46 = vor.u32 %v6659_v33, %v6308_v1  ;;  %v6252_v20 = vld [vmem:[%s10296_s5 + $0xb8] sm:$0xf0] }
 0x64f   : > { %v10142_v36 = vpack.c.bf16 %v4494_v17, %v4494_v17  ;;  %v6645_v17 = vld [vmem:[%s10296_s5 + $0xb4] sm:$0xf] }
 0x650   : > { %v4299_v15 = vadd.f32 %v9806_v47, %v4193_v3  ;;  %4984 = vmatpush.bf16.msra.mxu3 %v6287_v19  ;;  %v6255_v38 = vor.u32 %v6645_v17, %v6252_v20  ;;  %v6300_v3 = vld [vmem:[%s10296_s5 + $0x118] sm:$0xf0]  ;;  %v6292_v19 = vld [vmem:[%s10296_s5 + $0x108] sm:$0xf0]  ;;  %v6675_v17 = vld [vmem:[%s10296_s5 + $0x1a4] sm:$0xf] }
 0x651   : > { %v6372_v20 = vld [vmem:[%s10296_s5 + $0x1a8] sm:$0xf0] }
 0x652   : > { %v4395_v25 = vmax.f32 %v4299_v15, 0.0  ;;  %v4035_v30 = vpop.f32.mrf.mxu0  ;;  %5004 = vmatpush.bf16.msrb.mxu2 %v6335_v5  ;;  %v6655_v15 = vld [vmem:[%s10296_s5 + $0x104] sm:$0xf] }
 0x653   : > { %v4104_v4 = vpop.f32.mrf.mxu1  ;;  %v4905_v18 = vpop.f32.mrf.mxu2  ;;  %v6295_v52 = vor.u32 %v6655_v15, %v6292_v19 }
 0x654   : > { %v10136_v24 = vadd.f32 %v10022_v22, %v4395_v25  ;;  %v4105_v0 = vadd.f32 %v4104_v4, %v4035_v30  ;;  %v4906_v2 = vadd.f32 %v4905_v18, %v10083_v37  ;;  %v4923_v11 = vpop.f32.mrf.mxu3  ;;  %4985 = vmatpush.bf16.msra.mxu3 %v6279_v14  ;;  %v6268_v22 = vld [vmem:[%s10296_s5 + $0xd8] sm:$0xf0]  ;;  %v6247_v25 = vor.u32 %v6643_v59, %v6244_v48  ;;  %v6641_v4 = vld [vmem:[%s10296_s5 + $0x94] sm:$0xf]  ;;  %v6671_v59 = vld [vmem:[%s10296_s5 + $0x184] sm:$0xf] }
 0x655   : > { %v6271_v8 = vor.u32 %v6649_v16, %v6268_v22  ;;  %v6236_v18 = vld [vmem:[%s10296_s5 + $0x98] sm:$0xf0]  ;;  %v6356_v48 = vld [vmem:[%s10296_s5 + $0x188] sm:$0xf0] }
 0x656   : > { %v4197_v27 = vadd.f32 %v4105_v0, %v10673_v28  ;;  %v10140_v10 = vadd.f32 %v4923_v11, %v4906_v2  ;;  %5005 = vmatpush.bf16.msrb.mxu2 %v6327_v61  ;;  %v10675_v0 = vld [vmem:[#allocation12_spill] sm:$0xff]  ;;  %v6239_v11 = vor.u32 %v6641_v4, %v6236_v18  ;;  %v6639_v28 = vld [vmem:[%s10296_s5 + $0x84] sm:$0xf] }
 0x658   : > { %v4303_v50 = vadd.f32 %v9806_v47, %v4197_v27  ;;  %4986 = vmatpush.bf16.msra.mxu3 %v6271_v8  ;;  %v6228_v27 = vld [vmem:[%s10296_s5 + $0x88] sm:$0xf0] }
 0x659   : > { %4943 = vmatmul.bf16.gmra.mxu2 %v10142_v36  ;;  %v6231_v22 = vor.u32 %v6639_v28, %v6228_v27 }
 0x65a   : > { %v4399_v26 = vmax.f32 %v4303_v50, 0.0  ;;  %v4037_v55 = vpop.f32.mrf.mxu0  ;;  %5006 = vmatpush.bf16.msrb.mxu2 %v6319_v6  ;;  %v10676_v6 = vld [vmem:[#allocation13_spill] sm:$0xff] }
 0x65b   : > { %v4106_v13 = vpop.f32.mrf.mxu1  ;;  %v4908_v45 = vpop.f32.mrf.mxu2 }
 0x65c   : > { %v4107_v40 = vadd.f32 %v4106_v13, %v4037_v55  ;;  %v4909_v41 = vadd.f32 %v4908_v45, %v10083_v37  ;;  %v4926_v42 = vpop.f32.mrf.mxu3  ;;  %v4483_v57 = vadd.f32 %v10054_v53, %v4399_v26  ;;  %4987 = vmatpush.bf16.msra.mxu3 %v6263_v56  ;;  %v6657_v37 = vld [vmem:[%s10296_s5 + $0x114] sm:$0xf]  ;;  %v6404_v55 = vld [vmem:[%s10296_s5 + $0x1e8] sm:$0xf0] }
 0x65d   : > { %v6303_v31 = vor.u32 %v6657_v37, %v6300_v3  ;;  %v6681_v45 = vld [vmem:[%s10296_s5 + $0x1d4] sm:$0xf]  ;;  %v6375_v37 = vor.u32 %v6675_v17, %v6372_v20 }
 0x65e   : > { %v4201_v43 = vadd.f32 %v4107_v40, %v10674_v51  ;;  %v10173_v62 = vadd.f32 %v4926_v42, %v4909_v41  ;;  %5007 = vmatpush.bf16.msrb.mxu2 %v6311_v46  ;;  %v6679_v40 = vld [vmem:[%s10296_s5 + $0x1c4] sm:$0xf]  ;;  %v6388_v41 = vld [vmem:[%s10296_s5 + $0x1c8] sm:$0xf0]  ;;  %v6677_v51 = vld [vmem:[%s10296_s5 + $0x1b4] sm:$0xf] }
 0x65f   : > { %v6391_v42 = vor.u32 %v6679_v40, %v6388_v41 }
 0x660   : > { %v4307_v53 = vadd.f32 %v9806_v47, %v4201_v43  ;;  %4988 = vmatpush.bf16.msra.mxu3 %v6255_v38  ;;  %v6364_v38 = vld [vmem:[%s10296_s5 + $0x198] sm:$0xf0] }
 0x662   : > { %v4403_v44 = vmax.f32 %v4307_v53, 0.0  ;;  %v4040_v5 = vpop.f32.mrf.mxu0  ;;  %5008 = vmatpush.bf16.msrb.mxu2 %v6303_v31  ;;  %v6673_v53 = vld [vmem:[%s10296_s5 + $0x194] sm:$0xf]  ;;  %v6359_v31 = vor.u32 %v6671_v59, %v6356_v48 }
 0x663   : > { %v4109_v30 = vpop.f32.mrf.mxu1  ;;  %v4910_v23 = vpop.f32.mrf.mxu2  ;;  %v6367_v3 = vor.u32 %v6673_v53, %v6364_v38 }
 0x664   : > { %v4487_v14 = vadd.f32 %v10097_v9, %v4403_v44  ;;  %v4110_v35 = vadd.f32 %v4109_v30, %v4040_v5  ;;  %v4928_v34 = vpop.f32.mrf.mxu3  ;;  %4989 = vmatpush.bf16.msra.mxu3 %v6247_v25  ;;  %v4571_v25 = vperm.slane %v10066_v32, 1 }
 0x666   : > { %v4205_v2 = vadd.f32 %v4110_v35, %v10675_v0  ;;  %5009 = vmatpush.bf16.msrb.mxu2 %v6295_v52 }
 0x668   : > { %v4311_v61 = vadd.f32 %v9806_v47, %v4205_v2  ;;  %4990 = vmatpush.bf16.msra.mxu3 %v6239_v11 }
 0x669   : > { %4974 = vmatmul.bf16.vlgmr.msra.gmra.mxu2 %v9636_v12  ;;  %v6685_v12 = vld [vmem:[%s10296_s5 + $0x1f4] sm:$0xf] }
 0x66a   : > { %v4407_v9 = vmax.f32 %v4311_v61, 0.0  ;;  %v4042_v16 = vpop.f32.mrf.mxu0  ;;  %v6415_v26 = vor.u32 %v6685_v12, %v6412_v7 }
 0x66b   : > { %v4111_v63 = vpop.f32.mrf.mxu1 }
 0x66c   : > { %v4491_v50 = vadd.f32 %v10136_v24, %v4407_v9  ;;  %v4112_v8 = vadd.f32 %v4111_v63, %v4042_v16  ;;  %4991 = vmatpush.bf16.msra.mxu3 %v6231_v22  ;;  %v6683_v24 = vld [vmem:[%s10296_s5 + $0x1e4] sm:$0xf] }
 0x66d   : > { %v6407_v1 = vor.u32 %v6683_v24, %v6404_v55 }
 0x66e   : > { %v4499_v29 = vpack.c.bf16 %v4491_v50, %v4487_v14  ;;  %v4209_v54 = vadd.f32 %v4112_v8, %v10676_v6 }
 0x670   : > { %v4315_v33 = vadd.f32 %v9806_v47, %v4209_v54  ;;  %4956 = vmatmul.bf16.vlgmr.msrb.gmra.mxu3 %v4499_v29  ;;  %v6396_v47 = vld [vmem:[%s10296_s5 + $0x1d8] sm:$0xf0] }
 0x671   : > { %5020 = vmatpush.bf16.msrb.mxu3 %v6415_v26  ;;  %v6399_v46 = vor.u32 %v6681_v45, %v6396_v47 }
 0x672   : > { %v4411_v56 = vmax.f32 %v4315_v33, 0.0 }
 0x674   : > { %v4495_v13 = vadd.f32 %v4483_v57, %v4411_v56 }
 0x675   : > { %5021 = vmatpush.bf16.msrb.mxu3 %v6407_v1 }
 0x676   : > { %v4503_v57 = vpack.c.bf16 %v4495_v13, %v4495_v13 }
 0x679   : > { %4979 = vmatmul.bf16.gmra.mxu2 %v9821_v49  ;;  %5022 = vmatpush.bf16.msrb.mxu3 %v6399_v46  ;;  %v6380_v49 = vld [vmem:[%s10296_s5 + $0x1b8] sm:$0xf0] }
 0x67a   : > { %v6383_v43 = vor.u32 %v6677_v51, %v6380_v49 }
 0x67d   : > { %5023 = vmatpush.bf16.msrb.mxu3 %v6391_v42 }
 0x680   : > { %4961 = vmatmul.bf16.gmra.mxu3 %v4503_v57 }
 0x681   : > { %5024 = vmatpush.bf16.msrb.mxu3 %v6383_v43 }
 0x685   : > { %5025 = vmatpush.bf16.msrb.mxu3 %v6375_v37 }
 0x689   : > { %5010 = vmatmul.bf16.vlgmr.msrb.gmra.mxu2 %v10069_v21  ;;  %5026 = vmatpush.bf16.msrb.mxu3 %v6367_v3 }
 0x68d   : > { %5027 = vmatpush.bf16.msrb.mxu3 %v6359_v31 }
 0x690   : > { %4992 = vmatmul.bf16.vlgmr.msra.gmra.mxu3 %v9773_v60 }
 0x699   : > { %5015 = vmatmul.bf16.gmra.mxu2 %v10142_v36 }
 0x6a0   : > { %4997 = vmatmul.bf16.gmra.mxu3 %v9825_v39 }
 0x6b0   : > { %5028 = vmatmul.bf16.vlgmr.msrb.gmra.mxu3 %v4499_v29 }
 0x6c0   : > { %5033 = vmatmul.bf16.gmra.mxu3 %v4503_v57 }
 0x6cc   : > { %v4939_v15 = vpop.f32.mrf.mxu2 }
 0x6cd   : > { %v4940_v23 = vadd.f32 %v4939_v15, %v10108_v58 }
 0x6d4   : > { %v4941_v19 = vpop.f32.mrf.mxu2 }
 0x6d5   : > { %v4942_v4 = vadd.f32 %v4941_v19, %v10140_v10 }
 0x6dc   : > { %v4944_v44 = vpop.f32.mrf.mxu2 }
 0x6dd   : > { %v4945_v0 = vadd.f32 %v4944_v44, %v10173_v62 }
 0x6e4   : > { %v4946_v5 = vpop.f32.mrf.mxu2 }
 0x6ec   : > { %v4975_v21 = vpop.f32.mrf.mxu2 }
 0x6ed   : > { %v4976_v30 = vadd.f32 %v4975_v21, %v4571_v25 }
 0x6f3   : > { %v4957_v60 = vpop.f32.mrf.mxu3 }
 0x6f4   : > { %v4958_v36 = vadd.f32 %v4957_v60, %v4940_v23  ;;  %v4977_v52 = vpop.f32.mrf.mxu2 }
 0x6f5   : > { %v4978_v39 = vadd.f32 %v4977_v52, %v4571_v25 }
 0x6f6   : > { %v5038_v32 = vmax.f32 %v4958_v36, 0.0 }
 0x6f8   : > { %5044 = vst [vmem:[%s10278_s29] sm:$0xff] %v5038_v32 }
 0x6fb   : > { %v4959_v18 = vpop.f32.mrf.mxu3 }
 0x6fc   : > { %v4960_v14 = vadd.f32 %v4959_v18, %v4942_v4  ;;  %v4980_v58 = vpop.f32.mrf.mxu2 }
 0x6fd   : > { %v4981_v35 = vadd.f32 %v4980_v58, %v4571_v25 }
 0x6fe   : > { %v5040_v34 = vmax.f32 %v4960_v14, 0.0 }
 0x700   : > { %5046 = vst [vmem:[%s10278_s29 + $0x10] sm:$0xff] %v5040_v34 }
 0x703   : > { %v4962_v2 = vpop.f32.mrf.mxu3 }
 0x704   : > { %v4963_v11 = vadd.f32 %v4962_v2, %v4945_v0  ;;  %v4982_v61 = vpop.f32.mrf.mxu2 }
 0x706   : > { %v5042_v28 = vmax.f32 %v4963_v11, 0.0 }
 0x708   : > { %5048 = vst [vmem:[%s10278_s29 + $0x20] sm:$0xff] %v5042_v28 }
 0x70b   : > { %v4964_v27 = vpop.f32.mrf.mxu3 }
 0x70c   : > { %v5011_v9 = vpop.f32.mrf.mxu2 }
 0x713   : > { %v4993_v16 = vpop.f32.mrf.mxu3 }
 0x714   : > { %v5013_v22 = vpop.f32.mrf.mxu2  ;;  %v4994_v6 = vadd.f32 %v4993_v16, %v4976_v30 }
 0x716   : > { %v5012_v54 = vadd.f32 %v5011_v9, %v4994_v6 }
 0x71b   : > { %v4995_v63 = vpop.f32.mrf.mxu3 }
 0x71c   : > { %v5016_v10 = vpop.f32.mrf.mxu2  ;;  %v4996_v7 = vadd.f32 %v4995_v63, %v4978_v39 }
 0x71e   : > { %v5014_v26 = vadd.f32 %v5013_v22, %v4996_v7 }
 0x723   : > { %v4998_v50 = vpop.f32.mrf.mxu3 }
 0x724   : > { %v5018_v8 = vpop.f32.mrf.mxu2  ;;  %v4999_v56 = vadd.f32 %v4998_v50, %v4981_v35 }
 0x726   : > { %v5017_v13 = vadd.f32 %v5016_v10, %v4999_v56 }
 0x72b   : > { %v5000_v29 = vpop.f32.mrf.mxu3 }
 0x733   : > { %v5029_v62 = vpop.f32.mrf.mxu3 }
 0x734   : > { %v5030_v12 = vadd.f32 %v5029_v62, %v5012_v54 }
 0x736   : > { %v5039_v33 = vmax.f32 %v5030_v12, 0.0 }
 0x738   : > { %5045 = vst [vmem:[%s10278_s29 + $0x8] sm:$0xff] %v5039_v33 }
 0x73b   : > { %v5031_v24 = vpop.f32.mrf.mxu3 }
 0x73c   : > { %v5032_v55 = vadd.f32 %v5031_v24, %v5014_v26 }
 0x73e   : > { %v5041_v1 = vmax.f32 %v5032_v55, 0.0 }
 0x740   : > { %5047 = vst [vmem:[%s10278_s29 + $0x18] sm:$0xff] %v5041_v1 }
 0x743   : > { %v5034_v45 = vpop.f32.mrf.mxu3 }
 0x744   : > { %v5035_v47 = vadd.f32 %v5034_v45, %v5017_v13 }
 0x746   : > { %v5043_v46 = vmax.f32 %v5035_v47, 0.0 }
 0x748   : > { %5049 = vst [vmem:[%s10278_s29 + $0x28] sm:$0xff] %v5043_v46 }
 0x74b   : > { %v5036_v40 = vpop.f32.mrf.mxu3 }
 0x74c PF: > { %s17_s24 = sadd.s32 1, %s6844_s24  }
 0x74d   : > { %p14_p5 = scmp.ge.s32.totalorder %s17_s24, 4  }
 0x74f   :  { %16 = sbr.rel (!%p14_p5) target bundleno = 1 (0x1), region = 82 }

// kernel: spatial_temporal_convnet.3
= control target key start
LH: loop header
LB: loop body
LE: loop exit
PB: predicated region body
PF: predicated region fallthrough
CT: control target
= control target key end

     0   :  { %s4830_s0 = inlined_call_operand.vmem [shape: f32[48,256], index: 0, kind: input, shape index: {}]   ;;  %s4831_s1 = inlined_call_operand.vmem [shape: bf16[4,48,48], index: 1, kind: input, shape index: {}]   ;;  %s4832_s2 = inlined_call_operand.vmem [shape: bf16[896,64], index: 2, kind: input, shape index: {}]   ;;  %s4833_s3 = inlined_call_operand.vmem [shape: f32[3,64], index: 3, kind: input, shape index: {}]   ;;  %s4834_s4 = inlined_call_operand.vmem [shape: bf16[256,32], index: 4, kind: input, shape index: {}]   ;;  %s4835_s5 = inlined_call_operand.vmem [shape: f32[3,32], index: 5, kind: input, shape index: {}]   ;;  %s4836_s6 = inlined_call_operand.vmem [shape: bf16[128,32], index: 6, kind: input, shape index: {}]   ;;  %s4837_s7 = inlined_call_operand.vmem [shape: f32[2,32], index: 7, kind: input, shape index: {}]   ;;  %s4838_s8 = inlined_call_operand.vmem [shape: bf16[128,16], index: 8, kind: input, shape index: {}]   ;;  %s4839_s9 = inlined_call_operand.vmem [shape: f32[3,16], index: 9, kind: input, shape index: {}]   ;;  %s4840_s10 = inlined_call_operand.vmem [shape: bf16[16,768], index: 10, kind: input, shape index: {}]   ;;  %s4841_s11 = inlined_call_operand.vmem [shape: bf16[48,768], index: 11, kind: input, shape index: {}]   ;;  %s4842_s12 = inlined_call_operand.vmem [shape: bf16[768,32], index: 12, kind: input, shape index: {}]   ;;  %s4843_s13 = inlined_call_operand.vmem [shape: bf16[2,48], index: 13, kind: input, shape index: {}]   ;;  %s4844_s14 = inlined_call_operand.vmem [shape: f32[1,32], index: 14, kind: input, shape index: {}]   ;;  %s4845_s15 = inlined_call_operand.vmem [shape: bf16[32,3], index: 15, kind: input, shape index: {}]   ;;  %s4846_s16 = inlined_call_operand.vmem [shape: f32[1,3], index: 16, kind: input, shape index: {}]   ;;  %s4847_s17 = inlined_call_operand.hbm [shape: f32[2,3], index: 17, kind: output, shape index: {}]  }
   0x1   :  { %4850 = sst [smem:[#allocation5_spill]] %s4830_s0 }
   0x2   :  { %4851 = sst [smem:[#allocation6_spill]] %s4831_s1 }
   0x3   :  { %v3614_v0 = vld [vmem:[%s4832_s2 + $0x38] sm:$0xff]  ;;  %v3613_v2 = vld [vmem:[%s4832_s2 + $0x30] sm:$0xff]  ;;  %v3612_v4 = vld [vmem:[%s4832_s2 + $0x28] sm:$0xff] }
   0x4   :  { %v3622_v1 = vld [vmem:[%s4832_s2 + $0x78] sm:$0xff]  ;;  %258 = vmatpush.bf16.msra.mxu0 %v3614_v0  ;;  %v3621_v3 = vld [vmem:[%s4832_s2 + $0x70] sm:$0xff]  ;;  %v3620_v5 = vld [vmem:[%s4832_s2 + $0x68] sm:$0xff] }
   0x5   :  { %282 = vmatpush.bf16.msra.mxu1 %v3622_v1  ;;  %v3611_v6 = vld [vmem:[%s4832_s2 + $0x20] sm:$0xff] }
   0x6   :  { %v3619_v7 = vld [vmem:[%s4832_s2 + $0x60] sm:$0xff] }
   0x8   :  { %259 = vmatpush.bf16.msra.mxu0 %v3613_v2 }
   0x9   :  { %283 = vmatpush.bf16.msra.mxu1 %v3621_v3 }
   0xc   :  { %260 = vmatpush.bf16.msra.mxu0 %v3612_v4 }
   0xd   :  { %284 = vmatpush.bf16.msra.mxu1 %v3620_v5 }
   0xe   :  { %22 = vsyncpa [#allocation3], 0  ;;  %v3610_v8 = vld [vmem:[%s4832_s2 + $0x18] sm:$0xff]  ;;  %v3609_v10 = vld [vmem:[%s4832_s2 + $0x10] sm:$0xff]  ;;  %s4852_s28 = sld [smem:[#allocation5_spill]]  ;;  %vm468_vm0 = vcmask 392192  }
   0xf   :  { %v3618_v9 = vld [vmem:[%s4832_s2 + $0x58] sm:$0xff]  ;;  %v3617_v11 = vld [vmem:[%s4832_s2 + $0x50] sm:$0xff]  ;;  %v3608_v12 = vld [vmem:[%s4832_s2 + $0x8] sm:$0xff]  ;;  %s4853_s26 = sld [smem:[#allocation6_spill]]  ;;  %vm543_vm1 = vcmask 523264   ;;  %vm1075_vm2 = vcmask 261120  }
  0x10   :  { %261 = vmatpush.bf16.msra.mxu0 %v3611_v6  ;;  %v3616_v13 = vld [vmem:[%s4832_s2 + $0x48] sm:$0xff]  ;;  %v3607_v14 = vld [vmem:[%s4832_s2] sm:$0xff]  ;;  %v3630_v34 = vld [vmem:[%s4832_s2 + $0xb8] sm:$0xff]  ;;  %vm1742_vm3 = vcmask 130048   ;;  %s2856_s0 = sshll.u32 %s4847_s17, 4  ;;  %vm2847_vm4 = vcmask 17408   ;;  %s2857_s0 = int_to_ptr.hbm [resolvable:$true] %s2856_s0 }
  0x11   :  { %285 = vmatpush.bf16.msra.mxu1 %v3619_v7  ;;  %v3615_v15 = vld [vmem:[%s4832_s2 + $0x40] sm:$0xff]  ;;  %v3638_v35 = vld [vmem:[%s4832_s2 + $0xf8] sm:$0xff]  ;;  %405 = vmatpush.bf16.msra.mxu2 %v3630_v34  ;;  %v3629_v36 = vld [vmem:[%s4832_s2 + $0xb0] sm:$0xff] }
  0x12   :  { %429 = vmatpush.bf16.msra.mxu3 %v3638_v35  ;;  %v3637_v37 = vld [vmem:[%s4832_s2 + $0xf0] sm:$0xff]  ;;  %v3628_v38 = vld [vmem:[%s4832_s2 + $0xa8] sm:$0xff]  ;;  %v3627_v40 = vld [vmem:[%s4832_s2 + $0xa0] sm:$0xff] }
  0x13   :  { %v3636_v39 = vld [vmem:[%s4832_s2 + $0xe8] sm:$0xff]  ;;  %v3635_v41 = vld [vmem:[%s4832_s2 + $0xe0] sm:$0xff]  ;;  %v3626_v42 = vld [vmem:[%s4832_s2 + $0x98] sm:$0xff] }
  0x14   :  { %262 = vmatpush.bf16.msra.mxu0 %v3610_v8  ;;  %v58_v16 = vld [vmem:[%s4852_s28] sm:$0xff]  ;;  %v60_v17 = vld [vmem:[%s4852_s28 + $0x10] sm:$0xff]  ;;  %v59_v18 = vld [vmem:[%s4852_s28 + $0x8] sm:$0xff] }
  0x15   :  { %286 = vmatpush.bf16.msra.mxu1 %v3618_v9  ;;  %v61_v19 = vld [vmem:[%s4852_s28 + $0x18] sm:$0xff]  ;;  %v3951_v20 = vpack.c.bf16 %v60_v17, %v58_v16  ;;  %v62_v22 = vld [vmem:[%s4852_s28 + $0x20] sm:$0xff]  ;;  %v64_v23 = vld [vmem:[%s4852_s28 + $0x30] sm:$0xff]  ;;  %406 = vmatpush.bf16.msra.mxu2 %v3629_v36 }
  0x16   :  { %v3953_v21 = vpack.c.bf16 %v61_v19, %v59_v18  ;;  %v63_v24 = vld [vmem:[%s4852_s28 + $0x28] sm:$0xff]  ;;  %v65_v25 = vld [vmem:[%s4852_s28 + $0x38] sm:$0xff]  ;;  %v3969_v26 = vpack.c.bf16 %v64_v23, %v62_v22  ;;  %v66_v28 = vld [vmem:[%s4852_s28 + $0x40] sm:$0xff]  ;;  %430 = vmatpush.bf16.msra.mxu3 %v3637_v37 }
  0x17   :  { %v3971_v27 = vpack.c.bf16 %v65_v25, %v63_v24  ;;  %v68_v29 = vld [vmem:[%s4852_s28 + $0x50] sm:$0xff]  ;;  %v67_v30 = vld [vmem:[%s4852_s28 + $0x48] sm:$0xff]  ;;  %v69_v31 = vld [vmem:[%s4852_s28 + $0x58] sm:$0xff] }
  0x18   :  { %263 = vmatpush.bf16.msra.mxu0 %v3609_v10  ;;  %v3987_v32 = vpack.c.bf16 %v68_v29, %v66_v28  ;;  %v3989_v33 = vpack.c.bf16 %v69_v31, %v67_v30  ;;  %v3634_v43 = vld [vmem:[%s4832_s2 + $0xd8] sm:$0xff]  ;;  %v3625_v44 = vld [vmem:[%s4832_s2 + $0x90] sm:$0xff]  ;;  %v3624_v46 = vld [vmem:[%s4832_s2 + $0x88] sm:$0xff] }
  0x19   :  { %287 = vmatpush.bf16.msra.mxu1 %v3617_v11  ;;  %407 = vmatpush.bf16.msra.mxu2 %v3628_v38  ;;  %v3633_v45 = vld [vmem:[%s4832_s2 + $0xd0] sm:$0xff]  ;;  %v3632_v47 = vld [vmem:[%s4832_s2 + $0xc8] sm:$0xff]  ;;  %v3623_v50 = vld [vmem:[%s4832_s2 + $0x80] sm:$0xff] }
  0x1a   :  { %431 = vmatpush.bf16.msra.mxu3 %v3636_v39  ;;  %v3631_v51 = vld [vmem:[%s4832_s2 + $0xc0] sm:$0xff]  ;;  %v4057_v8 = vld [vmem:[%s4853_s26 + $0x8] sm:$0xff]  ;;  %v4064_v9 = vld [vmem:[%s4853_s26 + $0x10] sm:$0xff] }
  0x1b   :  { %v4050_v7 = vld [vmem:[%s4853_s26] sm:$0xff]  ;;  %v3642_v10 = vld [vmem:[%s4832_s2 + $0x118] sm:$0xff] }
  0x1c   :  { %264 = vmatpush.bf16.msra.mxu0 %v3608_v12  ;;  %v3646_v11 = vld [vmem:[%s4832_s2 + $0x138] sm:$0xff]  ;;  %v3641_v12 = vld [vmem:[%s4832_s2 + $0x110] sm:$0xff]  ;;  %v3639_v16 = vld [vmem:[%s4832_s2 + $0x100] sm:$0xff] }
  0x1d   :  { %288 = vmatpush.bf16.msra.mxu1 %v3616_v13  ;;  %408 = vmatpush.bf16.msra.mxu2 %v3627_v40  ;;  %v3645_v13 = vld [vmem:[%s4832_s2 + $0x130] sm:$0xff]  ;;  %v3643_v17 = vld [vmem:[%s4832_s2 + $0x120] sm:$0xff] }
  0x1e   :  { %432 = vmatpush.bf16.msra.mxu3 %v3635_v41  ;;  %v3761_v29 = vld [vmem:[%s4833_s3] ss:$0 sm:$0xff] }
  0x20   :  { %265 = vmatpush.bf16.msra.mxu0 %v3607_v14  ;;  %v3640_v14 = vld [vmem:[%s4832_s2 + $0x108] sm:$0xff] }
  0x21   :  { %289 = vmatpush.bf16.msra.mxu1 %v3615_v15  ;;  %409 = vmatpush.bf16.msra.mxu2 %v3626_v42  ;;  %v3644_v15 = vld [vmem:[%s4832_s2 + $0x128] sm:$0xff] }
  0x22   :  { %433 = vmatpush.bf16.msra.mxu3 %v3634_v43 }
  0x23   :  { %266 = vmatmul.bf16.vlgmr.msra.gmra.mxu0 %v3951_v20 }
  0x24   :  { %290 = vmatmul.bf16.vlgmr.msra.gmra.mxu1 %v3953_v21 }
  0x25   :  { %410 = vmatpush.bf16.msra.mxu2 %v3625_v44  ;;  %557 = vmatpush.bf16.msrb.mxu1 %v3642_v10  ;;  %v3662_v10 = vld [vmem:[%s4832_s2 + $0x1b8] sm:$0xff] }
  0x26   :  { %434 = vmatpush.bf16.msra.mxu3 %v3633_v45 }
  0x29   :  { %411 = vmatpush.bf16.msra.mxu2 %v3624_v46  ;;  %558 = vmatpush.bf16.msrb.mxu1 %v3641_v12  ;;  %v3661_v12 = vld [vmem:[%s4832_s2 + $0x1b0] sm:$0xff] }
  0x2a   :  { %435 = vmatpush.bf16.msra.mxu3 %v3632_v47 }
  0x2d   :  { %412 = vmatpush.bf16.msra.mxu2 %v3623_v50  ;;  %559 = vmatpush.bf16.msrb.mxu1 %v3640_v14  ;;  %v3660_v14 = vld [vmem:[%s4832_s2 + $0x1a8] sm:$0xff] }
  0x2e   :  { %436 = vmatpush.bf16.msra.mxu3 %v3631_v51 }
  0x30   :  { %413 = vmatmul.bf16.vlgmr.msra.gmra.mxu2 %v3951_v20 }
  0x31   :  { %437 = vmatmul.bf16.vlgmr.msra.gmra.mxu3 %v3953_v21  ;;  %608 = vmatpush.bf16.msrb.mxu2 %v3646_v11  ;;  %v3653_v11 = vld [vmem:[%s4832_s2 + $0x170] sm:$0xff] }
  0x32   :  { %560 = vmatpush.bf16.msrb.mxu1 %v3639_v16  ;;  %v3651_v16 = vld [vmem:[%s4832_s2 + $0x160] sm:$0xff] }
  0x33   :  { %271 = vmatmul.bf16.gmra.mxu0 %v3969_v26 }
  0x34   :  { %295 = vmatmul.bf16.gmra.mxu1 %v3971_v27 }
  0x35   :  { %609 = vmatpush.bf16.msrb.mxu2 %v3645_v13  ;;  %v3652_v13 = vld [vmem:[%s4832_s2 + $0x168] sm:$0xff] }
  0x36   :  { %820 = vmatpush.bf16.msra.mxu1 %v3662_v10 }
  0x39   :  { %610 = vmatpush.bf16.msrb.mxu2 %v3644_v15 }
  0x3a   :  { %821 = vmatpush.bf16.msra.mxu1 %v3661_v12 }
  0x3d   :  { %611 = vmatpush.bf16.msrb.mxu2 %v3643_v17  ;;  %v3659_v17 = vld [vmem:[%s4832_s2 + $0x1a0] sm:$0xff] }
  0x3e   :  { %822 = vmatpush.bf16.msra.mxu1 %v3660_v14 }
  0x40   :  { %418 = vmatmul.bf16.gmra.mxu2 %v3969_v26 }
  0x41   :  { %442 = vmatmul.bf16.gmra.mxu3 %v3971_v27 }
  0x42   :  { %823 = vmatpush.bf16.msra.mxu1 %v3659_v17 }
  0x43   :  { %276 = vmatmul.bf16.gmra.mxu0 %v3987_v32 }
  0x44   :  { %300 = vmatmul.bf16.gmra.mxu1 %v3989_v33 }
  0x50   :  { %423 = vmatmul.bf16.gmra.mxu2 %v3987_v32 }
  0x51   :  { %447 = vmatmul.bf16.gmra.mxu3 %v3989_v33 }
  0xa0   :  { %v267_v48 = vpop.f32.mrf.mxu0 }
  0xa1   :  { %v291_v49 = vpop.f32.mrf.mxu1 }
  0xa2   :  { %v292_v5 = vadd.f32 %v291_v49, %v267_v48 }
  0xa8   :  { %v269_v52 = vpop.f32.mrf.mxu0 }
  0xa9   :  { %v293_v53 = vpop.f32.mrf.mxu1 }
  0xaa   :  { %v294_v3 = vadd.f32 %v293_v53, %v269_v52 }
  0xac   :  { %v306_v6 = vpack.c.bf16 %v294_v3, %v292_v5 }
  0xb0   :  { %v272_v54 = vpop.f32.mrf.mxu0 }
  0xb1   :  { %v296_v55 = vpop.f32.mrf.mxu1 }
  0xb2   :  { %v297_v2 = vadd.f32 %v296_v55, %v272_v54 }
  0xb3   :  { %v414_v18 = vpop.f32.mrf.mxu2 }
  0xb4   :  { %v438_v19 = vpop.f32.mrf.mxu3 }
  0xb5   :  { %v439_v25 = vadd.f32 %v438_v19, %v414_v18  ;;  %v3650_v18 = vld [vmem:[%s4832_s2 + $0x158] sm:$0xff] }
  0xb6   :  { %v3658_v19 = vld [vmem:[%s4832_s2 + $0x198] sm:$0xff] }
  0xb7   :  { %824 = vmatpush.bf16.msra.mxu1 %v3658_v19 }
  0xb8   :  { %v274_v56 = vpop.f32.mrf.mxu0 }
  0xb9   :  { %v298_v57 = vpop.f32.mrf.mxu1 }
  0xba   :  { %v299_v0 = vadd.f32 %v298_v57, %v274_v56 }
  0xbb   :  { %v416_v22 = vpop.f32.mrf.mxu2 }
  0xbc   :  { %v307_v4 = vpack.c.bf16 %v299_v0, %v297_v2  ;;  %v440_v23 = vpop.f32.mrf.mxu3 }
  0xbd   :  { %v441_v34 = vadd.f32 %v440_v23, %v416_v22  ;;  %v3649_v23 = vld [vmem:[%s4832_s2 + $0x150] sm:$0xff] }
  0xc0   :  { %v277_v58 = vpop.f32.mrf.mxu0 }
  0xc1   :  { %v301_v59 = vpop.f32.mrf.mxu1 }
  0xc2   :  { %v302_v62 = vadd.f32 %v301_v59, %v277_v58 }
  0xc3   :  { %v419_v30 = vpop.f32.mrf.mxu2 }
  0xc4   :  { %v443_v31 = vpop.f32.mrf.mxu3 }
  0xc5   :  { %v444_v45 = vadd.f32 %v443_v31, %v419_v30  ;;  %v3647_v30 = vld [vmem:[%s4832_s2 + $0x140] sm:$0xff] }
  0xc6   :  { %v3655_v31 = vld [vmem:[%s4832_s2 + $0x180] sm:$0xff] }
  0xc8   :  { %v279_v60 = vpop.f32.mrf.mxu0 }
  0xc9   :  { %v303_v61 = vpop.f32.mrf.mxu1 }
  0xca   :  { %v304_v63 = vadd.f32 %v303_v61, %v279_v60 }
  0xcb   :  { %v421_v42 = vpop.f32.mrf.mxu2 }
  0xcc   :  { %v308_v1 = vpack.c.bf16 %v304_v63, %v302_v62  ;;  %v445_v43 = vpop.f32.mrf.mxu3 }
  0xcd   :  { %v446_v47 = vadd.f32 %v445_v43, %v421_v42 }
  0xce   :  { %483 = vmatpush.bf16.msrb.mxu0 %v308_v1 }
  0xd2   :  { %484 = vmatpush.bf16.msrb.mxu0 %v307_v4 }
  0xd3   :  { %v424_v51 = vpop.f32.mrf.mxu2 }
  0xd4   :  { %v448_v52 = vpop.f32.mrf.mxu3 }
  0xd5   :  { %v449_v58 = vadd.f32 %v448_v52, %v424_v51 }
  0xd6   :  { %485 = vmatpush.bf16.msrb.mxu0 %v306_v6  ;;  %v3654_v6 = vld [vmem:[%s4832_s2 + $0x178] sm:$0xff] }
  0xd9   :  { %3005 = vmatmul.msk.bf16.vlgmr.msrb.gmra.mxu0 %vm468_vm0, %v4050_v7 }
  0xda   :  { %796 = vmatpush.bf16.msra.mxu0 %v3654_v6 }
  0xdb   :  { %v426_v59 = vpop.f32.mrf.mxu2 }
  0xdc   :  { %v450_v60 = vpop.f32.mrf.mxu3 }
  0xdd   :  { %v451_v62 = vadd.f32 %v450_v60, %v426_v59 }
  0xde   :  { %797 = vmatpush.bf16.msra.mxu0 %v3653_v11 }
  0xe2   :  { %798 = vmatpush.bf16.msra.mxu0 %v3652_v13 }
  0xe6   :  { %799 = vmatpush.bf16.msra.mxu0 %v3651_v16 }
  0xe9   :  { %3006 = vmatmul.msk.bf16.gmra.mxu0 %vm468_vm0, %v4057_v8 }
  0xea   :  { %800 = vmatpush.bf16.msra.mxu0 %v3650_v18 }
  0xee   :  { %801 = vmatpush.bf16.msra.mxu0 %v3649_v23 }
  0xf9   :  { %3007 = vmatmul.msk.bf16.gmra.mxu0 %vm468_vm0, %v4064_v9 }
 0x156   :  { %v487_v24 = vpop.f32.mrf.mxu0 }
 0x157   :  { %v488_v28 = vadd.f32 %v487_v24, %v439_v25  ;;  %v3657_v24 = vld [vmem:[%s4832_s2 + $0x190] sm:$0xff]  ;;  %v3648_v25 = vld [vmem:[%s4832_s2 + $0x148] sm:$0xff] }
 0x158   :  { %825 = vmatpush.bf16.msra.mxu1 %v3657_v24  ;;  %802 = vmatpush.bf16.msra.mxu0 %v3648_v25 }
 0x159   :  { %v504_v36 = vadd.f32 %v3761_v29, %v488_v28  ;;  %v3656_v28 = vld [vmem:[%s4832_s2 + $0x188] sm:$0xff] }
 0x15b   :  { %v510_v39 = vmax.f32 %v504_v36, 0.0 }
 0x15c   :  { %826 = vmatpush.bf16.msra.mxu1 %v3656_v28  ;;  %803 = vmatpush.bf16.msra.mxu0 %v3647_v30 }
 0x15e   :  { %v489_v35 = vpop.f32.mrf.mxu0 }
 0x15f   :  { %v490_v37 = vadd.f32 %v489_v35, %v441_v34  ;;  %804 = vmatmul.bf16.vlgmr.msra.gmra.mxu0 %v3951_v20  ;;  %v3669_v20 = vld [vmem:[%s4834_s4 + $0x18] sm:$0xff] }
 0x160   :  { %827 = vmatpush.bf16.msra.mxu1 %v3655_v31  ;;  %927 = vmatpush.bf16.msra.mxu2 %v3669_v20 }
 0x161   :  { %v505_v38 = vadd.f32 %v3761_v29, %v490_v37 }
 0x163   :  { %v511_v40 = vmax.f32 %v505_v38, 0.0 }
 0x165   :  { %v516_v41 = vpack.c.bf16 %v511_v40, %v510_v39 }
 0x166   :  { %v492_v44 = vpop.f32.mrf.mxu0 }
 0x167   :  { %3024 = vmatmul.msk.bf16.vlgmr.msrb.gmra.mxu1 %vm543_vm1, %v516_v41  ;;  %3043 = vmatmul.msk.bf16.vlgmr.msrb.gmra.mxu2 %vm543_vm1, %v516_v41  ;;  %v493_v46 = vadd.f32 %v492_v44, %v444_v45  ;;  %v3762_v45 = vld [vmem:[%s4833_s3 + $0x2] ss:$0 sm:$0xff] }
 0x169   :  { %v506_v49 = vadd.f32 %v3761_v29, %v493_v46 }
 0x16b   :  { %v512_v54 = vmax.f32 %v506_v49, 0.0 }
 0x16e   :  { %v494_v48 = vpop.f32.mrf.mxu0 }
 0x16f   :  { %v495_v50 = vadd.f32 %v494_v48, %v446_v47  ;;  %809 = vmatmul.bf16.gmra.mxu0 %v3969_v26  ;;  %v3668_v26 = vld [vmem:[%s4834_s4 + $0x10] sm:$0xff]  ;;  %v3763_v47 = vld [vmem:[%s4833_s3 + $0x1] ss:$0 sm:$0xff] }
 0x170   :  { %928 = vmatpush.bf16.msra.mxu2 %v3668_v26 }
 0x171   :  { %v507_v53 = vadd.f32 %v3761_v29, %v495_v50 }
 0x173   :  { %v513_v55 = vmax.f32 %v507_v53, 0.0 }
 0x175   :  { %v517_v56 = vpack.c.bf16 %v513_v55, %v512_v54 }
 0x176   :  { %v497_v57 = vpop.f32.mrf.mxu0 }
 0x177   :  { %3025 = vmatmul.msk.bf16.gmra.mxu1 %vm543_vm1, %v517_v56  ;;  %3044 = vmatmul.msk.bf16.gmra.mxu2 %vm543_vm1, %v517_v56  ;;  %v498_v61 = vadd.f32 %v497_v57, %v449_v58 }
 0x179   :  { %v508_v0 = vadd.f32 %v3761_v29, %v498_v61 }
 0x17b   :  { %v514_v3 = vmax.f32 %v508_v0, 0.0 }
 0x17e   :  { %v499_v63 = vpop.f32.mrf.mxu0 }
 0x17f   :  { %v500_v1 = vadd.f32 %v499_v63, %v451_v62  ;;  %814 = vmatmul.bf16.gmra.mxu0 %v3987_v32  ;;  %v3667_v32 = vld [vmem:[%s4834_s4 + $0x8] sm:$0xff] }
 0x180   :  { %929 = vmatpush.bf16.msra.mxu2 %v3667_v32 }
 0x181   :  { %v509_v2 = vadd.f32 %v3761_v29, %v500_v1 }
 0x183   :  { %v515_v4 = vmax.f32 %v509_v2, 0.0 }
 0x185   :  { %v518_v5 = vpack.c.bf16 %v515_v4, %v514_v3 }
 0x187   :  { %3026 = vmatmul.msk.bf16.gmra.mxu1 %vm543_vm1, %v518_v5  ;;  %3045 = vmatmul.msk.bf16.gmra.mxu2 %vm543_vm1, %v518_v5 }
 0x197   :  { %828 = vmatmul.bf16.vlgmr.msra.gmra.mxu1 %v3953_v21  ;;  %v3673_v21 = vld [vmem:[%s4834_s4 + $0x38] sm:$0xff] }
 0x1a7   :  { %833 = vmatmul.bf16.gmra.mxu1 %v3971_v27  ;;  %v3672_v27 = vld [vmem:[%s4834_s4 + $0x30] sm:$0xff] }
 0x1b7   :  { %838 = vmatmul.bf16.gmra.mxu1 %v3989_v33  ;;  %v3671_v33 = vld [vmem:[%s4834_s4 + $0x28] sm:$0xff] }
 0x1e4   :  { %v562_v15 = vpop.f32.mrf.mxu1 }
 0x1ea   :  { %v613_v40 = vpop.f32.mrf.mxu2 }
 0x1ec   :  { %v564_v22 = vpop.f32.mrf.mxu1 }
 0x1ed   :  { %v577_v39 = vpack.c.bf16 %v564_v22, %v562_v15 }
 0x1f2   :  { %v615_v43 = vpop.f32.mrf.mxu2 }
 0x1f4   :  { %v567_v29 = vpop.f32.mrf.mxu1 }
 0x1fa   :  { %v618_v57 = vpop.f32.mrf.mxu2 }
 0x1fc   :  { %v569_v34 = vpop.f32.mrf.mxu1 }
 0x1fd   :  { %v578_v38 = vpack.c.bf16 %v569_v34, %v567_v29 }
 0x202   :  { %v620_v6 = vpop.f32.mrf.mxu2 }
 0x204   :  { %v572_v35 = vpop.f32.mrf.mxu1 }
 0x20a   :  { %v623_v25 = vpop.f32.mrf.mxu2 }
 0x20c   :  { %v574_v36 = vpop.f32.mrf.mxu1 }
 0x20d   :  { %v579_v37 = vpack.c.bf16 %v574_v36, %v572_v35 }
 0x20f   :  { %633 = vmatpush.bf16.msrb.mxu3 %v579_v37 }
 0x212   :  { %v625_v20 = vpop.f32.mrf.mxu2 }
 0x213   :  { %634 = vmatpush.bf16.msrb.mxu3 %v578_v38 }
 0x214   :  { %v829_v41 = vpop.f32.mrf.mxu1 }
 0x217   :  { %635 = vmatpush.bf16.msrb.mxu3 %v577_v39 }
 0x21a   :  { %3046 = vmatmul.msk.bf16.vlgmr.msrb.gmra.mxu3 %vm468_vm0, %v4050_v7  ;;  %v3666_v7 = vld [vmem:[%s4834_s4] sm:$0xff] }
 0x21b   :  { %978 = vmatpush.bf16.msra.mxu3 %v3673_v21  ;;  %930 = vmatpush.bf16.msra.mxu2 %v3666_v7 }
 0x21c   :  { %v831_v48 = vpop.f32.mrf.mxu1 }
 0x21f   :  { %979 = vmatpush.bf16.msra.mxu3 %v3672_v27 }
 0x223   :  { %980 = vmatpush.bf16.msra.mxu3 %v3671_v33 }
 0x224   :  { %v834_v59 = vpop.f32.mrf.mxu1 }
 0x22a   :  { %3047 = vmatmul.msk.bf16.gmra.mxu3 %vm468_vm0, %v4057_v8  ;;  %v3670_v8 = vld [vmem:[%s4834_s4 + $0x20] sm:$0xff] }
 0x22b   :  { %981 = vmatpush.bf16.msra.mxu3 %v3670_v8 }
 0x22c   :  { %v836_v12 = vpop.f32.mrf.mxu1 }
 0x234   :  { %v839_v29 = vpop.f32.mrf.mxu1 }
 0x23a   :  { %3048 = vmatmul.msk.bf16.gmra.mxu3 %vm468_vm0, %v4064_v9  ;;  %v805_v9 = vpop.f32.mrf.mxu0 }
 0x23b   :  { %v806_v49 = vadd.f32 %v3762_v45, %v805_v9 }
 0x23c   :  { %v841_v7 = vpop.f32.mrf.mxu1 }
 0x23d   :  { %v830_v53 = vadd.f32 %v829_v41, %v806_v49 }
 0x242   :  { %v807_v42 = vpop.f32.mrf.mxu0 }
 0x243   :  { %v808_v55 = vadd.f32 %v3762_v45, %v807_v42 }
 0x245   :  { %v832_v61 = vadd.f32 %v831_v48, %v808_v55  ;;  %v4204_v55 = vld [vmem:[%s4853_s26 + $0x18] sm:$0xff] }
 0x24a   :  { %v810_v52 = vpop.f32.mrf.mxu0 }
 0x24b   :  { %v811_v10 = vadd.f32 %v3762_v45, %v810_v52 }
 0x24d   :  { %v835_v14 = vadd.f32 %v834_v59, %v811_v10  ;;  %v3678_v59 = vld [vmem:[%s4834_s4 + $0x60] sm:$0xff] }
 0x252   :  { %v812_v4 = vpop.f32.mrf.mxu0 }
 0x253   :  { %v813_v16 = vadd.f32 %v3762_v45, %v812_v4 }
 0x255   :  { %v837_v23 = vadd.f32 %v836_v12, %v813_v16 }
 0x25a   :  { %v815_v19 = vpop.f32.mrf.mxu0 }
 0x25b   :  { %v816_v37 = vadd.f32 %v3762_v45, %v815_v19 }
 0x25d   :  { %v840_v26 = vadd.f32 %v839_v29, %v816_v37 }
 0x262   :  { %v817_v39 = vpop.f32.mrf.mxu0 }
 0x263   :  { %v818_v32 = vadd.f32 %v3762_v45, %v817_v39 }
 0x29d   :  { %v637_v44 = vpop.f32.mrf.mxu3 }
 0x29e   :  { %v638_v46 = vadd.f32 %v637_v44, %v613_v40  ;;  %v842_v40 = vadd.f32 %v841_v7, %v818_v32 }
 0x2a0   :  { %v654_v50 = vadd.f32 %v3763_v47, %v638_v46 }
 0x2a2   :  { %v660_v54 = vmax.f32 %v654_v50, 0.0 }
 0x2a4   :  { %v844_v60 = vadd.f32 %v830_v53, %v660_v54 }
 0x2a5   :  { %v639_v51 = vpop.f32.mrf.mxu3 }
 0x2a6   :  { %v640_v56 = vadd.f32 %v639_v51, %v615_v43  ;;  %v850_v1 = vmax.f32 %v844_v60, 0.0  ;;  %v4223_v60 = vld [vmem:[%s4853_s26 + $0x20] sm:$0xff] }
 0x2a8   :  { %v655_v58 = vadd.f32 %v3763_v47, %v640_v56  ;;  %v3681_v56 = vld [vmem:[%s4834_s4 + $0x78] sm:$0xff] }
 0x2aa   :  { %v661_v62 = vmax.f32 %v655_v58, 0.0  ;;  %v3679_v58 = vld [vmem:[%s4834_s4 + $0x68] sm:$0xff] }
 0x2ac   :  { %v845_v63 = vadd.f32 %v832_v61, %v661_v62  ;;  %v4230_v61 = vld [vmem:[%s4853_s26 + $0x28] sm:$0xff] }
 0x2ad   :  { %v642_v0 = vpop.f32.mrf.mxu3  ;;  %v3675_v62 = vld [vmem:[%s4834_s4 + $0x48] sm:$0xff] }
 0x2ae   :  { %v851_v2 = vmax.f32 %v845_v63, 0.0  ;;  %v643_v3 = vadd.f32 %v642_v0, %v618_v57  ;;  %v3680_v57 = vld [vmem:[%s4834_s4 + $0x70] sm:$0xff]  ;;  %1091 = vmatpush.bf16.msrb.mxu1 %v3675_v62  ;;  %v3677_v63 = vld [vmem:[%s4834_s4 + $0x58] sm:$0xff]  ;;  %v3674_v0 = vld [vmem:[%s4834_s4 + $0x40] sm:$0xff] }
 0x2af   :  { %1130 = vmatpush.bf16.msrb.mxu2 %v3677_v63 }
 0x2b0   :  { %v4191_v5 = vpack.c.bf16 %v851_v2, %v850_v1  ;;  %v656_v11 = vadd.f32 %v3763_v47, %v643_v3  ;;  %v3676_v1 = vld [vmem:[%s4834_s4 + $0x50] sm:$0xff] }
 0x2b2   :  { %3135 = vmatmul.msk.bf16.vlgmr.msra.gmra.mxu2 %vm543_vm1, %v4191_v5  ;;  %3154 = vmatmul.msk.bf16.vlgmr.msra.gmra.mxu3 %vm543_vm1, %v4191_v5  ;;  %v662_v15 = vmax.f32 %v656_v11, 0.0 }
 0x2b3   :  { %1092 = vmatpush.bf16.msrb.mxu1 %v3674_v0  ;;  %1131 = vmatpush.bf16.msrb.mxu2 %v3676_v1 }
 0x2b4   :  { %v846_v22 = vadd.f32 %v835_v14, %v662_v15 }
 0x2b5   :  { %v644_v13 = vpop.f32.mrf.mxu3 }
 0x2b6   :  { %v645_v17 = vadd.f32 %v644_v13, %v620_v6  ;;  %v852_v31 = vmax.f32 %v846_v22, 0.0  ;;  %v3764_v6 = vld [vmem:[%s4835_s5] ss:$0 sm:$0xff] }
 0x2b8   :  { %v657_v18 = vadd.f32 %v3763_v47, %v645_v17 }
 0x2ba   :  { %v663_v24 = vmax.f32 %v657_v18, 0.0 }
 0x2bc   :  { %v847_v28 = vadd.f32 %v837_v23, %v663_v24 }
 0x2bd   :  { %v647_v30 = vpop.f32.mrf.mxu3 }
 0x2be   :  { %v648_v34 = vadd.f32 %v647_v30, %v623_v25  ;;  %v853_v35 = vmax.f32 %v847_v28, 0.0 }
 0x2c0   :  { %v857_v36 = vpack.c.bf16 %v853_v35, %v852_v31  ;;  %v658_v38 = vadd.f32 %v3763_v47, %v648_v34 }
 0x2c2   :  { %3136 = vmatmul.msk.bf16.gmra.mxu2 %vm543_vm1, %v857_v36  ;;  %3155 = vmatmul.msk.bf16.gmra.mxu3 %vm543_vm1, %v857_v36  ;;  %v664_v27 = vmax.f32 %v658_v38, 0.0 }
 0x2c4   :  { %v848_v9 = vadd.f32 %v840_v26, %v664_v27 }
 0x2c5   :  { %v649_v21 = vpop.f32.mrf.mxu3 }
 0x2c6   :  { %v650_v33 = vadd.f32 %v649_v21, %v625_v20  ;;  %v854_v43 = vmax.f32 %v848_v9, 0.0 }
 0x2c8   :  { %v659_v8 = vadd.f32 %v3763_v47, %v650_v33 }
 0x2ca   :  { %v665_v41 = vmax.f32 %v659_v8, 0.0 }
 0x2cc   :  { %v849_v42 = vadd.f32 %v842_v40, %v665_v41 }
 0x2ce   :  { %v855_v44 = vmax.f32 %v849_v42, 0.0 }
 0x2d0   :  { %v858_v46 = vpack.c.bf16 %v855_v44, %v854_v43 }
 0x2d2   :  { %3137 = vmatmul.msk.bf16.gmra.mxu2 %vm543_vm1, %v858_v46  ;;  %3156 = vmatmul.msk.bf16.gmra.mxu3 %vm543_vm1, %v858_v46 }
 0x335   :  { %v932_v48 = vpop.f32.mrf.mxu2  ;;  %v983_v2 = vpop.f32.mrf.mxu3 }
 0x33d   :  { %v934_v49 = vpop.f32.mrf.mxu2  ;;  %v985_v3 = vpop.f32.mrf.mxu3 }
 0x33e   :  { %v947_v54 = vpack.c.bf16 %v934_v49, %v932_v48  ;;  %v3688_v48 = vld [vmem:[%s4836_s6 + $0x18] sm:$0xff]  ;;  %v3685_v49 = vld [vmem:[%s4836_s6] sm:$0xff] }
 0x33f   :  { %1348 = vmatpush.bf16.msra.mxu2 %v3688_v48 }
 0x345   :  { %v937_v50 = vpop.f32.mrf.mxu2  ;;  %v988_v13 = vpop.f32.mrf.mxu3 }
 0x34d   :  { %v939_v51 = vpop.f32.mrf.mxu2  ;;  %v990_v19 = vpop.f32.mrf.mxu3 }
 0x34e   :  { %v948_v47 = vpack.c.bf16 %v939_v51, %v937_v50  ;;  %v3687_v50 = vld [vmem:[%s4836_s6 + $0x10] sm:$0xff] }
 0x34f   :  { %1349 = vmatpush.bf16.msra.mxu2 %v3687_v50 }
 0x355   :  { %v942_v52 = vpop.f32.mrf.mxu2  ;;  %v993_v31 = vpop.f32.mrf.mxu3 }
 0x35d   :  { %v944_v45 = vpop.f32.mrf.mxu2  ;;  %v995_v37 = vpop.f32.mrf.mxu3 }
 0x35e   :  { %v949_v53 = vpack.c.bf16 %v944_v45, %v942_v52 }
 0x360   :  { %1027 = vmatpush.bf16.msrb.mxu0 %v949_v53 }
 0x364   :  { %1028 = vmatpush.bf16.msrb.mxu0 %v948_v47 }
 0x368   :  { %1029 = vmatpush.bf16.msrb.mxu0 %v947_v54  ;;  %v3766_v54 = vld [vmem:[%s4835_s5 + $0x1] ss:$0 sm:$0xff] }
 0x36b   :  { %3169 = vmatmul.msk.bf16.vlgmr.msrb.gmra.mxu0 %vm468_vm0, %v4204_v55 }
 0x36c   :  { %1224 = vmatpush.bf16.msra.mxu0 %v3681_v56 }
 0x370   :  { %1225 = vmatpush.bf16.msra.mxu0 %v3680_v57  ;;  %v3765_v57 = vld [vmem:[%s4835_s5 + $0x2] ss:$0 sm:$0xff] }
 0x374   :  { %1226 = vmatpush.bf16.msra.mxu0 %v3679_v58 }
 0x378   :  { %1227 = vmatpush.bf16.msra.mxu0 %v3678_v59 }
 0x37b   :  { %3170 = vmatmul.msk.bf16.gmra.mxu0 %vm468_vm0, %v4223_v60 }
 0x38b   :  { %3171 = vmatmul.msk.bf16.gmra.mxu0 %vm468_vm0, %v4230_v61 }
 0x39b   :  { %3213 = vmatmul.msk.bf16.vlgmr.msra.gmra.mxu0 %vm543_vm1, %v4191_v5 }
 0x3ab   :  { %3214 = vmatmul.msk.bf16.gmra.mxu0 %vm543_vm1, %v857_v36 }
 0x3bb   :  { %3215 = vmatmul.msk.bf16.gmra.mxu0 %vm543_vm1, %v858_v46  ;;  %v3686_v46 = vld [vmem:[%s4836_s6 + $0x8] sm:$0xff] }
 0x3bc   :  { %1309 = vmatpush.bf16.msra.mxu1 %v3686_v46 }
 0x3c0   :  { %1310 = vmatpush.bf16.msra.mxu1 %v3685_v49 }
 0x3e8   :  { %v1031_v4 = vpop.f32.mrf.mxu0 }
 0x3e9   :  { %v1032_v5 = vadd.f32 %v1031_v4, %v983_v2 }
 0x3eb   :  { %v1048_v11 = vadd.f32 %v3764_v6, %v1032_v5 }
 0x3ed   :  { %v1054_v15 = vmax.f32 %v1048_v11, 0.0 }
 0x3f0   :  { %v1033_v10 = vpop.f32.mrf.mxu0 }
 0x3f1   :  { %v1034_v12 = vadd.f32 %v1033_v10, %v985_v3 }
 0x3f3   :  { %v1049_v14 = vadd.f32 %v3764_v6, %v1034_v12 }
 0x3f5   :  { %v1055_v16 = vmax.f32 %v1049_v14, 0.0 }
 0x3f7   :  { %v1060_v17 = vpack.c.bf16 %v1055_v16, %v1054_v15 }
 0x3f8   :  { %v1036_v18 = vpop.f32.mrf.mxu0 }
 0x3f9   :  { %3180 = vmatmul.msk.bf16.vlgmr.msrb.gmra.mxu1 %vm1075_vm2, %v1060_v17  ;;  %3191 = vmatmul.msk.bf16.vlgmr.msrb.gmra.mxu2 %vm1075_vm2, %v1060_v17  ;;  %v1037_v22 = vadd.f32 %v1036_v18, %v988_v13 }
 0x3fb   :  { %v1050_v24 = vadd.f32 %v3764_v6, %v1037_v22 }
 0x3fd   :  { %v1056_v29 = vmax.f32 %v1050_v24, 0.0 }
 0x400   :  { %v1038_v23 = vpop.f32.mrf.mxu0 }
 0x401   :  { %v1039_v25 = vadd.f32 %v1038_v23, %v990_v19 }
 0x403   :  { %v1051_v28 = vadd.f32 %v3764_v6, %v1039_v25 }
 0x405   :  { %v1057_v30 = vmax.f32 %v1051_v28, 0.0 }
 0x407   :  { %v1061_v34 = vpack.c.bf16 %v1057_v30, %v1056_v29 }
 0x408   :  { %v1041_v35 = vpop.f32.mrf.mxu0 }
 0x409   :  { %3181 = vmatmul.msk.bf16.gmra.mxu1 %vm1075_vm2, %v1061_v34  ;;  %3192 = vmatmul.msk.bf16.gmra.mxu2 %vm1075_vm2, %v1061_v34  ;;  %v1042_v36 = vadd.f32 %v1041_v35, %v993_v31 }
 0x40b   :  { %v1052_v39 = vadd.f32 %v3764_v6, %v1042_v36 }
 0x40d   :  { %v1058_v26 = vmax.f32 %v1052_v39, 0.0 }
 0x410   :  { %v1043_v38 = vpop.f32.mrf.mxu0 }
 0x411   :  { %v1044_v20 = vadd.f32 %v1043_v38, %v995_v37 }
 0x413   :  { %v1053_v21 = vadd.f32 %v3764_v6, %v1044_v20 }
 0x415   :  { %v1059_v27 = vmax.f32 %v1053_v21, 0.0 }
 0x417   :  { %v1062_v32 = vpack.c.bf16 %v1059_v27, %v1058_v26 }
 0x418   :  { %v1229_v52 = vpop.f32.mrf.mxu0 }
 0x419   :  { %3182 = vmatmul.msk.bf16.gmra.mxu1 %vm1075_vm2, %v1062_v32  ;;  %3193 = vmatmul.msk.bf16.gmra.mxu2 %vm1075_vm2, %v1062_v32  ;;  %v1230_v62 = vadd.f32 %v3765_v57, %v1229_v52 }
 0x476   :  { %v1094_v33 = vpop.f32.mrf.mxu1 }
 0x47c   :  { %v1133_v51 = vpop.f32.mrf.mxu2 }
 0x47e   :  { %v1096_v7 = vpop.f32.mrf.mxu1 }
 0x47f   :  { %v1109_v44 = vpack.c.bf16 %v1096_v7, %v1094_v33 }
 0x484   :  { %v1135_v45 = vpop.f32.mrf.mxu2 }
 0x486   :  { %v1099_v8 = vpop.f32.mrf.mxu1 }
 0x48e   :  { %v1101_v9 = vpop.f32.mrf.mxu1 }
 0x48f   :  { %v1110_v43 = vpack.c.bf16 %v1101_v9, %v1099_v8 }
 0x496   :  { %v1104_v40 = vpop.f32.mrf.mxu1 }
 0x49e   :  { %v1106_v41 = vpop.f32.mrf.mxu1 }
 0x49f   :  { %v1111_v42 = vpack.c.bf16 %v1106_v41, %v1104_v40 }
 0x4a1   :  { %1153 = vmatpush.bf16.msrb.mxu3 %v1111_v42 }
 0x4a5   :  { %1154 = vmatpush.bf16.msrb.mxu3 %v1110_v43 }
 0x4a9   :  { %1155 = vmatpush.bf16.msrb.mxu3 %v1109_v44 }
 0x4ac   :  { %3194 = vmatmul.msk.bf16.vlgmr.msrb.gmra.mxu3 %vm468_vm0, %v4204_v55  ;;  %v1231_v55 = vpop.f32.mrf.mxu0 }
 0x4ad   :  { %v1232_v1 = vadd.f32 %v3765_v57, %v1231_v55  ;;  %v4336_v55 = vld [vmem:[%s4853_s26 + $0x40] sm:$0xff] }
 0x4b4   :  { %v1234_v0 = vpop.f32.mrf.mxu0 }
 0x4b5   :  { %v1235_v19 = vadd.f32 %v3765_v57, %v1234_v0  ;;  %v3767_v0 = vld [vmem:[%s4837_s7] ss:$0 sm:$0xff] }
 0x4bc   :  { %3195 = vmatmul.msk.bf16.gmra.mxu3 %vm468_vm0, %v4223_v60  ;;  %v1236_v15 = vpop.f32.mrf.mxu0 }
 0x4bd   :  { %v1237_v23 = vadd.f32 %v3765_v57, %v1236_v15 }
 0x4c4   :  { %v1239_v30 = vpop.f32.mrf.mxu0 }
 0x4c5   :  { %v1240_v32 = vadd.f32 %v3765_v57, %v1239_v30 }
 0x4cc   :  { %3196 = vmatmul.msk.bf16.gmra.mxu3 %vm468_vm0, %v4230_v61  ;;  %v1138_v61 = vpop.f32.mrf.mxu2  ;;  %v1241_v27 = vpop.f32.mrf.mxu0 }
 0x4cd   :  { %v1242_v7 = vadd.f32 %v3765_v57, %v1241_v27  ;;  %v3692_v57 = vld [vmem:[%s4836_s6 + $0x38] sm:$0xff] }
 0x4ce   :  { %1497 = vmatpush.bf16.msrb.mxu1 %v3692_v57 }
 0x4d4   :  { %v1140_v13 = vpop.f32.mrf.mxu2 }
 0x4dc   :  { %v1143_v28 = vpop.f32.mrf.mxu2 }
 0x4e4   :  { %v1145_v39 = vpop.f32.mrf.mxu2 }
 0x52f   :  { %v1157_v53 = vpop.f32.mrf.mxu3 }
 0x530   :  { %v1158_v47 = vadd.f32 %v1157_v53, %v1133_v51 }
 0x532   :  { %v1174_v56 = vadd.f32 %v3766_v54, %v1158_v47  ;;  %v4322_v47 = vld [vmem:[%s4853_s26 + $0x30] sm:$0xff] }
 0x534   :  { %v1180_v59 = vmax.f32 %v1174_v56, 0.0  ;;  %v3690_v56 = vld [vmem:[%s4836_s6 + $0x28] sm:$0xff] }
 0x535   :  { %1458 = vmatpush.bf16.msrb.mxu0 %v3690_v56 }
 0x536   :  { %v4283_v2 = vadd.f32 %v1230_v62, %v1180_v59  ;;  %v3691_v59 = vld [vmem:[%s4836_s6 + $0x30] sm:$0xff] }
 0x537   :  { %v1159_v58 = vpop.f32.mrf.mxu3  ;;  %1498 = vmatpush.bf16.msrb.mxu1 %v3691_v59  ;;  %v3768_v59 = vld [vmem:[%s4837_s7 + $0x1] ss:$0 sm:$0xff] }
 0x538   :  { %v1160_v60 = vadd.f32 %v1159_v58, %v1135_v45  ;;  %v1250_v6 = vmax.f32 %v4283_v2, 0.0  ;;  %v3689_v58 = vld [vmem:[%s4836_s6 + $0x20] sm:$0xff] }
 0x539   :  { %1459 = vmatpush.bf16.msrb.mxu0 %v3689_v58 }
 0x53a   :  { %v1175_v63 = vadd.f32 %v3766_v54, %v1160_v60 }
 0x53c   :  { %v1181_v3 = vmax.f32 %v1175_v63, 0.0 }
 0x53e   :  { %v4285_v4 = vadd.f32 %v1232_v1, %v1181_v3 }
 0x53f   :  { %v1162_v5 = vpop.f32.mrf.mxu3 }
 0x540   :  { %v1251_v10 = vmax.f32 %v4285_v4, 0.0  ;;  %v1163_v11 = vadd.f32 %v1162_v5, %v1138_v61 }
 0x542   :  { %v1256_v12 = vpack.c.bf16 %v1251_v10, %v1250_v6  ;;  %v1176_v14 = vadd.f32 %v3766_v54, %v1163_v11 }
 0x544   :  { %3230 = vmatmul.msk.bf16.vlgmr.msra.gmra.mxu1 %vm1075_vm2, %v1256_v12  ;;  %3241 = vmatmul.msk.bf16.vlgmr.msra.gmra.mxu2 %vm1075_vm2, %v1256_v12  ;;  %v1182_v17 = vmax.f32 %v1176_v14, 0.0 }
 0x546   :  { %v4295_v24 = vadd.f32 %v1235_v19, %v1182_v17 }
 0x547   :  { %v1164_v16 = vpop.f32.mrf.mxu3 }
 0x548   :  { %v1165_v18 = vadd.f32 %v1164_v16, %v1140_v13  ;;  %v1252_v34 = vmax.f32 %v4295_v24, 0.0 }
 0x54a   :  { %v1177_v22 = vadd.f32 %v3766_v54, %v1165_v18 }
 0x54c   :  { %v1183_v25 = vmax.f32 %v1177_v22, 0.0 }
 0x54e   :  { %v4297_v29 = vadd.f32 %v1237_v23, %v1183_v25 }
 0x54f   :  { %v1167_v31 = vpop.f32.mrf.mxu3 }
 0x550   :  { %v1253_v35 = vmax.f32 %v4297_v29, 0.0  ;;  %v1168_v36 = vadd.f32 %v1167_v31, %v1143_v28 }
 0x552   :  { %v1257_v37 = vpack.c.bf16 %v1253_v35, %v1252_v34  ;;  %v1178_v38 = vadd.f32 %v3766_v54, %v1168_v36 }
 0x554   :  { %3231 = vmatmul.msk.bf16.gmra.mxu1 %vm1075_vm2, %v1257_v37  ;;  %3242 = vmatmul.msk.bf16.gmra.mxu2 %vm1075_vm2, %v1257_v37  ;;  %v1184_v21 = vmax.f32 %v1178_v38, 0.0 }
 0x556   :  { %v4307_v8 = vadd.f32 %v1240_v32, %v1184_v21 }
 0x557   :  { %v1169_v20 = vpop.f32.mrf.mxu3 }
 0x558   :  { %v1170_v26 = vadd.f32 %v1169_v20, %v1145_v39  ;;  %v1254_v41 = vmax.f32 %v4307_v8, 0.0 }
 0x55a   :  { %v1179_v33 = vadd.f32 %v3766_v54, %v1170_v26  ;;  %v4329_v54 = vld [vmem:[%s4853_s26 + $0x38] sm:$0xff] }
 0x55c   :  { %v1185_v9 = vmax.f32 %v1179_v33, 0.0 }
 0x55e   :  { %v4309_v40 = vadd.f32 %v1242_v7, %v1185_v9 }
 0x560   :  { %v1255_v42 = vmax.f32 %v4309_v40, 0.0  ;;  %v4403_v40 = vld [vmem:[%s4853_s26 + $0x48] sm:$0xff] }
 0x562   :  { %v1258_v43 = vpack.c.bf16 %v1255_v42, %v1254_v41 }
 0x564   :  { %3232 = vmatmul.msk.bf16.gmra.mxu1 %vm1075_vm2, %v1258_v43  ;;  %3243 = vmatmul.msk.bf16.gmra.mxu2 %vm1075_vm2, %v1258_v43 }
 0x5c1   :  { %v1312_v44 = vpop.f32.mrf.mxu1 }
 0x5c7   :  { %v1351_v60 = vpop.f32.mrf.mxu2 }
 0x5c9   :  { %v1314_v46 = vpop.f32.mrf.mxu1 }
 0x5ca   :  { %v1327_v53 = vpack.c.bf16 %v1314_v46, %v1312_v44 }
 0x5cf   :  { %v1353_v61 = vpop.f32.mrf.mxu2 }
 0x5d1   :  { %v1317_v48 = vpop.f32.mrf.mxu1 }
 0x5d7   :  { %v1356_v11 = vpop.f32.mrf.mxu2 }
 0x5d9   :  { %v1319_v49 = vpop.f32.mrf.mxu1 }
 0x5da   :  { %v1328_v45 = vpack.c.bf16 %v1319_v49, %v1317_v48 }
 0x5df   :  { %v1358_v17 = vpop.f32.mrf.mxu2 }
 0x5e1   :  { %v1322_v50 = vpop.f32.mrf.mxu1 }
 0x5e7   :  { %v1361_v31 = vpop.f32.mrf.mxu2 }
 0x5e9   :  { %v1324_v51 = vpop.f32.mrf.mxu1 }
 0x5ea   :  { %v1329_v52 = vpack.c.bf16 %v1324_v51, %v1322_v50 }
 0x5ec   :  { %1395 = vmatpush.bf16.msra.mxu3 %v1329_v52 }
 0x5ef   :  { %v1363_v39 = vpop.f32.mrf.mxu2 }
 0x5f0   :  { %1396 = vmatpush.bf16.msra.mxu3 %v1328_v45  ;;  %v3697_v45 = vld [vmem:[%s4838_s8 + $0x8] sm:$0xff] }
 0x5f4   :  { %1397 = vmatpush.bf16.msra.mxu3 %v1327_v53  ;;  %v3699_v53 = vld [vmem:[%s4838_s8 + $0x18] sm:$0xff] }
 0x5f5   :  { %1653 = vmatpush.bf16.msra.mxu0 %v3699_v53  ;;  %v3701_v53 = vld [vmem:[%s4838_s8 + $0x28] sm:$0xff] }
 0x5f7   :  { %3256 = vmatmul.msk.bf16.vlgmr.msra.gmra.mxu3 %vm468_vm0, %v4322_v47 }
 0x5f8   :  { %1614 = vmatpush.bf16.msrb.mxu3 %v3697_v45  ;;  %v3700_v45 = vld [vmem:[%s4838_s8 + $0x20] sm:$0xff] }
 0x607   :  { %3257 = vmatmul.msk.bf16.gmra.mxu3 %vm468_vm0, %v4329_v54 }
 0x617   :  { %3258 = vmatmul.msk.bf16.gmra.mxu3 %vm468_vm0, %v4336_v55 }
 0x67a   :  { %v1399_v62 = vpop.f32.mrf.mxu3 }
 0x67b   :  { %v1400_v63 = vadd.f32 %v1399_v62, %v1351_v60 }
 0x67d   :  { %v1416_v3 = vadd.f32 %v3767_v0, %v1400_v63 }
 0x67f   :  { %v1422_v13 = vmax.f32 %v1416_v3, 0.0 }
 0x682   :  { %v1401_v1 = vpop.f32.mrf.mxu3 }
 0x683   :  { %v1402_v5 = vadd.f32 %v1401_v1, %v1353_v61 }
 0x685   :  { %v1417_v12 = vadd.f32 %v3767_v0, %v1402_v5 }
 0x687   :  { %v1423_v14 = vmax.f32 %v1417_v12, 0.0 }
 0x689   :  { %v1428_v15 = vpack.c.bf16 %v1423_v14, %v1422_v13 }
 0x68a   :  { %v1404_v16 = vpop.f32.mrf.mxu3 }
 0x68b   :  { %3267 = vmatmul.msk.bf16.vlgmr.msrb.gmra.mxu0 %vm1075_vm2, %v1428_v15  ;;  %3278 = vmatmul.msk.bf16.vlgmr.msrb.gmra.mxu1 %vm1075_vm2, %v1428_v15  ;;  %v1405_v18 = vadd.f32 %v1404_v16, %v1356_v11 }
 0x68d   :  { %v1418_v22 = vadd.f32 %v3767_v0, %v1405_v18 }
 0x68f   :  { %v1424_v28 = vmax.f32 %v1418_v22, 0.0 }
 0x692   :  { %v1406_v19 = vpop.f32.mrf.mxu3 }
 0x693   :  { %v1407_v23 = vadd.f32 %v1406_v19, %v1358_v17 }
 0x695   :  { %v1419_v25 = vadd.f32 %v3767_v0, %v1407_v23 }
 0x697   :  { %v1425_v30 = vmax.f32 %v1419_v25, 0.0 }
 0x699   :  { %v1429_v36 = vpack.c.bf16 %v1425_v30, %v1424_v28 }
 0x69a   :  { %v1409_v37 = vpop.f32.mrf.mxu3 }
 0x69b   :  { %3268 = vmatmul.msk.bf16.gmra.mxu0 %vm1075_vm2, %v1429_v36  ;;  %3279 = vmatmul.msk.bf16.gmra.mxu1 %vm1075_vm2, %v1429_v36  ;;  %v1410_v38 = vadd.f32 %v1409_v37, %v1361_v31 }
 0x69d   :  { %v1420_v21 = vadd.f32 %v3767_v0, %v1410_v38 }
 0x69f   :  { %v1426_v32 = vmax.f32 %v1420_v21, 0.0 }
 0x6a2   :  { %v1411_v20 = vpop.f32.mrf.mxu3 }
 0x6a3   :  { %v1412_v26 = vadd.f32 %v1411_v20, %v1363_v39 }
 0x6a5   :  { %v1421_v27 = vadd.f32 %v3767_v0, %v1412_v26 }
 0x6a7   :  { %v1427_v33 = vmax.f32 %v1421_v27, 0.0 }
 0x6a9   :  { %v1430_v7 = vpack.c.bf16 %v1427_v33, %v1426_v32 }
 0x6ab   :  { %3269 = vmatmul.msk.bf16.gmra.mxu0 %vm1075_vm2, %v1430_v7  ;;  %3280 = vmatmul.msk.bf16.gmra.mxu1 %vm1075_vm2, %v1430_v7 }
 0x708   :  { %v1461_v9 = vpop.f32.mrf.mxu0 }
 0x710   :  { %v1463_v43 = vpop.f32.mrf.mxu0 }
 0x711   :  { %v1476_v52 = vpack.c.bf16 %v1463_v43, %v1461_v9 }
 0x718   :  { %v1466_v44 = vpop.f32.mrf.mxu0 }
 0x720   :  { %v1468_v46 = vpop.f32.mrf.mxu0 }
 0x721   :  { %v1477_v51 = vpack.c.bf16 %v1468_v46, %v1466_v44 }
 0x728   :  { %v1471_v48 = vpop.f32.mrf.mxu0 }
 0x730   :  { %v1473_v49 = vpop.f32.mrf.mxu0 }
 0x731   :  { %v1478_v50 = vpack.c.bf16 %v1473_v49, %v1471_v48 }
 0x733   :  { %1520 = vmatpush.bf16.msrb.mxu2 %v1478_v50  ;;  %v3702_v50 = vld [vmem:[%s4838_s8 + $0x30] sm:$0xff] }
 0x737   :  { %1521 = vmatpush.bf16.msrb.mxu2 %v1477_v51  ;;  %v4416_v51 = vld [vmem:[%s4853_s26 + $0x50] sm:$0xff] }
 0x73b   :  { %1522 = vmatpush.bf16.msrb.mxu2 %v1476_v52  ;;  %v4423_v52 = vld [vmem:[%s4853_s26 + $0x58] sm:$0xff] }
 0x73e   :  { %3281 = vmatmul.msk.bf16.vlgmr.msrb.gmra.mxu2 %vm468_vm0, %v4322_v47  ;;  %v3696_v47 = vld [vmem:[%s4838_s8] sm:$0xff] }
 0x73f   :  { %1615 = vmatpush.bf16.msrb.mxu3 %v3696_v47  ;;  %1759 = vmatpush.bf16.msra.mxu2 %v3700_v45 }
 0x743   :  { %1792 = vmatpush.bf16.msra.mxu3 %v3701_v53  ;;  %v3770_v53 = vld [vmem:[%s4839_s9 + $0x2] ss:$0 sm:$0xff] }
 0x74e   :  { %3282 = vmatmul.msk.bf16.gmra.mxu2 %vm468_vm0, %v4329_v54  ;;  %v3698_v54 = vld [vmem:[%s4838_s8 + $0x10] sm:$0xff] }
 0x74f   :  { %1654 = vmatpush.bf16.msra.mxu0 %v3698_v54 }
 0x75e   :  { %3283 = vmatmul.msk.bf16.gmra.mxu2 %vm468_vm0, %v4336_v55  ;;  %v1500_v55 = vpop.f32.mrf.mxu1 }
 0x766   :  { %v1502_v56 = vpop.f32.mrf.mxu1 }
 0x76e   :  { %v1505_v0 = vpop.f32.mrf.mxu1 }
 0x776   :  { %v1507_v17 = vpop.f32.mrf.mxu1 }
 0x7c1   :  { %v1524_v57 = vpop.f32.mrf.mxu2 }
 0x7c2   :  { %v1525_v58 = vadd.f32 %v1524_v57, %v1500_v55  ;;  %v3769_v57 = vld [vmem:[%s4839_s9] ss:$0 sm:$0xff] }
 0x7c4   :  { %v1541_v60 = vadd.f32 %v3768_v59, %v1525_v58 }
 0x7c6   :  { %v1547_v62 = vmax.f32 %v1541_v60, 0.0 }
 0x7c8   :  { %v1553_v3 = vadd.f32 %v1547_v62, %v1250_v6 }
 0x7c9   :  { %v1526_v61 = vpop.f32.mrf.mxu2 }
 0x7ca   :  { %v1527_v63 = vadd.f32 %v1526_v61, %v1502_v56  ;;  %v1559_v13 = vmax.f32 %v1553_v3, 0.0 }
 0x7cc   :  { %v1542_v1 = vadd.f32 %v3768_v59, %v1527_v63 }
 0x7ce   :  { %v1548_v5 = vmax.f32 %v1542_v1, 0.0 }
 0x7d0   :  { %v1554_v11 = vadd.f32 %v1548_v5, %v1251_v10  ;;  %v1510_v10 = vpop.f32.mrf.mxu1 }
 0x7d1   :  { %v1529_v12 = vpop.f32.mrf.mxu2 }
 0x7d2   :  { %v1560_v14 = vmax.f32 %v1554_v11, 0.0  ;;  %v1530_v15 = vadd.f32 %v1529_v12, %v1505_v0 }
 0x7d4   :  { %v1565_v16 = vpack.c.bf16 %v1560_v14, %v1559_v13  ;;  %v1543_v18 = vadd.f32 %v3768_v59, %v1530_v15 }
 0x7d6   :  { %3298 = vmatmul.msk.bf16.vlgmr.msrb.gmra.mxu3 %vm1075_vm2, %v1565_v16  ;;  %3309 = vmatmul.msk.bf16.vlgmr.msra.gmra.mxu0 %vm1075_vm2, %v1565_v16  ;;  %v1549_v22 = vmax.f32 %v1543_v18, 0.0 }
 0x7d8   :  { %v1555_v6 = vadd.f32 %v1549_v22, %v1252_v34  ;;  %v1512_v39 = vpop.f32.mrf.mxu1 }
 0x7d9   :  { %v1531_v19 = vpop.f32.mrf.mxu2 }
 0x7da   :  { %v1532_v23 = vadd.f32 %v1531_v19, %v1507_v17  ;;  %v1561_v30 = vmax.f32 %v1555_v6, 0.0 }
 0x7dc   :  { %v1544_v2 = vadd.f32 %v3768_v59, %v1532_v23 }
 0x7de   :  { %v1550_v4 = vmax.f32 %v1544_v2, 0.0 }
 0x7e0   :  { %v1556_v25 = vadd.f32 %v1550_v4, %v1253_v35 }
 0x7e1   :  { %v1534_v28 = vpop.f32.mrf.mxu2 }
 0x7e2   :  { %v1562_v31 = vmax.f32 %v1556_v25, 0.0  ;;  %v1535_v36 = vadd.f32 %v1534_v28, %v1510_v10 }
 0x7e4   :  { %v1566_v37 = vpack.c.bf16 %v1562_v31, %v1561_v30  ;;  %v1545_v38 = vadd.f32 %v3768_v59, %v1535_v36 }
 0x7e6   :  { %3299 = vmatmul.msk.bf16.gmra.mxu3 %vm1075_vm2, %v1566_v37  ;;  %3310 = vmatmul.msk.bf16.gmra.mxu0 %vm1075_vm2, %v1566_v37  ;;  %v1551_v21 = vmax.f32 %v1545_v38, 0.0 }
 0x7e8   :  { %v1557_v26 = vadd.f32 %v1551_v21, %v1254_v41 }
 0x7e9   :  { %v1536_v20 = vpop.f32.mrf.mxu2 }
 0x7ea   :  { %v1537_v24 = vadd.f32 %v1536_v20, %v1512_v39  ;;  %v1563_v27 = vmax.f32 %v1557_v26, 0.0 }
 0x7ec   :  { %v1546_v34 = vadd.f32 %v3768_v59, %v1537_v24 }
 0x7ee   :  { %v1552_v29 = vmax.f32 %v1546_v34, 0.0 }
 0x7f0   :  { %v1558_v35 = vadd.f32 %v1552_v29, %v1255_v42  ;;  %v3703_v42 = vld [vmem:[%s4838_s8 + $0x38] sm:$0xff]  ;;  %v3357_v29 = vld [vmem:[%s4840_s10] sm:$0xf] }
 0x7f2   :  { %v1564_v32 = vmax.f32 %v1558_v35, 0.0  ;;  %v3707_v35 = vld [vmem:[%s4840_s10 + $0x14] sm:$0xf0] }
 0x7f4   :  { %v1567_v33 = vpack.c.bf16 %v1564_v32, %v1563_v27  ;;  %v3704_v27 = vld [vmem:[%s4840_s10 + $0x4] sm:$0xf]  ;;  %v3358_v32 = vor.u32 %v3707_v35, %v3357_v29 }
 0x7f6   :  { %3300 = vmatmul.msk.bf16.gmra.mxu3 %vm1075_vm2, %v1567_v33  ;;  %3311 = vmatmul.msk.bf16.gmra.mxu0 %vm1075_vm2, %v1567_v33 }
 0x7f7   :  { %1956 = vmatpush.bf16.msrb.mxu2 %v3358_v32 }
 0x853   :  { %v1656_v47 = vpop.f32.mrf.mxu0 }
 0x859   :  { %v1617_v7 = vpop.f32.mrf.mxu3 }
 0x85b   :  { %v1658_v54 = vpop.f32.mrf.mxu0 }
 0x861   :  { %v1619_v9 = vpop.f32.mrf.mxu3 }
 0x862   :  { %v1632_v41 = vpack.c.bf16 %v1619_v9, %v1617_v7  ;;  %v3365_v7 = vld [vmem:[%s4840_s10 + $0x8] sm:$0xf]  ;;  %v3708_v9 = vld [vmem:[%s4840_s10 + $0x1c] sm:$0xf0] }
 0x863   :  { %v1661_v61 = vpop.f32.mrf.mxu0 }
 0x869   :  { %v1622_v43 = vpop.f32.mrf.mxu3 }
 0x86b   :  { %v1663_v5 = vpop.f32.mrf.mxu0 }
 0x871   :  { %v1624_v44 = vpop.f32.mrf.mxu3 }
 0x872   :  { %v1633_v8 = vpack.c.bf16 %v1624_v44, %v1622_v43  ;;  %v3366_v44 = vor.u32 %v3708_v9, %v3365_v7 }
 0x873   :  { %v1666_v18 = vpop.f32.mrf.mxu0 }
 0x879   :  { %v1627_v46 = vpop.f32.mrf.mxu3 }
 0x87b   :  { %v1668_v2 = vpop.f32.mrf.mxu0 }
 0x881   :  { %v1629_v48 = vpop.f32.mrf.mxu3 }
 0x882   :  { %v1634_v49 = vpack.c.bf16 %v1629_v48, %v1627_v46  ;;  %v3705_v46 = vld [vmem:[%s4840_s10 + $0xc] sm:$0xf]  ;;  %v3367_v48 = vld [vmem:[%s4840_s10 + $0x20] sm:$0xf0] }
 0x884   :  { %1700 = vmatpush.bf16.msra.mxu1 %v1634_v49  ;;  %v3370_v49 = vor.u32 %v3705_v46, %v3367_v48 }
 0x888   :  { %1701 = vmatpush.bf16.msra.mxu1 %v1633_v8 }
 0x88c   :  { %1702 = vmatpush.bf16.msra.mxu1 %v1632_v41 }
 0x88f   :  { %3324 = vmatmul.msk.bf16.vlgmr.msra.gmra.mxu1 %vm468_vm0, %v4403_v40 }
 0x890   :  { %1871 = vmatpush.bf16.msrb.mxu1 %v3703_v42 }
 0x894   :  { %1872 = vmatpush.bf16.msrb.mxu1 %v3702_v50 }
 0x898   :  { %2028 = vmatpush.bf16.msra.mxu1 %v3370_v49 }
 0x89f   :  { %3325 = vmatmul.msk.bf16.gmra.mxu1 %vm468_vm0, %v4416_v51 }
 0x8af   :  { %3326 = vmatmul.msk.bf16.gmra.mxu1 %vm468_vm0, %v4423_v52 }
 0x8bf   :  { %3352 = vmatmul.msk.bf16.vlgmr.msrb.gmra.mxu1 %vm1075_vm2, %v1565_v16 }
 0x8cf   :  { %3353 = vmatmul.msk.bf16.gmra.mxu1 %vm1075_vm2, %v1566_v37 }
 0x8df   :  { %3354 = vmatmul.msk.bf16.gmra.mxu1 %vm1075_vm2, %v1567_v33  ;;  %v3359_v33 = vld [vmem:[%s4840_s10 + $0x18] sm:$0xf0] }
 0x8e0   :  { %v3362_v43 = vor.u32 %v3704_v27, %v3359_v33 }
 0x8e2   :  { %1980 = vmatpush.bf16.msrb.mxu3 %v3362_v43 }
 0x90c   :  { %v1704_v55 = vpop.f32.mrf.mxu1 }
 0x90d   :  { %v1705_v56 = vadd.f32 %v1704_v55, %v1656_v47 }
 0x90f   :  { %v1721_v59 = vadd.f32 %v3769_v57, %v1705_v56 }
 0x911   :  { %v1727_v63 = vmax.f32 %v1721_v59, 0.0 }
 0x914   :  { %v1706_v58 = vpop.f32.mrf.mxu1 }
 0x915   :  { %v1707_v60 = vadd.f32 %v1706_v58, %v1658_v54 }
 0x917   :  { %v1722_v62 = vadd.f32 %v3769_v57, %v1707_v60 }
 0x919   :  { %v1728_v0 = vmax.f32 %v1722_v62, 0.0 }
 0x91b   :  { %v1733_v1 = vpack.c.bf16 %v1728_v0, %v1727_v63 }
 0x91c   :  { %v1709_v3 = vpop.f32.mrf.mxu1 }
 0x91d   :  { %3331 = vmatmul.msk.bf16.vlgmr.msra.gmra.mxu2 %vm1742_vm3, %v1733_v1  ;;  %3338 = vmatmul.msk.bf16.vlgmr.msra.gmra.mxu3 %vm1742_vm3, %v1733_v1  ;;  %v1710_v11 = vadd.f32 %v1709_v3, %v1661_v61 }
 0x91f   :  { %v1723_v13 = vadd.f32 %v3769_v57, %v1710_v11 }
 0x921   :  { %v1729_v16 = vmax.f32 %v1723_v13, 0.0 }
 0x924   :  { %v1711_v12 = vpop.f32.mrf.mxu1 }
 0x925   :  { %v1712_v14 = vadd.f32 %v1711_v12, %v1663_v5 }
 0x927   :  { %v1724_v15 = vadd.f32 %v3769_v57, %v1712_v14 }
 0x929   :  { %v1730_v17 = vmax.f32 %v1724_v15, 0.0  ;;  %v3373_v15 = vld [vmem:[%s4840_s10 + $0x10] sm:$0xf] }
 0x92b   :  { %v1734_v19 = vpack.c.bf16 %v1730_v17, %v1729_v16  ;;  %v3709_v16 = vld [vmem:[%s4840_s10 + $0x24] sm:$0xf0]  ;;  %v3706_v17 = vld [vmem:[%s4840_s10 + $0x14] sm:$0xf] }
 0x92c   :  { %v1714_v22 = vpop.f32.mrf.mxu1 }
 0x92d   :  { %3332 = vmatmul.msk.bf16.gmra.mxu2 %vm1742_vm3, %v1734_v19  ;;  %3339 = vmatmul.msk.bf16.gmra.mxu3 %vm1742_vm3, %v1734_v19  ;;  %v1715_v23 = vadd.f32 %v1714_v22, %v1666_v18  ;;  %v3374_v18 = vor.u32 %v3709_v16, %v3373_v15  ;;  %v3375_v19 = vld [vmem:[%s4840_s10 + $0x28] sm:$0xf0] }
 0x92f   :  { %v1725_v4 = vadd.f32 %v3769_v57, %v1715_v23  ;;  %v3378_v23 = vor.u32 %v3706_v17, %v3375_v19  ;;  %2052 = vmatpush.bf16.msra.mxu2 %v3374_v18  ;;  %v4554_v18 = vld [vmem:[%s4841_s11 + $0x48] sm:$0xff] }
 0x931   :  { %v1731_v28 = vmax.f32 %v1725_v4, 0.0  ;;  %2076 = vmatpush.bf16.msra.mxu3 %v3378_v23 }
 0x934   :  { %v1716_v6 = vpop.f32.mrf.mxu1 }
 0x935   :  { %v1717_v10 = vadd.f32 %v1716_v6, %v1668_v2 }
 0x937   :  { %v1726_v25 = vadd.f32 %v3769_v57, %v1717_v10 }
 0x939   :  { %v1732_v30 = vmax.f32 %v1726_v25, 0.0 }
 0x93b   :  { %v1735_v31 = vpack.c.bf16 %v1732_v30, %v1731_v28 }
 0x93c   :  { %v1874_v41 = vpop.f32.mrf.mxu1 }
 0x93d   :  { %3333 = vmatmul.msk.bf16.gmra.mxu2 %vm1742_vm3, %v1735_v31  ;;  %3340 = vmatmul.msk.bf16.gmra.mxu3 %vm1742_vm3, %v1735_v31  ;;  %v1875_v57 = vadd.f32 %v3770_v53, %v1874_v41 }
 0x9a0   :  { %v1761_v36 = vpop.f32.mrf.mxu2  ;;  %v1794_v8 = vpop.f32.mrf.mxu3 }
 0x9a8   :  { %v1763_v37 = vpop.f32.mrf.mxu2 }
 0x9a9   :  { %v1776_v26 = vpack.c.bf16 %v1763_v37, %v1761_v36 }
 0x9b0   :  { %v1766_v38 = vpop.f32.mrf.mxu2 }
 0x9b8   :  { %v1768_v39 = vpop.f32.mrf.mxu2 }
 0x9b9   :  { %v1777_v34 = vpack.c.bf16 %v1768_v39, %v1766_v38 }
 0x9c0   :  { %v1771_v20 = vpop.f32.mrf.mxu2 }
 0x9c8   :  { %v1773_v21 = vpop.f32.mrf.mxu2 }
 0x9c9   :  { %v1778_v24 = vpack.c.bf16 %v1773_v21, %v1771_v20 }
 0x9cb   :  { %1814 = vmatpush.bf16.msrb.mxu0 %v1778_v24 }
 0x9cf   :  { %1815 = vmatpush.bf16.msrb.mxu0 %v1777_v34 }
 0x9d3   :  { %1816 = vmatpush.bf16.msrb.mxu0 %v1776_v26 }
 0x9d6   :  { %3341 = vmatmul.msk.bf16.vlgmr.msrb.gmra.mxu0 %vm468_vm0, %v4403_v40  ;;  %v1796_v40 = vpop.f32.mrf.mxu3 }
 0x9d7   :  { %2004 = vmatpush.bf16.msra.mxu0 %v3366_v44 }
 0x9de   :  { %v1799_v56 = vpop.f32.mrf.mxu3 }
 0x9e6   :  { %3342 = vmatmul.msk.bf16.gmra.mxu0 %vm468_vm0, %v4416_v51  ;;  %v3771_v51 = vld [vmem:[%s4839_s9 + $0x1] ss:$0 sm:$0xff]  ;;  %v1801_v12 = vpop.f32.mrf.mxu3 }
 0x9ee   :  { %v1804_v31 = vpop.f32.mrf.mxu3 }
 0x9f6   :  { %3343 = vmatmul.msk.bf16.gmra.mxu0 %vm468_vm0, %v4423_v52  ;;  %v1876_v52 = vpop.f32.mrf.mxu1  ;;  %v1806_v26 = vpop.f32.mrf.mxu3 }
 0x9f7   :  { %v1877_v60 = vadd.f32 %v3770_v53, %v1876_v52 }
 0x9fe   :  { %v1879_v59 = vpop.f32.mrf.mxu1 }
 0x9ff   :  { %v1880_v4 = vadd.f32 %v3770_v53, %v1879_v59 }
 0xa06   :  { %v1881_v14 = vpop.f32.mrf.mxu1 }
 0xa07   :  { %v1882_v25 = vadd.f32 %v3770_v53, %v1881_v14 }
 0xa0e   :  { %v1884_v37 = vpop.f32.mrf.mxu1 }
 0xa0f   :  { %v1885_v33 = vadd.f32 %v3770_v53, %v1884_v37  ;;  %v2184_v37 = vunpack.c.h.bf16 %v4554_v18 }
 0xa16   :  { %v1886_v32 = vpop.f32.mrf.mxu1 }
 0xa17   :  { %v1887_v9 = vadd.f32 %v3770_v53, %v1886_v32 }
 0xa53   :  { %v1818_v42 = vpop.f32.mrf.mxu0 }
 0xa54   :  { %v1819_v50 = vadd.f32 %v1818_v42, %v1794_v8 }
 0xa56   :  { %v1835_v45 = vadd.f32 %v3771_v51, %v1819_v50 }
 0xa58   :  { %v1841_v54 = vmax.f32 %v1835_v45, 0.0 }
 0xa5a   :  { %v1889_v61 = vadd.f32 %v1875_v57, %v1841_v54 }
 0xa5b   :  { %v1820_v47 = vpop.f32.mrf.mxu0 }
 0xa5c   :  { %v1821_v55 = vadd.f32 %v1820_v47, %v1796_v40  ;;  %v1895_v1 = vmax.f32 %v1889_v61, 0.0  ;;  %v4522_v61 = vld [vmem:[%s4841_s11 + $0x8] sm:$0xff] }
 0xa5d   :  { %v2168_v15 = vunpack.c.h.bf16 %v4522_v61 }
 0xa5e   :  { %v1836_v58 = vadd.f32 %v3771_v51, %v1821_v55 }
 0xa60   :  { %v1842_v62 = vmax.f32 %v1836_v58, 0.0 }
 0xa62   :  { %v1890_v63 = vadd.f32 %v1877_v60, %v1842_v62  ;;  %v2115_v62 = vld [vmem:[%s4841_s11 + $0x20] sm:$0xff] }
 0xa63   :  { %v1823_v0 = vpop.f32.mrf.mxu0  ;;  %v2173_v16 = vunpack.c.l.bf16 %v2115_v62  ;;  %v2174_v17 = vunpack.c.h.bf16 %v2115_v62 }
 0xa64   :  { %v1896_v3 = vmax.f32 %v1890_v63, 0.0  ;;  %v1824_v5 = vadd.f32 %v1823_v0, %v1799_v56  ;;  %v4530_v63 = vld [vmem:[%s4841_s11 + $0x18] sm:$0xff] }
 0xa65   :  { %v4535_v0 = vld [vmem:[%s4841_s11 + $0x38] sm:$0xff]  ;;  %v2171_v19 = vunpack.c.l.bf16 %v4530_v63 }
 0xa66   :  { %v1901_v11 = vpack.c.bf16 %v1896_v3, %v1895_v1  ;;  %v1837_v13 = vadd.f32 %v3771_v51, %v1824_v5  ;;  %v2167_v5 = vunpack.c.l.bf16 %v4522_v61  ;;  %v2179_v23 = vunpack.c.l.bf16 %v4535_v0 }
 0xa68   :  { %3379 = vmatmul.msk.bf16.vlgmr.msrb.gmra.mxu2 %vm1742_vm3, %v1901_v11  ;;  %3382 = vmatmul.msk.bf16.vlgmr.msrb.gmra.mxu3 %vm1742_vm3, %v1901_v11  ;;  %v1843_v2 = vmax.f32 %v1837_v13, 0.0  ;;  %v4546_v13 = vld [vmem:[%s4841_s11 + $0x50] sm:$0xff] }
 0xa69   :  { %3385 = vmatmul.msk.bf16.vlgmr.msra.gmra.mxu0 %vm1742_vm3, %v1901_v11  ;;  %3388 = vmatmul.msk.bf16.vlgmr.msra.gmra.mxu1 %vm1742_vm3, %v1901_v11 }
 0xa6a   :  { %v1891_v28 = vadd.f32 %v1880_v4, %v1843_v2  ;;  %v2180_v2 = vunpack.c.h.bf16 %v4535_v0 }
 0xa6b   :  { %v1825_v22 = vpop.f32.mrf.mxu0 }
 0xa6c   :  { %v1826_v6 = vadd.f32 %v1825_v22, %v1801_v12  ;;  %v1897_v39 = vmax.f32 %v1891_v28, 0.0  ;;  %v4541_v12 = vld [vmem:[%s4841_s11 + $0x30] sm:$0xff]  ;;  %v2172_v22 = vunpack.c.h.bf16 %v4530_v63  ;;  %v2186_v28 = vunpack.c.h.bf16 %v4546_v13 }
 0xa6d   :  { %v2177_v4 = vunpack.c.l.bf16 %v4541_v12 }
 0xa6e   :  { %v1838_v10 = vadd.f32 %v3771_v51, %v1826_v6  ;;  %v2124_v6 = vld [vmem:[%s4841_s11 + $0x68] sm:$0xff] }
 0xa6f   :  { %v2192_v32 = vunpack.c.h.bf16 %v2124_v6 }
 0xa70   :  { %v1844_v30 = vmax.f32 %v1838_v10, 0.0  ;;  %v2178_v10 = vunpack.c.h.bf16 %v4541_v12  ;;  %v4636_v12 = vld [vmem:[%s4843_s13] sm:$0x1] }
 0xa72   :  { %v1892_v36 = vadd.f32 %v1882_v25, %v1844_v30  ;;  %v2185_v25 = vunpack.c.l.bf16 %v4546_v13  ;;  %v4570_v30 = vld [vmem:[%s4841_s11 + $0x60] sm:$0xff] }
 0xa73   :  { %v1828_v38 = vpop.f32.mrf.mxu0 }
 0xa74   :  { %v1898_v20 = vmax.f32 %v1892_v36, 0.0  ;;  %v1829_v21 = vadd.f32 %v1828_v38, %v1804_v31  ;;  %v2183_v36 = vunpack.c.l.bf16 %v4554_v18 }
 0xa76   :  { %v1902_v24 = vpack.c.bf16 %v1898_v20, %v1897_v39  ;;  %v1839_v34 = vadd.f32 %v3771_v51, %v1829_v21  ;;  %v2127_v21 = vld [vmem:[%s4841_s11 + $0x80] sm:$0xff] }
 0xa78   :  { %3380 = vmatmul.msk.bf16.gmra.mxu2 %vm1742_vm3, %v1902_v24  ;;  %3383 = vmatmul.msk.bf16.gmra.mxu3 %vm1742_vm3, %v1902_v24  ;;  %v1845_v35 = vmax.f32 %v1839_v34, 0.0 }
 0xa79   :  { %3386 = vmatmul.msk.bf16.gmra.mxu0 %vm1742_vm3, %v1902_v24  ;;  %3389 = vmatmul.msk.bf16.gmra.mxu1 %vm1742_vm3, %v1902_v24 }
 0xa7a   :  { %v1893_v43 = vadd.f32 %v1885_v33, %v1845_v35  ;;  %v2189_v33 = vunpack.c.l.bf16 %v4570_v30 }
 0xa7b   :  { %v1830_v29 = vpop.f32.mrf.mxu0 }
 0xa7c   :  { %v1831_v27 = vadd.f32 %v1830_v29, %v1806_v26  ;;  %v1899_v48 = vmax.f32 %v1893_v43, 0.0  ;;  %v2191_v29 = vunpack.c.l.bf16 %v2124_v6  ;;  %v2190_v43 = vunpack.c.h.bf16 %v4570_v30 }
 0xa7e   :  { %v1840_v7 = vadd.f32 %v3771_v51, %v1831_v27 }
 0xa80   :  { %v1846_v44 = vmax.f32 %v1840_v7, 0.0  ;;  %v2126_v7 = vld [vmem:[%s4841_s11 + $0x78] sm:$0xff] }
 0xa82   :  { %v1894_v46 = vadd.f32 %v1887_v9, %v1846_v44 }
 0xa84   :  { %v1900_v49 = vmax.f32 %v1894_v46, 0.0 }
 0xa86   :  { %v1903_v8 = vpack.c.bf16 %v1900_v49, %v1899_v48  ;;  %v2197_v48 = vunpack.c.l.bf16 %v2127_v21  ;;  %v2198_v49 = vunpack.c.h.bf16 %v2127_v21 }
 0xa88   :  { %3381 = vmatmul.msk.bf16.gmra.mxu2 %vm1742_vm3, %v1903_v8  ;;  %3384 = vmatmul.msk.bf16.gmra.mxu3 %vm1742_vm3, %v1903_v8 }
 0xa89   :  { %3387 = vmatmul.msk.bf16.gmra.mxu0 %vm1742_vm3, %v1903_v8  ;;  %3390 = vmatmul.msk.bf16.gmra.mxu1 %vm1742_vm3, %v1903_v8 }
 0xa98   :  { %3391 = vmatmul.msk.bf16.vlgmr.msra.gmra.mxu2 %vm1742_vm3, %v1901_v11  ;;  %3394 = vmatmul.msk.bf16.vlgmr.msra.gmra.mxu3 %vm1742_vm3, %v1901_v11 }
 0xaa8   :  { %3392 = vmatmul.msk.bf16.gmra.mxu2 %vm1742_vm3, %v1902_v24  ;;  %3395 = vmatmul.msk.bf16.gmra.mxu3 %vm1742_vm3, %v1902_v24 }
 0xab8   :  { %3393 = vmatmul.msk.bf16.gmra.mxu2 %vm1742_vm3, %v1903_v8  ;;  %3396 = vmatmul.msk.bf16.gmra.mxu3 %vm1742_vm3, %v1903_v8 }
 0xae6   :  { %v2006_v41 = vpop.f32.mrf.mxu0  ;;  %v2030_v40 = vpop.f32.mrf.mxu1 }
 0xae7   :  { %v4548_v14 = vpack.c.bf16 %v2030_v40, %v2006_v41 }
 0xae9   :  { %v2131_v24 = vunpack.c.l.bf16 %v4548_v14  ;;  %v2132_v34 = vunpack.c.h.bf16 %v4548_v14 }
 0xaeb   :  { %v1958_v42 = vpop.f32.mrf.mxu2  ;;  %v1982_v50 = vpop.f32.mrf.mxu3 }
 0xaec   :  { %v4579_v35 = vpack.c.bf16 %v1982_v50, %v1958_v42 }
 0xaee   :  { %v2008_v51 = vpop.f32.mrf.mxu0  ;;  %v2032_v52 = vpop.f32.mrf.mxu1 }
 0xaef   :  { %v2097_v11 = vpack.c.bf16 %v2032_v52, %v2008_v51 }
 0xaf1   :  { %v2137_v31 = vunpack.c.l.bf16 %v2097_v11  ;;  %v2138_v26 = vunpack.c.h.bf16 %v2097_v11 }
 0xaf3   :  { %v1960_v45 = vpop.f32.mrf.mxu2  ;;  %v1984_v53 = vpop.f32.mrf.mxu3  ;;  %v4586_v8 = vmul.f32 %v2173_v16, %v2137_v31  ;;  %v4588_v50 = vmul.f32 %v2174_v17, %v2138_v26 }
 0xaf4   :  { %v4590_v51 = vpack.c.bf16 %v1984_v53, %v1960_v45 }
 0xaf6   :  { %v2011_v47 = vpop.f32.mrf.mxu0  ;;  %v2035_v54 = vpop.f32.mrf.mxu1 }
 0xaf7   :  { %v2100_v9 = vpack.c.bf16 %v2035_v54, %v2011_v47 }
 0xafb   :  { %v4511_v55 = vpop.f32.mrf.mxu2  ;;  %v4513_v56 = vpop.f32.mrf.mxu3 }
 0xafc   :  { %v2099_v11 = vpack.c.bf16 %v4513_v56, %v4511_v55 }
 0xafe   :  { %v2013_v57 = vpop.f32.mrf.mxu0  ;;  %v2037_v58 = vpop.f32.mrf.mxu1 }
 0xaff   :  { %v2103_v27 = vpack.c.bf16 %v2037_v58, %v2013_v57  ;;  %v2195_v57 = vunpack.c.l.bf16 %v2126_v7 }
 0xb01   :  { %v2149_v58 = vunpack.c.l.bf16 %v2103_v27  ;;  %v2150_v62 = vunpack.c.h.bf16 %v2103_v27 }
 0xb03   :  { %v4515_v59 = vpop.f32.mrf.mxu2  ;;  %v4517_v60 = vpop.f32.mrf.mxu3  ;;  %v2221_v21 = vmul.f32 %v2185_v25, %v2149_v58  ;;  %v2222_v26 = vmul.f32 %v2186_v28, %v2150_v62  ;;  %v2111_v25 = vld [vmem:[%s4841_s11] sm:$0xff]  ;;  %v2130_v62 = vunpack.c.h.bf16 %v4579_v35 }
 0xb04   :  { %v2102_v13 = vpack.c.bf16 %v4517_v60, %v4515_v59 }
 0xb06   :  { %v2016_v1 = vpop.f32.mrf.mxu0  ;;  %v2040_v3 = vpop.f32.mrf.mxu1 }
 0xb07   :  { %v2106_v38 = vpack.c.bf16 %v2040_v3, %v2016_v1  ;;  %v2143_v1 = vunpack.c.l.bf16 %v2100_v9  ;;  %v2144_v3 = vunpack.c.h.bf16 %v2100_v9 }
 0xb09   :  { %v2155_v41 = vunpack.c.l.bf16 %v2106_v38  ;;  %v2156_v40 = vunpack.c.h.bf16 %v2106_v38  ;;  %v2215_v59 = vmul.f32 %v2179_v23, %v2143_v1  ;;  %v2216_v60 = vmul.f32 %v2180_v2, %v2144_v3 }
 0xb0b   :  { %v1968_v39 = vpop.f32.mrf.mxu2  ;;  %v1992_v20 = vpop.f32.mrf.mxu3  ;;  %v2227_v16 = vmul.f32 %v2191_v29, %v2155_v41  ;;  %v2228_v6 = vmul.f32 %v2192_v32, %v2156_v40  ;;  %v2141_v29 = vunpack.c.l.bf16 %v2099_v11  ;;  %v2142_v32 = vunpack.c.h.bf16 %v2099_v11  ;;  %v3717_v11 = vld [vmem:[%s4842_s12 + $0x38] sm:$0xff] }
 0xb0c   :  { %v2105_v52 = vpack.c.bf16 %v1992_v20, %v1968_v39  ;;  %v2196_v20 = vunpack.c.h.bf16 %v2126_v7  ;;  %v2135_v41 = vunpack.c.l.bf16 %v4590_v51  ;;  %v2136_v40 = vunpack.c.h.bf16 %v4590_v51 }
 0xb0d   :  { %v2245_v23 = vpack.c.bf16 %v2221_v21, %v2215_v59  ;;  %v2165_v51 = vunpack.c.l.bf16 %v2111_v25  ;;  %v2214_v14 = vmul.f32 %v2178_v10, %v2142_v32  ;;  %v3722_v21 = vld [vmem:[%s4842_s12 + $0x60] sm:$0xff] }
 0xb0e   :  { %v2018_v44 = vpop.f32.mrf.mxu0  ;;  %v2042_v46 = vpop.f32.mrf.mxu1  ;;  %v2153_v31 = vunpack.c.l.bf16 %v2105_v52  ;;  %v2154_v38 = vunpack.c.h.bf16 %v2105_v52 }
 0xb0f   :  { %v2109_v42 = vpack.c.bf16 %v2042_v46, %v2018_v44  ;;  %v2147_v44 = vunpack.c.l.bf16 %v2102_v13  ;;  %v2148_v46 = vunpack.c.h.bf16 %v2102_v13  ;;  %v3725_v13 = vld [vmem:[%s4842_s12 + $0x78] sm:$0xff] }
 0xb10   :  { %v2225_v28 = vmul.f32 %v2189_v33, %v2153_v31  ;;  %v2226_v7 = vmul.f32 %v2190_v43, %v2154_v38  ;;  %v2203_v33 = vmul.f32 %v2167_v5, %v2131_v24  ;;  %v2204_v43 = vmul.f32 %v2168_v15, %v2132_v34  ;;  %v2125_v38 = vld [vmem:[%s4841_s11 + $0x70] sm:$0xff] }
 0xb11   :  { %v2161_v47 = vunpack.c.l.bf16 %v2109_v42  ;;  %v2162_v54 = vunpack.c.h.bf16 %v2109_v42  ;;  %v2246_v42 = vpack.c.bf16 %v2222_v26, %v2216_v60  ;;  %v2219_v0 = vmul.f32 %v2183_v36, %v2147_v44  ;;  %v2119_v26 = vld [vmem:[%s4841_s11 + $0x40] sm:$0xff] }
 0xb12   :  { %v2220_v2 = vmul.f32 %v2184_v37, %v2148_v46  ;;  %v2129_v37 = vunpack.c.l.bf16 %v4579_v35  ;;  %v2213_v5 = vmul.f32 %v2177_v4, %v2141_v29  ;;  %v2239_v61 = vpack.c.bf16 %v4586_v8, %v2203_v33 }
 0xb13   :  { %v2233_v17 = vmul.f32 %v2197_v48, %v2161_v47  ;;  %v2234_v30 = vmul.f32 %v2198_v49, %v2162_v54  ;;  %v1970_v45 = vpop.f32.mrf.mxu2  ;;  %v1994_v53 = vpop.f32.mrf.mxu3  ;;  %v2240_v15 = vpack.c.bf16 %v4588_v50, %v2204_v43  ;;  %v2207_v24 = vmul.f32 %v2171_v19, %v2135_v41 }
 0xb14   :  { %v2108_v39 = vpack.c.bf16 %v1994_v53, %v1970_v45  ;;  %v2208_v34 = vmul.f32 %v2172_v22, %v2136_v40  ;;  %v2243_v47 = vpack.c.bf16 %v2219_v0, %v2213_v5  ;;  %v2244_v35 = vpack.c.bf16 %v2220_v2, %v2214_v14  ;;  %v3715_v45 = vld [vmem:[%s4842_s12 + $0x28] sm:$0xff]  ;;  %v3713_v40 = vld [vmem:[%s4842_s12 + $0x18] sm:$0xff] }
 0xb15   :  { %v2251_v27 = vpack.c.bf16 %v2233_v17, %v2227_v16  ;;  %v2252_v9 = vpack.c.bf16 %v2234_v30, %v2228_v6  ;;  %v2201_v4 = vmul.f32 %v2165_v51, %v2129_v37  ;;  %v3716_v16 = vld [vmem:[%s4842_s12 + $0x30] sm:$0xff]  ;;  %v3723_v53 = vld [vmem:[%s4842_s12 + $0x68] sm:$0xff]  ;;  %v2193_v46 = vunpack.c.l.bf16 %v2125_v38 }
 0xb16   :  { %v2159_v55 = vunpack.c.l.bf16 %v2108_v39  ;;  %v2160_v56 = vunpack.c.h.bf16 %v2108_v39  ;;  %v3724_v6 = vld [vmem:[%s4842_s12 + $0x70] sm:$0xff]  ;;  %v2128_v39 = vld [vmem:[%s4841_s11 + $0x88] sm:$0xff] }
 0xb17   :  { %2290 = vmatpush.bf16.msrb.mxu2 %v2251_v27  ;;  %2303 = vmatpush.bf16.msrb.mxu3 %v2252_v9  ;;  %v2237_v10 = vpack.c.bf16 %v2207_v24, %v2201_v4  ;;  %v2122_v9 = vld [vmem:[%s4841_s11 + $0x58] sm:$0xff]  ;;  %v2199_v60 = vunpack.c.l.bf16 %v2128_v39  ;;  %v2113_v37 = vld [vmem:[%s4841_s11 + $0x10] sm:$0xff] }
 0xb18   :  { %v2231_v48 = vmul.f32 %v2195_v57, %v2159_v55  ;;  %v2232_v49 = vmul.f32 %v2196_v20, %v2160_v56  ;;  %v2166_v57 = vunpack.c.h.bf16 %v2111_v25  ;;  %v3714_v20 = vld [vmem:[%s4842_s12 + $0x20] sm:$0xff]  ;;  %v2194_v55 = vunpack.c.h.bf16 %v2125_v38 }
 0xb19   :  { %v2188_v41 = vunpack.c.h.bf16 %v2122_v9 }
 0xb1a   :  { %v2249_v52 = vpack.c.bf16 %v2231_v48, %v2225_v28  ;;  %v2250_v58 = vpack.c.bf16 %v2232_v49, %v2226_v7  ;;  %v2202_v54 = vmul.f32 %v2166_v57, %v2130_v62  ;;  %v2200_v28 = vunpack.c.h.bf16 %v2128_v39 }
 0xb1b   :  { %2291 = vmatpush.bf16.msrb.mxu2 %v2245_v23  ;;  %2304 = vmatpush.bf16.msrb.mxu3 %v2246_v42  ;;  %v4617_v36 = vpop.f32.mrf.mxu2  ;;  %v4619_v18 = vpop.f32.mrf.mxu3  ;;  %v2181_v48 = vunpack.c.l.bf16 %v2119_v26  ;;  %v2187_v49 = vunpack.c.l.bf16 %v2122_v9  ;;  %v3721_v23 = vld [vmem:[%s4842_s12 + $0x58] sm:$0xff]  ;;  %v2116_v42 = vld [vmem:[%s4841_s11 + $0x28] sm:$0xff]  ;;  %v2182_v57 = vunpack.c.h.bf16 %v2119_v26  ;;  %v3748_v9 = vld [vmem:[%s4842_s12 + $0x130] sm:$0xff]  ;;  %s3800_s11 = smov [#allocation2]  }
 0xb1c   :  { %2264 = vmatpush.bf16.msrb.mxu0 %v2249_v52  ;;  %2277 = vmatpush.bf16.msrb.mxu1 %v2250_v58  ;;  %v2238_v8 = vpack.c.bf16 %v2208_v34, %v2202_v54  ;;  %v2095_v33 = vpack.c.bf16 %v4619_v18, %v4617_v36  ;;  %v2175_v34 = vunpack.c.l.bf16 %v2116_v42  ;;  %v3712_v36 = vld [vmem:[%s4842_s12 + $0x10] sm:$0xff]  ;;  %v3757_v26 = vld [vmem:[%s4842_s12 + $0x178] sm:$0xff] }
 0xb1d   :  { %v3720_v18 = vld [vmem:[%s4842_s12 + $0x50] sm:$0xff] }
 0xb1f   :  { %2292 = vmatpush.bf16.msrb.mxu2 %v2239_v61  ;;  %2305 = vmatpush.bf16.msrb.mxu3 %v2240_v15 }
 0xb20   :  { %2265 = vmatpush.bf16.msrb.mxu0 %v2243_v47  ;;  %2278 = vmatpush.bf16.msrb.mxu1 %v2244_v35  ;;  %v2176_v47 = vunpack.c.h.bf16 %v2116_v42  ;;  %v3752_v42 = vld [vmem:[%s4842_s12 + $0x150] sm:$0xff] }
 0xb22   :  { %3399 = vmatmul.msk.bf16.vlgmr.msrb.gmra.mxu2 %vm468_vm0, %v4636_v12  ;;  %3400 = vmatmul.msk.bf16.vlgmr.msrb.gmra.mxu3 %vm468_vm0, %v4636_v12 }
 0xb23   :  { %v2056_v63 = vpop.f32.mrf.mxu2  ;;  %v2080_v19 = vpop.f32.mrf.mxu3  ;;  %2731 = vmatpush.bf16.msra.mxu2 %v3717_v11  ;;  %2744 = vmatpush.bf16.msra.mxu3 %v3725_v13  ;;  %v3719_v11 = vld [vmem:[%s4842_s12 + $0x48] sm:$0xff] }
 0xb24   :  { %2266 = vmatpush.bf16.msrb.mxu0 %v2237_v10  ;;  %2279 = vmatpush.bf16.msrb.mxu1 %v2238_v8  ;;  %v2098_v7 = vpack.c.bf16 %v2080_v19, %v2056_v63  ;;  %v2169_v8 = vunpack.c.l.bf16 %v2113_v37  ;;  %v2170_v63 = vunpack.c.h.bf16 %v2113_v37  ;;  %v2133_v19 = vunpack.c.l.bf16 %v2095_v33  ;;  %v3735_v37 = vld [vmem:[%s4842_s12 + $0xc8] sm:$0xff] }
 0xb26   :  { %v2139_v15 = vunpack.c.l.bf16 %v2098_v7  ;;  %v2140_v24 = vunpack.c.h.bf16 %v2098_v7  ;;  %v3745_v7 = vld [vmem:[%s4842_s12 + $0x118] sm:$0xff] }
 0xb27   :  { %3397 = vmatmul.msk.bf16.vlgmr.msrb.gmra.mxu0 %vm468_vm0, %v4636_v12  ;;  %3398 = vmatmul.msk.bf16.vlgmr.msrb.gmra.mxu1 %vm468_vm0, %v4636_v12 }
 0xb28   :  { %2732 = vmatpush.bf16.msra.mxu2 %v3716_v16  ;;  %2745 = vmatpush.bf16.msra.mxu3 %v3724_v6  ;;  %v2211_v13 = vmul.f32 %v2175_v34, %v2139_v15  ;;  %v2212_v16 = vmul.f32 %v2176_v47, %v2140_v24  ;;  %v3734_v15 = vld [vmem:[%s4842_s12 + $0xc0] sm:$0xff] }
 0xb2b   :  { %v2059_v22 = vpop.f32.mrf.mxu2  ;;  %v2083_v50 = vpop.f32.mrf.mxu3 }
 0xb2c   :  { %2733 = vmatpush.bf16.msra.mxu2 %v3715_v45  ;;  %2746 = vmatpush.bf16.msra.mxu3 %v3723_v53  ;;  %v2101_v44 = vpack.c.bf16 %v2083_v50, %v2059_v22  ;;  %v2134_v22 = vunpack.c.h.bf16 %v2095_v33  ;;  %v3710_v53 = vld [vmem:[%s4842_s12] sm:$0xff] }
 0xb2e   :  { %v2145_v43 = vunpack.c.l.bf16 %v2101_v44  ;;  %v2146_v51 = vunpack.c.h.bf16 %v2101_v44  ;;  %v2206_v45 = vmul.f32 %v2170_v63, %v2134_v22  ;;  %v3732_v44 = vld [vmem:[%s4842_s12 + $0xb0] sm:$0xff] }
 0xb30   :  { %2734 = vmatpush.bf16.msra.mxu2 %v3714_v20  ;;  %2747 = vmatpush.bf16.msra.mxu3 %v3722_v21  ;;  %v2217_v50 = vmul.f32 %v2181_v48, %v2145_v43  ;;  %v2242_v39 = vpack.c.bf16 %v2212_v16, %v2206_v45  ;;  %v3749_v20 = vld [vmem:[%s4842_s12 + $0x138] sm:$0xff]  ;;  %v3758_v45 = vld [vmem:[%s4845_s15] sm:$0xff] }
 0xb31   :  { %v3733_v21 = vld [vmem:[%s4842_s12 + $0xb8] sm:$0xff] }
 0xb32   :  { %v3729_v48 = vld [vmem:[%s4842_s12 + $0x98] sm:$0xff] }
 0xb33   :  { %v2061_v1 = vpop.f32.mrf.mxu2  ;;  %v2085_v3 = vpop.f32.mrf.mxu3 }
 0xb34   :  { %v2104_v27 = vpack.c.bf16 %v2085_v3, %v2061_v1  ;;  %2735 = vmatpush.bf16.msra.mxu2 %v3713_v40  ;;  %2748 = vmatpush.bf16.msra.mxu3 %v3721_v23  ;;  %v2218_v1 = vmul.f32 %v2182_v57, %v2146_v51  ;;  %v3711_v3 = vld [vmem:[%s4842_s12 + $0x8] sm:$0xff]  ;;  %v3744_v40 = vld [vmem:[%s4842_s12 + $0x110] sm:$0xff] }
 0xb35   :  { %v3728_v23 = vld [vmem:[%s4842_s12 + $0x90] sm:$0xff] }
 0xb36   :  { %v2151_v0 = vunpack.c.l.bf16 %v2104_v27  ;;  %v2152_v2 = vunpack.c.h.bf16 %v2104_v27  ;;  %v3741_v27 = vld [vmem:[%s4842_s12 + $0xf8] sm:$0xff] }
 0xb38   :  { %v2223_v35 = vmul.f32 %v2187_v49, %v2151_v0  ;;  %v2224_v4 = vmul.f32 %v2188_v41, %v2152_v2  ;;  %2736 = vmatpush.bf16.msra.mxu2 %v3712_v36  ;;  %2749 = vmatpush.bf16.msra.mxu3 %v3720_v18  ;;  %v3753_v49 = vld [vmem:[%s4842_s12 + $0x158] sm:$0xff]  ;;  %v3736_v0 = vld [vmem:[%s4842_s12 + $0xd0] sm:$0xff]  ;;  %v3743_v2 = vld [vmem:[%s4842_s12 + $0x108] sm:$0xff] }
 0xb39   :  { %v3737_v41 = vld [vmem:[%s4842_s12 + $0xd8] sm:$0xff]  ;;  %v3742_v36 = vld [vmem:[%s4842_s12 + $0x100] sm:$0xff] }
 0xb3a   :  { %v2247_v6 = vpack.c.bf16 %v2223_v35, %v2217_v50  ;;  %v3750_v18 = vld [vmem:[%s4842_s12 + $0x140] sm:$0xff] }
 0xb3b   :  { %v2064_v17 = vpop.f32.mrf.mxu2  ;;  %v2088_v30 = vpop.f32.mrf.mxu3 }
 0xb3c   :  { %v2107_v31 = vpack.c.bf16 %v2088_v30, %v2064_v17  ;;  %v2248_v17 = vpack.c.bf16 %v2224_v4, %v2218_v1  ;;  %v2205_v30 = vmul.f32 %v2169_v8, %v2133_v19  ;;  %2737 = vmatpush.bf16.msra.mxu2 %v3711_v3  ;;  %2750 = vmatpush.bf16.msra.mxu3 %v3719_v11 }
 0xb3e   :  { %v2157_v29 = vunpack.c.l.bf16 %v2107_v31  ;;  %v2158_v32 = vunpack.c.h.bf16 %v2107_v31  ;;  %v3718_v31 = vld [vmem:[%s4842_s12 + $0x40] sm:$0xff]  ;;  %v2241_v38 = vpack.c.bf16 %v2211_v13, %v2205_v30  ;;  %v3759_v30 = vld [vmem:[%s4845_s15 + $0x8] sm:$0xff] }
 0xb40   :  { %v2229_v62 = vmul.f32 %v2193_v46, %v2157_v29  ;;  %v2230_v5 = vmul.f32 %v2194_v55, %v2158_v32  ;;  %2738 = vmatpush.bf16.msra.mxu2 %v3710_v53  ;;  %2751 = vmatpush.bf16.msra.mxu3 %v3718_v31  ;;  %v3756_v46 = vld [vmem:[%s4842_s12 + $0x170] sm:$0xff]  ;;  %v3746_v29 = vld [vmem:[%s4842_s12 + $0x120] sm:$0xff] }
 0xb41   :  { %v3740_v55 = vld [vmem:[%s4842_s12 + $0xf0] sm:$0xff]  ;;  %v3730_v32 = vld [vmem:[%s4842_s12 + $0xa0] sm:$0xff] }
 0xb42   :  { %v3772_v53 = vld [vmem:[%s4844_s14] ss:$0 sm:$0xff]  ;;  %s2854_s14 = sshll.u32 %s3800_s11, 4  ;;  %s2855_s14 = int_to_ptr.vmem [resolvable:$true] %s2854_s14 }
 0xb43   :  { %v2066_v56 = vpop.f32.mrf.mxu2  ;;  %v2090_v59 = vpop.f32.mrf.mxu3 }
 0xb44   :  { %v2110_v25 = vpack.c.bf16 %v2090_v59, %v2066_v56  ;;  %2783 = vmatpush.bf16.msrb.mxu2 %v3749_v20  ;;  %2796 = vmatpush.bf16.msrb.mxu3 %v3757_v26  ;;  %v3747_v56 = vld [vmem:[%s4842_s12 + $0x128] sm:$0xff] }
 0xb45   :  { %v3755_v59 = vld [vmem:[%s4842_s12 + $0x168] sm:$0xff] }
 0xb46   :  { %v2163_v52 = vunpack.c.l.bf16 %v2110_v25  ;;  %v2164_v58 = vunpack.c.h.bf16 %v2110_v25  ;;  %v3754_v25 = vld [vmem:[%s4842_s12 + $0x160] sm:$0xff] }
 0xb48   :  { %v2235_v14 = vmul.f32 %v2199_v60, %v2163_v52  ;;  %v2236_v61 = vmul.f32 %v2200_v28, %v2164_v58  ;;  %2784 = vmatpush.bf16.msrb.mxu2 %v3748_v9  ;;  %2797 = vmatpush.bf16.msrb.mxu3 %v3756_v46  ;;  %v3739_v60 = vld [vmem:[%s4842_s12 + $0xe8] sm:$0xff]  ;;  %v3738_v28 = vld [vmem:[%s4842_s12 + $0xe0] sm:$0xff] }
 0xb49   :  { %v3727_v52 = vld [vmem:[%s4842_s12 + $0x88] sm:$0xff] }
 0xb4a   :  { %v2253_v54 = vpack.c.bf16 %v2235_v14, %v2229_v62  ;;  %v2254_v10 = vpack.c.bf16 %v2236_v61, %v2230_v5  ;;  %v3751_v58 = vld [vmem:[%s4842_s12 + $0x148] sm:$0xff]  ;;  %v3726_v14 = vld [vmem:[%s4842_s12 + $0x80] sm:$0xff] }
 0xb4c   :  { %2316 = vmatpush.bf16.msra.mxu0 %v2253_v54  ;;  %2329 = vmatpush.bf16.msra.mxu1 %v2254_v10 }
 0xb4d   :  { %2785 = vmatpush.bf16.msrb.mxu2 %v3747_v56  ;;  %2798 = vmatpush.bf16.msrb.mxu3 %v3755_v59 }
 0xb50   :  { %2317 = vmatpush.bf16.msra.mxu0 %v2247_v6  ;;  %2330 = vmatpush.bf16.msra.mxu1 %v2248_v17 }
 0xb51   :  { %2786 = vmatpush.bf16.msrb.mxu2 %v3746_v29  ;;  %2799 = vmatpush.bf16.msrb.mxu3 %v3754_v25 }
 0xb54   :  { %2318 = vmatpush.bf16.msra.mxu0 %v2241_v38  ;;  %2331 = vmatpush.bf16.msra.mxu1 %v2242_v39 }
 0xb55   :  { %2787 = vmatpush.bf16.msrb.mxu2 %v3745_v7  ;;  %2800 = vmatpush.bf16.msrb.mxu3 %v3753_v49 }
 0xb57   :  { %3401 = vmatmul.msk.bf16.vlgmr.msra.gmra.mxu0 %vm468_vm0, %v4636_v12  ;;  %3402 = vmatmul.msk.bf16.vlgmr.msra.gmra.mxu1 %vm468_vm0, %v4636_v12  ;;  %v3731_v12 = vld [vmem:[%s4842_s12 + $0xa8] sm:$0xff] }
 0xb58   :  { %2757 = vmatpush.bf16.msrb.mxu0 %v3733_v21  ;;  %2770 = vmatpush.bf16.msrb.mxu1 %v3741_v27 }
 0xb59   :  { %2788 = vmatpush.bf16.msrb.mxu2 %v3744_v40  ;;  %2801 = vmatpush.bf16.msrb.mxu3 %v3752_v42 }
 0xb5c   :  { %2758 = vmatpush.bf16.msrb.mxu0 %v3732_v44  ;;  %2771 = vmatpush.bf16.msrb.mxu1 %v3740_v55 }
 0xb5d   :  { %2789 = vmatpush.bf16.msrb.mxu2 %v3743_v2  ;;  %2802 = vmatpush.bf16.msrb.mxu3 %v3751_v58 }
 0xb60   :  { %2759 = vmatpush.bf16.msrb.mxu0 %v3731_v12  ;;  %2772 = vmatpush.bf16.msrb.mxu1 %v3739_v60  ;;  %v3773_v12 = vld [vmem:[%s4846_s16] ss:$0 sm:$0xff] }
 0xb61   :  { %2790 = vmatpush.bf16.msrb.mxu2 %v3742_v36  ;;  %2803 = vmatpush.bf16.msrb.mxu3 %v3750_v18 }
 0xb64   :  { %2760 = vmatpush.bf16.msrb.mxu0 %v3730_v32  ;;  %2773 = vmatpush.bf16.msrb.mxu1 %v3738_v28 }
 0xb68   :  { %2761 = vmatpush.bf16.msrb.mxu0 %v3729_v48  ;;  %2774 = vmatpush.bf16.msrb.mxu1 %v3737_v41 }
 0xb6c   :  { %2762 = vmatpush.bf16.msrb.mxu0 %v3728_v23  ;;  %2775 = vmatpush.bf16.msrb.mxu1 %v3736_v0 }
 0xb70   :  { %2763 = vmatpush.bf16.msrb.mxu0 %v3727_v52  ;;  %2776 = vmatpush.bf16.msrb.mxu1 %v3735_v37 }
 0xb74   :  { %2764 = vmatpush.bf16.msrb.mxu0 %v3726_v14  ;;  %2777 = vmatpush.bf16.msrb.mxu1 %v3734_v15 }
 0xb78   :  { %2840 = vmatpush.bf16.msra.mxu0 %v3759_v30 }
 0xb7c   :  { %2841 = vmatpush.bf16.msra.mxu0 %v3758_v45 }
 0xba4   :  { %v2268_v33 = vpop.f32.mrf.mxu0  ;;  %v2281_v43 = vpop.f32.mrf.mxu1 }
 0xba5   :  { %v2337_v51 = vpack.c.bf16 %v2268_v33, %v2268_v33  ;;  %v2338_v57 = vpack.c.bf16 %v2281_v43, %v2281_v43  ;;  %v2294_v61 = vpop.f32.mrf.mxu2  ;;  %v2307_v34 = vpop.f32.mrf.mxu3 }
 0xba6   :  { %v2339_v24 = vpack.c.bf16 %v2294_v61, %v2294_v61  ;;  %v2340_v47 = vpack.c.bf16 %v2307_v34, %v2307_v34 }
 0xba7   :  { %2739 = vmatmul.bf16.vlgmr.msra.gmra.mxu2 %v2337_v51  ;;  %2752 = vmatmul.bf16.vlgmr.msra.gmra.mxu3 %v2338_v57 }
 0xba8   :  { %2765 = vmatmul.bf16.vlgmr.msrb.gmra.mxu0 %v2339_v24  ;;  %2778 = vmatmul.bf16.vlgmr.msrb.gmra.mxu1 %v2340_v47 }
 0xbac   :  { %v2270_v62 = vpop.f32.mrf.mxu0  ;;  %v2283_v5 = vpop.f32.mrf.mxu1 }
 0xbad   :  { %v2296_v35 = vpop.f32.mrf.mxu2  ;;  %v2309_v4 = vpop.f32.mrf.mxu3 }
 0xbd4   :  { %v2320_v54 = vpop.f32.mrf.mxu0  ;;  %v2333_v10 = vpop.f32.mrf.mxu1 }
 0xbd5   :  { %v2341_v8 = vpack.c.bf16 %v2320_v54, %v2320_v54  ;;  %v2342_v63 = vpack.c.bf16 %v2333_v10, %v2333_v10 }
 0xbd7   :  { %2791 = vmatmul.bf16.vlgmr.msrb.gmra.mxu2 %v2341_v8  ;;  %2804 = vmatmul.bf16.vlgmr.msrb.gmra.mxu3 %v2342_v63 }
 0xbdc   :  { %v2322_v19 = vpop.f32.mrf.mxu0  ;;  %v2335_v22 = vpop.f32.mrf.mxu1 }
 0xc25   :  { %v2766_v3 = vpop.f32.mrf.mxu0  ;;  %v2779_v11 = vpop.f32.mrf.mxu1 }
 0xc2a   :  { %v2740_v50 = vpop.f32.mrf.mxu2  ;;  %v2753_v1 = vpop.f32.mrf.mxu3 }
 0xc2b   :  { %v2741_v31 = vadd.f32 %v3772_v53, %v2740_v50 }
 0xc2d   :  { %v2768_v6 = vpop.f32.mrf.mxu0  ;;  %v2781_v17 = vpop.f32.mrf.mxu1  ;;  %v2754_v38 = vadd.f32 %v2753_v1, %v2741_v31 }
 0xc2f   :  { %v2767_v39 = vadd.f32 %v2766_v3, %v2754_v38 }
 0xc31   :  { %v2780_v20 = vadd.f32 %v2779_v11, %v2767_v39 }
 0xc32   :  { %v2742_v13 = vpop.f32.mrf.mxu2  ;;  %v2755_v16 = vpop.f32.mrf.mxu3 }
 0xc5a   :  { %v2792_v21 = vpop.f32.mrf.mxu2  ;;  %v2805_v26 = vpop.f32.mrf.mxu3 }
 0xc5b   :  { %v2793_v27 = vadd.f32 %v2792_v21, %v2780_v20 }
 0xc5d   :  { %v2806_v9 = vadd.f32 %v2805_v26, %v2793_v27 }
 0xc5f   :  { %v2809_v44 = vmax.f32 %v2806_v9, 0.0 }
 0xc61   :  { %v2810_v46 = vpack.c.bf16 %v2809_v44, %v2809_v44 }
 0xc62   :  { %v2794_v55 = vpop.f32.mrf.mxu2  ;;  %v2807_v56 = vpop.f32.mrf.mxu3 }
 0xc63   :  { %3603 = vmatmul.msk.bf16.vlgmr.msra.gmra.mxu0 %vm1075_vm2, %v2810_v46 }
 0xce0   :  { %v2843_v59 = vpop.f32.mrf.mxu0 }
 0xce1   :  { %v2844_v60 = vadd.f32 %v3773_v12, %v2843_v59 }
 0xce3   :  { %2848 = vst.msk [vmem:[#allocation2] sm:$0x3] %vm2847_vm4, %v2844_v60 }
 0xce4   :  { %2859 = dma.vmem_to_hbm [thread:$0]  %s2855_s14, 32, %s2857_s0, [#allocation3]  }
 0xce8   :  { %v2845_v29 = vpop.f32.mrf.mxu0 }
 0xce9   :  { %3798 = dma.done.wait [#allocation3], 32  }
 0xcea   :  { %3799 = vsyncadd [#allocation3], 4294967264 }
 0xceb   :  { %2864 = vsyncpa [#allocation3], 1 }

</bundles_post_ra>
